<compile_context>
chip_gen: v7x
topology: tpu7x:2x2x1
jax: 0.10.0
libtpu: 0.0.40
codegen_flags: <defaults>
</compile_context>

<pallas_src>
import functools

import jax
import jax.numpy as jnp
from jax.experimental import pallas as pl
from jax.experimental.pallas import tpu as pltpu


_LAYER_SHAPES = [(200, 3, 3, 3), (400, 200, 3, 3), (800, 400, 3, 3), (10, 800, 3, 3)]
_STRIDES = [2, 2, 2, 1]
_RELU = [True, True, True, False]


def _round_up(x, m):
    return (x + m - 1) // m * m


# ----------------------------------------------------------------------------
# Pallas kernel: Y = relu?(X @ W + b); whole X resident, grid over N tiles.
# ----------------------------------------------------------------------------
def _matmul_bias_kernel(x_ref, w_ref, b_ref, o_ref, *, relu):
    acc = jnp.dot(x_ref[...], w_ref[...], preferred_element_type=jnp.float32)
    acc = acc + b_ref[...]
    if relu:
        acc = jnp.maximum(acc, 0.0)
    o_ref[...] = acc.astype(o_ref.dtype)


def matmul_bias(x, w_p, b_p, n_out, *, relu, out_dtype):
    """x: (M, K) bf16 unpadded; w_p: (K, Np) bf16 (N pre-padded); b_p: (1, Np) f32.

    Returns (M, n_out) in `out_dtype`.  M and K blocks use the full-array-dim
    rule, so no host-side zero padding is needed for them.  X's index_map is
    constant along the N grid axis, so the pipeline DMAs it once and keeps it
    VMEM-resident across N tiles.
    """
    M, K = x.shape
    Kw, Np = w_p.shape
    assert K == Kw, (K, Kw)
    TN = 256 if Np % 256 == 0 else 128   # 2x256 MXU on v6e/v7x; 128 fine on v5e

    cost = pl.CostEstimate(
        flops=2 * M * K * Np,
        transcendentals=0,
        bytes_accessed=(M * K * 2 + K * Np * 2 + Np * 4
                        + M * Np * jnp.dtype(out_dtype).itemsize),
    )
    # TODO(synk): if batch size is ever raised, add an M grid axis (parallel)
    # so v7x's 2 TensorCores get balanced work and X never exceeds VMEM.
    out = pl.pallas_call(
        functools.partial(_matmul_bias_kernel, relu=relu),
        out_shape=jax.ShapeDtypeStruct((M, Np), out_dtype),
        grid=(Np // TN,),
        in_specs=[
            pl.BlockSpec((M, K), lambda j: (0, 0)),    # whole X, constant index
            pl.BlockSpec((K, TN), lambda j: (0, j)),   # W tiled over N
            pl.BlockSpec((1, TN), lambda j: (0, j)),   # bias tile
        ],
        out_specs=pl.BlockSpec((M, TN), lambda j: (0, j)),
        compiler_params=pltpu.CompilerParams(
            dimension_semantics=("parallel",)),
        cost_estimate=cost,
    )(x, w_p, b_p)
    return out[:, :n_out]


# ----------------------------------------------------------------------------
# SConv2dAvg forward (stochastic path), NHWC in / NHWC out.
# ----------------------------------------------------------------------------
def sconv2d_avg_nhwc(x, w_p, b_p, n_out, kh, kw, stride, offsets, *, relu,
                     out_dtype):
    B, H, W, C = x.shape
    Hs, Ws = H - kh + 1, W - kw + 1                      # stride-1 positions
    OH, OW = (H - kh) // stride + 1, (W - kw) // stride + 1

    base_r = jnp.arange(OH, dtype=jnp.int32)[None, :, None] * stride
    base_c = jnp.arange(OW, dtype=jnp.int32)[None, None, :] * stride
    if offsets is not None and stride > 1:
        dh, dw = offsets                                  # (B, OH, OW) each
        row = jnp.clip(base_r + dh, 0, Hs - 1)
        col = jnp.clip(base_c + dw, 0, Ws - 1)
    else:
        # TODO(synk): deterministic SConv2dAvg averages the stride-1 conv over
        # each stride block (AvgPool, ceil_mode); this fallback is the plain
        # strided conv (exact for stride == 1).
        row = jnp.broadcast_to(base_r, (B, OH, OW))
        col = jnp.broadcast_to(base_c, (B, OH, OW))

    # NHWC patch gather: C stays contiguous (lane axis), no transpose needed.
    # TODO(synk): a fully fused in-kernel gather (scalar-prefetched row/col +
    # manual DMA) would need ~M*kh tiny DMAs per layer; at M <= 450 the XLA
    # slice-gather below is cheaper, so the gather stays in plain JAX.
    bidx = jnp.arange(B, dtype=jnp.int32)[:, None, None, None, None]
    r = row[:, :, :, None, None] + jnp.arange(kh, dtype=jnp.int32)[:, None]
    c = col[:, :, :, None, None] + jnp.arange(kw, dtype=jnp.int32)[None, :]
    patches = x[bidx, r, c, :]                            # (B,OH,OW,kh,kw,C)
    M = B * OH * OW
    patches = patches.reshape(M, kh * kw * C)             # (kh,kw,C) fastest->C

    y = matmul_bias(patches, w_p, b_p, n_out, relu=relu, out_dtype=out_dtype)
    return y.reshape(B, OH, OW, n_out)                    # stay NHWC


# ----------------------------------------------------------------------------
# Parameters
# ----------------------------------------------------------------------------
def init_params(key):
    """PyTorch-like uniform init; raw (Cout, Cin, kh, kw) weights, (Cout,) bias."""
    params = []
    for i, s in enumerate(_LAYER_SHAPES):
        kw_, kb_ = jax.random.split(jax.random.fold_in(key, i))
        fan_in = s[1] * s[2] * s[3]
        bound = 1.0 / (fan_in ** 0.5)
        w = jax.random.uniform(kw_, s, jnp.float32, -bound, bound)
        b = jax.random.uniform(kb_, (s[0],), jnp.float32, -bound, bound)
        params.append((w, b))
    return params


def prepare_params(params):
    """One-time prep: flatten weights to (kh*kw*Cin, Cout), pad N, cast bf16."""
    prepped = []
    for (w, b) in params:
        Cout, Cin, kh, kw = w.shape
        K = kh * kw * Cin
        np128 = _round_up(Cout, 128)
        np256 = _round_up(Cout, 256)
        Np = np256 if np256 == np128 else np128           # 256-tile when free
        w_flat = w.transpose(2, 3, 1, 0).reshape(K, Cout).astype(jnp.bfloat16)
        w_p = jnp.zeros((K, Np), jnp.bfloat16).at[:, :Cout].set(w_flat)
        b_p = jnp.zeros((1, Np), jnp.float32).at[0, :Cout].set(
            b.astype(jnp.float32))
        prepped.append((w_p, b_p))
    return prepped


# ----------------------------------------------------------------------------
# Fused stochastic-offset sampling for all layers (single PRNG draw).
# ----------------------------------------------------------------------------
def _layer_spatial_dims(H, W):
    dims, h, w = [], H, W
    for (_, _, kh, kw), s in zip(_LAYER_SHAPES, _STRIDES):
        oh, ow = (h - kh) // s + 1, (w - kw) // s + 1
        dims.append((oh, ow))
        h, w = oh, ow
    return dims


def _sample_all_offsets(key, B, dims):
    sizes = [2 * B * oh * ow if s > 1 else 0
             for (oh, ow), s in zip(dims, _STRIDES)]
    total = sum(sizes)
    if total == 0:
        return [None] * len(dims)
    u = jax.random.uniform(key, (total,), jnp.float32)
    offsets, start = [], 0
    for (oh, ow), s, sz in zip(dims, _STRIDES, sizes):
        if sz == 0:
            offsets.append(None)
            continue
        blk = u[start:start + sz].reshape(2, B, oh, ow)
        start += sz
        d = jnp.minimum(jnp.floor(blk * s).astype(jnp.int32), s - 1)
        offsets.append((d[0], d[1]))
    return offsets


# ----------------------------------------------------------------------------
# MyLeNetMatStoch forward
# ----------------------------------------------------------------------------
def my_lenet_mat_stoch(prepped_params, x_nchw, key, stoch=True):
    """x_nchw: (B, 3, H, W) float32 (PyTorch layout). Returns (B, 10) float32."""
    B, _, H, W = x_nchw.shape
    x = jnp.transpose(x_nchw, (0, 2, 3, 1)).astype(jnp.bfloat16)  # NHWC, once

    dims = _layer_spatial_dims(H, W)
    offsets = _sample_all_offsets(key, B, dims) if stoch else [None] * len(dims)

    n_layers = len(_LAYER_SHAPES)
    for i in range(n_layers):
        Cout, _, kh, kw = _LAYER_SHAPES[i]
        w_p, b_p = prepped_params[i]
        out_dtype = jnp.bfloat16 if i < n_layers - 1 else jnp.float32
        x = sconv2d_avg_nhwc(x, w_p, b_p, Cout, kh, kw, _STRIDES[i],
                             offsets[i], relu=_RELU[i], out_dtype=out_dtype)
    return x.reshape(B, -1)                               # out.view(B, -1)


if __name__ == "__main__":
    root = jax.random.PRNGKey(0)
    k_x, k_params, k_stoch = jax.random.split(root, 3)

    # Input consistent with the module: the final 3x3 / stride-1 conv needs a
    # 3x3 feature map, which a 32x32 input produces.
    x = jax.random.normal(k_x, (2, 3, 32, 32), jnp.float32)
    params = init_params(k_params)
    prepped = prepare_params(params)          # one-time weight prep (pad/cast)

    fwd = jax.jit(my_lenet_mat_stoch, static_argnames=("stoch",))
    logits = fwd(prepped, x, k_stoch, stoch=True)
    logits = jax.block_until_ready(logits)

    assert logits.shape == (2, 10), logits.shape
    assert bool(jnp.all(jnp.isfinite(logits)))
    print("KERNEL_OK")
</pallas_src>

<mosaic_0001>
module attributes {stable_mosaic.version = 11 : i64} {
  func.func @_matmul_bias_kernel(%arg0: i32, %arg1: memref<450x27xbf16, #tpu.memory_space<vmem>>, %arg2: memref<27x256xbf16, #tpu.memory_space<vmem>>, %arg3: memref<1x256xf32, #tpu.memory_space<vmem>>, %arg4: memref<450x256xbf16, #tpu.memory_space<vmem>>) attributes {dimension_semantics = [#tpu.dimension_semantics<parallel>], iteration_bounds = array<i64: 1>, scalar_prefetch = 0 : i64, scratch_operands = 0 : i64, tpu.core_type = #tpu.core_type<tc>, window_params = [{pipeline_mode = #tpu.pipeline_mode<synchronous>, transform_indices = @transform_0, window_bounds = array<i64: 450, 27>}, {transform_indices = @transform_1, window_bounds = array<i64: 27, 256>}, {transform_indices = @transform_2, window_bounds = array<i64: 1, 256>}, {transform_indices = @transform_3, window_bounds = array<i64: 450, 256>}]} {
    %c0 = arith.constant 0 : index
    %c0_0 = arith.constant 0 : index
    %0 = vector.load %arg1[%c0, %c0_0] : memref<450x27xbf16, #tpu.memory_space<vmem>>, vector<450x27xbf16>
    %c0_1 = arith.constant 0 : index
    %c0_2 = arith.constant 0 : index
    %1 = vector.load %arg2[%c0_1, %c0_2] : memref<27x256xbf16, #tpu.memory_space<vmem>>, vector<27x256xbf16>
    %cst = arith.constant dense<0.000000e+00> : vector<450x256xf32>
    %2 = tpu.matmul %0, %1, %cst {dimension_numbers = #tpu.dot_dimension_numbers<[1], [0], [0], [1], [0, 0, 1, 1], [], []>} : vector<450x27xbf16>, vector<27x256xbf16>, vector<450x256xf32> -> vector<450x256xf32>
    %c0_3 = arith.constant 0 : index
    %c0_4 = arith.constant 0 : index
    %3 = vector.load %arg3[%c0_3, %c0_4] : memref<1x256xf32, #tpu.memory_space<vmem>>, vector<1x256xf32>
    %4 = vector.broadcast %3 : vector<1x256xf32> to vector<450x256xf32>
    %5 = arith.addf %2, %4 : vector<450x256xf32>
    %cst_5 = arith.constant 0.000000e+00 : f32
    %6 = vector.broadcast %cst_5 : f32 to vector<450x256xf32>
    %7 = arith.maximumf %5, %6 : vector<450x256xf32>
    %8 = arith.truncf %7 : vector<450x256xf32> to vector<450x256xbf16>
    %c0_6 = arith.constant 0 : index
    %c0_7 = arith.constant 0 : index
    %9 = vector.load %arg4[%c0_6, %c0_7] : memref<450x256xbf16, #tpu.memory_space<vmem>>, vector<450x256xbf16>
    tpu.vector_store %arg4[%c0_6, %c0_7], %8 {strides = array<i32>} : memref<450x256xbf16, #tpu.memory_space<vmem>>, vector<450x256xbf16>,
    return
  }
  func.func @transform_0(%arg0: i32) -> (i32, i32) {
    %c0_i32 = arith.constant 0 : i32
    %c0_i32_0 = arith.constant 0 : i32
    %c0_i32_1 = arith.constant 0 : i32
    return %c0_i32, %c0_i32_0 : i32, i32
  }
  func.func @transform_1(%arg0: i32) -> (i32, i32) {
    %c0_i32 = arith.constant 0 : i32
    %c0_i32_0 = arith.constant 0 : i32
    return %c0_i32, %arg0 : i32, i32
  }
  func.func @transform_2(%arg0: i32) -> (i32, i32) {
    %c0_i32 = arith.constant 0 : i32
    %c0_i32_0 = arith.constant 0 : i32
    return %c0_i32, %arg0 : i32, i32
  }
  func.func @transform_3(%arg0: i32) -> (i32, i32) {
    %c0_i32 = arith.constant 0 : i32
    %c0_i32_0 = arith.constant 0 : i32
    return %c0_i32, %arg0 : i32, i32
  }
}

module attributes {stable_mosaic.version = 11 : i64} {
  func.func @_matmul_bias_kernel(%arg0: i32, %arg1: memref<98x1800xbf16, #tpu.memory_space<vmem>>, %arg2: memref<1800x256xbf16, #tpu.memory_space<vmem>>, %arg3: memref<1x256xf32, #tpu.memory_space<vmem>>, %arg4: memref<98x256xbf16, #tpu.memory_space<vmem>>) attributes {dimension_semantics = [#tpu.dimension_semantics<parallel>], iteration_bounds = array<i64: 2>, scalar_prefetch = 0 : i64, scratch_operands = 0 : i64, tpu.core_type = #tpu.core_type<tc>, window_params = [{pipeline_mode = #tpu.pipeline_mode<synchronous>, transform_indices = @transform_0, window_bounds = array<i64: 98, 1800>}, {transform_indices = @transform_1, window_bounds = array<i64: 1800, 256>}, {transform_indices = @transform_2, window_bounds = array<i64: 1, 256>}, {transform_indices = @transform_3, window_bounds = array<i64: 98, 256>}]} {
    %c0 = arith.constant 0 : index
    %c0_0 = arith.constant 0 : index
    %0 = vector.load %arg1[%c0, %c0_0] : memref<98x1800xbf16, #tpu.memory_space<vmem>>, vector<98x1800xbf16>
    %c0_1 = arith.constant 0 : index
    %c0_2 = arith.constant 0 : index
    %1 = vector.load %arg2[%c0_1, %c0_2] : memref<1800x256xbf16, #tpu.memory_space<vmem>>, vector<1800x256xbf16>
    %cst = arith.constant dense<0.000000e+00> : vector<98x256xf32>
    %2 = tpu.matmul %0, %1, %cst {dimension_numbers = #tpu.dot_dimension_numbers<[1], [0], [0], [1], [0, 0, 1, 1], [], []>} : vector<98x1800xbf16>, vector<1800x256xbf16>, vector<98x256xf32> -> vector<98x256xf32>
    %c0_3 = arith.constant 0 : index
    %c0_4 = arith.constant 0 : index
    %3 = vector.load %arg3[%c0_3, %c0_4] : memref<1x256xf32, #tpu.memory_space<vmem>>, vector<1x256xf32>
    %4 = vector.broadcast %3 : vector<1x256xf32> to vector<98x256xf32>
    %5 = arith.addf %2, %4 : vector<98x256xf32>
    %cst_5 = arith.constant 0.000000e+00 : f32
    %6 = vector.broadcast %cst_5 : f32 to vector<98x256xf32>
    %7 = arith.maximumf %5, %6 : vector<98x256xf32>
    %8 = arith.truncf %7 : vector<98x256xf32> to vector<98x256xbf16>
    %c0_6 = arith.constant 0 : index
    %c0_7 = arith.constant 0 : index
    %9 = vector.load %arg4[%c0_6, %c0_7] : memref<98x256xbf16, #tpu.memory_space<vmem>>, vector<98x256xbf16>
    tpu.vector_store %arg4[%c0_6, %c0_7], %8 {strides = array<i32>} : memref<98x256xbf16, #tpu.memory_space<vmem>>, vector<98x256xbf16>,
    return
  }
  func.func @transform_0(%arg0: i32) -> (i32, i32) {
    %c0_i32 = arith.constant 0 : i32
    %c0_i32_0 = arith.constant 0 : i32
    %c0_i32_1 = arith.constant 0 : i32
    return %c0_i32, %c0_i32_0 : i32, i32
  }
  func.func @transform_1(%arg0: i32) -> (i32, i32) {
    %c0_i32 = arith.constant 0 : i32
    %c0_i32_0 = arith.constant 0 : i32
    return %c0_i32, %arg0 : i32, i32
  }
  func.func @transform_2(%arg0: i32) -> (i32, i32) {
    %c0_i32 = arith.constant 0 : i32
    %c0_i32_0 = arith.constant 0 : i32
    return %c0_i32, %arg0 : i32, i32
  }
  func.func @transform_3(%arg0: i32) -> (i32, i32) {
    %c0_i32 = arith.constant 0 : i32
    %c0_i32_0 = arith.constant 0 : i32
    return %c0_i32, %arg0 : i32, i32
  }
}

module attributes {stable_mosaic.version = 11 : i64} {
  func.func @_matmul_bias_kernel(%arg0: i32, %arg1: memref<18x3600xbf16, #tpu.memory_space<vmem>>, %arg2: memref<3600x128xbf16, #tpu.memory_space<vmem>>, %arg3: memref<1x128xf32, #tpu.memory_space<vmem>>, %arg4: memref<18x128xbf16, #tpu.memory_space<vmem>>) attributes {dimension_semantics = [#tpu.dimension_semantics<parallel>], iteration_bounds = array<i64: 7>, scalar_prefetch = 0 : i64, scratch_operands = 0 : i64, tpu.core_type = #tpu.core_type<tc>, window_params = [{pipeline_mode = #tpu.pipeline_mode<synchronous>, transform_indices = @transform_0, window_bounds = array<i64: 18, 3600>}, {transform_indices = @transform_1, window_bounds = array<i64: 3600, 128>}, {transform_indices = @transform_2, window_bounds = array<i64: 1, 128>}, {transform_indices = @transform_3, window_bounds = array<i64: 18, 128>}]} {
    %c0 = arith.constant 0 : index
    %c0_0 = arith.constant 0 : index
    %0 = vector.load %arg1[%c0, %c0_0] : memref<18x3600xbf16, #tpu.memory_space<vmem>>, vector<18x3600xbf16>
    %c0_1 = arith.constant 0 : index
    %c0_2 = arith.constant 0 : index
    %1 = vector.load %arg2[%c0_1, %c0_2] : memref<3600x128xbf16, #tpu.memory_space<vmem>>, vector<3600x128xbf16>
    %cst = arith.constant dense<0.000000e+00> : vector<18x128xf32>
    %2 = tpu.matmul %0, %1, %cst {dimension_numbers = #tpu.dot_dimension_numbers<[1], [0], [0], [1], [0, 0, 1, 1], [], []>} : vector<18x3600xbf16>, vector<3600x128xbf16>, vector<18x128xf32> -> vector<18x128xf32>
    %c0_3 = arith.constant 0 : index
    %c0_4 = arith.constant 0 : index
    %3 = vector.load %arg3[%c0_3, %c0_4] : memref<1x128xf32, #tpu.memory_space<vmem>>, vector<1x128xf32>
    %4 = vector.broadcast %3 : vector<1x128xf32> to vector<18x128xf32>
    %5 = arith.addf %2, %4 : vector<18x128xf32>
    %cst_5 = arith.constant 0.000000e+00 : f32
    %6 = vector.broadcast %cst_5 : f32 to vector<18x128xf32>
    %7 = arith.maximumf %5, %6 : vector<18x128xf32>
    %8 = arith.truncf %7 : vector<18x128xf32> to vector<18x128xbf16>
    %c0_6 = arith.constant 0 : index
    %c0_7 = arith.constant 0 : index
    %9 = vector.load %arg4[%c0_6, %c0_7] : memref<18x128xbf16, #tpu.memory_space<vmem>>, vector<18x128xbf16>
    tpu.vector_store %arg4[%c0_6, %c0_7], %8 {strides = array<i32>} : memref<18x128xbf16, #tpu.memory_space<vmem>>, vector<18x128xbf16>,
    return
  }
  func.func @transform_0(%arg0: i32) -> (i32, i32) {
    %c0_i32 = arith.constant 0 : i32
    %c0_i32_0 = arith.constant 0 : i32
    %c0_i32_1 = arith.constant 0 : i32
    return %c0_i32, %c0_i32_0 : i32, i32
  }
  func.func @transform_1(%arg0: i32) -> (i32, i32) {
    %c0_i32 = arith.constant 0 : i32
    %c0_i32_0 = arith.constant 0 : i32
    return %c0_i32, %arg0 : i32, i32
  }
  func.func @transform_2(%arg0: i32) -> (i32, i32) {
    %c0_i32 = arith.constant 0 : i32
    %c0_i32_0 = arith.constant 0 : i32
    return %c0_i32, %arg0 : i32, i32
  }
  func.func @transform_3(%arg0: i32) -> (i32, i32) {
    %c0_i32 = arith.constant 0 : i32
    %c0_i32_0 = arith.constant 0 : i32
    return %c0_i32, %arg0 : i32, i32
  }
}

module attributes {stable_mosaic.version = 11 : i64} {
  func.func @_matmul_bias_kernel(%arg0: i32, %arg1: memref<2x7200xbf16, #tpu.memory_space<vmem>>, %arg2: memref<7200x128xbf16, #tpu.memory_space<vmem>>, %arg3: memref<1x128xf32, #tpu.memory_space<vmem>>, %arg4: memref<2x128xf32, #tpu.memory_space<vmem>>) attributes {dimension_semantics = [#tpu.dimension_semantics<parallel>], iteration_bounds = array<i64: 1>, scalar_prefetch = 0 : i64, scratch_operands = 0 : i64, tpu.core_type = #tpu.core_type<tc>, window_params = [{pipeline_mode = #tpu.pipeline_mode<synchronous>, transform_indices = @transform_0, window_bounds = array<i64: 2, 7200>}, {transform_indices = @transform_1, window_bounds = array<i64: 7200, 128>}, {transform_indices = @transform_2, window_bounds = array<i64: 1, 128>}, {transform_indices = @transform_3, window_bounds = array<i64: 2, 128>}]} {
    %c0 = arith.constant 0 : index
    %c0_0 = arith.constant 0 : index
    %0 = vector.load %arg1[%c0, %c0_0] : memref<2x7200xbf16, #tpu.memory_space<vmem>>, vector<2x7200xbf16>
    %c0_1 = arith.constant 0 : index
    %c0_2 = arith.constant 0 : index
    %1 = vector.load %arg2[%c0_1, %c0_2] : memref<7200x128xbf16, #tpu.memory_space<vmem>>, vector<7200x128xbf16>
    %cst = arith.constant dense<0.000000e+00> : vector<2x128xf32>
    %2 = tpu.matmul %0, %1, %cst {dimension_numbers = #tpu.dot_dimension_numbers<[1], [0], [0], [1], [0, 0, 1, 1], [], []>} : vector<2x7200xbf16>, vector<7200x128xbf16>, vector<2x128xf32> -> vector<2x128xf32>
    %c0_3 = arith.constant 0 : index
    %c0_4 = arith.constant 0 : index
    %3 = vector.load %arg3[%c0_3, %c0_4] : memref<1x128xf32, #tpu.memory_space<vmem>>, vector<1x128xf32>
    %4 = vector.broadcast %3 : vector<1x128xf32> to vector<2x128xf32>
    %5 = arith.addf %2, %4 : vector<2x128xf32>
    %c0_5 = arith.constant 0 : index
    %c0_6 = arith.constant 0 : index
    %6 = vector.load %arg4[%c0_5, %c0_6] : memref<2x128xf32, #tpu.memory_space<vmem>>, vector<2x128xf32>
    tpu.vector_store %arg4[%c0_5, %c0_6], %5 {strides = array<i32>} : memref<2x128xf32, #tpu.memory_space<vmem>>, vector<2x128xf32>,
    return
  }
  func.func @transform_0(%arg0: i32) -> (i32, i32) {
    %c0_i32 = arith.constant 0 : i32
    %c0_i32_0 = arith.constant 0 : i32
    %c0_i32_1 = arith.constant 0 : i32
    return %c0_i32, %c0_i32_0 : i32, i32
  }
  func.func @transform_1(%arg0: i32) -> (i32, i32) {
    %c0_i32 = arith.constant 0 : i32
    %c0_i32_0 = arith.constant 0 : i32
    return %c0_i32, %arg0 : i32, i32
  }
  func.func @transform_2(%arg0: i32) -> (i32, i32) {
    %c0_i32 = arith.constant 0 : i32
    %c0_i32_0 = arith.constant 0 : i32
    return %c0_i32, %arg0 : i32, i32
  }
  func.func @transform_3(%arg0: i32) -> (i32, i32) {
    %c0_i32 = arith.constant 0 : i32
    %c0_i32_0 = arith.constant 0 : i32
    return %c0_i32, %arg0 : i32, i32
  }
}

</mosaic_0001>

<bundles_post_ra>
// kernel: my_lenet_mat_stoch.4
= control target key start
LH: loop header
LB: loop body
LE: loop exit
PB: predicated region body
PF: predicated region fallthrough
CT: control target
= control target key end

     0   :  { %vm337_vm0 = vcmask 1044480   ;;  %vm338_vm1 = vcmask 1045504   ;;  %v1404_v1 = vmov 65535   ;;  %v1405_v3 = vmov 0   ;;  %s1875_s1 = inlined_call_operand.vmem [shape: bf16[27,256], index: 1, kind: input, shape index: {}]   ;;  %s1876_s0 = inlined_call_operand.vmem [shape: bf16[450,27], index: 0, kind: input, shape index: {}]   ;;  %s1877_s2 = inlined_call_operand.vmem [shape: f32[1,256], index: 2, kind: input, shape index: {}]   ;;  %s1878_s3 = inlined_call_operand.vmem [shape: bf16[450,256], index: 3, kind: output, shape index: {}]  }
   0x1   :  { %v1369_v0 = vld [vmem:[%s1875_s1 + $0x4] ss:$8 sps:$4 sm:$0xff]   ;;  %v339_v2 = vsel %vm337_vm0, 4294967295, %v1404_v1  ;;  %379 = vmatprep.mubr.bf16.mxu0 %v1405_v3  ;;  %529 = vmatprep.mubr.bf16.mxu1 %v1405_v3  ;;  %v1371_v4 = vld [vmem:[%s1875_s1] ss:$8 sps:$4 sm:$0xff]   ;;  %v1376_v11 = vld [vmem:[%s1876_s0 + $0x78] sm:$0xff]   ;;  %v78_v39 = vlaneseq }
   0x2   :  { %v340_v5 = vsel %vm338_vm1, %v339_v2, 0  ;;  %347 = vmatprep.subr.bf16.mxu0 %v1369_v0  ;;  %v1372_v6 = vld [vmem:[%s1875_s1 + $0x14] ss:$8 sps:$4 sm:$0x3f]   ;;  %1363 = vmatprep.subr.bf16.mxu1 %v1369_v0  ;;  %v1375_v10 = vld [vmem:[%s1876_s0] sm:$0xff]   ;;  %vm249_vm2 = vcmask 220160  }
   0x3   :  { %v1374_v7 = vld [vmem:[%s1875_s1 + $0x10] ss:$8 sps:$4 sm:$0x3f]   ;;  %348 = vmatpush1.bf16.msra.mxu0 %v1371_v4  ;;  %1365 = vmatpush1.bf16.msra.mxu1 %v1371_v4  ;;  %v345_v8 = vand.u32 %v1372_v6, %v340_v5  ;;  %v1377_v12 = vld [vmem:[%s1876_s0 + $0x8] sm:$0xff]   ;;  %v1378_v13 = vld [vmem:[%s1876_s0 + $0x80] sm:$0xff]   ;;  %v79_v40 = vshrl.u32 %v78_v39, 7 }
   0x4   :  { %v342_v9 = vand.u32 %v1374_v7, %v340_v5  ;;  %v1379_v14 = vld [vmem:[%s1876_s0 + $0x10] sm:$0xff]   ;;  %v1380_v15 = vld [vmem:[%s1876_s0 + $0x88] sm:$0xff]   ;;  %v1381_v16 = vld [vmem:[%s1876_s0 + $0x18] sm:$0xff]  }
   0x5   :  { %349 = vmatprep.subr.bf16.mxu0 %v345_v8  ;;  %1364 = vmatprep.subr.bf16.mxu1 %v345_v8  ;;  %v1382_v17 = vld [vmem:[%s1876_s0 + $0x90] sm:$0xff]   ;;  %v1383_v18 = vld [vmem:[%s1876_s0 + $0x20] sm:$0xff]   ;;  %v1384_v19 = vld [vmem:[%s1876_s0 + $0x98] sm:$0xff]   ;;  %v80_v41 = vsub.s32 0, %v79_v40  ;;  %v84_v43 = vsub.s32 1, %v79_v40 }
   0x6   :  { %v1385_v20 = vld [vmem:[%s1876_s0 + $0x28] sm:$0xff]   ;;  %v1386_v21 = vld [vmem:[%s1876_s0 + $0xa0] sm:$0xff]   ;;  %v1387_v22 = vld [vmem:[%s1876_s0 + $0x30] sm:$0xff]  }
   0x7   :  { %350 = vmatpush1.bf16.msra.mxu0 %v342_v9  ;;  %1366 = vmatpush1.bf16.msra.mxu1 %v342_v9  ;;  %v1388_v23 = vld [vmem:[%s1876_s0 + $0xa8] sm:$0xff]   ;;  %v1389_v24 = vld [vmem:[%s1876_s0 + $0x38] sm:$0xff]   ;;  %v1390_v25 = vld [vmem:[%s1876_s0 + $0xb0] sm:$0xff]  }
   0x8   :  { %v1391_v26 = vld [vmem:[%s1876_s0 + $0x40] sm:$0xff]   ;;  %v1392_v27 = vld [vmem:[%s1876_s0 + $0xb8] sm:$0xff]   ;;  %v1393_v28 = vld [vmem:[%s1876_s0 + $0x48] sm:$0xff]  }
   0x9   :  { %v1394_v29 = vld [vmem:[%s1876_s0 + $0xc0] sm:$0xff]   ;;  %v1395_v30 = vld [vmem:[%s1876_s0 + $0x50] sm:$0xff]   ;;  %v1396_v31 = vld [vmem:[%s1876_s0 + $0xc8] sm:$0xff]  }
   0xa   :  { %1220 = vmatmul.mubr.msk.bf16.vlgmr.msra.gmra.mrb[0].mxu0 %vm249_vm2, %v1375_v10  ;;  %1235 = vmatmul.mubr.msk.bf16.vlgmr.msra.gmra.mrb[0].mxu1 %vm249_vm2, %v1376_v11  ;;  %v1397_v32 = vld [vmem:[%s1876_s0 + $0x58] sm:$0xff]   ;;  %v1398_v33 = vld [vmem:[%s1876_s0 + $0xd0] sm:$0xff]   ;;  %v1399_v34 = vld [vmem:[%s1876_s0 + $0x60] sm:$0xff]  }
   0xb   :  { %389 = vmatprep.mubr.bf16.mxu0 %v1405_v3  ;;  %539 = vmatprep.mubr.bf16.mxu1 %v1405_v3  ;;  %v1400_v35 = vld [vmem:[%s1876_s0 + $0xd8] sm:$0xff]   ;;  %v1401_v36 = vld [vmem:[%s1876_s0 + $0x68] sm:$0xff]   ;;  %v1402_v37 = vld [vmem:[%s1876_s0 + $0xe0] ss:$0 sps:$4 sm:$0x11]  }
   0xc   :  { %v1403_v38 = vld [vmem:[%s1876_s0 + $0x70] sm:$0xff]   ;;  %v76_v42 = vld [vmem:[%s1877_s2] sm:$0x3] }
   0xd   :  { %v1586_v44 = vrot.slane %v76_v42, %v80_v41  ;;  %v1588_v45 = vrot.slane %v76_v42, %v84_v43 }
  0x12   :  { %1221 = vmatmul.mubr.msk.bf16.gmra.mrb[4].mxu0 %vm249_vm2, %v1377_v12  ;;  %1236 = vmatmul.mubr.msk.bf16.gmra.mrb[4].mxu1 %vm249_vm2, %v1378_v13 }
  0x13   :  { %399 = vmatprep.mubr.bf16.mxu0 %v1405_v3  ;;  %549 = vmatprep.mubr.bf16.mxu1 %v1405_v3 }
  0x1a   :  { %1222 = vmatmul.mubr.msk.bf16.gmra.mrb[8].mxu0 %vm249_vm2, %v1379_v14  ;;  %1237 = vmatmul.mubr.msk.bf16.gmra.mrb[8].mxu1 %vm249_vm2, %v1380_v15 }
  0x1b   :  { %409 = vmatprep.mubr.bf16.mxu0 %v1405_v3  ;;  %559 = vmatprep.mubr.bf16.mxu1 %v1405_v3 }
  0x22   :  { %1223 = vmatmul.mubr.msk.bf16.gmra.mrb[12].mxu0 %vm249_vm2, %v1381_v16  ;;  %1238 = vmatmul.mubr.msk.bf16.gmra.mrb[12].mxu1 %vm249_vm2, %v1382_v17 }
  0x23   :  { %419 = vmatprep.mubr.bf16.mxu0 %v1405_v3  ;;  %569 = vmatprep.mubr.bf16.mxu1 %v1405_v3 }
  0x2a   :  { %1224 = vmatmul.mubr.msk.bf16.gmra.mrb[16].mxu0 %vm249_vm2, %v1383_v18  ;;  %1239 = vmatmul.mubr.msk.bf16.gmra.mrb[16].mxu1 %vm249_vm2, %v1384_v19 }
  0x2b   :  { %429 = vmatprep.mubr.bf16.mxu0 %v1405_v3  ;;  %579 = vmatprep.mubr.bf16.mxu1 %v1405_v3 }
  0x32   :  { %1225 = vmatmul.mubr.msk.bf16.gmra.mrb[20].mxu0 %vm249_vm2, %v1385_v20  ;;  %1240 = vmatmul.mubr.msk.bf16.gmra.mrb[20].mxu1 %vm249_vm2, %v1386_v21 }
  0x33   :  { %439 = vmatprep.mubr.bf16.mxu0 %v1405_v3  ;;  %589 = vmatprep.mubr.bf16.mxu1 %v1405_v3 }
  0x3a   :  { %1226 = vmatmul.mubr.msk.bf16.gmra.mrb[24].mxu0 %vm249_vm2, %v1387_v22  ;;  %1241 = vmatmul.mubr.msk.bf16.gmra.mrb[24].mxu1 %vm249_vm2, %v1388_v23 }
  0x3b   :  { %449 = vmatprep.mubr.bf16.mxu0 %v1405_v3  ;;  %599 = vmatprep.mubr.bf16.mxu1 %v1405_v3 }
  0x42   :  { %1227 = vmatmul.mubr.msk.bf16.gmra.mrb[28].mxu0 %vm249_vm2, %v1389_v24  ;;  %1242 = vmatmul.mubr.msk.bf16.gmra.mrb[28].mxu1 %vm249_vm2, %v1390_v25 }
  0x43   :  { %459 = vmatprep.mubr.bf16.mxu0 %v1405_v3  ;;  %609 = vmatprep.mubr.bf16.mxu1 %v1405_v3 }
  0x4a   :  { %1228 = vmatmul.mubr.msk.bf16.gmra.mrb[32].mxu0 %vm249_vm2, %v1391_v26  ;;  %1243 = vmatmul.mubr.msk.bf16.gmra.mrb[32].mxu1 %vm249_vm2, %v1392_v27 }
  0x4b   :  { %469 = vmatprep.mubr.bf16.mxu0 %v1405_v3  ;;  %619 = vmatprep.mubr.bf16.mxu1 %v1405_v3 }
  0x52   :  { %1229 = vmatmul.mubr.msk.bf16.gmra.mrb[36].mxu0 %vm249_vm2, %v1393_v28  ;;  %1244 = vmatmul.mubr.msk.bf16.gmra.mrb[36].mxu1 %vm249_vm2, %v1394_v29 }
  0x53   :  { %479 = vmatprep.mubr.bf16.mxu0 %v1405_v3  ;;  %629 = vmatprep.mubr.bf16.mxu1 %v1405_v3 }
  0x5a   :  { %1230 = vmatmul.mubr.msk.bf16.gmra.mrb[40].mxu0 %vm249_vm2, %v1395_v30  ;;  %1245 = vmatmul.mubr.msk.bf16.gmra.mrb[40].mxu1 %vm249_vm2, %v1396_v31 }
  0x5b   :  { %489 = vmatprep.mubr.bf16.mxu0 %v1405_v3  ;;  %639 = vmatprep.mubr.bf16.mxu1 %v1405_v3 }
  0x62   :  { %1231 = vmatmul.mubr.msk.bf16.gmra.mrb[44].mxu0 %vm249_vm2, %v1397_v32  ;;  %1246 = vmatmul.mubr.msk.bf16.gmra.mrb[44].mxu1 %vm249_vm2, %v1398_v33 }
  0x63   :  { %499 = vmatprep.mubr.bf16.mxu0 %v1405_v3  ;;  %649 = vmatprep.mubr.bf16.mxu1 %v1405_v3 }
  0x6a   :  { %1232 = vmatmul.mubr.msk.bf16.gmra.mrb[48].mxu0 %vm249_vm2, %v1399_v34  ;;  %1247 = vmatmul.mubr.msk.bf16.gmra.mrb[48].mxu1 %vm249_vm2, %v1400_v35 }
  0x6b   :  { %509 = vmatprep.mubr.bf16.mxu0 %v1405_v3  ;;  %659 = vmatprep.mubr.bf16.mxu1 %v1405_v3 }
  0x72   :  { %1233 = vmatmul.mubr.msk.bf16.gmra.mrb[52].mxu0 %vm249_vm2, %v1401_v36  ;;  %1248 = vmatmul.mubr.msk.bf16.gmra.mrb[52].mxu1 %vm249_vm2, %v1402_v37 }
  0x73   :  { %519 = vmatprep.mubr.bf16.mxu0 %v1405_v3 }
  0x7a   :  { %1234 = vmatmul.mubr.msk.bf16.gmra.mrb[56].mxu0 %vm249_vm2, %v1403_v38 }
  0xdd   :  { %v381_v46 = vpop.f32.mrb[0].mxu0  ;;  %v531_v47 = vpop.f32.mrb[0].mxu1 }
  0xde   :  { %v382_v48 = vadd.f32 %v381_v46, %v1586_v44  ;;  %v383_v49 = vpop.f32.mrb[1].mxu0  ;;  %v532_v50 = vadd.f32 %v531_v47, %v1586_v44  ;;  %v533_v51 = vpop.f32.mrb[1].mxu1 }
  0xdf   :  { %v384_v52 = vadd.f32 %v383_v49, %v1588_v45  ;;  %v385_v53 = vpop.f32.mrb[2].mxu0  ;;  %v534_v54 = vadd.f32 %v533_v51, %v1588_v45  ;;  %v535_v55 = vpop.f32.mrb[2].mxu1 }
  0xe0   :  { %v668_v56 = vmax.f32 %v382_v48, 0.0  ;;  %v386_v57 = vadd.f32 %v385_v53, %v1586_v44  ;;  %v387_v58 = vpop.f32.mrb[3].mxu0  ;;  %v728_v59 = vmax.f32 %v532_v50, 0.0  ;;  %v536_v60 = vadd.f32 %v535_v55, %v1586_v44  ;;  %v537_v61 = vpop.f32.mrb[3].mxu1 }
  0xe1   :  { %v669_v62 = vmax.f32 %v384_v52, 0.0  ;;  %v388_v63 = vadd.f32 %v387_v58, %v1588_v45  ;;  %v729_v0 = vmax.f32 %v534_v54, 0.0  ;;  %v538_v1 = vadd.f32 %v537_v61, %v1588_v45 }
  0xe2   :  { %v670_v2 = vmax.f32 %v386_v57, 0.0  ;;  %v730_v3 = vmax.f32 %v536_v60, 0.0 }
  0xe3   :  { %v1306_v4 = vpack.c.bf16 %v669_v62, %v668_v56  ;;  %v671_v5 = vmax.f32 %v388_v63, 0.0  ;;  %v1336_v6 = vpack.c.bf16 %v729_v0, %v728_v59  ;;  %v731_v7 = vmax.f32 %v538_v1, 0.0 }
  0xe5   :  { %1126 = vst [vmem:[%s1878_s3] sm:$0xff] %v1306_v4  ;;  %v1307_v8 = vpack.c.bf16 %v671_v5, %v670_v2  ;;  %v391_v9 = vpop.f32.mrb[4].mxu0  ;;  %1156 = vst [vmem:[%s1878_s3 + $0xf0] sm:$0xff] %v1336_v6  ;;  %v1337_v10 = vpack.c.bf16 %v731_v7, %v730_v3  ;;  %v541_v11 = vpop.f32.mrb[4].mxu1 }
  0xe6   :  { %v392_v12 = vadd.f32 %v391_v9, %v1586_v44  ;;  %v393_v13 = vpop.f32.mrb[5].mxu0  ;;  %v542_v14 = vadd.f32 %v541_v11, %v1586_v44  ;;  %v543_v15 = vpop.f32.mrb[5].mxu1 }
  0xe7   :  { %1127 = vst [vmem:[%s1878_s3 + $0x8] sm:$0xff] %v1307_v8  ;;  %v394_v16 = vadd.f32 %v393_v13, %v1588_v45  ;;  %v395_v17 = vpop.f32.mrb[6].mxu0  ;;  %1157 = vst [vmem:[%s1878_s3 + $0xf8] sm:$0xff] %v1337_v10  ;;  %v544_v18 = vadd.f32 %v543_v15, %v1588_v45  ;;  %v545_v19 = vpop.f32.mrb[6].mxu1 }
  0xe8   :  { %v672_v20 = vmax.f32 %v392_v12, 0.0  ;;  %v396_v21 = vadd.f32 %v395_v17, %v1586_v44  ;;  %v397_v22 = vpop.f32.mrb[7].mxu0  ;;  %v732_v23 = vmax.f32 %v542_v14, 0.0  ;;  %v546_v24 = vadd.f32 %v545_v19, %v1586_v44  ;;  %v547_v25 = vpop.f32.mrb[7].mxu1 }
  0xe9   :  { %v673_v26 = vmax.f32 %v394_v16, 0.0  ;;  %v398_v27 = vadd.f32 %v397_v22, %v1588_v45  ;;  %v733_v28 = vmax.f32 %v544_v18, 0.0  ;;  %v548_v29 = vadd.f32 %v547_v25, %v1588_v45 }
  0xea   :  { %v674_v30 = vmax.f32 %v396_v21, 0.0  ;;  %v734_v31 = vmax.f32 %v546_v24, 0.0 }
  0xeb   :  { %v1308_v32 = vpack.c.bf16 %v673_v26, %v672_v20  ;;  %v675_v33 = vmax.f32 %v398_v27, 0.0  ;;  %v1338_v34 = vpack.c.bf16 %v733_v28, %v732_v23  ;;  %v735_v35 = vmax.f32 %v548_v29, 0.0 }
  0xed   :  { %1128 = vst [vmem:[%s1878_s3 + $0x10] sm:$0xff] %v1308_v32  ;;  %v1309_v36 = vpack.c.bf16 %v675_v33, %v674_v30  ;;  %v401_v37 = vpop.f32.mrb[8].mxu0  ;;  %1158 = vst [vmem:[%s1878_s3 + $0x100] sm:$0xff] %v1338_v34  ;;  %v1339_v38 = vpack.c.bf16 %v735_v35, %v734_v31  ;;  %v551_v39 = vpop.f32.mrb[8].mxu1 }
  0xee   :  { %v402_v40 = vadd.f32 %v401_v37, %v1586_v44  ;;  %v403_v41 = vpop.f32.mrb[9].mxu0  ;;  %v552_v42 = vadd.f32 %v551_v39, %v1586_v44  ;;  %v553_v43 = vpop.f32.mrb[9].mxu1 }
  0xef   :  { %1129 = vst [vmem:[%s1878_s3 + $0x18] sm:$0xff] %v1309_v36  ;;  %v404_v46 = vadd.f32 %v403_v41, %v1588_v45  ;;  %v405_v47 = vpop.f32.mrb[10].mxu0  ;;  %1159 = vst [vmem:[%s1878_s3 + $0x108] sm:$0xff] %v1339_v38  ;;  %v554_v48 = vadd.f32 %v553_v43, %v1588_v45  ;;  %v555_v49 = vpop.f32.mrb[10].mxu1 }
  0xf0   :  { %v676_v50 = vmax.f32 %v402_v40, 0.0  ;;  %v406_v51 = vadd.f32 %v405_v47, %v1586_v44  ;;  %v407_v52 = vpop.f32.mrb[11].mxu0  ;;  %v736_v53 = vmax.f32 %v552_v42, 0.0  ;;  %v556_v54 = vadd.f32 %v555_v49, %v1586_v44  ;;  %v557_v55 = vpop.f32.mrb[11].mxu1 }
  0xf1   :  { %v677_v56 = vmax.f32 %v404_v46, 0.0  ;;  %v408_v57 = vadd.f32 %v407_v52, %v1588_v45  ;;  %v737_v58 = vmax.f32 %v554_v48, 0.0  ;;  %v558_v59 = vadd.f32 %v557_v55, %v1588_v45 }
  0xf2   :  { %v678_v60 = vmax.f32 %v406_v51, 0.0  ;;  %v738_v61 = vmax.f32 %v556_v54, 0.0 }
  0xf3   :  { %v1310_v62 = vpack.c.bf16 %v677_v56, %v676_v50  ;;  %v679_v63 = vmax.f32 %v408_v57, 0.0  ;;  %v1340_v0 = vpack.c.bf16 %v737_v58, %v736_v53  ;;  %v739_v1 = vmax.f32 %v558_v59, 0.0 }
  0xf5   :  { %1130 = vst [vmem:[%s1878_s3 + $0x20] sm:$0xff] %v1310_v62  ;;  %v1311_v2 = vpack.c.bf16 %v679_v63, %v678_v60  ;;  %v411_v3 = vpop.f32.mrb[12].mxu0  ;;  %1160 = vst [vmem:[%s1878_s3 + $0x110] sm:$0xff] %v1340_v0  ;;  %v1341_v4 = vpack.c.bf16 %v739_v1, %v738_v61  ;;  %v561_v5 = vpop.f32.mrb[12].mxu1 }
  0xf6   :  { %v412_v6 = vadd.f32 %v411_v3, %v1586_v44  ;;  %v413_v7 = vpop.f32.mrb[13].mxu0  ;;  %v562_v8 = vadd.f32 %v561_v5, %v1586_v44  ;;  %v563_v9 = vpop.f32.mrb[13].mxu1 }
  0xf7   :  { %1131 = vst [vmem:[%s1878_s3 + $0x28] sm:$0xff] %v1311_v2  ;;  %v414_v10 = vadd.f32 %v413_v7, %v1588_v45  ;;  %v415_v11 = vpop.f32.mrb[14].mxu0  ;;  %1161 = vst [vmem:[%s1878_s3 + $0x118] sm:$0xff] %v1341_v4  ;;  %v564_v12 = vadd.f32 %v563_v9, %v1588_v45  ;;  %v565_v13 = vpop.f32.mrb[14].mxu1 }
  0xf8   :  { %v680_v14 = vmax.f32 %v412_v6, 0.0  ;;  %v416_v15 = vadd.f32 %v415_v11, %v1586_v44  ;;  %v417_v16 = vpop.f32.mrb[15].mxu0  ;;  %v740_v17 = vmax.f32 %v562_v8, 0.0  ;;  %v566_v18 = vadd.f32 %v565_v13, %v1586_v44  ;;  %v567_v19 = vpop.f32.mrb[15].mxu1 }
  0xf9   :  { %v681_v20 = vmax.f32 %v414_v10, 0.0  ;;  %v418_v21 = vadd.f32 %v417_v16, %v1588_v45  ;;  %v741_v22 = vmax.f32 %v564_v12, 0.0  ;;  %v568_v23 = vadd.f32 %v567_v19, %v1588_v45 }
  0xfa   :  { %v682_v24 = vmax.f32 %v416_v15, 0.0  ;;  %v742_v25 = vmax.f32 %v566_v18, 0.0 }
  0xfb   :  { %v1312_v26 = vpack.c.bf16 %v681_v20, %v680_v14  ;;  %v683_v27 = vmax.f32 %v418_v21, 0.0  ;;  %v1342_v28 = vpack.c.bf16 %v741_v22, %v740_v17  ;;  %v743_v29 = vmax.f32 %v568_v23, 0.0 }
  0xfd   :  { %1132 = vst [vmem:[%s1878_s3 + $0x30] sm:$0xff] %v1312_v26  ;;  %v1313_v30 = vpack.c.bf16 %v683_v27, %v682_v24  ;;  %v421_v31 = vpop.f32.mrb[16].mxu0  ;;  %1162 = vst [vmem:[%s1878_s3 + $0x120] sm:$0xff] %v1342_v28  ;;  %v1343_v32 = vpack.c.bf16 %v743_v29, %v742_v25  ;;  %v571_v33 = vpop.f32.mrb[16].mxu1 }
  0xfe   :  { %v422_v34 = vadd.f32 %v421_v31, %v1586_v44  ;;  %v423_v35 = vpop.f32.mrb[17].mxu0  ;;  %v572_v36 = vadd.f32 %v571_v33, %v1586_v44  ;;  %v573_v37 = vpop.f32.mrb[17].mxu1 }
  0xff   :  { %1133 = vst [vmem:[%s1878_s3 + $0x38] sm:$0xff] %v1313_v30  ;;  %v424_v38 = vadd.f32 %v423_v35, %v1588_v45  ;;  %v425_v39 = vpop.f32.mrb[18].mxu0  ;;  %1163 = vst [vmem:[%s1878_s3 + $0x128] sm:$0xff] %v1343_v32  ;;  %v574_v40 = vadd.f32 %v573_v37, %v1588_v45  ;;  %v575_v41 = vpop.f32.mrb[18].mxu1 }
 0x100   :  { %v684_v42 = vmax.f32 %v422_v34, 0.0  ;;  %v426_v43 = vadd.f32 %v425_v39, %v1586_v44  ;;  %v427_v46 = vpop.f32.mrb[19].mxu0  ;;  %v744_v47 = vmax.f32 %v572_v36, 0.0  ;;  %v576_v48 = vadd.f32 %v575_v41, %v1586_v44  ;;  %v577_v49 = vpop.f32.mrb[19].mxu1 }
 0x101   :  { %v685_v50 = vmax.f32 %v424_v38, 0.0  ;;  %v428_v51 = vadd.f32 %v427_v46, %v1588_v45  ;;  %v745_v52 = vmax.f32 %v574_v40, 0.0  ;;  %v578_v53 = vadd.f32 %v577_v49, %v1588_v45 }
 0x102   :  { %v686_v54 = vmax.f32 %v426_v43, 0.0  ;;  %v746_v55 = vmax.f32 %v576_v48, 0.0 }
 0x103   :  { %v1314_v56 = vpack.c.bf16 %v685_v50, %v684_v42  ;;  %v687_v57 = vmax.f32 %v428_v51, 0.0  ;;  %v1344_v58 = vpack.c.bf16 %v745_v52, %v744_v47  ;;  %v747_v59 = vmax.f32 %v578_v53, 0.0 }
 0x105   :  { %1134 = vst [vmem:[%s1878_s3 + $0x40] sm:$0xff] %v1314_v56  ;;  %v1315_v60 = vpack.c.bf16 %v687_v57, %v686_v54  ;;  %v431_v61 = vpop.f32.mrb[20].mxu0  ;;  %1164 = vst [vmem:[%s1878_s3 + $0x130] sm:$0xff] %v1344_v58  ;;  %v1345_v62 = vpack.c.bf16 %v747_v59, %v746_v55  ;;  %v581_v63 = vpop.f32.mrb[20].mxu1 }
 0x106   :  { %v432_v0 = vadd.f32 %v431_v61, %v1586_v44  ;;  %v433_v1 = vpop.f32.mrb[21].mxu0  ;;  %v582_v2 = vadd.f32 %v581_v63, %v1586_v44  ;;  %v583_v3 = vpop.f32.mrb[21].mxu1 }
 0x107   :  { %1135 = vst [vmem:[%s1878_s3 + $0x48] sm:$0xff] %v1315_v60  ;;  %v434_v4 = vadd.f32 %v433_v1, %v1588_v45  ;;  %v435_v5 = vpop.f32.mrb[22].mxu0  ;;  %1165 = vst [vmem:[%s1878_s3 + $0x138] sm:$0xff] %v1345_v62  ;;  %v584_v6 = vadd.f32 %v583_v3, %v1588_v45  ;;  %v585_v7 = vpop.f32.mrb[22].mxu1 }
 0x108   :  { %v688_v8 = vmax.f32 %v432_v0, 0.0  ;;  %v436_v9 = vadd.f32 %v435_v5, %v1586_v44  ;;  %v437_v10 = vpop.f32.mrb[23].mxu0  ;;  %v748_v11 = vmax.f32 %v582_v2, 0.0  ;;  %v586_v12 = vadd.f32 %v585_v7, %v1586_v44  ;;  %v587_v13 = vpop.f32.mrb[23].mxu1 }
 0x109   :  { %v689_v14 = vmax.f32 %v434_v4, 0.0  ;;  %v438_v15 = vadd.f32 %v437_v10, %v1588_v45  ;;  %v749_v16 = vmax.f32 %v584_v6, 0.0  ;;  %v588_v17 = vadd.f32 %v587_v13, %v1588_v45 }
 0x10a   :  { %v690_v18 = vmax.f32 %v436_v9, 0.0  ;;  %v750_v19 = vmax.f32 %v586_v12, 0.0 }
 0x10b   :  { %v1316_v20 = vpack.c.bf16 %v689_v14, %v688_v8  ;;  %v691_v21 = vmax.f32 %v438_v15, 0.0  ;;  %v1346_v22 = vpack.c.bf16 %v749_v16, %v748_v11  ;;  %v751_v23 = vmax.f32 %v588_v17, 0.0 }
 0x10d   :  { %1136 = vst [vmem:[%s1878_s3 + $0x50] sm:$0xff] %v1316_v20  ;;  %v1317_v24 = vpack.c.bf16 %v691_v21, %v690_v18  ;;  %v441_v25 = vpop.f32.mrb[24].mxu0  ;;  %1166 = vst [vmem:[%s1878_s3 + $0x140] sm:$0xff] %v1346_v22  ;;  %v1347_v26 = vpack.c.bf16 %v751_v23, %v750_v19  ;;  %v591_v27 = vpop.f32.mrb[24].mxu1 }
 0x10e   :  { %v442_v28 = vadd.f32 %v441_v25, %v1586_v44  ;;  %v443_v29 = vpop.f32.mrb[25].mxu0  ;;  %v592_v30 = vadd.f32 %v591_v27, %v1586_v44  ;;  %v593_v31 = vpop.f32.mrb[25].mxu1 }
 0x10f   :  { %1137 = vst [vmem:[%s1878_s3 + $0x58] sm:$0xff] %v1317_v24  ;;  %v444_v32 = vadd.f32 %v443_v29, %v1588_v45  ;;  %v445_v33 = vpop.f32.mrb[26].mxu0  ;;  %1167 = vst [vmem:[%s1878_s3 + $0x148] sm:$0xff] %v1347_v26  ;;  %v594_v34 = vadd.f32 %v593_v31, %v1588_v45  ;;  %v595_v35 = vpop.f32.mrb[26].mxu1 }
 0x110   :  { %v692_v36 = vmax.f32 %v442_v28, 0.0  ;;  %v446_v37 = vadd.f32 %v445_v33, %v1586_v44  ;;  %v447_v38 = vpop.f32.mrb[27].mxu0  ;;  %v752_v39 = vmax.f32 %v592_v30, 0.0  ;;  %v596_v40 = vadd.f32 %v595_v35, %v1586_v44  ;;  %v597_v41 = vpop.f32.mrb[27].mxu1 }
 0x111   :  { %v693_v42 = vmax.f32 %v444_v32, 0.0  ;;  %v448_v43 = vadd.f32 %v447_v38, %v1588_v45  ;;  %v753_v46 = vmax.f32 %v594_v34, 0.0  ;;  %v598_v47 = vadd.f32 %v597_v41, %v1588_v45 }
 0x112   :  { %v694_v48 = vmax.f32 %v446_v37, 0.0  ;;  %v754_v49 = vmax.f32 %v596_v40, 0.0 }
 0x113   :  { %v1318_v50 = vpack.c.bf16 %v693_v42, %v692_v36  ;;  %v695_v51 = vmax.f32 %v448_v43, 0.0  ;;  %v1348_v52 = vpack.c.bf16 %v753_v46, %v752_v39  ;;  %v755_v53 = vmax.f32 %v598_v47, 0.0 }
 0x115   :  { %1138 = vst [vmem:[%s1878_s3 + $0x60] sm:$0xff] %v1318_v50  ;;  %v1319_v54 = vpack.c.bf16 %v695_v51, %v694_v48  ;;  %v451_v55 = vpop.f32.mrb[28].mxu0  ;;  %1168 = vst [vmem:[%s1878_s3 + $0x150] sm:$0xff] %v1348_v52  ;;  %v1349_v56 = vpack.c.bf16 %v755_v53, %v754_v49  ;;  %v601_v57 = vpop.f32.mrb[28].mxu1 }
 0x116   :  { %v452_v58 = vadd.f32 %v451_v55, %v1586_v44  ;;  %v453_v59 = vpop.f32.mrb[29].mxu0  ;;  %v602_v60 = vadd.f32 %v601_v57, %v1586_v44  ;;  %v603_v61 = vpop.f32.mrb[29].mxu1 }
 0x117   :  { %1139 = vst [vmem:[%s1878_s3 + $0x68] sm:$0xff] %v1319_v54  ;;  %v454_v62 = vadd.f32 %v453_v59, %v1588_v45  ;;  %v455_v63 = vpop.f32.mrb[30].mxu0  ;;  %1169 = vst [vmem:[%s1878_s3 + $0x158] sm:$0xff] %v1349_v56  ;;  %v604_v0 = vadd.f32 %v603_v61, %v1588_v45  ;;  %v605_v1 = vpop.f32.mrb[30].mxu1 }
 0x118   :  { %v696_v2 = vmax.f32 %v452_v58, 0.0  ;;  %v456_v3 = vadd.f32 %v455_v63, %v1586_v44  ;;  %v457_v4 = vpop.f32.mrb[31].mxu0  ;;  %v756_v5 = vmax.f32 %v602_v60, 0.0  ;;  %v606_v6 = vadd.f32 %v605_v1, %v1586_v44  ;;  %v607_v7 = vpop.f32.mrb[31].mxu1 }
 0x119   :  { %v697_v8 = vmax.f32 %v454_v62, 0.0  ;;  %v458_v9 = vadd.f32 %v457_v4, %v1588_v45  ;;  %v757_v10 = vmax.f32 %v604_v0, 0.0  ;;  %v608_v11 = vadd.f32 %v607_v7, %v1588_v45 }
 0x11a   :  { %v698_v12 = vmax.f32 %v456_v3, 0.0  ;;  %v758_v13 = vmax.f32 %v606_v6, 0.0 }
 0x11b   :  { %v1320_v14 = vpack.c.bf16 %v697_v8, %v696_v2  ;;  %v699_v15 = vmax.f32 %v458_v9, 0.0  ;;  %v1350_v16 = vpack.c.bf16 %v757_v10, %v756_v5  ;;  %v759_v17 = vmax.f32 %v608_v11, 0.0 }
 0x11d   :  { %1140 = vst [vmem:[%s1878_s3 + $0x70] sm:$0xff] %v1320_v14  ;;  %v1321_v18 = vpack.c.bf16 %v699_v15, %v698_v12  ;;  %v461_v19 = vpop.f32.mrb[32].mxu0  ;;  %1170 = vst [vmem:[%s1878_s3 + $0x160] sm:$0xff] %v1350_v16  ;;  %v1351_v20 = vpack.c.bf16 %v759_v17, %v758_v13  ;;  %v611_v21 = vpop.f32.mrb[32].mxu1 }
 0x11e   :  { %v462_v22 = vadd.f32 %v461_v19, %v1586_v44  ;;  %v463_v23 = vpop.f32.mrb[33].mxu0  ;;  %v612_v24 = vadd.f32 %v611_v21, %v1586_v44  ;;  %v613_v25 = vpop.f32.mrb[33].mxu1 }
 0x11f   :  { %1141 = vst [vmem:[%s1878_s3 + $0x78] sm:$0xff] %v1321_v18  ;;  %v464_v26 = vadd.f32 %v463_v23, %v1588_v45  ;;  %v465_v27 = vpop.f32.mrb[34].mxu0  ;;  %1171 = vst [vmem:[%s1878_s3 + $0x168] sm:$0xff] %v1351_v20  ;;  %v614_v28 = vadd.f32 %v613_v25, %v1588_v45  ;;  %v615_v29 = vpop.f32.mrb[34].mxu1 }
 0x120   :  { %v700_v30 = vmax.f32 %v462_v22, 0.0  ;;  %v466_v31 = vadd.f32 %v465_v27, %v1586_v44  ;;  %v467_v32 = vpop.f32.mrb[35].mxu0  ;;  %v760_v33 = vmax.f32 %v612_v24, 0.0  ;;  %v616_v34 = vadd.f32 %v615_v29, %v1586_v44  ;;  %v617_v35 = vpop.f32.mrb[35].mxu1 }
 0x121   :  { %v701_v36 = vmax.f32 %v464_v26, 0.0  ;;  %v468_v37 = vadd.f32 %v467_v32, %v1588_v45  ;;  %v761_v38 = vmax.f32 %v614_v28, 0.0  ;;  %v618_v39 = vadd.f32 %v617_v35, %v1588_v45 }
 0x122   :  { %v702_v40 = vmax.f32 %v466_v31, 0.0  ;;  %v762_v41 = vmax.f32 %v616_v34, 0.0 }
 0x123   :  { %v1322_v42 = vpack.c.bf16 %v701_v36, %v700_v30  ;;  %v703_v43 = vmax.f32 %v468_v37, 0.0  ;;  %v1352_v46 = vpack.c.bf16 %v761_v38, %v760_v33  ;;  %v763_v47 = vmax.f32 %v618_v39, 0.0 }
 0x125   :  { %1142 = vst [vmem:[%s1878_s3 + $0x80] sm:$0xff] %v1322_v42  ;;  %v1323_v48 = vpack.c.bf16 %v703_v43, %v702_v40  ;;  %v471_v49 = vpop.f32.mrb[36].mxu0  ;;  %1172 = vst [vmem:[%s1878_s3 + $0x170] sm:$0xff] %v1352_v46  ;;  %v1353_v50 = vpack.c.bf16 %v763_v47, %v762_v41  ;;  %v621_v51 = vpop.f32.mrb[36].mxu1 }
 0x126   :  { %v472_v52 = vadd.f32 %v471_v49, %v1586_v44  ;;  %v473_v53 = vpop.f32.mrb[37].mxu0  ;;  %v622_v54 = vadd.f32 %v621_v51, %v1586_v44  ;;  %v623_v55 = vpop.f32.mrb[37].mxu1 }
 0x127   :  { %1143 = vst [vmem:[%s1878_s3 + $0x88] sm:$0xff] %v1323_v48  ;;  %v474_v56 = vadd.f32 %v473_v53, %v1588_v45  ;;  %v475_v57 = vpop.f32.mrb[38].mxu0  ;;  %1173 = vst [vmem:[%s1878_s3 + $0x178] sm:$0xff] %v1353_v50  ;;  %v624_v58 = vadd.f32 %v623_v55, %v1588_v45  ;;  %v625_v59 = vpop.f32.mrb[38].mxu1 }
 0x128   :  { %v704_v60 = vmax.f32 %v472_v52, 0.0  ;;  %v476_v61 = vadd.f32 %v475_v57, %v1586_v44  ;;  %v477_v62 = vpop.f32.mrb[39].mxu0  ;;  %v764_v63 = vmax.f32 %v622_v54, 0.0  ;;  %v626_v0 = vadd.f32 %v625_v59, %v1586_v44  ;;  %v627_v1 = vpop.f32.mrb[39].mxu1 }
 0x129   :  { %v705_v2 = vmax.f32 %v474_v56, 0.0  ;;  %v478_v3 = vadd.f32 %v477_v62, %v1588_v45  ;;  %v765_v4 = vmax.f32 %v624_v58, 0.0  ;;  %v628_v5 = vadd.f32 %v627_v1, %v1588_v45 }
 0x12a   :  { %v706_v6 = vmax.f32 %v476_v61, 0.0  ;;  %v766_v7 = vmax.f32 %v626_v0, 0.0 }
 0x12b   :  { %v1324_v8 = vpack.c.bf16 %v705_v2, %v704_v60  ;;  %v707_v9 = vmax.f32 %v478_v3, 0.0  ;;  %v1354_v10 = vpack.c.bf16 %v765_v4, %v764_v63  ;;  %v767_v11 = vmax.f32 %v628_v5, 0.0 }
 0x12d   :  { %1144 = vst [vmem:[%s1878_s3 + $0x90] sm:$0xff] %v1324_v8  ;;  %v1325_v12 = vpack.c.bf16 %v707_v9, %v706_v6  ;;  %v481_v13 = vpop.f32.mrb[40].mxu0  ;;  %1174 = vst [vmem:[%s1878_s3 + $0x180] sm:$0xff] %v1354_v10  ;;  %v1355_v14 = vpack.c.bf16 %v767_v11, %v766_v7  ;;  %v631_v15 = vpop.f32.mrb[40].mxu1 }
 0x12e   :  { %v482_v16 = vadd.f32 %v481_v13, %v1586_v44  ;;  %v483_v17 = vpop.f32.mrb[41].mxu0  ;;  %v632_v18 = vadd.f32 %v631_v15, %v1586_v44  ;;  %v633_v19 = vpop.f32.mrb[41].mxu1 }
 0x12f   :  { %1145 = vst [vmem:[%s1878_s3 + $0x98] sm:$0xff] %v1325_v12  ;;  %v484_v20 = vadd.f32 %v483_v17, %v1588_v45  ;;  %v485_v21 = vpop.f32.mrb[42].mxu0  ;;  %1175 = vst [vmem:[%s1878_s3 + $0x188] sm:$0xff] %v1355_v14  ;;  %v634_v22 = vadd.f32 %v633_v19, %v1588_v45  ;;  %v635_v23 = vpop.f32.mrb[42].mxu1 }
 0x130   :  { %v708_v24 = vmax.f32 %v482_v16, 0.0  ;;  %v486_v25 = vadd.f32 %v485_v21, %v1586_v44  ;;  %v487_v26 = vpop.f32.mrb[43].mxu0  ;;  %v768_v27 = vmax.f32 %v632_v18, 0.0  ;;  %v636_v28 = vadd.f32 %v635_v23, %v1586_v44  ;;  %v637_v29 = vpop.f32.mrb[43].mxu1 }
 0x131   :  { %v709_v30 = vmax.f32 %v484_v20, 0.0  ;;  %v488_v31 = vadd.f32 %v487_v26, %v1588_v45  ;;  %v769_v32 = vmax.f32 %v634_v22, 0.0  ;;  %v638_v33 = vadd.f32 %v637_v29, %v1588_v45 }
 0x132   :  { %v710_v34 = vmax.f32 %v486_v25, 0.0  ;;  %v770_v35 = vmax.f32 %v636_v28, 0.0 }
 0x133   :  { %v1326_v36 = vpack.c.bf16 %v709_v30, %v708_v24  ;;  %v711_v37 = vmax.f32 %v488_v31, 0.0  ;;  %v1356_v38 = vpack.c.bf16 %v769_v32, %v768_v27  ;;  %v771_v39 = vmax.f32 %v638_v33, 0.0 }
 0x135   :  { %1146 = vst [vmem:[%s1878_s3 + $0xa0] sm:$0xff] %v1326_v36  ;;  %v1327_v40 = vpack.c.bf16 %v711_v37, %v710_v34  ;;  %v491_v41 = vpop.f32.mrb[44].mxu0  ;;  %1176 = vst [vmem:[%s1878_s3 + $0x190] sm:$0xff] %v1356_v38  ;;  %v1357_v42 = vpack.c.bf16 %v771_v39, %v770_v35  ;;  %v641_v43 = vpop.f32.mrb[44].mxu1 }
 0x136   :  { %v492_v46 = vadd.f32 %v491_v41, %v1586_v44  ;;  %v493_v47 = vpop.f32.mrb[45].mxu0  ;;  %v642_v48 = vadd.f32 %v641_v43, %v1586_v44  ;;  %v643_v49 = vpop.f32.mrb[45].mxu1 }
 0x137   :  { %1147 = vst [vmem:[%s1878_s3 + $0xa8] sm:$0xff] %v1327_v40  ;;  %v494_v50 = vadd.f32 %v493_v47, %v1588_v45  ;;  %v495_v51 = vpop.f32.mrb[46].mxu0  ;;  %1177 = vst [vmem:[%s1878_s3 + $0x198] sm:$0xff] %v1357_v42  ;;  %v644_v52 = vadd.f32 %v643_v49, %v1588_v45  ;;  %v645_v53 = vpop.f32.mrb[46].mxu1 }
 0x138   :  { %v712_v54 = vmax.f32 %v492_v46, 0.0  ;;  %v496_v55 = vadd.f32 %v495_v51, %v1586_v44  ;;  %v497_v56 = vpop.f32.mrb[47].mxu0  ;;  %v772_v57 = vmax.f32 %v642_v48, 0.0  ;;  %v646_v58 = vadd.f32 %v645_v53, %v1586_v44  ;;  %v647_v59 = vpop.f32.mrb[47].mxu1 }
 0x139   :  { %v713_v60 = vmax.f32 %v494_v50, 0.0  ;;  %v498_v61 = vadd.f32 %v497_v56, %v1588_v45  ;;  %v773_v62 = vmax.f32 %v644_v52, 0.0  ;;  %v648_v63 = vadd.f32 %v647_v59, %v1588_v45 }
 0x13a   :  { %v714_v0 = vmax.f32 %v496_v55, 0.0  ;;  %v774_v1 = vmax.f32 %v646_v58, 0.0 }
 0x13b   :  { %v1328_v2 = vpack.c.bf16 %v713_v60, %v712_v54  ;;  %v715_v3 = vmax.f32 %v498_v61, 0.0  ;;  %v1358_v4 = vpack.c.bf16 %v773_v62, %v772_v57  ;;  %v775_v5 = vmax.f32 %v648_v63, 0.0 }
 0x13d   :  { %1148 = vst [vmem:[%s1878_s3 + $0xb0] sm:$0xff] %v1328_v2  ;;  %v1329_v6 = vpack.c.bf16 %v715_v3, %v714_v0  ;;  %v501_v7 = vpop.f32.mrb[48].mxu0  ;;  %1178 = vst [vmem:[%s1878_s3 + $0x1a0] sm:$0xff] %v1358_v4  ;;  %v1359_v8 = vpack.c.bf16 %v775_v5, %v774_v1  ;;  %v651_v9 = vpop.f32.mrb[48].mxu1 }
 0x13e   :  { %v502_v10 = vadd.f32 %v501_v7, %v1586_v44  ;;  %v503_v11 = vpop.f32.mrb[49].mxu0  ;;  %v652_v12 = vadd.f32 %v651_v9, %v1586_v44  ;;  %v653_v13 = vpop.f32.mrb[49].mxu1 }
 0x13f   :  { %1149 = vst [vmem:[%s1878_s3 + $0xb8] sm:$0xff] %v1329_v6  ;;  %v504_v14 = vadd.f32 %v503_v11, %v1588_v45  ;;  %v505_v15 = vpop.f32.mrb[50].mxu0  ;;  %1179 = vst [vmem:[%s1878_s3 + $0x1a8] sm:$0xff] %v1359_v8  ;;  %v654_v16 = vadd.f32 %v653_v13, %v1588_v45  ;;  %v655_v17 = vpop.f32.mrb[50].mxu1 }
 0x140   :  { %v716_v18 = vmax.f32 %v502_v10, 0.0  ;;  %v506_v19 = vadd.f32 %v505_v15, %v1586_v44  ;;  %v507_v20 = vpop.f32.mrb[51].mxu0  ;;  %v776_v21 = vmax.f32 %v652_v12, 0.0  ;;  %v656_v22 = vadd.f32 %v655_v17, %v1586_v44  ;;  %v657_v23 = vpop.f32.mrb[51].mxu1 }
 0x141   :  { %v717_v24 = vmax.f32 %v504_v14, 0.0  ;;  %v508_v25 = vadd.f32 %v507_v20, %v1588_v45  ;;  %v777_v26 = vmax.f32 %v654_v16, 0.0  ;;  %v658_v27 = vadd.f32 %v657_v23, %v1588_v45 }
 0x142   :  { %v718_v28 = vmax.f32 %v506_v19, 0.0  ;;  %v778_v29 = vmax.f32 %v656_v22, 0.0 }
 0x143   :  { %v1330_v30 = vpack.c.bf16 %v717_v24, %v716_v18  ;;  %v719_v31 = vmax.f32 %v508_v25, 0.0  ;;  %v1360_v32 = vpack.c.bf16 %v777_v26, %v776_v21  ;;  %v779_v33 = vmax.f32 %v658_v27, 0.0 }
 0x145   :  { %1150 = vst [vmem:[%s1878_s3 + $0xc0] sm:$0xff] %v1330_v30  ;;  %v1331_v34 = vpack.c.bf16 %v719_v31, %v718_v28  ;;  %v511_v35 = vpop.f32.mrb[52].mxu0  ;;  %1180 = vst [vmem:[%s1878_s3 + $0x1b0] sm:$0xff] %v1360_v32  ;;  %v1361_v36 = vpack.c.bf16 %v779_v33, %v778_v29  ;;  %v661_v37 = vpop.f32.mrb[52].mxu1 }
 0x146   :  { %v512_v38 = vadd.f32 %v511_v35, %v1586_v44  ;;  %v513_v39 = vpop.f32.mrb[53].mxu0  ;;  %v662_v40 = vadd.f32 %v661_v37, %v1586_v44  ;;  %v663_v41 = vpop.f32.mrb[53].mxu1 }
 0x147   :  { %1151 = vst [vmem:[%s1878_s3 + $0xc8] sm:$0xff] %v1331_v34  ;;  %v514_v42 = vadd.f32 %v513_v39, %v1588_v45  ;;  %v515_v43 = vpop.f32.mrb[54].mxu0  ;;  %1181 = vst [vmem:[%s1878_s3 + $0x1b8] sm:$0xff] %v1361_v36  ;;  %v664_v46 = vadd.f32 %v663_v41, %v1588_v45  ;;  %v665_v47 = vpop.f32.mrb[54].mxu1 }
 0x148   :  { %v720_v48 = vmax.f32 %v512_v38, 0.0  ;;  %v516_v49 = vadd.f32 %v515_v43, %v1586_v44  ;;  %v517_v50 = vpop.f32.mrb[55].mxu0  ;;  %v780_v51 = vmax.f32 %v662_v40, 0.0  ;;  %v666_v52 = vpop.f32.mrb[55].mxu1 }
 0x149   :  { %v721_v53 = vmax.f32 %v514_v42, 0.0  ;;  %v518_v54 = vadd.f32 %v517_v50, %v1588_v45  ;;  %v781_v55 = vmax.f32 %v664_v46, 0.0 }
 0x14a   :  { %v722_v56 = vmax.f32 %v516_v49, 0.0 }
 0x14b   :  { %v1332_v57 = vpack.c.bf16 %v721_v53, %v720_v48  ;;  %v723_v58 = vmax.f32 %v518_v54, 0.0  ;;  %v1362_v59 = vpack.c.bf16 %v781_v55, %v780_v51 }
 0x14d   :  { %1152 = vst [vmem:[%s1878_s3 + $0xd0] sm:$0xff] %v1332_v57  ;;  %v1333_v60 = vpack.c.bf16 %v723_v58, %v722_v56  ;;  %v521_v61 = vpop.f32.mrb[56].mxu0  ;;  %1182 = vst [vmem:[%s1878_s3 + $0x1c0] sm:$0x11] %v1362_v59 }
 0x14e   :  { %v522_v62 = vadd.f32 %v521_v61, %v1586_v44  ;;  %v523_v63 = vpop.f32.mrb[57].mxu0 }
 0x14f   :  { %1153 = vst [vmem:[%s1878_s3 + $0xd8] sm:$0xff] %v1333_v60  ;;  %v524_v0 = vadd.f32 %v523_v63, %v1588_v45  ;;  %v525_v1 = vpop.f32.mrb[58].mxu0 }
 0x150   :  { %v724_v2 = vmax.f32 %v522_v62, 0.0  ;;  %v526_v3 = vadd.f32 %v525_v1, %v1586_v44  ;;  %v527_v4 = vpop.f32.mrb[59].mxu0 }
 0x151   :  { %v725_v5 = vmax.f32 %v524_v0, 0.0  ;;  %v528_v6 = vadd.f32 %v527_v4, %v1588_v45 }
 0x152   :  { %v726_v7 = vmax.f32 %v526_v3, 0.0 }
 0x153   :  { %v1334_v8 = vpack.c.bf16 %v725_v5, %v724_v2  ;;  %v727_v9 = vmax.f32 %v528_v6, 0.0 }
 0x155   :  { %1154 = vst [vmem:[%s1878_s3 + $0xe0] sm:$0xff] %v1334_v8  ;;  %v1335_v10 = vpack.c.bf16 %v727_v9, %v726_v7 }
 0x157   :  { %1155 = vst [vmem:[%s1878_s3 + $0xe8] sm:$0xff] %v1335_v10 }

// kernel: my_lenet_mat_stoch.5
= control target key start
LH: loop header
LB: loop body
LE: loop exit
PB: predicated region body
PF: predicated region fallthrough
CT: control target
= control target key end

     0   :  { %s5354_s12 = smov 0   ;;  %s5356_s13 = smov 0   ;;  %s6462_s0 = inlined_call_operand.vmem [shape: bf16[98,1800], index: 0, kind: input, shape index: {}]   ;;  %s6463_s1 = inlined_call_operand.vmem [shape: bf16[1800,512], index: 1, kind: input, shape index: {}]   ;;  %s6464_s2 = inlined_call_operand.vmem [shape: f32[1,512], index: 2, kind: input, shape index: {}]   ;;  %s6465_s3 = inlined_call_operand.vmem [shape: bf16[98,512], index: 3, kind: output, shape index: {}]  }
   0x1   :  { %s5358_s14 = smov 0  }
   0x2 LB: > { %s5370_s15 = sadd.s32 4294967295, %s5331_s14   ;;  %s5373_s16 = sadd.s32 1, %s5331_s14   ;;  %s5331_s14 = sphi %s5358_s14, %s6469_s14   ;;  %s5327_s13 = sphi %s5356_s13, %s6468_s13   ;;  %s5323_s12 = sphi %s5354_s12, %s6467_s12  }
   0x3   : > { %s38_s17 = ssub.s32 %s5331_s14, %s5373_s16  ;;  %s41_s18 = sadd.s32 1, %s5327_s13 }
   0x4   : > { %p39_p0 = scmp.eq.s32.totalorder %s38_s17, 0  ;;  %p48_p1 = scmp.ne.s32.totalorder %s5327_s13, %s5323_s12 }
   0x5   : > { %p49_p2 = scmp.eq.s32.totalorder %s5331_s14, 0  ;;  %p104_p3 = scmp.eq.s32.totalorder %s5370_s15, 1 }
   0x6   : > { %s5383_s19 = scalar_select %p39_p0, %s5327_s13, %s41_s18  }
   0x7   : > { %p50_p4 = por %p49_p2, %p48_p1  ;;  %p5385_p5 = por %p104_p3, %p48_p1 }
   0x8   : > { %p4200_p6 = scmp.ge.s32.totalorder %s5331_s14, 2 }
   0xa   : > { %129 = sbr.rel (%p4200_p6) target bundleno = 134 (0x86), region = 20 }
  0x11   : > { %132 = sbr.rel (!%p50_p4) target bundleno = 134 (0x86), region = 24  ;;  %s134_s21 = sand.u32 (%p50_p4), 1, %s5327_s13  }
  0x12   : > { %s4561_s22 = sshll.u32 (%p50_p4), %s5331_s14, 3  ;;  %s4796_s23 = smul.u32 (%p50_p4), 1800, %s134_s21 }
  0x13   : > { %s5395_s26 = scalar_lea.vmem (%p50_p4), %s6463_s1, %s4561_s22 }
  0x14   : > { %v615_v0 = vld [vmem:[%s5395_s26] sm:$0xff] (%p50_p4)  ;;  %v617_v1 = vld [vmem:[%s5395_s26 + $0x10] sm:$0xff] (%p50_p4)  ;;  %s5403_s27 = scalar_lea.vmem (%p50_p4), [#allocation2], %s4796_s23 }
  0x15   : > { %v619_v2 = vld [vmem:[%s5395_s26 + $0x20] sm:$0xff] (%p50_p4)  ;;  %v621_v3 = vld [vmem:[%s5395_s26 + $0x30] sm:$0xff] (%p50_p4)  ;;  %616 = vst [vmem:[%s5403_s27] sm:$0xff] (%p50_p4), %v615_v0  ;;  %618 = vst [vmem:[%s5403_s27 + $0x8] sm:$0xff] (%p50_p4), %v617_v1 }
  0x16   : > { %v623_v4 = vld [vmem:[%s5395_s26 + $0x40] sm:$0xff] (%p50_p4)  ;;  %v625_v5 = vld [vmem:[%s5395_s26 + $0x50] sm:$0xff] (%p50_p4)  ;;  %620 = vst [vmem:[%s5403_s27 + $0x10] sm:$0xff] (%p50_p4), %v619_v2  ;;  %622 = vst [vmem:[%s5403_s27 + $0x18] sm:$0xff] (%p50_p4), %v621_v3 }
  0x17   : > { %624 = vst [vmem:[%s5403_s27 + $0x20] sm:$0xff] (%p50_p4), %v623_v4  ;;  %626 = vst [vmem:[%s5403_s27 + $0x28] sm:$0xff] (%p50_p4), %v625_v5  ;;  %v627_v6 = vld [vmem:[%s5395_s26 + $0x60] sm:$0xff] (%p50_p4)  ;;  %v629_v7 = vld [vmem:[%s5395_s26 + $0x70] sm:$0xff] (%p50_p4) }
  0x18   : > { %v631_v8 = vld [vmem:[%s5395_s26 + $0x80] sm:$0xff]  ;;  %628 = vst [vmem:[%s5403_s27 + $0x30] sm:$0xff] %v627_v6  ;;  %630 = vst [vmem:[%s5403_s27 + $0x38] sm:$0xff] %v629_v7  ;;  %v633_v9 = vld [vmem:[%s5395_s26 + $0x90] sm:$0xff] }
  0x19   : > { %632 = vst [vmem:[%s5403_s27 + $0x40] sm:$0xff] %v631_v8  ;;  %v635_v10 = vld [vmem:[%s5395_s26 + $0xa0] sm:$0xff]  ;;  %v637_v11 = vld [vmem:[%s5395_s26 + $0xb0] sm:$0xff]  ;;  %634 = vst [vmem:[%s5403_s27 + $0x48] sm:$0xff] %v633_v9 }
  0x1a   : > { %636 = vst [vmem:[%s5403_s27 + $0x50] sm:$0xff] %v635_v10  ;;  %638 = vst [vmem:[%s5403_s27 + $0x58] sm:$0xff] %v637_v11  ;;  %v639_v12 = vld [vmem:[%s5395_s26 + $0xc0] sm:$0xff]  ;;  %v641_v13 = vld [vmem:[%s5395_s26 + $0xd0] sm:$0xff] }
  0x1b   : > { %v643_v14 = vld [vmem:[%s5395_s26 + $0xe0] sm:$0xff]  ;;  %640 = vst [vmem:[%s5403_s27 + $0x60] sm:$0xff] %v639_v12  ;;  %642 = vst [vmem:[%s5403_s27 + $0x68] sm:$0xff] %v641_v13  ;;  %v645_v15 = vld [vmem:[%s5395_s26 + $0xf0] sm:$0xff] }
  0x1c   : > { %644 = vst [vmem:[%s5403_s27 + $0x70] sm:$0xff] %v643_v14  ;;  %v647_v16 = vld [vmem:[%s5395_s26 + $0x100] sm:$0xff]  ;;  %v649_v17 = vld [vmem:[%s5395_s26 + $0x110] sm:$0xff]  ;;  %646 = vst [vmem:[%s5403_s27 + $0x78] sm:$0xff] %v645_v15 }
  0x1d   : > { %648 = vst [vmem:[%s5403_s27 + $0x80] sm:$0xff] %v647_v16  ;;  %650 = vst [vmem:[%s5403_s27 + $0x88] sm:$0xff] %v649_v17  ;;  %v651_v18 = vld [vmem:[%s5395_s26 + $0x120] sm:$0xff]  ;;  %v653_v19 = vld [vmem:[%s5395_s26 + $0x130] sm:$0xff] }
  0x1e   : > { %v655_v20 = vld [vmem:[%s5395_s26 + $0x140] sm:$0xff]  ;;  %652 = vst [vmem:[%s5403_s27 + $0x90] sm:$0xff] %v651_v18  ;;  %654 = vst [vmem:[%s5403_s27 + $0x98] sm:$0xff] %v653_v19  ;;  %v657_v21 = vld [vmem:[%s5395_s26 + $0x150] sm:$0xff] }
  0x1f   : > { %656 = vst [vmem:[%s5403_s27 + $0xa0] sm:$0xff] %v655_v20  ;;  %v659_v22 = vld [vmem:[%s5395_s26 + $0x160] sm:$0xff]  ;;  %v661_v23 = vld [vmem:[%s5395_s26 + $0x170] sm:$0xff]  ;;  %658 = vst [vmem:[%s5403_s27 + $0xa8] sm:$0xff] %v657_v21 }
  0x20   : > { %660 = vst [vmem:[%s5403_s27 + $0xb0] sm:$0xff] %v659_v22  ;;  %662 = vst [vmem:[%s5403_s27 + $0xb8] sm:$0xff] %v661_v23  ;;  %v663_v24 = vld [vmem:[%s5395_s26 + $0x180] sm:$0xff]  ;;  %v665_v25 = vld [vmem:[%s5395_s26 + $0x190] sm:$0xff] }
  0x21   : > { %v667_v26 = vld [vmem:[%s5395_s26 + $0x1a0] sm:$0xff]  ;;  %664 = vst [vmem:[%s5403_s27 + $0xc0] sm:$0xff] %v663_v24  ;;  %666 = vst [vmem:[%s5403_s27 + $0xc8] sm:$0xff] %v665_v25  ;;  %v669_v27 = vld [vmem:[%s5395_s26 + $0x1b0] sm:$0xff] }
  0x22   : > { %668 = vst [vmem:[%s5403_s27 + $0xd0] sm:$0xff] %v667_v26  ;;  %v671_v28 = vld [vmem:[%s5395_s26 + $0x1c0] sm:$0xff]  ;;  %v673_v29 = vld [vmem:[%s5395_s26 + $0x1d0] sm:$0xff]  ;;  %670 = vst [vmem:[%s5403_s27 + $0xd8] sm:$0xff] %v669_v27 }
  0x23   : > { %672 = vst [vmem:[%s5403_s27 + $0xe0] sm:$0xff] %v671_v28  ;;  %674 = vst [vmem:[%s5403_s27 + $0xe8] sm:$0xff] %v673_v29  ;;  %v675_v30 = vld [vmem:[%s5395_s26 + $0x1e0] sm:$0xff]  ;;  %v677_v31 = vld [vmem:[%s5395_s26 + $0x1f0] sm:$0xff] }
  0x24   : > { %v679_v32 = vld [vmem:[%s5395_s26 + $0x200] sm:$0xff]  ;;  %676 = vst [vmem:[%s5403_s27 + $0xf0] sm:$0xff] %v675_v30  ;;  %678 = vst [vmem:[%s5403_s27 + $0xf8] sm:$0xff] %v677_v31  ;;  %v681_v33 = vld [vmem:[%s5395_s26 + $0x210] sm:$0xff] }
  0x25   : > { %680 = vst [vmem:[%s5403_s27 + $0x100] sm:$0xff] %v679_v32  ;;  %v683_v34 = vld [vmem:[%s5395_s26 + $0x220] sm:$0xff]  ;;  %v685_v35 = vld [vmem:[%s5395_s26 + $0x230] sm:$0xff]  ;;  %682 = vst [vmem:[%s5403_s27 + $0x108] sm:$0xff] %v681_v33 }
  0x26   : > { %684 = vst [vmem:[%s5403_s27 + $0x110] sm:$0xff] %v683_v34  ;;  %686 = vst [vmem:[%s5403_s27 + $0x118] sm:$0xff] %v685_v35  ;;  %v687_v36 = vld [vmem:[%s5395_s26 + $0x240] sm:$0xff]  ;;  %v689_v37 = vld [vmem:[%s5395_s26 + $0x250] sm:$0xff] }
  0x27   : > { %v691_v38 = vld [vmem:[%s5395_s26 + $0x260] sm:$0xff]  ;;  %688 = vst [vmem:[%s5403_s27 + $0x120] sm:$0xff] %v687_v36  ;;  %690 = vst [vmem:[%s5403_s27 + $0x128] sm:$0xff] %v689_v37  ;;  %v693_v39 = vld [vmem:[%s5395_s26 + $0x270] sm:$0xff] }
  0x28   : > { %692 = vst [vmem:[%s5403_s27 + $0x130] sm:$0xff] %v691_v38  ;;  %v695_v40 = vld [vmem:[%s5395_s26 + $0x280] sm:$0xff]  ;;  %v697_v41 = vld [vmem:[%s5395_s26 + $0x290] sm:$0xff]  ;;  %694 = vst [vmem:[%s5403_s27 + $0x138] sm:$0xff] %v693_v39 }
  0x29   : > { %696 = vst [vmem:[%s5403_s27 + $0x140] sm:$0xff] %v695_v40  ;;  %698 = vst [vmem:[%s5403_s27 + $0x148] sm:$0xff] %v697_v41  ;;  %v699_v42 = vld [vmem:[%s5395_s26 + $0x2a0] sm:$0xff]  ;;  %v701_v43 = vld [vmem:[%s5395_s26 + $0x2b0] sm:$0xff] }
  0x2a   : > { %v703_v44 = vld [vmem:[%s5395_s26 + $0x2c0] sm:$0xff]  ;;  %700 = vst [vmem:[%s5403_s27 + $0x150] sm:$0xff] %v699_v42  ;;  %702 = vst [vmem:[%s5403_s27 + $0x158] sm:$0xff] %v701_v43  ;;  %v705_v45 = vld [vmem:[%s5395_s26 + $0x2d0] sm:$0xff] }
  0x2b   : > { %704 = vst [vmem:[%s5403_s27 + $0x160] sm:$0xff] %v703_v44  ;;  %v707_v46 = vld [vmem:[%s5395_s26 + $0x2e0] sm:$0xff]  ;;  %v709_v47 = vld [vmem:[%s5395_s26 + $0x2f0] sm:$0xff]  ;;  %706 = vst [vmem:[%s5403_s27 + $0x168] sm:$0xff] %v705_v45 }
  0x2c   : > { %708 = vst [vmem:[%s5403_s27 + $0x170] sm:$0xff] %v707_v46  ;;  %710 = vst [vmem:[%s5403_s27 + $0x178] sm:$0xff] %v709_v47  ;;  %v711_v48 = vld [vmem:[%s5395_s26 + $0x300] sm:$0xff]  ;;  %v713_v49 = vld [vmem:[%s5395_s26 + $0x310] sm:$0xff] }
  0x2d   : > { %v715_v50 = vld [vmem:[%s5395_s26 + $0x320] sm:$0xff]  ;;  %712 = vst [vmem:[%s5403_s27 + $0x180] sm:$0xff] %v711_v48  ;;  %714 = vst [vmem:[%s5403_s27 + $0x188] sm:$0xff] %v713_v49  ;;  %v717_v51 = vld [vmem:[%s5395_s26 + $0x330] sm:$0xff] }
  0x2e   : > { %716 = vst [vmem:[%s5403_s27 + $0x190] sm:$0xff] %v715_v50  ;;  %v719_v52 = vld [vmem:[%s5395_s26 + $0x340] sm:$0xff]  ;;  %v721_v53 = vld [vmem:[%s5395_s26 + $0x350] sm:$0xff]  ;;  %718 = vst [vmem:[%s5403_s27 + $0x198] sm:$0xff] %v717_v51 }
  0x2f   : > { %720 = vst [vmem:[%s5403_s27 + $0x1a0] sm:$0xff] %v719_v52  ;;  %722 = vst [vmem:[%s5403_s27 + $0x1a8] sm:$0xff] %v721_v53  ;;  %v723_v54 = vld [vmem:[%s5395_s26 + $0x360] sm:$0xff]  ;;  %v725_v55 = vld [vmem:[%s5395_s26 + $0x370] sm:$0xff] }
  0x30   : > { %v727_v56 = vld [vmem:[%s5395_s26 + $0x380] sm:$0xff]  ;;  %724 = vst [vmem:[%s5403_s27 + $0x1b0] sm:$0xff] %v723_v54  ;;  %726 = vst [vmem:[%s5403_s27 + $0x1b8] sm:$0xff] %v725_v55  ;;  %v729_v57 = vld [vmem:[%s5395_s26 + $0x390] sm:$0xff] }
  0x31   : > { %728 = vst [vmem:[%s5403_s27 + $0x1c0] sm:$0xff] %v727_v56  ;;  %v731_v58 = vld [vmem:[%s5395_s26 + $0x3a0] sm:$0xff]  ;;  %v733_v59 = vld [vmem:[%s5395_s26 + $0x3b0] sm:$0xff]  ;;  %730 = vst [vmem:[%s5403_s27 + $0x1c8] sm:$0xff] %v729_v57 }
  0x32   : > { %732 = vst [vmem:[%s5403_s27 + $0x1d0] sm:$0xff] %v731_v58  ;;  %734 = vst [vmem:[%s5403_s27 + $0x1d8] sm:$0xff] %v733_v59  ;;  %v735_v60 = vld [vmem:[%s5395_s26 + $0x3c0] sm:$0xff]  ;;  %v737_v61 = vld [vmem:[%s5395_s26 + $0x3d0] sm:$0xff] }
  0x33   : > { %v739_v62 = vld [vmem:[%s5395_s26 + $0x3e0] sm:$0xff]  ;;  %736 = vst [vmem:[%s5403_s27 + $0x1e0] sm:$0xff] %v735_v60  ;;  %738 = vst [vmem:[%s5403_s27 + $0x1e8] sm:$0xff] %v737_v61  ;;  %v741_v63 = vld [vmem:[%s5395_s26 + $0x3f0] sm:$0xff] }
  0x34   : > { %740 = vst [vmem:[%s5403_s27 + $0x1f0] sm:$0xff] %v739_v62  ;;  %v743_v0 = vld [vmem:[%s5395_s26 + $0x400] sm:$0xff]  ;;  %v745_v1 = vld [vmem:[%s5395_s26 + $0x410] sm:$0xff]  ;;  %742 = vst [vmem:[%s5403_s27 + $0x1f8] sm:$0xff] %v741_v63 }
  0x35   : > { %744 = vst [vmem:[%s5403_s27 + $0x200] sm:$0xff] %v743_v0  ;;  %746 = vst [vmem:[%s5403_s27 + $0x208] sm:$0xff] %v745_v1  ;;  %v747_v2 = vld [vmem:[%s5395_s26 + $0x420] sm:$0xff]  ;;  %v749_v3 = vld [vmem:[%s5395_s26 + $0x430] sm:$0xff] }
  0x36   : > { %v751_v4 = vld [vmem:[%s5395_s26 + $0x440] sm:$0xff]  ;;  %748 = vst [vmem:[%s5403_s27 + $0x210] sm:$0xff] %v747_v2  ;;  %750 = vst [vmem:[%s5403_s27 + $0x218] sm:$0xff] %v749_v3  ;;  %v753_v5 = vld [vmem:[%s5395_s26 + $0x450] sm:$0xff] }
  0x37   : > { %752 = vst [vmem:[%s5403_s27 + $0x220] sm:$0xff] %v751_v4  ;;  %v755_v6 = vld [vmem:[%s5395_s26 + $0x460] sm:$0xff]  ;;  %v757_v7 = vld [vmem:[%s5395_s26 + $0x470] sm:$0xff]  ;;  %754 = vst [vmem:[%s5403_s27 + $0x228] sm:$0xff] %v753_v5 }
  0x38   : > { %756 = vst [vmem:[%s5403_s27 + $0x230] sm:$0xff] %v755_v6  ;;  %758 = vst [vmem:[%s5403_s27 + $0x238] sm:$0xff] %v757_v7  ;;  %v759_v8 = vld [vmem:[%s5395_s26 + $0x480] sm:$0xff]  ;;  %v761_v9 = vld [vmem:[%s5395_s26 + $0x490] sm:$0xff] }
  0x39   : > { %v763_v10 = vld [vmem:[%s5395_s26 + $0x4a0] sm:$0xff]  ;;  %760 = vst [vmem:[%s5403_s27 + $0x240] sm:$0xff] %v759_v8  ;;  %762 = vst [vmem:[%s5403_s27 + $0x248] sm:$0xff] %v761_v9  ;;  %v765_v11 = vld [vmem:[%s5395_s26 + $0x4b0] sm:$0xff] }
  0x3a   : > { %764 = vst [vmem:[%s5403_s27 + $0x250] sm:$0xff] %v763_v10  ;;  %v767_v12 = vld [vmem:[%s5395_s26 + $0x4c0] sm:$0xff]  ;;  %v769_v13 = vld [vmem:[%s5395_s26 + $0x4d0] sm:$0xff]  ;;  %766 = vst [vmem:[%s5403_s27 + $0x258] sm:$0xff] %v765_v11 }
  0x3b   : > { %768 = vst [vmem:[%s5403_s27 + $0x260] sm:$0xff] %v767_v12  ;;  %770 = vst [vmem:[%s5403_s27 + $0x268] sm:$0xff] %v769_v13  ;;  %v771_v14 = vld [vmem:[%s5395_s26 + $0x4e0] sm:$0xff]  ;;  %v773_v15 = vld [vmem:[%s5395_s26 + $0x4f0] sm:$0xff] }
  0x3c   : > { %v775_v16 = vld [vmem:[%s5395_s26 + $0x500] sm:$0xff]  ;;  %772 = vst [vmem:[%s5403_s27 + $0x270] sm:$0xff] %v771_v14  ;;  %774 = vst [vmem:[%s5403_s27 + $0x278] sm:$0xff] %v773_v15  ;;  %v777_v17 = vld [vmem:[%s5395_s26 + $0x510] sm:$0xff] }
  0x3d   : > { %776 = vst [vmem:[%s5403_s27 + $0x280] sm:$0xff] %v775_v16  ;;  %v779_v18 = vld [vmem:[%s5395_s26 + $0x520] sm:$0xff]  ;;  %v781_v19 = vld [vmem:[%s5395_s26 + $0x530] sm:$0xff]  ;;  %778 = vst [vmem:[%s5403_s27 + $0x288] sm:$0xff] %v777_v17 }
  0x3e   : > { %780 = vst [vmem:[%s5403_s27 + $0x290] sm:$0xff] %v779_v18  ;;  %782 = vst [vmem:[%s5403_s27 + $0x298] sm:$0xff] %v781_v19  ;;  %v783_v20 = vld [vmem:[%s5395_s26 + $0x540] sm:$0xff]  ;;  %v785_v21 = vld [vmem:[%s5395_s26 + $0x550] sm:$0xff] }
  0x3f   : > { %v787_v22 = vld [vmem:[%s5395_s26 + $0x560] sm:$0xff]  ;;  %784 = vst [vmem:[%s5403_s27 + $0x2a0] sm:$0xff] %v783_v20  ;;  %786 = vst [vmem:[%s5403_s27 + $0x2a8] sm:$0xff] %v785_v21  ;;  %v789_v23 = vld [vmem:[%s5395_s26 + $0x570] sm:$0xff] }
  0x40   : > { %788 = vst [vmem:[%s5403_s27 + $0x2b0] sm:$0xff] %v787_v22  ;;  %v791_v24 = vld [vmem:[%s5395_s26 + $0x580] sm:$0xff]  ;;  %v793_v25 = vld [vmem:[%s5395_s26 + $0x590] sm:$0xff]  ;;  %790 = vst [vmem:[%s5403_s27 + $0x2b8] sm:$0xff] %v789_v23 }
  0x41   : > { %792 = vst [vmem:[%s5403_s27 + $0x2c0] sm:$0xff] %v791_v24  ;;  %794 = vst [vmem:[%s5403_s27 + $0x2c8] sm:$0xff] %v793_v25  ;;  %v795_v26 = vld [vmem:[%s5395_s26 + $0x5a0] sm:$0xff]  ;;  %v797_v27 = vld [vmem:[%s5395_s26 + $0x5b0] sm:$0xff] }
  0x42   : > { %v799_v28 = vld [vmem:[%s5395_s26 + $0x5c0] sm:$0xff]  ;;  %796 = vst [vmem:[%s5403_s27 + $0x2d0] sm:$0xff] %v795_v26  ;;  %798 = vst [vmem:[%s5403_s27 + $0x2d8] sm:$0xff] %v797_v27  ;;  %v801_v29 = vld [vmem:[%s5395_s26 + $0x5d0] sm:$0xff] }
  0x43   : > { %800 = vst [vmem:[%s5403_s27 + $0x2e0] sm:$0xff] %v799_v28  ;;  %v803_v30 = vld [vmem:[%s5395_s26 + $0x5e0] sm:$0xff]  ;;  %v805_v31 = vld [vmem:[%s5395_s26 + $0x5f0] sm:$0xff]  ;;  %802 = vst [vmem:[%s5403_s27 + $0x2e8] sm:$0xff] %v801_v29 }
  0x44   : > { %804 = vst [vmem:[%s5403_s27 + $0x2f0] sm:$0xff] %v803_v30  ;;  %806 = vst [vmem:[%s5403_s27 + $0x2f8] sm:$0xff] %v805_v31  ;;  %v807_v32 = vld [vmem:[%s5395_s26 + $0x600] sm:$0xff]  ;;  %v809_v33 = vld [vmem:[%s5395_s26 + $0x610] sm:$0xff] }
  0x45   : > { %v811_v34 = vld [vmem:[%s5395_s26 + $0x620] sm:$0xff]  ;;  %808 = vst [vmem:[%s5403_s27 + $0x300] sm:$0xff] %v807_v32  ;;  %810 = vst [vmem:[%s5403_s27 + $0x308] sm:$0xff] %v809_v33  ;;  %v813_v35 = vld [vmem:[%s5395_s26 + $0x630] sm:$0xff] }
  0x46   : > { %812 = vst [vmem:[%s5403_s27 + $0x310] sm:$0xff] %v811_v34  ;;  %v815_v36 = vld [vmem:[%s5395_s26 + $0x640] sm:$0xff]  ;;  %v817_v37 = vld [vmem:[%s5395_s26 + $0x650] sm:$0xff]  ;;  %814 = vst [vmem:[%s5403_s27 + $0x318] sm:$0xff] %v813_v35 }
  0x47   : > { %816 = vst [vmem:[%s5403_s27 + $0x320] sm:$0xff] %v815_v36  ;;  %818 = vst [vmem:[%s5403_s27 + $0x328] sm:$0xff] %v817_v37  ;;  %v819_v38 = vld [vmem:[%s5395_s26 + $0x660] sm:$0xff]  ;;  %v821_v39 = vld [vmem:[%s5395_s26 + $0x670] sm:$0xff] }
  0x48   : > { %v823_v40 = vld [vmem:[%s5395_s26 + $0x680] sm:$0xff]  ;;  %820 = vst [vmem:[%s5403_s27 + $0x330] sm:$0xff] %v819_v38  ;;  %822 = vst [vmem:[%s5403_s27 + $0x338] sm:$0xff] %v821_v39  ;;  %v825_v41 = vld [vmem:[%s5395_s26 + $0x690] sm:$0xff] }
  0x49   : > { %824 = vst [vmem:[%s5403_s27 + $0x340] sm:$0xff] %v823_v40  ;;  %v827_v42 = vld [vmem:[%s5395_s26 + $0x6a0] sm:$0xff]  ;;  %v829_v43 = vld [vmem:[%s5395_s26 + $0x6b0] sm:$0xff]  ;;  %826 = vst [vmem:[%s5403_s27 + $0x348] sm:$0xff] %v825_v41 }
  0x4a   : > { %828 = vst [vmem:[%s5403_s27 + $0x350] sm:$0xff] %v827_v42  ;;  %830 = vst [vmem:[%s5403_s27 + $0x358] sm:$0xff] %v829_v43  ;;  %v831_v44 = vld [vmem:[%s5395_s26 + $0x6c0] sm:$0xff]  ;;  %v833_v45 = vld [vmem:[%s5395_s26 + $0x6d0] sm:$0xff] }
  0x4b   : > { %v835_v46 = vld [vmem:[%s5395_s26 + $0x6e0] sm:$0xff]  ;;  %832 = vst [vmem:[%s5403_s27 + $0x360] sm:$0xff] %v831_v44  ;;  %834 = vst [vmem:[%s5403_s27 + $0x368] sm:$0xff] %v833_v45  ;;  %v837_v47 = vld [vmem:[%s5395_s26 + $0x6f0] sm:$0xff] }
  0x4c   : > { %836 = vst [vmem:[%s5403_s27 + $0x370] sm:$0xff] %v835_v46  ;;  %v839_v48 = vld [vmem:[%s5395_s26 + $0x700] sm:$0xff]  ;;  %v841_v49 = vld [vmem:[%s5395_s26 + $0x710] sm:$0xff]  ;;  %838 = vst [vmem:[%s5403_s27 + $0x378] sm:$0xff] %v837_v47 }
  0x4d   : > { %840 = vst [vmem:[%s5403_s27 + $0x380] sm:$0xff] %v839_v48  ;;  %842 = vst [vmem:[%s5403_s27 + $0x388] sm:$0xff] %v841_v49  ;;  %v843_v50 = vld [vmem:[%s5395_s26 + $0x720] sm:$0xff]  ;;  %v845_v51 = vld [vmem:[%s5395_s26 + $0x730] sm:$0xff] }
  0x4e   : > { %v847_v52 = vld [vmem:[%s5395_s26 + $0x740] sm:$0xff]  ;;  %844 = vst [vmem:[%s5403_s27 + $0x390] sm:$0xff] %v843_v50  ;;  %846 = vst [vmem:[%s5403_s27 + $0x398] sm:$0xff] %v845_v51  ;;  %v849_v53 = vld [vmem:[%s5395_s26 + $0x750] sm:$0xff] }
  0x4f   : > { %848 = vst [vmem:[%s5403_s27 + $0x3a0] sm:$0xff] %v847_v52  ;;  %v851_v54 = vld [vmem:[%s5395_s26 + $0x760] sm:$0xff]  ;;  %v853_v55 = vld [vmem:[%s5395_s26 + $0x770] sm:$0xff]  ;;  %850 = vst [vmem:[%s5403_s27 + $0x3a8] sm:$0xff] %v849_v53 }
  0x50   : > { %852 = vst [vmem:[%s5403_s27 + $0x3b0] sm:$0xff] %v851_v54  ;;  %854 = vst [vmem:[%s5403_s27 + $0x3b8] sm:$0xff] %v853_v55  ;;  %v855_v56 = vld [vmem:[%s5395_s26 + $0x780] sm:$0xff]  ;;  %v857_v57 = vld [vmem:[%s5395_s26 + $0x790] sm:$0xff] }
  0x51   : > { %v859_v58 = vld [vmem:[%s5395_s26 + $0x7a0] sm:$0xff]  ;;  %856 = vst [vmem:[%s5403_s27 + $0x3c0] sm:$0xff] %v855_v56  ;;  %858 = vst [vmem:[%s5403_s27 + $0x3c8] sm:$0xff] %v857_v57  ;;  %v861_v59 = vld [vmem:[%s5395_s26 + $0x7b0] sm:$0xff] }
  0x52   : > { %860 = vst [vmem:[%s5403_s27 + $0x3d0] sm:$0xff] %v859_v58  ;;  %v863_v60 = vld [vmem:[%s5395_s26 + $0x7c0] sm:$0xff]  ;;  %v865_v61 = vld [vmem:[%s5395_s26 + $0x7d0] sm:$0xff]  ;;  %862 = vst [vmem:[%s5403_s27 + $0x3d8] sm:$0xff] %v861_v59 }
  0x53   : > { %864 = vst [vmem:[%s5403_s27 + $0x3e0] sm:$0xff] %v863_v60  ;;  %866 = vst [vmem:[%s5403_s27 + $0x3e8] sm:$0xff] %v865_v61  ;;  %v867_v62 = vld [vmem:[%s5395_s26 + $0x7e0] sm:$0xff]  ;;  %v869_v63 = vld [vmem:[%s5395_s26 + $0x7f0] sm:$0xff] }
  0x54   : > { %v871_v0 = vld [vmem:[%s5395_s26 + $0x800] sm:$0xff]  ;;  %868 = vst [vmem:[%s5403_s27 + $0x3f0] sm:$0xff] %v867_v62  ;;  %870 = vst [vmem:[%s5403_s27 + $0x3f8] sm:$0xff] %v869_v63  ;;  %v873_v1 = vld [vmem:[%s5395_s26 + $0x810] sm:$0xff] }
  0x55   : > { %872 = vst [vmem:[%s5403_s27 + $0x400] sm:$0xff] %v871_v0  ;;  %v875_v2 = vld [vmem:[%s5395_s26 + $0x820] sm:$0xff]  ;;  %v877_v3 = vld [vmem:[%s5395_s26 + $0x830] sm:$0xff]  ;;  %874 = vst [vmem:[%s5403_s27 + $0x408] sm:$0xff] %v873_v1 }
  0x56   : > { %876 = vst [vmem:[%s5403_s27 + $0x410] sm:$0xff] %v875_v2  ;;  %878 = vst [vmem:[%s5403_s27 + $0x418] sm:$0xff] %v877_v3  ;;  %v879_v4 = vld [vmem:[%s5395_s26 + $0x840] sm:$0xff]  ;;  %v881_v5 = vld [vmem:[%s5395_s26 + $0x850] sm:$0xff] }
  0x57   : > { %v883_v6 = vld [vmem:[%s5395_s26 + $0x860] sm:$0xff]  ;;  %880 = vst [vmem:[%s5403_s27 + $0x420] sm:$0xff] %v879_v4  ;;  %882 = vst [vmem:[%s5403_s27 + $0x428] sm:$0xff] %v881_v5  ;;  %v885_v7 = vld [vmem:[%s5395_s26 + $0x870] sm:$0xff] }
  0x58   : > { %884 = vst [vmem:[%s5403_s27 + $0x430] sm:$0xff] %v883_v6  ;;  %v887_v8 = vld [vmem:[%s5395_s26 + $0x880] sm:$0xff]  ;;  %v889_v9 = vld [vmem:[%s5395_s26 + $0x890] sm:$0xff]  ;;  %886 = vst [vmem:[%s5403_s27 + $0x438] sm:$0xff] %v885_v7 }
  0x59   : > { %888 = vst [vmem:[%s5403_s27 + $0x440] sm:$0xff] %v887_v8  ;;  %890 = vst [vmem:[%s5403_s27 + $0x448] sm:$0xff] %v889_v9  ;;  %v891_v10 = vld [vmem:[%s5395_s26 + $0x8a0] sm:$0xff]  ;;  %v893_v11 = vld [vmem:[%s5395_s26 + $0x8b0] sm:$0xff] }
  0x5a   : > { %v895_v12 = vld [vmem:[%s5395_s26 + $0x8c0] sm:$0xff]  ;;  %892 = vst [vmem:[%s5403_s27 + $0x450] sm:$0xff] %v891_v10  ;;  %894 = vst [vmem:[%s5403_s27 + $0x458] sm:$0xff] %v893_v11  ;;  %v897_v13 = vld [vmem:[%s5395_s26 + $0x8d0] sm:$0xff] }
  0x5b   : > { %896 = vst [vmem:[%s5403_s27 + $0x460] sm:$0xff] %v895_v12  ;;  %v899_v14 = vld [vmem:[%s5395_s26 + $0x8e0] sm:$0xff]  ;;  %v901_v15 = vld [vmem:[%s5395_s26 + $0x8f0] sm:$0xff]  ;;  %898 = vst [vmem:[%s5403_s27 + $0x468] sm:$0xff] %v897_v13 }
  0x5c   : > { %900 = vst [vmem:[%s5403_s27 + $0x470] sm:$0xff] %v899_v14  ;;  %902 = vst [vmem:[%s5403_s27 + $0x478] sm:$0xff] %v901_v15  ;;  %v903_v16 = vld [vmem:[%s5395_s26 + $0x900] sm:$0xff]  ;;  %v905_v17 = vld [vmem:[%s5395_s26 + $0x910] sm:$0xff] }
  0x5d   : > { %v907_v18 = vld [vmem:[%s5395_s26 + $0x920] sm:$0xff]  ;;  %904 = vst [vmem:[%s5403_s27 + $0x480] sm:$0xff] %v903_v16  ;;  %906 = vst [vmem:[%s5403_s27 + $0x488] sm:$0xff] %v905_v17  ;;  %v909_v19 = vld [vmem:[%s5395_s26 + $0x930] sm:$0xff] }
  0x5e   : > { %908 = vst [vmem:[%s5403_s27 + $0x490] sm:$0xff] %v907_v18  ;;  %v911_v20 = vld [vmem:[%s5395_s26 + $0x940] sm:$0xff]  ;;  %v913_v21 = vld [vmem:[%s5395_s26 + $0x950] sm:$0xff]  ;;  %910 = vst [vmem:[%s5403_s27 + $0x498] sm:$0xff] %v909_v19 }
  0x5f   : > { %912 = vst [vmem:[%s5403_s27 + $0x4a0] sm:$0xff] %v911_v20  ;;  %914 = vst [vmem:[%s5403_s27 + $0x4a8] sm:$0xff] %v913_v21  ;;  %v915_v22 = vld [vmem:[%s5395_s26 + $0x960] sm:$0xff]  ;;  %v917_v23 = vld [vmem:[%s5395_s26 + $0x970] sm:$0xff] }
  0x60   : > { %v919_v24 = vld [vmem:[%s5395_s26 + $0x980] sm:$0xff]  ;;  %916 = vst [vmem:[%s5403_s27 + $0x4b0] sm:$0xff] %v915_v22  ;;  %918 = vst [vmem:[%s5403_s27 + $0x4b8] sm:$0xff] %v917_v23  ;;  %v921_v25 = vld [vmem:[%s5395_s26 + $0x990] sm:$0xff] }
  0x61   : > { %920 = vst [vmem:[%s5403_s27 + $0x4c0] sm:$0xff] %v919_v24  ;;  %v923_v26 = vld [vmem:[%s5395_s26 + $0x9a0] sm:$0xff]  ;;  %v925_v27 = vld [vmem:[%s5395_s26 + $0x9b0] sm:$0xff]  ;;  %922 = vst [vmem:[%s5403_s27 + $0x4c8] sm:$0xff] %v921_v25 }
  0x62   : > { %924 = vst [vmem:[%s5403_s27 + $0x4d0] sm:$0xff] %v923_v26  ;;  %926 = vst [vmem:[%s5403_s27 + $0x4d8] sm:$0xff] %v925_v27  ;;  %v927_v28 = vld [vmem:[%s5395_s26 + $0x9c0] sm:$0xff]  ;;  %v929_v29 = vld [vmem:[%s5395_s26 + $0x9d0] sm:$0xff] }
  0x63   : > { %v931_v30 = vld [vmem:[%s5395_s26 + $0x9e0] sm:$0xff]  ;;  %928 = vst [vmem:[%s5403_s27 + $0x4e0] sm:$0xff] %v927_v28  ;;  %930 = vst [vmem:[%s5403_s27 + $0x4e8] sm:$0xff] %v929_v29  ;;  %v933_v31 = vld [vmem:[%s5395_s26 + $0x9f0] sm:$0xff] }
  0x64   : > { %932 = vst [vmem:[%s5403_s27 + $0x4f0] sm:$0xff] %v931_v30  ;;  %v935_v32 = vld [vmem:[%s5395_s26 + $0xa00] sm:$0xff]  ;;  %v937_v33 = vld [vmem:[%s5395_s26 + $0xa10] sm:$0xff]  ;;  %934 = vst [vmem:[%s5403_s27 + $0x4f8] sm:$0xff] %v933_v31 }
  0x65   : > { %936 = vst [vmem:[%s5403_s27 + $0x500] sm:$0xff] %v935_v32  ;;  %938 = vst [vmem:[%s5403_s27 + $0x508] sm:$0xff] %v937_v33  ;;  %v939_v34 = vld [vmem:[%s5395_s26 + $0xa20] sm:$0xff]  ;;  %v941_v35 = vld [vmem:[%s5395_s26 + $0xa30] sm:$0xff] }
  0x66   : > { %v943_v36 = vld [vmem:[%s5395_s26 + $0xa40] sm:$0xff]  ;;  %940 = vst [vmem:[%s5403_s27 + $0x510] sm:$0xff] %v939_v34  ;;  %942 = vst [vmem:[%s5403_s27 + $0x518] sm:$0xff] %v941_v35  ;;  %v945_v37 = vld [vmem:[%s5395_s26 + $0xa50] sm:$0xff] }
  0x67   : > { %944 = vst [vmem:[%s5403_s27 + $0x520] sm:$0xff] %v943_v36  ;;  %v947_v38 = vld [vmem:[%s5395_s26 + $0xa60] sm:$0xff]  ;;  %v949_v39 = vld [vmem:[%s5395_s26 + $0xa70] sm:$0xff]  ;;  %946 = vst [vmem:[%s5403_s27 + $0x528] sm:$0xff] %v945_v37 }
  0x68   : > { %948 = vst [vmem:[%s5403_s27 + $0x530] sm:$0xff] %v947_v38  ;;  %950 = vst [vmem:[%s5403_s27 + $0x538] sm:$0xff] %v949_v39  ;;  %v951_v40 = vld [vmem:[%s5395_s26 + $0xa80] sm:$0xff]  ;;  %v953_v41 = vld [vmem:[%s5395_s26 + $0xa90] sm:$0xff] }
  0x69   : > { %v955_v42 = vld [vmem:[%s5395_s26 + $0xaa0] sm:$0xff]  ;;  %952 = vst [vmem:[%s5403_s27 + $0x540] sm:$0xff] %v951_v40  ;;  %954 = vst [vmem:[%s5403_s27 + $0x548] sm:$0xff] %v953_v41  ;;  %v957_v43 = vld [vmem:[%s5395_s26 + $0xab0] sm:$0xff] }
  0x6a   : > { %956 = vst [vmem:[%s5403_s27 + $0x550] sm:$0xff] %v955_v42  ;;  %v959_v44 = vld [vmem:[%s5395_s26 + $0xac0] sm:$0xff]  ;;  %v961_v45 = vld [vmem:[%s5395_s26 + $0xad0] sm:$0xff]  ;;  %958 = vst [vmem:[%s5403_s27 + $0x558] sm:$0xff] %v957_v43 }
  0x6b   : > { %960 = vst [vmem:[%s5403_s27 + $0x560] sm:$0xff] %v959_v44  ;;  %962 = vst [vmem:[%s5403_s27 + $0x568] sm:$0xff] %v961_v45  ;;  %v963_v46 = vld [vmem:[%s5395_s26 + $0xae0] sm:$0xff]  ;;  %v965_v47 = vld [vmem:[%s5395_s26 + $0xaf0] sm:$0xff] }
  0x6c   : > { %v967_v48 = vld [vmem:[%s5395_s26 + $0xb00] sm:$0xff]  ;;  %964 = vst [vmem:[%s5403_s27 + $0x570] sm:$0xff] %v963_v46  ;;  %966 = vst [vmem:[%s5403_s27 + $0x578] sm:$0xff] %v965_v47  ;;  %v969_v49 = vld [vmem:[%s5395_s26 + $0xb10] sm:$0xff] }
  0x6d   : > { %968 = vst [vmem:[%s5403_s27 + $0x580] sm:$0xff] %v967_v48  ;;  %v971_v50 = vld [vmem:[%s5395_s26 + $0xb20] sm:$0xff]  ;;  %v973_v51 = vld [vmem:[%s5395_s26 + $0xb30] sm:$0xff]  ;;  %970 = vst [vmem:[%s5403_s27 + $0x588] sm:$0xff] %v969_v49 }
  0x6e   : > { %972 = vst [vmem:[%s5403_s27 + $0x590] sm:$0xff] %v971_v50  ;;  %974 = vst [vmem:[%s5403_s27 + $0x598] sm:$0xff] %v973_v51  ;;  %v975_v52 = vld [vmem:[%s5395_s26 + $0xb40] sm:$0xff]  ;;  %v977_v53 = vld [vmem:[%s5395_s26 + $0xb50] sm:$0xff] }
  0x6f   : > { %v979_v54 = vld [vmem:[%s5395_s26 + $0xb60] sm:$0xff]  ;;  %976 = vst [vmem:[%s5403_s27 + $0x5a0] sm:$0xff] %v975_v52  ;;  %978 = vst [vmem:[%s5403_s27 + $0x5a8] sm:$0xff] %v977_v53  ;;  %v981_v55 = vld [vmem:[%s5395_s26 + $0xb70] sm:$0xff] }
  0x70   : > { %980 = vst [vmem:[%s5403_s27 + $0x5b0] sm:$0xff] %v979_v54  ;;  %v983_v56 = vld [vmem:[%s5395_s26 + $0xb80] sm:$0xff]  ;;  %v985_v57 = vld [vmem:[%s5395_s26 + $0xb90] sm:$0xff]  ;;  %982 = vst [vmem:[%s5403_s27 + $0x5b8] sm:$0xff] %v981_v55 }
  0x71   : > { %984 = vst [vmem:[%s5403_s27 + $0x5c0] sm:$0xff] %v983_v56  ;;  %986 = vst [vmem:[%s5403_s27 + $0x5c8] sm:$0xff] %v985_v57  ;;  %v987_v58 = vld [vmem:[%s5395_s26 + $0xba0] sm:$0xff]  ;;  %v989_v59 = vld [vmem:[%s5395_s26 + $0xbb0] sm:$0xff] }
  0x72   : > { %v991_v60 = vld [vmem:[%s5395_s26 + $0xbc0] sm:$0xff]  ;;  %988 = vst [vmem:[%s5403_s27 + $0x5d0] sm:$0xff] %v987_v58  ;;  %990 = vst [vmem:[%s5403_s27 + $0x5d8] sm:$0xff] %v989_v59  ;;  %v993_v61 = vld [vmem:[%s5395_s26 + $0xbd0] sm:$0xff] }
  0x73   : > { %992 = vst [vmem:[%s5403_s27 + $0x5e0] sm:$0xff] %v991_v60  ;;  %v995_v62 = vld [vmem:[%s5395_s26 + $0xbe0] sm:$0xff]  ;;  %v997_v63 = vld [vmem:[%s5395_s26 + $0xbf0] sm:$0xff]  ;;  %994 = vst [vmem:[%s5403_s27 + $0x5e8] sm:$0xff] %v993_v61 }
  0x74   : > { %996 = vst [vmem:[%s5403_s27 + $0x5f0] sm:$0xff] %v995_v62  ;;  %998 = vst [vmem:[%s5403_s27 + $0x5f8] sm:$0xff] %v997_v63  ;;  %v999_v0 = vld [vmem:[%s5395_s26 + $0xc00] sm:$0xff]  ;;  %v1001_v1 = vld [vmem:[%s5395_s26 + $0xc10] sm:$0xff] }
  0x75   : > { %v1003_v2 = vld [vmem:[%s5395_s26 + $0xc20] sm:$0xff]  ;;  %1000 = vst [vmem:[%s5403_s27 + $0x600] sm:$0xff] %v999_v0  ;;  %1002 = vst [vmem:[%s5403_s27 + $0x608] sm:$0xff] %v1001_v1  ;;  %v1005_v3 = vld [vmem:[%s5395_s26 + $0xc30] sm:$0xff] }
  0x76   : > { %1004 = vst [vmem:[%s5403_s27 + $0x610] sm:$0xff] %v1003_v2  ;;  %v1007_v4 = vld [vmem:[%s5395_s26 + $0xc40] sm:$0xff]  ;;  %v1009_v5 = vld [vmem:[%s5395_s26 + $0xc50] sm:$0xff]  ;;  %1006 = vst [vmem:[%s5403_s27 + $0x618] sm:$0xff] %v1005_v3 }
  0x77   : > { %1008 = vst [vmem:[%s5403_s27 + $0x620] sm:$0xff] %v1007_v4  ;;  %1010 = vst [vmem:[%s5403_s27 + $0x628] sm:$0xff] %v1009_v5  ;;  %v1011_v6 = vld [vmem:[%s5395_s26 + $0xc60] sm:$0xff]  ;;  %v1013_v7 = vld [vmem:[%s5395_s26 + $0xc70] sm:$0xff] }
  0x78   : > { %v1015_v8 = vld [vmem:[%s5395_s26 + $0xc80] sm:$0xff]  ;;  %1012 = vst [vmem:[%s5403_s27 + $0x630] sm:$0xff] %v1011_v6  ;;  %1014 = vst [vmem:[%s5403_s27 + $0x638] sm:$0xff] %v1013_v7  ;;  %v1017_v9 = vld [vmem:[%s5395_s26 + $0xc90] sm:$0xff] }
  0x79   : > { %1016 = vst [vmem:[%s5403_s27 + $0x640] sm:$0xff] %v1015_v8  ;;  %v1019_v10 = vld [vmem:[%s5395_s26 + $0xca0] sm:$0xff]  ;;  %v1021_v11 = vld [vmem:[%s5395_s26 + $0xcb0] sm:$0xff]  ;;  %1018 = vst [vmem:[%s5403_s27 + $0x648] sm:$0xff] %v1017_v9 }
  0x7a   : > { %1020 = vst [vmem:[%s5403_s27 + $0x650] sm:$0xff] %v1019_v10  ;;  %1022 = vst [vmem:[%s5403_s27 + $0x658] sm:$0xff] %v1021_v11  ;;  %v1023_v12 = vld [vmem:[%s5395_s26 + $0xcc0] sm:$0xff]  ;;  %v1025_v13 = vld [vmem:[%s5395_s26 + $0xcd0] sm:$0xff] }
  0x7b   : > { %v1027_v14 = vld [vmem:[%s5395_s26 + $0xce0] sm:$0xff]  ;;  %1024 = vst [vmem:[%s5403_s27 + $0x660] sm:$0xff] %v1023_v12  ;;  %1026 = vst [vmem:[%s5403_s27 + $0x668] sm:$0xff] %v1025_v13  ;;  %v1029_v15 = vld [vmem:[%s5395_s26 + $0xcf0] sm:$0xff] }
  0x7c   : > { %1028 = vst [vmem:[%s5403_s27 + $0x670] sm:$0xff] %v1027_v14  ;;  %v1031_v16 = vld [vmem:[%s5395_s26 + $0xd00] sm:$0xff]  ;;  %v1033_v17 = vld [vmem:[%s5395_s26 + $0xd10] sm:$0xff]  ;;  %1030 = vst [vmem:[%s5403_s27 + $0x678] sm:$0xff] %v1029_v15 }
  0x7d   : > { %1032 = vst [vmem:[%s5403_s27 + $0x680] sm:$0xff] %v1031_v16  ;;  %1034 = vst [vmem:[%s5403_s27 + $0x688] sm:$0xff] %v1033_v17  ;;  %v1035_v18 = vld [vmem:[%s5395_s26 + $0xd20] sm:$0xff]  ;;  %v1037_v19 = vld [vmem:[%s5395_s26 + $0xd30] sm:$0xff] }
  0x7e   : > { %v1039_v20 = vld [vmem:[%s5395_s26 + $0xd40] sm:$0xff]  ;;  %1036 = vst [vmem:[%s5403_s27 + $0x690] sm:$0xff] %v1035_v18  ;;  %1038 = vst [vmem:[%s5403_s27 + $0x698] sm:$0xff] %v1037_v19  ;;  %v1041_v21 = vld [vmem:[%s5395_s26 + $0xd50] sm:$0xff] }
  0x7f   : > { %1040 = vst [vmem:[%s5403_s27 + $0x6a0] sm:$0xff] %v1039_v20  ;;  %v1043_v22 = vld [vmem:[%s5395_s26 + $0xd60] sm:$0xff]  ;;  %v1045_v23 = vld [vmem:[%s5395_s26 + $0xd70] sm:$0xff]  ;;  %1042 = vst [vmem:[%s5403_s27 + $0x6a8] sm:$0xff] %v1041_v21 }
  0x80   : > { %1044 = vst [vmem:[%s5403_s27 + $0x6b0] sm:$0xff] %v1043_v22  ;;  %1046 = vst [vmem:[%s5403_s27 + $0x6b8] sm:$0xff] %v1045_v23  ;;  %v1047_v24 = vld [vmem:[%s5395_s26 + $0xd80] sm:$0xff]  ;;  %v1049_v25 = vld [vmem:[%s5395_s26 + $0xd90] sm:$0xff] }
  0x81   : > { %v1051_v26 = vld [vmem:[%s5395_s26 + $0xda0] sm:$0xff]  ;;  %1048 = vst [vmem:[%s5403_s27 + $0x6c0] sm:$0xff] %v1047_v24  ;;  %1050 = vst [vmem:[%s5403_s27 + $0x6c8] sm:$0xff] %v1049_v25  ;;  %v1053_v27 = vld [vmem:[%s5395_s26 + $0xdb0] sm:$0xff] }
  0x82   : > { %1052 = vst [vmem:[%s5403_s27 + $0x6d0] sm:$0xff] %v1051_v26  ;;  %v1055_v28 = vld [vmem:[%s5395_s26 + $0xdc0] sm:$0xff]  ;;  %v1057_v29 = vld [vmem:[%s5395_s26 + $0xdd0] sm:$0xff]  ;;  %1054 = vst [vmem:[%s5403_s27 + $0x6d8] sm:$0xff] %v1053_v27 }
  0x83   : > { %1056 = vst [vmem:[%s5403_s27 + $0x6e0] sm:$0xff] %v1055_v28  ;;  %1058 = vst [vmem:[%s5403_s27 + $0x6e8] sm:$0xff] %v1057_v29  ;;  %v1059_v30 = vld [vmem:[%s5395_s26 + $0xde0] sm:$0xff]  ;;  %v1061_v31 = vld [vmem:[%s5395_s26 + $0xdf0] sm:$0xff] }
  0x84   : > { %v1063_v32 = vld [vmem:[%s5395_s26 + $0xe00] sm:$0xff]  ;;  %1060 = vst [vmem:[%s5403_s27 + $0x6f0] sm:$0xff] %v1059_v30  ;;  %1062 = vst [vmem:[%s5403_s27 + $0x6f8] sm:$0xff] %v1061_v31 }
  0x85   : > { %1064 = vst [vmem:[%s5403_s27 + $0x700] sm:$0xff] %v1063_v32 }
  0x86 PF: > { %p4203_p7 = scmp.ge.s32.totalorder %s5331_s14, 1  ;;  %p1077_p8 = scmp.lt.s32.totalorder %s5331_s14, 3 }
  0x88   : > { %p1078_p9 = pnand %p4203_p7, %p1077_p8 }
  0x89   : > { %s1084_s28 = sand.u32 (!%p1078_p9), 1, %s5323_s12   ;;  %v4922_v33 = vld [vmem:[%s6462_s0 + $0x4] ss:$60 sps:$4 sm:$0xff] (!%p1078_p9)   ;;  %vm3108_vm0 = vcmask (!%p1078_p9), 1043456   ;;  %vm3086_vm1 = vcmask (!%p1078_p9), 64512   ;;  %s4204_s8 = sshll.u32 (!%p1078_p9), %s5370_s15, 1 }
  0x8a   : > { %1081 = sbr.rel (%p1078_p9) target bundleno = 677 (0x2a5), region = 66  ;;  %v4928_v34 = vld [vmem:[%s6462_s0 + $0x24] ss:$60 sps:$4 sm:$0xff] (!%p1078_p9)   ;;  %3147 = vmatprep.mubr.bf16.mxu1 (!%p1078_p9), %v4922_v33  ;;  %p1112_p10 = scmp.lt.s32.totalorder (!%p1078_p9), %s4204_s8, 3 }
  0x8b   : > { %s4797_s29 = smul.u32 (!%p1078_p9), 1800, %s1084_s28  ;;  %3551 = vmatprep.mubr.bf16.mxu0 (!%p1078_p9), %v4928_v34 }
  0x8c   : > { %s4798_s14 = smul.u32 (!%p1078_p9), 104, %s1084_s28 }
  0x8d   : > { %s5860_s7 = scalar_lea.vmem (!%p1078_p9), [#allocation2], %s4797_s29 }
  0x8e   : > { %v4824_v35 = vld [vmem:[%s5860_s7 + $0x4] ss:$8 sps:$4 sm:$0xff] (!%p1078_p9)   ;;  %v4828_v37 = vld [vmem:[%s5860_s7] ss:$8 sps:$4 sm:$0xff] (!%p1078_p9)   ;;  %v4830_v39 = vld [vmem:[%s5860_s7 + $0x14] ss:$8 sps:$4 sm:$0xff] (!%p1078_p9)  }
  0x8f   : > { %v4826_v36 = vld [vmem:[%s5860_s7 + $0x404] ss:$8 sps:$4 sm:$0xff] (!%p1078_p9)   ;;  %3115 = vmatprep.subr.bf16.mxu1 (!%p1078_p9), %v4824_v35  ;;  %v4829_v38 = vld [vmem:[%s5860_s7 + $0x400] ss:$8 sps:$4 sm:$0xff] (!%p1078_p9)   ;;  %v4832_v40 = vld [vmem:[%s5860_s7 + $0x414] ss:$8 sps:$4 sm:$0xff] (!%p1078_p9)  }
  0x90   : > { %3519 = vmatprep.subr.bf16.mxu0 (!%p1078_p9), %v4826_v36  ;;  %3116 = vmatpush1.bf16.msra.mxu1 (!%p1078_p9), %v4828_v37  ;;  %v4834_v41 = vld [vmem:[%s5860_s7 + $0x10] ss:$8 sps:$4 sm:$0xff] (!%p1078_p9)   ;;  %v4836_v43 = vld [vmem:[%s5860_s7 + $0x24] ss:$8 sps:$4 sm:$0xff] (!%p1078_p9)   ;;  %v4840_v45 = vld [vmem:[%s5860_s7 + $0x20] ss:$8 sps:$4 sm:$0xff] (!%p1078_p9)  }
  0x91   : > { %3520 = vmatpush1.bf16.msra.mxu0 %v4829_v38  ;;  %3117 = vmatprep.subr.bf16.mxu1 %v4830_v39  ;;  %v4835_v42 = vld [vmem:[%s5860_s7 + $0x410] ss:$8 sps:$4 sm:$0xff]   ;;  %v4838_v44 = vld [vmem:[%s5860_s7 + $0x424] ss:$8 sps:$4 sm:$0xff]   ;;  %v4841_v46 = vld [vmem:[%s5860_s7 + $0x420] ss:$8 sps:$4 sm:$0xff]  }
  0x92   : > { %3521 = vmatprep.subr.bf16.mxu0 %v4832_v40  ;;  %v4842_v47 = vld [vmem:[%s5860_s7 + $0x34] ss:$8 sps:$4 sm:$0xff]   ;;  %v4846_v49 = vld [vmem:[%s5860_s7 + $0x30] ss:$8 sps:$4 sm:$0xff]   ;;  %v4848_v51 = vld [vmem:[%s5860_s7 + $0x44] ss:$8 sps:$4 sm:$0xff]  }
  0x93   : > { %v4844_v48 = vld [vmem:[%s5860_s7 + $0x434] ss:$8 sps:$4 sm:$0xff]   ;;  %v4847_v50 = vld [vmem:[%s5860_s7 + $0x430] ss:$8 sps:$4 sm:$0xff]   ;;  %v4850_v52 = vld [vmem:[%s5860_s7 + $0x444] ss:$8 sps:$4 sm:$0xff]  }
  0x94   : > { %3118 = vmatpush1.bf16.msra.mxu1 %v4834_v41  ;;  %v4852_v53 = vld [vmem:[%s5860_s7 + $0x40] ss:$8 sps:$4 sm:$0xff]   ;;  %v4854_v55 = vld [vmem:[%s5860_s7 + $0x54] ss:$8 sps:$4 sm:$0xff]   ;;  %v4858_v57 = vld [vmem:[%s5860_s7 + $0x50] ss:$8 sps:$4 sm:$0xff]  }
  0x95   : > { %3522 = vmatpush1.bf16.msra.mxu0 %v4835_v42  ;;  %3119 = vmatprep.subr.bf16.mxu1 %v4836_v43  ;;  %v4853_v54 = vld [vmem:[%s5860_s7 + $0x440] ss:$8 sps:$4 sm:$0xff]   ;;  %v4856_v56 = vld [vmem:[%s5860_s7 + $0x454] ss:$8 sps:$4 sm:$0xff]   ;;  %v4859_v58 = vld [vmem:[%s5860_s7 + $0x450] ss:$8 sps:$4 sm:$0xff]  }
  0x96   : > { %3523 = vmatprep.subr.bf16.mxu0 %v4838_v44  ;;  %v4860_v59 = vld [vmem:[%s5860_s7 + $0x64] ss:$8 sps:$4 sm:$0xff]   ;;  %v4864_v61 = vld [vmem:[%s5860_s7 + $0x60] ss:$8 sps:$4 sm:$0xff]   ;;  %v4866_v63 = vld [vmem:[%s5860_s7 + $0x74] ss:$8 sps:$4 sm:$0xff]  }
  0x97   : > { %v4862_v60 = vld [vmem:[%s5860_s7 + $0x464] ss:$8 sps:$4 sm:$0xff]   ;;  %v4865_v62 = vld [vmem:[%s5860_s7 + $0x460] ss:$8 sps:$4 sm:$0xff]   ;;  %v4868_v0 = vld [vmem:[%s5860_s7 + $0x474] ss:$8 sps:$4 sm:$0xff]  }
  0x98   : > { %3120 = vmatpush1.bf16.msra.mxu1 %v4840_v45  ;;  %v4870_v1 = vld [vmem:[%s5860_s7 + $0x70] ss:$8 sps:$4 sm:$0xff]   ;;  %v4872_v3 = vld [vmem:[%s5860_s7 + $0x84] ss:$8 sps:$4 sm:$0xff]   ;;  %v4876_v5 = vld [vmem:[%s5860_s7 + $0x80] ss:$8 sps:$4 sm:$0xff]  }
  0x99   : > { %3524 = vmatpush1.bf16.msra.mxu0 %v4841_v46  ;;  %3121 = vmatprep.subr.bf16.mxu1 %v4842_v47  ;;  %v4871_v2 = vld [vmem:[%s5860_s7 + $0x470] ss:$8 sps:$4 sm:$0xff]   ;;  %v4874_v4 = vld [vmem:[%s5860_s7 + $0x484] ss:$8 sps:$4 sm:$0xff]   ;;  %v4877_v6 = vld [vmem:[%s5860_s7 + $0x480] ss:$8 sps:$4 sm:$0xff]  }
  0x9a   : > { %3525 = vmatprep.subr.bf16.mxu0 %v4844_v48  ;;  %v4878_v7 = vld [vmem:[%s5860_s7 + $0x94] ss:$8 sps:$4 sm:$0xff]   ;;  %v4882_v9 = vld [vmem:[%s5860_s7 + $0x90] ss:$8 sps:$4 sm:$0xff]   ;;  %v4884_v11 = vld [vmem:[%s5860_s7 + $0xa4] ss:$8 sps:$4 sm:$0xff]  }
  0x9b   : > { %v4880_v8 = vld [vmem:[%s5860_s7 + $0x494] ss:$8 sps:$4 sm:$0xff]   ;;  %v4883_v10 = vld [vmem:[%s5860_s7 + $0x490] ss:$8 sps:$4 sm:$0xff]   ;;  %v4886_v12 = vld [vmem:[%s5860_s7 + $0x4a4] ss:$8 sps:$4 sm:$0xff]  }
  0x9c   : > { %3122 = vmatpush1.bf16.msra.mxu1 %v4846_v49  ;;  %v4888_v13 = vld [vmem:[%s5860_s7 + $0xa0] ss:$8 sps:$4 sm:$0xff]   ;;  %v4890_v15 = vld [vmem:[%s5860_s7 + $0xb4] ss:$8 sps:$4 sm:$0xff]   ;;  %v4894_v17 = vld [vmem:[%s5860_s7 + $0xb0] ss:$8 sps:$4 sm:$0xff]  }
  0x9d   : > { %3526 = vmatpush1.bf16.msra.mxu0 %v4847_v50  ;;  %3123 = vmatprep.subr.bf16.mxu1 %v4848_v51  ;;  %v4889_v14 = vld [vmem:[%s5860_s7 + $0x4a0] ss:$8 sps:$4 sm:$0xff]   ;;  %v4892_v16 = vld [vmem:[%s5860_s7 + $0x4b4] ss:$8 sps:$4 sm:$0xff]   ;;  %v4895_v18 = vld [vmem:[%s5860_s7 + $0x4b0] ss:$8 sps:$4 sm:$0xff]  }
  0x9e   : > { %3527 = vmatprep.subr.bf16.mxu0 %v4850_v52  ;;  %v4896_v19 = vld [vmem:[%s5860_s7 + $0xc4] ss:$8 sps:$4 sm:$0xff]   ;;  %v4900_v21 = vld [vmem:[%s5860_s7 + $0xc0] ss:$8 sps:$4 sm:$0xff]   ;;  %v4902_v23 = vld [vmem:[%s5860_s7 + $0xd4] ss:$8 sps:$4 sm:$0xff]  }
  0x9f   : > { %v4898_v20 = vld [vmem:[%s5860_s7 + $0x4c4] ss:$8 sps:$4 sm:$0xff]   ;;  %v4901_v22 = vld [vmem:[%s5860_s7 + $0x4c0] ss:$8 sps:$4 sm:$0xff]   ;;  %v4904_v24 = vld [vmem:[%s5860_s7 + $0x4d4] ss:$8 sps:$4 sm:$0xff]  }
  0xa0   : > { %3124 = vmatpush1.bf16.msra.mxu1 %v4852_v53  ;;  %v4906_v25 = vld [vmem:[%s5860_s7 + $0xd0] ss:$8 sps:$4 sm:$0xff]   ;;  %v4908_v27 = vld [vmem:[%s5860_s7 + $0xe4] ss:$8 sps:$4 sm:$0xff]   ;;  %v4912_v29 = vld [vmem:[%s5860_s7 + $0xe0] ss:$8 sps:$4 sm:$0xff]  }
  0xa1   : > { %3528 = vmatpush1.bf16.msra.mxu0 %v4853_v54  ;;  %3125 = vmatprep.subr.bf16.mxu1 %v4854_v55  ;;  %v4907_v26 = vld [vmem:[%s5860_s7 + $0x4d0] ss:$8 sps:$4 sm:$0xff]   ;;  %v4910_v28 = vld [vmem:[%s5860_s7 + $0x4e4] ss:$8 sps:$4 sm:$0xff]   ;;  %v4913_v30 = vld [vmem:[%s5860_s7 + $0x4e0] ss:$8 sps:$4 sm:$0xff]  }
  0xa2   : > { %3529 = vmatprep.subr.bf16.mxu0 %v4856_v56  ;;  %v4914_v31 = vld [vmem:[%s5860_s7 + $0xf4] ss:$8 sps:$4 sm:$0xff]   ;;  %v4918_v33 = vld [vmem:[%s5860_s7 + $0xf0] ss:$8 sps:$4 sm:$0xff]   ;;  %v4925_v35 = vld [vmem:[%s5860_s7 + $0x104] ss:$8 sps:$4 sm:$0xff]  }
  0xa3   : > { %v4916_v32 = vld [vmem:[%s5860_s7 + $0x4f4] ss:$8 sps:$4 sm:$0xff]   ;;  %v4919_v34 = vld [vmem:[%s5860_s7 + $0x4f0] ss:$8 sps:$4 sm:$0xff]   ;;  %v4931_v36 = vld [vmem:[%s5860_s7 + $0x504] ss:$8 sps:$4 sm:$0xff]  }
  0xa4   : > { %3126 = vmatpush1.bf16.msra.mxu1 %v4858_v57  ;;  %v4920_v37 = vld [vmem:[%s6462_s0] ss:$60 sps:$4 sm:$0xff]   ;;  %v4940_v47 = vld [vmem:[%s5860_s7 + $0x124] ss:$8 sps:$4 sm:$0xff]   ;;  %s6471_s8 = smov (!%p1112_p10, %s4204_s8), 3  ;;  %s6397_s12 = scalar_lea.vmem [#allocation3], %s4798_s14 }
  0xa5   : > { %3530 = vmatpush1.bf16.msra.mxu0 %v4859_v58  ;;  %3127 = vmatprep.subr.bf16.mxu1 %v4860_v59  ;;  %v4926_v38 = vld [vmem:[%s6462_s0 + $0x20] ss:$60 sps:$4 sm:$0xff]   ;;  %v4943_v48 = vld [vmem:[%s5860_s7 + $0x524] ss:$8 sps:$4 sm:$0xff]   ;;  %s1114_s11 = scalar_lea.vmem %s6464_s2, %s6471_s8  ;;  %s4575_s28 = sshll.u32 (%p5385_p5), %s5370_s15, 3 }
  0xa6   : > { %3531 = vmatprep.subr.bf16.mxu0 %v4862_v60  ;;  %v4923_v39 = vld [vmem:[%s5860_s7 + $0x100] ss:$8 sps:$4 sm:$0xff]   ;;  %v4934_v41 = vld [vmem:[%s5860_s7 + $0x114] ss:$8 sps:$4 sm:$0xff]   ;;  %v4932_v45 = vld [vmem:[%s5860_s7 + $0x110] ss:$8 sps:$4 sm:$0xff]   ;;  %s4051_s21 = scalar_lea.vmem (%p5385_p5), %s6465_s3, %s4575_s28 }
  0xa7   : > { %v4929_v40 = vld [vmem:[%s5860_s7 + $0x500] ss:$8 sps:$4 sm:$0xff]   ;;  %v4937_v42 = vld [vmem:[%s5860_s7 + $0x514] ss:$8 sps:$4 sm:$0xff]   ;;  %v4935_v46 = vld [vmem:[%s5860_s7 + $0x510] ss:$8 sps:$4 sm:$0xff]  }
  0xa8   : > { %3128 = vmatpush1.bf16.msra.mxu1 %v4864_v61  ;;  %v4950_v43 = vld [vmem:[%s6462_s0 + $0x7c] ss:$60 sps:$4 sm:$0xff]   ;;  %v4938_v51 = vld [vmem:[%s5860_s7 + $0x120] ss:$8 sps:$4 sm:$0xff]   ;;  %v4954_v59 = vld [vmem:[%s5860_s7 + $0x144] ss:$8 sps:$4 sm:$0xff]  }
  0xa9   : > { %3532 = vmatpush1.bf16.msra.mxu0 %v4865_v62  ;;  %3129 = vmatprep.subr.bf16.mxu1 %v4866_v63  ;;  %v4955_v44 = vld [vmem:[%s6462_s0 + $0x9c] ss:$60 sps:$4 sm:$0xff]   ;;  %v4941_v52 = vld [vmem:[%s5860_s7 + $0x520] ss:$8 sps:$4 sm:$0xff]   ;;  %v4959_v60 = vld [vmem:[%s5860_s7 + $0x544] ss:$8 sps:$4 sm:$0xff]  }
  0xaa   : > { %3533 = vmatprep.subr.bf16.mxu0 %v4868_v0  ;;  %v4960_v49 = vld [vmem:[%s6462_s0 + $0x78] ss:$60 sps:$4 sm:$0xff]   ;;  %v4978_v61 = vld [vmem:[%s6462_s0 + $0xf0] ss:$60 sps:$4 sm:$0xff]  }
  0xab   : > { %v4961_v50 = vld [vmem:[%s6462_s0 + $0x98] ss:$60 sps:$4 sm:$0xff]   ;;  %v4979_v62 = vld [vmem:[%s6462_s0 + $0x110] ss:$60 sps:$4 sm:$0xff]  }
  0xac   : > { %3130 = vmatpush1.bf16.msra.mxu1 %v4870_v1  ;;  %v4946_v53 = vld [vmem:[%s5860_s7 + $0x134] ss:$8 sps:$4 sm:$0xff]   ;;  %v4944_v57 = vld [vmem:[%s5860_s7 + $0x130] ss:$8 sps:$4 sm:$0xff]   ;;  %v4952_v63 = vld [vmem:[%s5860_s7 + $0x140] ss:$8 sps:$4 sm:$0xff]  }
  0xad   : > { %3534 = vmatpush1.bf16.msra.mxu0 %v4871_v2  ;;  %3131 = vmatprep.subr.bf16.mxu1 %v4872_v3  ;;  %v4949_v54 = vld [vmem:[%s5860_s7 + $0x534] ss:$8 sps:$4 sm:$0xff]   ;;  %v4947_v58 = vld [vmem:[%s5860_s7 + $0x530] ss:$8 sps:$4 sm:$0xff]   ;;  %v4957_v0 = vld [vmem:[%s5860_s7 + $0x540] ss:$8 sps:$4 sm:$0xff]  }
  0xae   : > { %3535 = vmatprep.subr.bf16.mxu0 %v4874_v4  ;;  %v4968_v55 = vld [vmem:[%s6462_s0 + $0xf4] ss:$60 sps:$4 sm:$0xff]   ;;  %v4986_v3 = vld [vmem:[%s6462_s0 + $0x16c] ss:$60 sps:$4 sm:$0xff]  }
  0xaf   : > { %v4973_v56 = vld [vmem:[%s6462_s0 + $0x114] ss:$60 sps:$4 sm:$0xff]   ;;  %v4991_v4 = vld [vmem:[%s6462_s0 + $0x18c] ss:$60 sps:$4 sm:$0xff]  }
  0xb0   : > { %3132 = vmatpush1.bf16.msra.mxu1 %v4876_v5  ;;  %v4964_v1 = vld [vmem:[%s5860_s7 + $0x154] ss:$8 sps:$4 sm:$0xff]   ;;  %v4962_v5 = vld [vmem:[%s5860_s7 + $0x150] ss:$8 sps:$4 sm:$0xff]  }
  0xb1   : > { %3536 = vmatpush1.bf16.msra.mxu0 %v4877_v6  ;;  %3133 = vmatprep.subr.bf16.mxu1 %v4878_v7  ;;  %v4967_v2 = vld [vmem:[%s5860_s7 + $0x554] ss:$8 sps:$4 sm:$0xff]   ;;  %v4965_v6 = vld [vmem:[%s5860_s7 + $0x550] ss:$8 sps:$4 sm:$0xff]   ;;  %v4972_v7 = vld [vmem:[%s5860_s7 + $0x164] ss:$8 sps:$4 sm:$0xff]  }
  0xb2   : > { %3537 = vmatprep.subr.bf16.mxu0 %v4880_v8  ;;  %v4977_v8 = vld [vmem:[%s5860_s7 + $0x564] ss:$8 sps:$4 sm:$0xff]  }
  0xb4   : > { %3134 = vmatpush1.bf16.msra.mxu1 %v4882_v9  ;;  %v4996_v9 = vld [vmem:[%s6462_s0 + $0x168] ss:$60 sps:$4 sm:$0xff]  }
  0xb5   : > { %3538 = vmatpush1.bf16.msra.mxu0 %v4883_v10  ;;  %3135 = vmatprep.subr.bf16.mxu1 %v4884_v11  ;;  %v4997_v10 = vld [vmem:[%s6462_s0 + $0x188] ss:$60 sps:$4 sm:$0xff]  }
  0xb6   : > { %3539 = vmatprep.subr.bf16.mxu0 %v4886_v12  ;;  %v4970_v11 = vld [vmem:[%s5860_s7 + $0x160] ss:$8 sps:$4 sm:$0xff]  }
  0xb7   : > { %v4975_v12 = vld [vmem:[%s5860_s7 + $0x560] ss:$8 sps:$4 sm:$0xff]  }
  0xb8   : > { %3136 = vmatpush1.bf16.msra.mxu1 %v4888_v13  ;;  %v4982_v13 = vld [vmem:[%s5860_s7 + $0x174] ss:$8 sps:$4 sm:$0xff]  }
  0xb9   : > { %3540 = vmatpush1.bf16.msra.mxu0 %v4889_v14  ;;  %3137 = vmatprep.subr.bf16.mxu1 %v4890_v15  ;;  %v4985_v14 = vld [vmem:[%s5860_s7 + $0x574] ss:$8 sps:$4 sm:$0xff]  }
  0xba   : > { %3541 = vmatprep.subr.bf16.mxu0 %v4892_v16  ;;  %v5004_v15 = vld [vmem:[%s6462_s0 + $0x1e4] ss:$60 sps:$4 sm:$0xff]  }
  0xbb   : > { %v5009_v16 = vld [vmem:[%s6462_s0 + $0x204] ss:$60 sps:$4 sm:$0xff]  }
  0xbc   : > { %3138 = vmatpush1.bf16.msra.mxu1 %v4894_v17  ;;  %v4980_v17 = vld [vmem:[%s5860_s7 + $0x170] ss:$8 sps:$4 sm:$0xff]  }
  0xbd   : > { %3542 = vmatpush1.bf16.msra.mxu0 %v4895_v18  ;;  %3139 = vmatprep.subr.bf16.mxu1 %v4896_v19  ;;  %v4983_v18 = vld [vmem:[%s5860_s7 + $0x570] ss:$8 sps:$4 sm:$0xff]   ;;  %v4990_v19 = vld [vmem:[%s5860_s7 + $0x184] ss:$8 sps:$4 sm:$0xff]  }
  0xbe   : > { %3543 = vmatprep.subr.bf16.mxu0 %v4898_v20  ;;  %v4995_v20 = vld [vmem:[%s5860_s7 + $0x584] ss:$8 sps:$4 sm:$0xff]  }
  0xc0   : > { %3140 = vmatpush1.bf16.msra.mxu1 %v4900_v21  ;;  %v4988_v21 = vld [vmem:[%s5860_s7 + $0x180] ss:$8 sps:$4 sm:$0xff]  }
  0xc1   : > { %3544 = vmatpush1.bf16.msra.mxu0 %v4901_v22  ;;  %3141 = vmatprep.subr.bf16.mxu1 %v4902_v23  ;;  %v5014_v22 = vld [vmem:[%s6462_s0 + $0x1e0] ss:$60 sps:$4 sm:$0xff]  }
  0xc2   : > { %3545 = vmatprep.subr.bf16.mxu0 %v4904_v24  ;;  %v5015_v23 = vld [vmem:[%s6462_s0 + $0x200] ss:$60 sps:$4 sm:$0xff]  }
  0xc3   : > { %v4993_v24 = vld [vmem:[%s5860_s7 + $0x580] ss:$8 sps:$4 sm:$0xff]  }
  0xc4   : > { %3142 = vmatpush1.bf16.msra.mxu1 %v4906_v25  ;;  %v5000_v25 = vld [vmem:[%s5860_s7 + $0x194] ss:$8 sps:$4 sm:$0xff]  }
  0xc5   : > { %3546 = vmatpush1.bf16.msra.mxu0 %v4907_v26  ;;  %3143 = vmatprep.subr.bf16.mxu1 %v4908_v27  ;;  %v5003_v26 = vld [vmem:[%s5860_s7 + $0x594] ss:$8 sps:$4 sm:$0xff]  }
  0xc6   : > { %3547 = vmatprep.subr.bf16.mxu0 %v4910_v28  ;;  %v5022_v27 = vld [vmem:[%s6462_s0 + $0x25c] ss:$60 sps:$4 sm:$0xff]  }
  0xc7   : > { %v4998_v28 = vld [vmem:[%s5860_s7 + $0x190] ss:$8 sps:$4 sm:$0xff]  }
  0xc8   : > { %3144 = vmatpush1.bf16.msra.mxu1 %v4912_v29  ;;  %v5027_v29 = vld [vmem:[%s6462_s0 + $0x27c] ss:$60 sps:$4 sm:$0xff]  }
  0xc9   : > { %3548 = vmatpush1.bf16.msra.mxu0 %v4913_v30  ;;  %3145 = vmatprep.subr.bf16.mxu1 %v4914_v31  ;;  %v5001_v30 = vld [vmem:[%s5860_s7 + $0x590] ss:$8 sps:$4 sm:$0xff]   ;;  %v5008_v31 = vld [vmem:[%s5860_s7 + $0x1a4] ss:$8 sps:$4 sm:$0xff]  }
  0xca   : > { %3549 = vmatprep.subr.bf16.mxu0 %v4916_v32  ;;  %v5013_v32 = vld [vmem:[%s5860_s7 + $0x5a4] ss:$8 sps:$4 sm:$0xff]  }
  0xcc   : > { %3146 = vmatpush1.bf16.msra.mxu1 %v4918_v33  ;;  %v5032_v33 = vld [vmem:[%s6462_s0 + $0x258] ss:$60 sps:$4 sm:$0xff]  }
  0xcd   : > { %3550 = vmatpush1.bf16.msra.mxu0 %v4919_v34  ;;  %3216 = vmatprep.subr.bf16.mxu1 %v4925_v35  ;;  %v5033_v34 = vld [vmem:[%s6462_s0 + $0x278] ss:$60 sps:$4 sm:$0xff]  }
  0xce   : > { %3620 = vmatprep.subr.bf16.mxu0 %v4931_v36  ;;  %v1214_v35 = vld [vmem:[%s6462_s0 + $0x2d0] sm:$0x11] }
  0xcf   : > { %3148 = vmatmul.mubr.bf16.vlgmr.msra.gmra.mrb[0].mxu1 %v4920_v37  ;;  %v1218_v36 = vld [vmem:[%s6462_s0 + $0x2f0] sm:$0x11] }
  0xd0   : > { %3552 = vmatmul.mubr.bf16.vlgmr.msra.gmra.mrb[0].mxu0 %v4926_v38  ;;  %3217 = vmatpush1.bf16.msra.mxu1 %v4923_v39  ;;  %v5006_v37 = vld [vmem:[%s5860_s7 + $0x1a0] ss:$8 sps:$4 sm:$0xff]   ;;  %v5018_v39 = vld [vmem:[%s5860_s7 + $0x1b4] ss:$8 sps:$4 sm:$0xff]  }
  0xd1   : > { %3621 = vmatpush1.bf16.msra.mxu0 %v4929_v40  ;;  %3218 = vmatprep.subr.bf16.mxu1 %v4934_v41  ;;  %v5011_v38 = vld [vmem:[%s5860_s7 + $0x5a0] ss:$8 sps:$4 sm:$0xff]   ;;  %v5021_v40 = vld [vmem:[%s5860_s7 + $0x5b4] ss:$8 sps:$4 sm:$0xff]   ;;  %v4296_v41 = vcombine.high %v1214_v35, %v1214_v35 }
  0xd2   : > { %3622 = vmatprep.subr.bf16.mxu0 %v4937_v42  ;;  %3157 = vmatprep.mubr.bf16.mxu1 %v4950_v43  ;;  %v4304_v42 = vcombine.high %v1218_v36, %v1218_v36  ;;  %v5016_v43 = vld [vmem:[%s5860_s7 + $0x1b0] ss:$8 sps:$4 sm:$0xff]  }
  0xd3   : > { %3561 = vmatprep.mubr.bf16.mxu0 %v4955_v44  ;;  %v5019_v44 = vld [vmem:[%s5860_s7 + $0x5b0] ss:$8 sps:$4 sm:$0xff]  }
  0xd4   : > { %3219 = vmatpush1.bf16.msra.mxu1 %v4932_v45  ;;  %v5026_v45 = vld [vmem:[%s5860_s7 + $0x1c4] ss:$8 sps:$4 sm:$0xff]  }
  0xd5   : > { %3623 = vmatpush1.bf16.msra.mxu0 %v4935_v46  ;;  %3220 = vmatprep.subr.bf16.mxu1 %v4940_v47  ;;  %v5031_v46 = vld [vmem:[%s5860_s7 + $0x5c4] ss:$8 sps:$4 sm:$0xff]   ;;  %v5024_v47 = vld [vmem:[%s5860_s7 + $0x1c0] ss:$8 sps:$4 sm:$0xff]  }
  0xd6   : > { %3624 = vmatprep.subr.bf16.mxu0 %v4943_v48  ;;  %v5029_v48 = vld [vmem:[%s5860_s7 + $0x5c0] ss:$8 sps:$4 sm:$0xff]  }
  0xd7   : > { %3158 = vmatmul.mubr.bf16.gmra.mrb[4].mxu1 %v4960_v49  ;;  %v4295_v49 = vcombine.low %v1214_v35, %v1214_v35  ;;  %v5098_v35 = vld [vmem:[%s5860_s7 + $0x250] ss:$8 sps:$4 sm:$0xff]  }
  0xd8   : > { %3562 = vmatmul.mubr.bf16.gmra.mrb[4].mxu0 %v4961_v50  ;;  %3221 = vmatpush1.bf16.msra.mxu1 %v4938_v51  ;;  %v4303_v50 = vcombine.low %v1218_v36, %v1218_v36  ;;  %v5036_v51 = vld [vmem:[%s5860_s7 + $0x1d4] ss:$8 sps:$4 sm:$0xff]   ;;  %v5101_v36 = vld [vmem:[%s5860_s7 + $0x650] ss:$8 sps:$4 sm:$0xff]  }
  0xd9   : > { %3625 = vmatpush1.bf16.msra.mxu0 %v4941_v52  ;;  %3222 = vmatprep.subr.bf16.mxu1 %v4946_v53  ;;  %v5039_v52 = vld [vmem:[%s5860_s7 + $0x5d4] ss:$8 sps:$4 sm:$0xff]   ;;  %v5058_v53 = vld [vmem:[%s6462_s0 + $0xc] ss:$60 sps:$4 sm:$0xff]  }
  0xda   : > { %3626 = vmatprep.subr.bf16.mxu0 %v4949_v54  ;;  %3167 = vmatprep.mubr.bf16.mxu1 %v4968_v55  ;;  %v5064_v54 = vld [vmem:[%s6462_s0 + $0x2c] ss:$60 sps:$4 sm:$0xff]   ;;  %v5034_v55 = vld [vmem:[%s5860_s7 + $0x1d0] ss:$8 sps:$4 sm:$0xff]  }
  0xdb   : > { %3571 = vmatprep.mubr.bf16.mxu0 %v4973_v56  ;;  %v5037_v56 = vld [vmem:[%s5860_s7 + $0x5d0] ss:$8 sps:$4 sm:$0xff]  }
  0xdc   : > { %3223 = vmatpush1.bf16.msra.mxu1 %v4944_v57  ;;  %v5043_v57 = vld [vmem:[%s5860_s7 + $0x1e4] ss:$8 sps:$4 sm:$0xff]  }
  0xdd   : > { %3627 = vmatpush1.bf16.msra.mxu0 %v4947_v58  ;;  %3224 = vmatprep.subr.bf16.mxu1 %v4954_v59  ;;  %v5047_v58 = vld [vmem:[%s5860_s7 + $0x5e4] ss:$8 sps:$4 sm:$0xff]   ;;  %v5041_v59 = vld [vmem:[%s5860_s7 + $0x1e0] ss:$8 sps:$4 sm:$0xff]  }
  0xde   : > { %3628 = vmatprep.subr.bf16.mxu0 %v4959_v60  ;;  %v5045_v60 = vld [vmem:[%s5860_s7 + $0x5e0] ss:$8 sps:$4 sm:$0xff]  }
  0xdf   : > { %3168 = vmatmul.mubr.bf16.gmra.mrb[8].mxu1 %v4978_v61  ;;  %v5052_v61 = vld [vmem:[%s5860_s7 + $0x1f4] ss:$8 sps:$4 sm:$0xff]  }
  0xe0   : > { %3572 = vmatmul.mubr.bf16.gmra.mrb[8].mxu0 %v4979_v62  ;;  %3225 = vmatpush1.bf16.msra.mxu1 %v4952_v63  ;;  %v5055_v62 = vld [vmem:[%s5860_s7 + $0x5f4] ss:$8 sps:$4 sm:$0xff]   ;;  %v5050_v63 = vld [vmem:[%s5860_s7 + $0x1f0] ss:$8 sps:$4 sm:$0xff]  }
  0xe1   : > { %3629 = vmatpush1.bf16.msra.mxu0 %v4957_v0  ;;  %3226 = vmatprep.subr.bf16.mxu1 %v4964_v1  ;;  %v5053_v0 = vld [vmem:[%s5860_s7 + $0x5f0] ss:$8 sps:$4 sm:$0xff]   ;;  %v5056_v1 = vld [vmem:[%s6462_s0 + $0x8] ss:$60 sps:$4 sm:$0xff]  }
  0xe2   : > { %3630 = vmatprep.subr.bf16.mxu0 %v4967_v2  ;;  %3177 = vmatprep.mubr.bf16.mxu1 %v4986_v3  ;;  %v5061_v2 = vld [vmem:[%s5860_s7 + $0x204] ss:$8 sps:$4 sm:$0xff]  }
  0xe3   : > { %3581 = vmatprep.mubr.bf16.mxu0 %v4991_v4  ;;  %v5067_v3 = vld [vmem:[%s5860_s7 + $0x604] ss:$8 sps:$4 sm:$0xff]   ;;  %v5059_v4 = vld [vmem:[%s5860_s7 + $0x200] ss:$8 sps:$4 sm:$0xff]  }
  0xe4   : > { %3227 = vmatpush1.bf16.msra.mxu1 %v4962_v5  ;;  %v5062_v5 = vld [vmem:[%s6462_s0 + $0x28] ss:$60 sps:$4 sm:$0xff]  }
  0xe5   : > { %3631 = vmatpush1.bf16.msra.mxu0 %v4965_v6  ;;  %3228 = vmatprep.subr.bf16.mxu1 %v4972_v7  ;;  %v5065_v6 = vld [vmem:[%s5860_s7 + $0x600] ss:$8 sps:$4 sm:$0xff]   ;;  %v5070_v7 = vld [vmem:[%s5860_s7 + $0x214] ss:$8 sps:$4 sm:$0xff]  }
  0xe6   : > { %3632 = vmatprep.subr.bf16.mxu0 %v4977_v8  ;;  %v5073_v8 = vld [vmem:[%s5860_s7 + $0x614] ss:$8 sps:$4 sm:$0xff]  }
  0xe7   : > { %3178 = vmatmul.mubr.bf16.gmra.mrb[12].mxu1 %v4996_v9  ;;  %v5086_v9 = vld [vmem:[%s6462_s0 + $0xa4] ss:$60 sps:$4 sm:$0xff]  }
  0xe8   : > { %3582 = vmatmul.mubr.bf16.gmra.mrb[12].mxu0 %v4997_v10  ;;  %3229 = vmatpush1.bf16.msra.mxu1 %v4970_v11  ;;  %v5088_v10 = vld [vmem:[%s6462_s0 + $0x84] ss:$60 sps:$4 sm:$0xff]  }
  0xe9   : > { %3633 = vmatpush1.bf16.msra.mxu0 %v4975_v12  ;;  %3230 = vmatprep.subr.bf16.mxu1 %v4982_v13  ;;  %v5068_v11 = vld [vmem:[%s5860_s7 + $0x210] ss:$8 sps:$4 sm:$0xff]   ;;  %v5076_v13 = vld [vmem:[%s5860_s7 + $0x224] ss:$8 sps:$4 sm:$0xff]  }
  0xea   : > { %3634 = vmatprep.subr.bf16.mxu0 %v4985_v14  ;;  %3187 = vmatprep.mubr.bf16.mxu1 %v5004_v15  ;;  %v5071_v12 = vld [vmem:[%s5860_s7 + $0x610] ss:$8 sps:$4 sm:$0xff]   ;;  %v5079_v14 = vld [vmem:[%s5860_s7 + $0x624] ss:$8 sps:$4 sm:$0xff]   ;;  %v5074_v15 = vld [vmem:[%s5860_s7 + $0x220] ss:$8 sps:$4 sm:$0xff]  }
  0xeb   : > { %3591 = vmatprep.mubr.bf16.mxu0 %v5009_v16  ;;  %v5077_v16 = vld [vmem:[%s5860_s7 + $0x620] ss:$8 sps:$4 sm:$0xff]  }
  0xec   : > { %3231 = vmatpush1.bf16.msra.mxu1 %v4980_v17  ;;  %v5093_v17 = vld [vmem:[%s6462_s0 + $0xa0] ss:$60 sps:$4 sm:$0xff]  }
  0xed   : > { %3635 = vmatpush1.bf16.msra.mxu0 %v4983_v18  ;;  %3232 = vmatprep.subr.bf16.mxu1 %v4990_v19  ;;  %v5097_v18 = vld [vmem:[%s6462_s0 + $0x80] ss:$60 sps:$4 sm:$0xff]  }
  0xee   : > { %3636 = vmatprep.subr.bf16.mxu0 %v4995_v20  ;;  %v5082_v19 = vld [vmem:[%s5860_s7 + $0x234] ss:$8 sps:$4 sm:$0xff]  }
  0xef   : > { %3188 = vmatmul.mubr.bf16.gmra.mrb[16].mxu1 %v5014_v22  ;;  %v5085_v20 = vld [vmem:[%s5860_s7 + $0x634] ss:$8 sps:$4 sm:$0xff]  }
  0xf0   : > { %3592 = vmatmul.mubr.bf16.gmra.mrb[16].mxu0 %v5015_v23  ;;  %3233 = vmatpush1.bf16.msra.mxu1 %v4988_v21  ;;  %v5104_v21 = vld [vmem:[%s6462_s0 + $0x11c] ss:$60 sps:$4 sm:$0xff]  }
  0xf1   : > { %3637 = vmatpush1.bf16.msra.mxu0 %v4993_v24  ;;  %3234 = vmatprep.subr.bf16.mxu1 %v5000_v25  ;;  %v5106_v22 = vld [vmem:[%s6462_s0 + $0xfc] ss:$60 sps:$4 sm:$0xff]   ;;  %v5092_v25 = vld [vmem:[%s5860_s7 + $0x244] ss:$8 sps:$4 sm:$0xff]  }
  0xf2   : > { %3638 = vmatprep.subr.bf16.mxu0 %v5003_v26  ;;  %3197 = vmatprep.mubr.bf16.mxu1 %v5022_v27  ;;  %v5080_v23 = vld [vmem:[%s5860_s7 + $0x230] ss:$8 sps:$4 sm:$0xff]   ;;  %v5096_v26 = vld [vmem:[%s5860_s7 + $0x644] ss:$8 sps:$4 sm:$0xff]   ;;  %v5090_v27 = vld [vmem:[%s5860_s7 + $0x240] ss:$8 sps:$4 sm:$0xff]  }
  0xf3   : > { %3601 = vmatprep.mubr.bf16.mxu0 %v5027_v29  ;;  %v5083_v24 = vld [vmem:[%s5860_s7 + $0x630] ss:$8 sps:$4 sm:$0xff]  }
  0xf4   : > { %3235 = vmatpush1.bf16.msra.mxu1 %v4998_v28  ;;  %v5094_v28 = vld [vmem:[%s5860_s7 + $0x640] ss:$8 sps:$4 sm:$0xff]   ;;  %v5111_v29 = vld [vmem:[%s6462_s0 + $0x118] ss:$60 sps:$4 sm:$0xff]  }
  0xf5   : > { %3639 = vmatpush1.bf16.msra.mxu0 %v5001_v30  ;;  %3236 = vmatprep.subr.bf16.mxu1 %v5008_v31  ;;  %v5115_v30 = vld [vmem:[%s6462_s0 + $0xf8] ss:$60 sps:$4 sm:$0xff]  }
  0xf6   : > { %3640 = vmatprep.subr.bf16.mxu0 %v5013_v32  ;;  %v5100_v31 = vld [vmem:[%s5860_s7 + $0x254] ss:$8 sps:$4 sm:$0xff]  }
  0xf7   : > { %3198 = vmatmul.mubr.bf16.gmra.mrb[20].mxu1 %v5032_v33  ;;  %v5103_v32 = vld [vmem:[%s5860_s7 + $0x654] ss:$8 sps:$4 sm:$0xff]  }
  0xf8   : > { %3602 = vmatmul.mubr.bf16.gmra.mrb[20].mxu0 %v5033_v34  ;;  %3237 = vmatpush1.bf16.msra.mxu1 %v5006_v37  ;;  %v5122_v33 = vld [vmem:[%s6462_s0 + $0x194] ss:$60 sps:$4 sm:$0xff]  }
  0xf9   : > { %3641 = vmatpush1.bf16.msra.mxu0 %v5011_v38  ;;  %3238 = vmatprep.subr.bf16.mxu1 %v5018_v39  ;;  %v5124_v34 = vld [vmem:[%s6462_s0 + $0x174] ss:$60 sps:$4 sm:$0xff]  }
  0xfa   : > { %3642 = vmatprep.subr.bf16.mxu0 %v5021_v40  ;;  %3207 = vmatprep.mubr.bf16.mxu1 %v4296_v41  ;;  %v5110_v37 = vld [vmem:[%s5860_s7 + $0x264] ss:$8 sps:$4 sm:$0xff]   ;;  %v5108_v39 = vld [vmem:[%s5860_s7 + $0x260] ss:$8 sps:$4 sm:$0xff]  }
  0xfb   : > { %3611 = vmatprep.mubr.bf16.mxu0 %v4304_v42  ;;  %v5114_v38 = vld [vmem:[%s5860_s7 + $0x664] ss:$8 sps:$4 sm:$0xff]   ;;  %v5112_v40 = vld [vmem:[%s5860_s7 + $0x660] ss:$8 sps:$4 sm:$0xff]  }
  0xfc   : > { %3239 = vmatpush1.bf16.msra.mxu1 %v5016_v43  ;;  %v5129_v41 = vld [vmem:[%s6462_s0 + $0x190] ss:$60 sps:$4 sm:$0xff]   ;;  %v5118_v43 = vld [vmem:[%s5860_s7 + $0x274] ss:$8 sps:$4 sm:$0xff]  }
  0xfd   : > { %3643 = vmatpush1.bf16.msra.mxu0 %v5019_v44  ;;  %3240 = vmatprep.subr.bf16.mxu1 %v5026_v45  ;;  %v5133_v42 = vld [vmem:[%s6462_s0 + $0x170] ss:$60 sps:$4 sm:$0xff]   ;;  %v5121_v44 = vld [vmem:[%s5860_s7 + $0x674] ss:$8 sps:$4 sm:$0xff]  }
  0xfe   : > { %3644 = vmatprep.subr.bf16.mxu0 %v5031_v46  ;;  %v5140_v45 = vld [vmem:[%s6462_s0 + $0x20c] ss:$60 sps:$4 sm:$0xff]  }
  0xff   : > { %3208 = vmatmul.mubr.bf16.gmra.mrb[24].mxu1 %v4295_v49  ;;  %v5142_v46 = vld [vmem:[%s6462_s0 + $0x1ec] ss:$60 sps:$4 sm:$0xff]  }
 0x100   : > { %3612 = vmatmul.mubr.bf16.gmra.mrb[24].mxu0 %v4303_v50  ;;  %3241 = vmatpush1.bf16.msra.mxu1 %v5024_v47  ;;  %v5116_v47 = vld [vmem:[%s5860_s7 + $0x270] ss:$8 sps:$4 sm:$0xff]   ;;  %v5128_v49 = vld [vmem:[%s5860_s7 + $0x284] ss:$8 sps:$4 sm:$0xff]  }
 0x101   : > { %3645 = vmatpush1.bf16.msra.mxu0 %v5029_v48  ;;  %3242 = vmatprep.subr.bf16.mxu1 %v5036_v51  ;;  %v5119_v48 = vld [vmem:[%s5860_s7 + $0x670] ss:$8 sps:$4 sm:$0xff]   ;;  %v5132_v50 = vld [vmem:[%s5860_s7 + $0x684] ss:$8 sps:$4 sm:$0xff]   ;;  %v5126_v51 = vld [vmem:[%s5860_s7 + $0x280] ss:$8 sps:$4 sm:$0xff]  }
 0x102   : > { %3646 = vmatprep.subr.bf16.mxu0 %v5039_v52  ;;  %3248 = vmatprep.mubr.bf16.mxu1 %v5058_v53  ;;  %v5130_v52 = vld [vmem:[%s5860_s7 + $0x680] ss:$8 sps:$4 sm:$0xff]  }
 0x103   : > { %3652 = vmatprep.mubr.bf16.mxu0 %v5064_v54  ;;  %v5147_v53 = vld [vmem:[%s6462_s0 + $0x208] ss:$60 sps:$4 sm:$0xff]  }
 0x104   : > { %3243 = vmatpush1.bf16.msra.mxu1 %v5034_v55  ;;  %v5151_v54 = vld [vmem:[%s6462_s0 + $0x1e8] ss:$60 sps:$4 sm:$0xff]  }
 0x105   : > { %3647 = vmatpush1.bf16.msra.mxu0 %v5037_v56  ;;  %3244 = vmatprep.subr.bf16.mxu1 %v5043_v57  ;;  %v5136_v55 = vld [vmem:[%s5860_s7 + $0x294] ss:$8 sps:$4 sm:$0xff]  }
 0x106   : > { %3648 = vmatprep.subr.bf16.mxu0 %v5047_v58  ;;  %v5139_v56 = vld [vmem:[%s5860_s7 + $0x694] ss:$8 sps:$4 sm:$0xff]  }
 0x107   : > { %v5158_v57 = vld [vmem:[%s6462_s0 + $0x284] ss:$60 sps:$4 sm:$0xff]  }
 0x108   : > { %3245 = vmatpush1.bf16.msra.mxu1 %v5041_v59  ;;  %v5160_v58 = vld [vmem:[%s6462_s0 + $0x264] ss:$60 sps:$4 sm:$0xff]  }
 0x109   : > { %3649 = vmatpush1.bf16.msra.mxu0 %v5045_v60  ;;  %3246 = vmatprep.subr.bf16.mxu1 %v5052_v61  ;;  %v5134_v59 = vld [vmem:[%s5860_s7 + $0x290] ss:$8 sps:$4 sm:$0xff]   ;;  %v5146_v61 = vld [vmem:[%s5860_s7 + $0x2a4] ss:$8 sps:$4 sm:$0xff]  }
 0x10a   : > { %3650 = vmatprep.subr.bf16.mxu0 %v5055_v62  ;;  %v5137_v60 = vld [vmem:[%s5860_s7 + $0x690] ss:$8 sps:$4 sm:$0xff]   ;;  %v5150_v62 = vld [vmem:[%s5860_s7 + $0x6a4] ss:$8 sps:$4 sm:$0xff]  }
 0x10c   : > { %3247 = vmatpush1.bf16.msra.mxu1 %v5050_v63  ;;  %v5165_v63 = vld [vmem:[%s6462_s0 + $0x280] ss:$60 sps:$4 sm:$0xff]  }
 0x10d   : > { %3651 = vmatpush1.bf16.msra.mxu0 %v5053_v0  ;;  %3317 = vmatprep.subr.bf16.mxu1 %v5061_v2  ;;  %v5144_v0 = vld [vmem:[%s5860_s7 + $0x2a0] ss:$8 sps:$4 sm:$0xff]  }
 0x10e   : > { %3721 = vmatprep.subr.bf16.mxu0 %v5067_v3  ;;  %v5169_v2 = vld [vmem:[%s6462_s0 + $0x260] ss:$60 sps:$4 sm:$0xff]  }
 0x10f   : > { %3249 = vmatmul.mubr.bf16.vlgmr.msra.gmra.mrb[0].mxu1 %v5056_v1  ;;  %v5148_v1 = vld [vmem:[%s5860_s7 + $0x6a0] ss:$8 sps:$4 sm:$0xff]   ;;  %v1219_v3 = vld [vmem:[%s6462_s0 + $0x2f8] sm:$0x11] }
 0x110   : > { %3653 = vmatmul.mubr.bf16.vlgmr.msra.gmra.mrb[0].mxu0 %v5062_v5  ;;  %3318 = vmatpush1.bf16.msra.mxu1 %v5059_v4  ;;  %v1215_v4 = vld [vmem:[%s6462_s0 + $0x2d8] sm:$0x11] }
 0x111   : > { %3722 = vmatpush1.bf16.msra.mxu0 %v5065_v6  ;;  %3319 = vmatprep.subr.bf16.mxu1 %v5070_v7  ;;  %v5154_v5 = vld [vmem:[%s5860_s7 + $0x2b4] ss:$8 sps:$4 sm:$0xff]   ;;  %v5152_v7 = vld [vmem:[%s5860_s7 + $0x2b0] ss:$8 sps:$4 sm:$0xff]  }
 0x112   : > { %3723 = vmatprep.subr.bf16.mxu0 %v5073_v8  ;;  %3662 = vmatprep.mubr.bf16.mxu0 %v5086_v9  ;;  %v5157_v6 = vld [vmem:[%s5860_s7 + $0x6b4] ss:$8 sps:$4 sm:$0xff]   ;;  %v4306_v8 = vcombine.high %v1219_v3, %v1219_v3  ;;  %v4298_v9 = vcombine.high %v1215_v4, %v1215_v4 }
 0x113   : > { %3258 = vmatprep.mubr.bf16.mxu1 %v5088_v10  ;;  %v5155_v10 = vld [vmem:[%s5860_s7 + $0x6b0] ss:$8 sps:$4 sm:$0xff]  }
 0x114   : > { %3320 = vmatpush1.bf16.msra.mxu1 %v5068_v11  ;;  %v5164_v11 = vld [vmem:[%s5860_s7 + $0x2c4] ss:$8 sps:$4 sm:$0xff]  }
 0x115   : > { %3724 = vmatpush1.bf16.msra.mxu0 %v5071_v12  ;;  %3321 = vmatprep.subr.bf16.mxu1 %v5076_v13  ;;  %v5168_v12 = vld [vmem:[%s5860_s7 + $0x6c4] ss:$8 sps:$4 sm:$0xff]   ;;  %v5162_v13 = vld [vmem:[%s5860_s7 + $0x2c0] ss:$8 sps:$4 sm:$0xff]  }
 0x116   : > { %3725 = vmatprep.subr.bf16.mxu0 %v5079_v14  ;;  %v5166_v14 = vld [vmem:[%s5860_s7 + $0x6c0] ss:$8 sps:$4 sm:$0xff]  }
 0x117   : > { %3259 = vmatmul.mubr.bf16.gmra.mrb[4].mxu1 %v5097_v18  ;;  %v5175_v18 = vld [vmem:[%s5860_s7 + $0x6d4] ss:$8 sps:$4 sm:$0xff]  }
 0x118   : > { %3663 = vmatmul.mubr.bf16.gmra.mrb[4].mxu0 %v5093_v17  ;;  %3322 = vmatpush1.bf16.msra.mxu1 %v5074_v15  ;;  %v4305_v15 = vcombine.low %v1219_v3, %v1219_v3  ;;  %v5172_v17 = vld [vmem:[%s5860_s7 + $0x2d4] ss:$8 sps:$4 sm:$0xff]   ;;  %v5246_v3 = vld [vmem:[%s5860_s7 + $0x384] ss:$8 sps:$4 sm:$0xff]  }
 0x119   : > { %3726 = vmatpush1.bf16.msra.mxu0 %v5077_v16  ;;  %3323 = vmatprep.subr.bf16.mxu1 %v5082_v19  ;;  %v4297_v16 = vcombine.low %v1215_v4, %v1215_v4  ;;  %v5194_v19 = vld [vmem:[%s6462_s0 + $0x34] ss:$60 sps:$4 sm:$0xff]  }
 0x11a   : > { %3727 = vmatprep.subr.bf16.mxu0 %v5085_v20  ;;  %3672 = vmatprep.mubr.bf16.mxu0 %v5104_v21  ;;  %v5197_v20 = vld [vmem:[%s6462_s0 + $0x14] ss:$60 sps:$4 sm:$0xff]  }
 0x11b   : > { %3268 = vmatprep.mubr.bf16.mxu1 %v5106_v22  ;;  %v5170_v21 = vld [vmem:[%s5860_s7 + $0x2d0] ss:$8 sps:$4 sm:$0xff]  }
 0x11c   : > { %3324 = vmatpush1.bf16.msra.mxu1 %v5080_v23  ;;  %v5173_v22 = vld [vmem:[%s5860_s7 + $0x6d0] ss:$8 sps:$4 sm:$0xff]   ;;  %v5180_v23 = vld [vmem:[%s5860_s7 + $0x2e4] ss:$8 sps:$4 sm:$0xff]  }
 0x11d   : > { %3728 = vmatpush1.bf16.msra.mxu0 %v5083_v24  ;;  %3325 = vmatprep.subr.bf16.mxu1 %v5092_v25  ;;  %v5184_v24 = vld [vmem:[%s5860_s7 + $0x6e4] ss:$8 sps:$4 sm:$0xff]   ;;  %v5178_v25 = vld [vmem:[%s5860_s7 + $0x2e0] ss:$8 sps:$4 sm:$0xff]  }
 0x11e   : > { %3729 = vmatprep.subr.bf16.mxu0 %v5096_v26  ;;  %v5182_v26 = vld [vmem:[%s5860_s7 + $0x6e0] ss:$8 sps:$4 sm:$0xff]  }
 0x11f   : > { %3269 = vmatmul.mubr.bf16.gmra.mrb[8].mxu1 %v5115_v30  ;;  %v5186_v30 = vld [vmem:[%s5860_s7 + $0x2f0] ss:$8 sps:$4 sm:$0xff]  }
 0x120   : > { %3673 = vmatmul.mubr.bf16.gmra.mrb[8].mxu0 %v5111_v29  ;;  %3326 = vmatpush1.bf16.msra.mxu1 %v5090_v27  ;;  %v5188_v27 = vld [vmem:[%s5860_s7 + $0x2f4] ss:$8 sps:$4 sm:$0xff]   ;;  %v1446_v29 = vld [vmem:[%s5860_s7 + $0x700] sm:$0xff] }
 0x121   : > { %3730 = vmatpush1.bf16.msra.mxu0 %v5094_v28  ;;  %3327 = vmatprep.subr.bf16.mxu1 %v5100_v31  ;;  %v5191_v28 = vld [vmem:[%s5860_s7 + $0x6f4] ss:$8 sps:$4 sm:$0xff]   ;;  %v5189_v31 = vld [vmem:[%s5860_s7 + $0x6f0] ss:$8 sps:$4 sm:$0xff]  }
 0x122   : > { %3731 = vmatprep.subr.bf16.mxu0 %v5103_v32  ;;  %3682 = vmatprep.mubr.bf16.mxu0 %v5122_v33  ;;  %v5200_v32 = vld [vmem:[%s5860_s7 + $0x304] ss:$8 sps:$4 sm:$0xff]   ;;  %v4535_v33 = vcombine.high %v1446_v29, %v1446_v29 }
 0x123   : > { %3278 = vmatprep.mubr.bf16.mxu1 %v5124_v34  ;;  %v5192_v34 = vld [vmem:[%s6462_s0 + $0x30] ss:$60 sps:$4 sm:$0xff]  }
 0x124   : > { %3328 = vmatpush1.bf16.msra.mxu1 %v5098_v35  ;;  %v4534_v35 = vcombine.low %v1446_v29, %v1446_v29  ;;  %v5247_v4 = vld [vmem:[%s6462_s0 + $0x210] ss:$60 sps:$4 sm:$0xff]  }
 0x125   : > { %3732 = vmatpush1.bf16.msra.mxu0 %v5101_v36  ;;  %3329 = vmatprep.subr.bf16.mxu1 %v5110_v37  ;;  %v5195_v36 = vld [vmem:[%s6462_s0 + $0x10] ss:$60 sps:$4 sm:$0xff]  }
 0x126   : > { %3733 = vmatprep.subr.bf16.mxu0 %v5114_v38  ;;  %v5198_v37 = vld [vmem:[%s5860_s7 + $0x300] ss:$8 sps:$4 sm:$0xff]   ;;  %v5203_v38 = vld [vmem:[%s5860_s7 + $0x314] ss:$8 sps:$4 sm:$0xff]   ;;  %v5278_v29 = vld [vmem:[%s5860_s7 + $0x3e4] ss:$8 sps:$4 sm:$0xff]  }
 0x127   : > { %3279 = vmatmul.mubr.bf16.gmra.mrb[12].mxu1 %v5133_v42  ;;  %v5201_v42 = vld [vmem:[%s5860_s7 + $0x310] ss:$8 sps:$4 sm:$0xff]  }
 0x128   : > { %3683 = vmatmul.mubr.bf16.gmra.mrb[12].mxu0 %v5129_v41  ;;  %3330 = vmatpush1.bf16.msra.mxu1 %v5108_v39  ;;  %v5204_v39 = vld [vmem:[%s6462_s0 + $0xac] ss:$60 sps:$4 sm:$0xff]   ;;  %v3110_v41 = vsel %vm3108_vm0, %v4534_v35, 0 }
 0x129   : > { %3734 = vmatpush1.bf16.msra.mxu0 %v5112_v40  ;;  %3331 = vmatprep.subr.bf16.mxu1 %v5118_v43  ;;  %v5215_v40 = vld [vmem:[%s6462_s0 + $0x8c] ss:$60 sps:$4 sm:$0xff]  }
 0x12a   : > { %3735 = vmatprep.subr.bf16.mxu0 %v5121_v44  ;;  %3692 = vmatprep.mubr.bf16.mxu0 %v5140_v45  ;;  %v5208_v43 = vld [vmem:[%s5860_s7 + $0x324] ss:$8 sps:$4 sm:$0xff]   ;;  %v5206_v44 = vld [vmem:[%s5860_s7 + $0x320] ss:$8 sps:$4 sm:$0xff]  }
 0x12b   : > { %3288 = vmatprep.mubr.bf16.mxu1 %v5142_v46  ;;  %v5209_v45 = vld [vmem:[%s6462_s0 + $0xa8] ss:$60 sps:$4 sm:$0xff]   ;;  %v5286_v35 = vld [vmem:[%s6462_s0 + $0xb0] ss:$60 sps:$4 sm:$0xff]  }
 0x12c   : > { %3332 = vmatpush1.bf16.msra.mxu1 %v5116_v47  ;;  %v5214_v46 = vld [vmem:[%s5860_s7 + $0x334] ss:$8 sps:$4 sm:$0xff]  }
 0x12d   : > { %3736 = vmatpush1.bf16.msra.mxu0 %v5119_v48  ;;  %3333 = vmatprep.subr.bf16.mxu1 %v5128_v49  ;;  %v5219_v47 = vld [vmem:[%s6462_s0 + $0x88] ss:$60 sps:$4 sm:$0xff]  }
 0x12e   : > { %3737 = vmatprep.subr.bf16.mxu0 %v5132_v50  ;;  %v5217_v48 = vld [vmem:[%s6462_s0 + $0x124] ss:$60 sps:$4 sm:$0xff]  }
 0x12f   : > { %3289 = vmatmul.mubr.bf16.gmra.mrb[16].mxu1 %v5151_v54  ;;  %v5227_v49 = vld [vmem:[%s6462_s0 + $0x104] ss:$60 sps:$4 sm:$0xff]  }
 0x130   : > { %3693 = vmatmul.mubr.bf16.gmra.mrb[16].mxu0 %v5147_v53  ;;  %3334 = vmatpush1.bf16.msra.mxu1 %v5126_v51  ;;  %v5212_v50 = vld [vmem:[%s5860_s7 + $0x330] ss:$8 sps:$4 sm:$0xff]   ;;  %v5222_v51 = vld [vmem:[%s5860_s7 + $0x344] ss:$8 sps:$4 sm:$0xff]  }
 0x131   : > { %3738 = vmatpush1.bf16.msra.mxu0 %v5130_v52  ;;  %3335 = vmatprep.subr.bf16.mxu1 %v5136_v55  ;;  %v5220_v52 = vld [vmem:[%s5860_s7 + $0x340] ss:$8 sps:$4 sm:$0xff]   ;;  %v5229_v55 = vld [vmem:[%s6462_s0 + $0x19c] ss:$60 sps:$4 sm:$0xff]  }
 0x132   : > { %3739 = vmatprep.subr.bf16.mxu0 %v5139_v56  ;;  %3702 = vmatprep.mubr.bf16.mxu0 %v5158_v57  ;;  %v5223_v53 = vld [vmem:[%s6462_s0 + $0x120] ss:$60 sps:$4 sm:$0xff]  }
 0x133   : > { %3298 = vmatprep.mubr.bf16.mxu1 %v5160_v58  ;;  %v5231_v54 = vld [vmem:[%s6462_s0 + $0x100] ss:$60 sps:$4 sm:$0xff]  }
 0x134   : > { %3336 = vmatpush1.bf16.msra.mxu1 %v5134_v59  ;;  %v5226_v56 = vld [vmem:[%s5860_s7 + $0x354] ss:$8 sps:$4 sm:$0xff]   ;;  %v5224_v58 = vld [vmem:[%s5860_s7 + $0x350] ss:$8 sps:$4 sm:$0xff]   ;;  %v5234_v59 = vld [vmem:[%s5860_s7 + $0x364] ss:$8 sps:$4 sm:$0xff]  }
 0x135   : > { %3740 = vmatpush1.bf16.msra.mxu0 %v5137_v60  ;;  %3337 = vmatprep.subr.bf16.mxu1 %v5146_v61  ;;  %v5239_v57 = vld [vmem:[%s6462_s0 + $0x17c] ss:$60 sps:$4 sm:$0xff]  }
 0x136   : > { %3741 = vmatprep.subr.bf16.mxu0 %v5150_v62  ;;  %v5235_v60 = vld [vmem:[%s6462_s0 + $0x198] ss:$60 sps:$4 sm:$0xff]   ;;  %v5232_v62 = vld [vmem:[%s5860_s7 + $0x360] ss:$8 sps:$4 sm:$0xff]  }
 0x137   : > { %3299 = vmatmul.mubr.bf16.gmra.mrb[20].mxu1 %v5169_v2  ;;  %v5243_v61 = vld [vmem:[%s6462_s0 + $0x178] ss:$60 sps:$4 sm:$0xff]  }
 0x138   : > { %3703 = vmatmul.mubr.bf16.gmra.mrb[20].mxu0 %v5165_v63  ;;  %3338 = vmatpush1.bf16.msra.mxu1 %v5144_v0  ;;  %v5241_v63 = vld [vmem:[%s6462_s0 + $0x214] ss:$60 sps:$4 sm:$0xff]  }
 0x139   : > { %3742 = vmatpush1.bf16.msra.mxu0 %v5148_v1  ;;  %3339 = vmatprep.subr.bf16.mxu1 %v5154_v5  ;;  %v5238_v0 = vld [vmem:[%s5860_s7 + $0x374] ss:$8 sps:$4 sm:$0xff]   ;;  %v5236_v2 = vld [vmem:[%s5860_s7 + $0x370] ss:$8 sps:$4 sm:$0xff]  }
 0x13a   : > { %3743 = vmatprep.subr.bf16.mxu0 %v5157_v6  ;;  %3712 = vmatprep.mubr.bf16.mxu0 %v4306_v8  ;;  %v5251_v1 = vld [vmem:[%s6462_s0 + $0x1f4] ss:$60 sps:$4 sm:$0xff]  }
 0x13b   : > { %3308 = vmatprep.mubr.bf16.mxu1 %v4298_v9  ;;  %v5255_v5 = vld [vmem:[%s6462_s0 + $0x1f0] ss:$60 sps:$4 sm:$0xff]   ;;  %v5250_v8 = vld [vmem:[%s5860_s7 + $0x394] ss:$8 sps:$4 sm:$0xff]  }
 0x13c   : > { %3340 = vmatpush1.bf16.msra.mxu1 %v5152_v7  ;;  %v5244_v6 = vld [vmem:[%s5860_s7 + $0x380] ss:$8 sps:$4 sm:$0xff]  }
 0x13d   : > { %3744 = vmatpush1.bf16.msra.mxu0 %v5155_v10  ;;  %3341 = vmatprep.subr.bf16.mxu1 %v5164_v11  ;;  %v5253_v7 = vld [vmem:[%s6462_s0 + $0x28c] ss:$60 sps:$4 sm:$0xff]   ;;  %v5248_v10 = vld [vmem:[%s5860_s7 + $0x390] ss:$8 sps:$4 sm:$0xff]  }
 0x13e   : > { %3745 = vmatprep.subr.bf16.mxu0 %v5168_v12  ;;  %v5263_v9 = vld [vmem:[%s6462_s0 + $0x26c] ss:$60 sps:$4 sm:$0xff]   ;;  %v1220_v12 = vld [vmem:[%s6462_s0 + $0x300] sm:$0x11] }
 0x13f   : > { %3309 = vmatmul.mubr.bf16.gmra.mrb[24].mxu1 %v4297_v16  ;;  %v5258_v11 = vld [vmem:[%s5860_s7 + $0x3a4] ss:$8 sps:$4 sm:$0xff]   ;;  %v5256_v16 = vld [vmem:[%s5860_s7 + $0x3a0] ss:$8 sps:$4 sm:$0xff]  }
 0x140   : > { %3713 = vmatmul.mubr.bf16.gmra.mrb[24].mxu0 %v4305_v15  ;;  %3342 = vmatpush1.bf16.msra.mxu1 %v5162_v13  ;;  %v1216_v13 = vld [vmem:[%s6462_s0 + $0x2e0] sm:$0x11] }
 0x141   : > { %3746 = vmatpush1.bf16.msra.mxu0 %v5166_v14  ;;  %3343 = vmatprep.subr.bf16.mxu1 %v5172_v17  ;;  %v5259_v14 = vld [vmem:[%s6462_s0 + $0x288] ss:$60 sps:$4 sm:$0xff]   ;;  %v4308_v17 = vcombine.high %v1220_v12, %v1220_v12 }
 0x142   : > { %3747 = vmatprep.subr.bf16.mxu0 %v5175_v18  ;;  %3753 = vmatprep.mubr.bf16.mxu0 %v5194_v19  ;;  %v5266_v15 = vld [vmem:[%s6462_s0 + $0x268] ss:$60 sps:$4 sm:$0xff]   ;;  %v4300_v19 = vcombine.high %v1216_v13, %v1216_v13 }
 0x143   : > { %3349 = vmatprep.mubr.bf16.mxu1 %v5197_v20  ;;  %v5262_v18 = vld [vmem:[%s5860_s7 + $0x3b4] ss:$8 sps:$4 sm:$0xff]   ;;  %v5260_v20 = vld [vmem:[%s5860_s7 + $0x3b0] ss:$8 sps:$4 sm:$0xff]  }
 0x144   : > { %3344 = vmatpush1.bf16.msra.mxu1 %v5170_v21  ;;  %v5269_v21 = vld [vmem:[%s5860_s7 + $0x3c4] ss:$8 sps:$4 sm:$0xff]  }
 0x145   : > { %3748 = vmatpush1.bf16.msra.mxu0 %v5173_v22  ;;  %3345 = vmatprep.subr.bf16.mxu1 %v5180_v23  ;;  %v4307_v22 = vcombine.low %v1220_v12, %v1220_v12  ;;  %v4299_v23 = vcombine.low %v1216_v13, %v1216_v13 }
 0x146   : > { %3749 = vmatprep.subr.bf16.mxu0 %v5184_v24  ;;  %v5267_v24 = vld [vmem:[%s5860_s7 + $0x3c0] ss:$8 sps:$4 sm:$0xff]  }
 0x148   : > { %3346 = vmatpush1.bf16.msra.mxu1 %v5178_v25  ;;  %v5273_v25 = vld [vmem:[%s5860_s7 + $0x3d4] ss:$8 sps:$4 sm:$0xff]  }
 0x149   : > { %3750 = vmatpush1.bf16.msra.mxu0 %v5182_v26  ;;  %3347 = vmatprep.subr.bf16.mxu1 %v5188_v27  ;;  %v5285_v26 = vld [vmem:[%s6462_s0 + $0x1c] ss:$60 sps:$4 sm:$0xff]  }
 0x14a   : > { %3751 = vmatprep.subr.bf16.mxu0 %v5191_v28  ;;  %v5271_v27 = vld [vmem:[%s5860_s7 + $0x3d0] ss:$8 sps:$4 sm:$0xff]   ;;  %v5333_v28 = vmov 0  }
 0x14c   : > { %3348 = vmatpush1.bf16.msra.mxu1 %v5186_v30  ;;  %v5279_v30 = vld [vmem:[%s6462_s0 + $0x38] ss:$60 sps:$4 sm:$0xff]  }
 0x14d   : > { %3752 = vmatpush1.bf16.msra.mxu0 %v5189_v31  ;;  %3418 = vmatprep.subr.bf16.mxu1 %v5200_v32  ;;  %v5276_v31 = vld [vmem:[%s5860_s7 + $0x3e0] ss:$8 sps:$4 sm:$0xff]   ;;  %v5282_v32 = vld [vmem:[%s5860_s7 + $0x3f4] ss:$8 sps:$4 sm:$0xff]  }
 0x14e   : > { %4536 = vmatprep.subr.msk.bf16.mxu0 %vm3108_vm0, %v4535_v33  ;;  %v5280_v33 = vld [vmem:[%s5860_s7 + $0x3f0] ss:$8 sps:$4 sm:$0xff]  }
 0x14f   : > { %3350 = vmatmul.mubr.bf16.vlgmr.msra.gmra.mrb[0].mxu1 %v5195_v36  ;;  %v5287_v36 = vld [vmem:[%s6462_s0 + $0x94] ss:$60 sps:$4 sm:$0xff]  }
 0x150   : > { %3754 = vmatmul.mubr.bf16.vlgmr.msra.gmra.mrb[0].mxu0 %v5192_v34  ;;  %3419 = vmatpush1.bf16.msra.mxu1 %v5198_v37  ;;  %v5283_v34 = vld [vmem:[%s6462_s0 + $0x18] ss:$60 sps:$4 sm:$0xff]   ;;  %v5289_v37 = vld [vmem:[%s6462_s0 + $0x90] ss:$60 sps:$4 sm:$0xff]  }
 0x151   : > { %3763 = vmatprep.mubr.bf16.mxu0 %v5204_v39  ;;  %3420 = vmatprep.subr.bf16.mxu1 %v5203_v38  ;;  %v5290_v38 = vld [vmem:[%s6462_s0 + $0x128] ss:$60 sps:$4 sm:$0xff]  }
 0x152   : > { %3823 = vmatpush1.bf16.msra.mxu0 %v3110_v41  ;;  %3359 = vmatprep.mubr.bf16.mxu1 %v5215_v40  ;;  %v5291_v39 = vld [vmem:[%s6462_s0 + $0x10c] ss:$60 sps:$4 sm:$0xff]   ;;  %v5294_v41 = vld [vmem:[%s6462_s0 + $0x1a0] ss:$60 sps:$4 sm:$0xff]  }
 0x153   : > { %v5293_v40 = vld [vmem:[%s6462_s0 + $0x108] ss:$60 sps:$4 sm:$0xff]  }
 0x154   : > { %3421 = vmatpush1.bf16.msra.mxu1 %v5201_v42  ;;  %v5295_v42 = vld [vmem:[%s6462_s0 + $0x184] ss:$60 sps:$4 sm:$0xff]  }
 0x155   : > { %3422 = vmatprep.subr.bf16.mxu1 %v5208_v43  ;;  %v5297_v43 = vld [vmem:[%s6462_s0 + $0x180] ss:$60 sps:$4 sm:$0xff]  }
 0x157   : > { %3360 = vmatmul.mubr.bf16.gmra.mrb[4].mxu1 %v5219_v47  ;;  %v5302_v47 = vld [vmem:[%s6462_s0 + $0x290] ss:$60 sps:$4 sm:$0xff]  }
 0x158   : > { %3764 = vmatmul.mubr.bf16.gmra.mrb[4].mxu0 %v5209_v45  ;;  %3423 = vmatpush1.bf16.msra.mxu1 %v5206_v44  ;;  %v5298_v44 = vld [vmem:[%s6462_s0 + $0x218] ss:$60 sps:$4 sm:$0xff]  }
 0x159   : > { %3773 = vmatprep.mubr.bf16.mxu0 %v5217_v48  ;;  %3424 = vmatprep.subr.bf16.mxu1 %v5214_v46  ;;  %v5299_v45 = vld [vmem:[%s6462_s0 + $0x1fc] ss:$60 sps:$4 sm:$0xff]   ;;  %v5303_v48 = vld [vmem:[%s6462_s0 + $0x274] ss:$60 sps:$4 sm:$0xff]  }
 0x15a   : > { %3369 = vmatprep.mubr.bf16.mxu1 %v5227_v49  ;;  %v5301_v46 = vld [vmem:[%s6462_s0 + $0x1f8] ss:$60 sps:$4 sm:$0xff]   ;;  %v1217_v49 = vld [vmem:[%s6462_s0 + $0x2e8] sm:$0x11] }
 0x15c   : > { %3425 = vmatpush1.bf16.msra.mxu1 %v5212_v50  ;;  %v5305_v50 = vld [vmem:[%s6462_s0 + $0x270] ss:$60 sps:$4 sm:$0xff]  }
 0x15d   : > { %3426 = vmatprep.subr.bf16.mxu1 %v5222_v51  ;;  %v5306_v51 = vld [vmem:[%s6462_s0 + $0x308] ss:$0 sps:$4 sm:$0x11]  }
 0x15f   : > { %3370 = vmatmul.mubr.bf16.gmra.mrb[8].mxu1 %v5231_v54  ;;  %v1449_v54 = vlaneseq }
 0x160   : > { %3774 = vmatmul.mubr.bf16.gmra.mrb[8].mxu0 %v5223_v53  ;;  %3427 = vmatpush1.bf16.msra.mxu1 %v5220_v52  ;;  %v4302_v52 = vcombine.high %v1217_v49, %v1217_v49  ;;  %v4301_v53 = vcombine.low %v1217_v49, %v1217_v49 }
 0x161   : > { %3783 = vmatprep.mubr.bf16.mxu0 %v5229_v55  ;;  %3428 = vmatprep.subr.bf16.mxu1 %v5226_v56  ;;  %v1450_v55 = vshrl.u32 %v1449_v54, 7 }
 0x162   : > { %3379 = vmatprep.mubr.bf16.mxu1 %v5239_v57 }
 0x164   : > { %3429 = vmatpush1.bf16.msra.mxu1 %v5224_v58  ;;  %v1451_v58 = vsub.s32 0, %v1450_v55 }
 0x165   : > { %3430 = vmatprep.subr.bf16.mxu1 %v5234_v59 }
 0x167   : > { %3380 = vmatmul.mubr.bf16.gmra.mrb[12].mxu1 %v5243_v61  ;;  %v1455_v61 = vsub.s32 1, %v1450_v55 }
 0x168   : > { %3784 = vmatmul.mubr.bf16.gmra.mrb[12].mxu0 %v5235_v60  ;;  %3431 = vmatpush1.bf16.msra.mxu1 %v5232_v62  ;;  %v1447_v60 = vld [vmem:[%s1114_s11] sm:$0x3] }
 0x169   : > { %3793 = vmatprep.mubr.bf16.mxu0 %v5241_v63  ;;  %3432 = vmatprep.subr.bf16.mxu1 %v5238_v0  ;;  %v6386_v63 = vrot.slane %v1447_v60, %v1451_v58  ;;  %v6388_v0 = vrot.slane %v1447_v60, %v1455_v61 }
 0x16a   : > { %3389 = vmatprep.mubr.bf16.mxu1 %v5251_v1 }
 0x16c   : > { %3433 = vmatpush1.bf16.msra.mxu1 %v5236_v2 }
 0x16d   : > { %3434 = vmatprep.subr.bf16.mxu1 %v5246_v3 }
 0x16f   : > { %3390 = vmatmul.mubr.bf16.gmra.mrb[16].mxu1 %v5255_v5 }
 0x170   : > { %3794 = vmatmul.mubr.bf16.gmra.mrb[16].mxu0 %v5247_v4  ;;  %3435 = vmatpush1.bf16.msra.mxu1 %v5244_v6 }
 0x171   : > { %3803 = vmatprep.mubr.bf16.mxu0 %v5253_v7  ;;  %3436 = vmatprep.subr.bf16.mxu1 %v5250_v8 }
 0x172   : > { %3399 = vmatprep.mubr.bf16.mxu1 %v5263_v9 }
 0x174   : > { %3437 = vmatpush1.bf16.msra.mxu1 %v5248_v10 }
 0x175   : > { %3438 = vmatprep.subr.bf16.mxu1 %v5258_v11 }
 0x177   : > { %3400 = vmatmul.mubr.bf16.gmra.mrb[20].mxu1 %v5266_v15 }
 0x178   : > { %3804 = vmatmul.mubr.bf16.gmra.mrb[20].mxu0 %v5259_v14  ;;  %3439 = vmatpush1.bf16.msra.mxu1 %v5256_v16 }
 0x179   : > { %3813 = vmatprep.mubr.bf16.mxu0 %v4308_v17  ;;  %3440 = vmatprep.subr.bf16.mxu1 %v5262_v18 }
 0x17a   : > { %3409 = vmatprep.mubr.bf16.mxu1 %v4300_v19 }
 0x17c   : > { %3441 = vmatpush1.bf16.msra.mxu1 %v5260_v20 }
 0x17d   : > { %3442 = vmatprep.subr.bf16.mxu1 %v5269_v21 }
 0x17f   : > { %3410 = vmatmul.mubr.bf16.gmra.mrb[24].mxu1 %v4299_v23 }
 0x180   : > { %3814 = vmatmul.mubr.bf16.gmra.mrb[24].mxu0 %v4307_v22  ;;  %3443 = vmatpush1.bf16.msra.mxu1 %v5267_v24 }
 0x181   : > { %3854 = vmatprep.mubr.bf16.mxu0 %v5333_v28  ;;  %3444 = vmatprep.subr.bf16.mxu1 %v5273_v25 }
 0x182   : > { %3450 = vmatprep.mubr.bf16.mxu1 %v5285_v26 }
 0x184   : > { %3445 = vmatpush1.bf16.msra.mxu1 %v5271_v27 }
 0x185   : > { %3446 = vmatprep.subr.bf16.mxu1 %v5278_v29 }
 0x188   : > { %4537 = vmatmul.mubr.msk.bf16.vlgmr.msra.gmra.mrb[0].mxu0 %vm3086_vm1, %v5279_v30  ;;  %3447 = vmatpush1.bf16.msra.mxu1 %v5276_v31 }
 0x189   : > { %3864 = vmatprep.mubr.bf16.mxu0 %v5333_v28  ;;  %3448 = vmatprep.subr.bf16.mxu1 %v5282_v32 }
 0x18c   : > { %3449 = vmatpush1.bf16.msra.mxu1 %v5280_v33 }
 0x18f   : > { %3451 = vmatmul.mubr.bf16.vlgmr.msra.gmra.mrb[0].mxu1 %v5283_v34 }
 0x190   : > { %4538 = vmatmul.mubr.msk.bf16.gmra.mrb[4].mxu0 %vm3086_vm1, %v5286_v35  ;;  %3460 = vmatprep.mubr.bf16.mxu1 %v5287_v36 }
 0x191   : > { %3874 = vmatprep.mubr.bf16.mxu0 %v5333_v28 }
 0x197   : > { %3461 = vmatmul.mubr.bf16.gmra.mrb[4].mxu1 %v5289_v37 }
 0x198   : > { %4539 = vmatmul.mubr.msk.bf16.gmra.mrb[8].mxu0 %vm3086_vm1, %v5290_v38  ;;  %3470 = vmatprep.mubr.bf16.mxu1 %v5291_v39 }
 0x199   : > { %3884 = vmatprep.mubr.bf16.mxu0 %v5333_v28 }
 0x19f   : > { %3471 = vmatmul.mubr.bf16.gmra.mrb[8].mxu1 %v5293_v40 }
 0x1a0   : > { %4540 = vmatmul.mubr.msk.bf16.gmra.mrb[12].mxu0 %vm3086_vm1, %v5294_v41  ;;  %3480 = vmatprep.mubr.bf16.mxu1 %v5295_v42 }
 0x1a1   : > { %3894 = vmatprep.mubr.bf16.mxu0 %v5333_v28 }
 0x1a7   : > { %3481 = vmatmul.mubr.bf16.gmra.mrb[12].mxu1 %v5297_v43 }
 0x1a8   : > { %4541 = vmatmul.mubr.msk.bf16.gmra.mrb[16].mxu0 %vm3086_vm1, %v5298_v44  ;;  %3490 = vmatprep.mubr.bf16.mxu1 %v5299_v45 }
 0x1a9   : > { %3904 = vmatprep.mubr.bf16.mxu0 %v5333_v28 }
 0x1af   : > { %3491 = vmatmul.mubr.bf16.gmra.mrb[16].mxu1 %v5301_v46 }
 0x1b0   : > { %4542 = vmatmul.mubr.msk.bf16.gmra.mrb[20].mxu0 %vm3086_vm1, %v5302_v47  ;;  %3500 = vmatprep.mubr.bf16.mxu1 %v5303_v48 }
 0x1b1   : > { %3914 = vmatprep.mubr.bf16.mxu0 %v5333_v28 }
 0x1b7   : > { %3501 = vmatmul.mubr.bf16.gmra.mrb[20].mxu1 %v5305_v50 }
 0x1b8   : > { %4543 = vmatmul.mubr.msk.bf16.gmra.mrb[24].mxu0 %vm3086_vm1, %v5306_v51  ;;  %3510 = vmatprep.mubr.bf16.mxu1 %v4302_v52 }
 0x1bf   : > { %3511 = vmatmul.mubr.bf16.gmra.mrb[24].mxu1 %v4301_v53 }
 0x25b   : > { %v3856_v56 = vpop.f32.mrb[0].mxu0 }
 0x25c   : > { %v3858_v57 = vpop.f32.mrb[1].mxu0 }
 0x25d   : > { %v3860_v59 = vpop.f32.mrb[2].mxu0 }
 0x25e   : > { %v3862_v62 = vpop.f32.mrb[3].mxu0 }
 0x262   : > { %v3452_v1 = vpop.f32.mrb[0].mxu1 }
 0x263   : > { %v3866_v2 = vpop.f32.mrb[4].mxu0  ;;  %v4576_v3 = vadd.f32 %v3452_v1, %v6386_v63  ;;  %v3454_v4 = vpop.f32.mrb[1].mxu1 }
 0x264   : > { %v3868_v5 = vpop.f32.mrb[5].mxu0  ;;  %v4578_v6 = vadd.f32 %v3454_v4, %v6388_v0  ;;  %v3456_v7 = vpop.f32.mrb[2].mxu1 }
 0x265   : > { %v3870_v8 = vpop.f32.mrb[6].mxu0  ;;  %v4577_v9 = vadd.f32 %v4576_v3, %v3856_v56  ;;  %v4580_v10 = vadd.f32 %v3456_v7, %v6386_v63  ;;  %v3458_v11 = vpop.f32.mrb[3].mxu1 }
 0x266   : > { %v3872_v12 = vpop.f32.mrb[7].mxu0  ;;  %v4579_v13 = vadd.f32 %v4578_v6, %v3858_v57  ;;  %v4582_v14 = vadd.f32 %v3458_v11, %v6388_v0 }
 0x267   : > { %v3923_v15 = vmax.f32 %v4577_v9, 0.0  ;;  %v4581_v16 = vadd.f32 %v4580_v10, %v3860_v59 }
 0x268   : > { %v3924_v17 = vmax.f32 %v4579_v13, 0.0  ;;  %v4583_v18 = vadd.f32 %v4582_v14, %v3862_v62 }
 0x269   : > { %v3925_v19 = vmax.f32 %v4581_v16, 0.0 }
 0x26a   : > { %v4562_v20 = vpack.c.bf16 %v3924_v17, %v3923_v15  ;;  %v3926_v21 = vmax.f32 %v4583_v18, 0.0  ;;  %v3462_v22 = vpop.f32.mrb[4].mxu1 }
 0x26b   : > { %v3876_v23 = vpop.f32.mrb[8].mxu0  ;;  %v4584_v24 = vadd.f32 %v3462_v22, %v6386_v63  ;;  %v3464_v25 = vpop.f32.mrb[5].mxu1 }
 0x26c   : > { %v3878_v26 = vpop.f32.mrb[9].mxu0  ;;  %4029 = vst [vmem:[%s6397_s12] sm:$0xff] %v4562_v20  ;;  %v4563_v27 = vpack.c.bf16 %v3926_v21, %v3925_v19  ;;  %v4586_v28 = vadd.f32 %v3464_v25, %v6388_v0  ;;  %v3466_v29 = vpop.f32.mrb[6].mxu1 }
 0x26d   : > { %v3880_v30 = vpop.f32.mrb[10].mxu0  ;;  %v4585_v31 = vadd.f32 %v4584_v24, %v3866_v2  ;;  %v4588_v32 = vadd.f32 %v3466_v29, %v6386_v63  ;;  %v3468_v33 = vpop.f32.mrb[7].mxu1 }
 0x26e   : > { %v3882_v34 = vpop.f32.mrb[11].mxu0  ;;  %4030 = vst [vmem:[%s6397_s12 + $0x8] sm:$0xff] %v4563_v27  ;;  %v4587_v35 = vadd.f32 %v4586_v28, %v3868_v5  ;;  %v4590_v36 = vadd.f32 %v3468_v33, %v6388_v0 }
 0x26f   : > { %v3927_v37 = vmax.f32 %v4585_v31, 0.0  ;;  %v4589_v38 = vadd.f32 %v4588_v32, %v3870_v8 }
 0x270   : > { %v3928_v39 = vmax.f32 %v4587_v35, 0.0  ;;  %v4591_v40 = vadd.f32 %v4590_v36, %v3872_v12 }
 0x271   : > { %v3929_v41 = vmax.f32 %v4589_v38, 0.0 }
 0x272   : > { %v4564_v42 = vpack.c.bf16 %v3928_v39, %v3927_v37  ;;  %v3930_v43 = vmax.f32 %v4591_v40, 0.0  ;;  %v3472_v44 = vpop.f32.mrb[8].mxu1 }
 0x273   : > { %v3886_v45 = vpop.f32.mrb[12].mxu0  ;;  %v4592_v46 = vadd.f32 %v3472_v44, %v6386_v63  ;;  %v3474_v47 = vpop.f32.mrb[9].mxu1 }
 0x274   : > { %v3888_v48 = vpop.f32.mrb[13].mxu0  ;;  %4031 = vst [vmem:[%s6397_s12 + $0x10] sm:$0xff] %v4564_v42  ;;  %v4565_v49 = vpack.c.bf16 %v3930_v43, %v3929_v41  ;;  %v4594_v50 = vadd.f32 %v3474_v47, %v6388_v0  ;;  %v3476_v51 = vpop.f32.mrb[10].mxu1 }
 0x275   : > { %v3890_v52 = vpop.f32.mrb[14].mxu0  ;;  %v4593_v53 = vadd.f32 %v4592_v46, %v3876_v23  ;;  %v4596_v54 = vadd.f32 %v3476_v51, %v6386_v63  ;;  %v3478_v55 = vpop.f32.mrb[11].mxu1 }
 0x276   : > { %v3892_v56 = vpop.f32.mrb[15].mxu0  ;;  %4032 = vst [vmem:[%s6397_s12 + $0x18] sm:$0xff] %v4565_v49  ;;  %v4595_v57 = vadd.f32 %v4594_v50, %v3878_v26  ;;  %v4598_v58 = vadd.f32 %v3478_v55, %v6388_v0 }
 0x277   : > { %v3931_v59 = vmax.f32 %v4593_v53, 0.0  ;;  %v4597_v60 = vadd.f32 %v4596_v54, %v3880_v30 }
 0x278   : > { %v3932_v61 = vmax.f32 %v4595_v57, 0.0  ;;  %v4599_v62 = vadd.f32 %v4598_v58, %v3882_v34 }
 0x279   : > { %v3933_v1 = vmax.f32 %v4597_v60, 0.0 }
 0x27a   : > { %v4566_v2 = vpack.c.bf16 %v3932_v61, %v3931_v59  ;;  %v3934_v3 = vmax.f32 %v4599_v62, 0.0  ;;  %v3482_v4 = vpop.f32.mrb[12].mxu1 }
 0x27b   : > { %v3896_v5 = vpop.f32.mrb[16].mxu0  ;;  %v4600_v6 = vadd.f32 %v3482_v4, %v6386_v63  ;;  %v3484_v7 = vpop.f32.mrb[13].mxu1 }
 0x27c   : > { %v3898_v8 = vpop.f32.mrb[17].mxu0  ;;  %4033 = vst [vmem:[%s6397_s12 + $0x20] sm:$0xff] %v4566_v2  ;;  %v4567_v9 = vpack.c.bf16 %v3934_v3, %v3933_v1  ;;  %v4602_v10 = vadd.f32 %v3484_v7, %v6388_v0  ;;  %v3486_v11 = vpop.f32.mrb[14].mxu1 }
 0x27d   : > { %v3900_v12 = vpop.f32.mrb[18].mxu0  ;;  %v4601_v13 = vadd.f32 %v4600_v6, %v3886_v45  ;;  %v4604_v14 = vadd.f32 %v3486_v11, %v6386_v63  ;;  %v3488_v15 = vpop.f32.mrb[15].mxu1 }
 0x27e   : > { %v3902_v16 = vpop.f32.mrb[19].mxu0  ;;  %4034 = vst [vmem:[%s6397_s12 + $0x28] sm:$0xff] %v4567_v9  ;;  %v4603_v17 = vadd.f32 %v4602_v10, %v3888_v48  ;;  %v4606_v18 = vadd.f32 %v3488_v15, %v6388_v0 }
 0x27f   : > { %v3935_v19 = vmax.f32 %v4601_v13, 0.0  ;;  %v4605_v20 = vadd.f32 %v4604_v14, %v3890_v52 }
 0x280   : > { %v3936_v21 = vmax.f32 %v4603_v17, 0.0  ;;  %v4607_v22 = vadd.f32 %v4606_v18, %v3892_v56 }
 0x281   : > { %v3937_v23 = vmax.f32 %v4605_v20, 0.0  ;;  %v4107_v20 = vld [vmem:[%s6397_s12 + $0x10] sm:$0xff] (%p5385_p5) }
 0x282   : > { %v4568_v24 = vpack.c.bf16 %v3936_v21, %v3935_v19  ;;  %v3938_v25 = vmax.f32 %v4607_v22, 0.0  ;;  %v3492_v26 = vpop.f32.mrb[16].mxu1  ;;  %v4109_v21 = vld [vmem:[%s6397_s12 + $0x18] sm:$0xff] (%p5385_p5)  ;;  %4108 = vst [vmem:[%s4051_s21 + $0x20] sm:$0xff] (%p5385_p5), %v4107_v20 }
 0x283   : > { %v3906_v27 = vpop.f32.mrb[20].mxu0  ;;  %v4608_v28 = vadd.f32 %v3492_v26, %v6386_v63  ;;  %v3494_v29 = vpop.f32.mrb[17].mxu1  ;;  %v4111_v22 = vld [vmem:[%s6397_s12 + $0x20] sm:$0xff] (%p5385_p5)  ;;  %4110 = vst [vmem:[%s4051_s21 + $0x30] sm:$0xff] (%p5385_p5), %v4109_v21 }
 0x284   : > { %v3908_v30 = vpop.f32.mrb[21].mxu0  ;;  %4035 = vst [vmem:[%s6397_s12 + $0x30] sm:$0xff] %v4568_v24  ;;  %v4569_v31 = vpack.c.bf16 %v3938_v25, %v3937_v23  ;;  %v4610_v32 = vadd.f32 %v3494_v29, %v6388_v0  ;;  %v3496_v33 = vpop.f32.mrb[18].mxu1  ;;  %4112 = vst [vmem:[%s4051_s21 + $0x40] sm:$0xff] (%p5385_p5), %v4111_v22 }
 0x285   : > { %v3910_v34 = vpop.f32.mrb[22].mxu0  ;;  %v4609_v35 = vadd.f32 %v4608_v28, %v3896_v5  ;;  %v4612_v36 = vadd.f32 %v3496_v33, %v6386_v63  ;;  %v3498_v37 = vpop.f32.mrb[19].mxu1  ;;  %v4113_v23 = vld [vmem:[%s6397_s12 + $0x28] sm:$0xff] (%p5385_p5) }
 0x286   : > { %v3912_v38 = vpop.f32.mrb[23].mxu0  ;;  %4036 = vst [vmem:[%s6397_s12 + $0x38] sm:$0xff] %v4569_v31  ;;  %v4611_v39 = vadd.f32 %v4610_v32, %v3898_v8  ;;  %v4614_v40 = vadd.f32 %v3498_v37, %v6388_v0  ;;  %4114 = vst [vmem:[%s4051_s21 + $0x50] sm:$0xff] (%p5385_p5), %v4113_v23 }
 0x287   : > { %v3939_v41 = vmax.f32 %v4609_v35, 0.0  ;;  %v4613_v42 = vadd.f32 %v4612_v36, %v3900_v12 }
 0x288   : > { %v3940_v43 = vmax.f32 %v4611_v39, 0.0  ;;  %v4615_v44 = vadd.f32 %v4614_v40, %v3902_v16 }
 0x289   : > { %v3941_v45 = vmax.f32 %v4613_v42, 0.0 }
 0x28a   : > { %v4570_v46 = vpack.c.bf16 %v3940_v43, %v3939_v41  ;;  %v3942_v47 = vmax.f32 %v4615_v44, 0.0  ;;  %v3502_v48 = vpop.f32.mrb[20].mxu1 }
 0x28b   : > { %v3916_v49 = vpop.f32.mrb[24].mxu0  ;;  %v4616_v50 = vadd.f32 %v3502_v48, %v6386_v63  ;;  %v3504_v51 = vpop.f32.mrb[21].mxu1  ;;  %v4115_v24 = vld [vmem:[%s6397_s12 + $0x30] sm:$0xff] (%p5385_p5) }
 0x28c   : > { %v3918_v52 = vpop.f32.mrb[25].mxu0  ;;  %4037 = vst [vmem:[%s6397_s12 + $0x40] sm:$0xff] %v4570_v46  ;;  %v4571_v53 = vpack.c.bf16 %v3942_v47, %v3941_v45  ;;  %v4618_v54 = vadd.f32 %v3504_v51, %v6388_v0  ;;  %v3506_v55 = vpop.f32.mrb[22].mxu1  ;;  %4116 = vst [vmem:[%s4051_s21 + $0x60] sm:$0xff] (%p5385_p5), %v4115_v24 }
 0x28d   : > { %v3920_v56 = vpop.f32.mrb[26].mxu0  ;;  %v4617_v57 = vadd.f32 %v4616_v50, %v3906_v27  ;;  %v4620_v58 = vadd.f32 %v3506_v55, %v6386_v63  ;;  %v3508_v59 = vpop.f32.mrb[23].mxu1  ;;  %v4117_v25 = vld [vmem:[%s6397_s12 + $0x38] sm:$0xff] (%p5385_p5) }
 0x28e   : > { %v3921_v60 = vpop.f32.mrb[27].mxu0  ;;  %4038 = vst [vmem:[%s6397_s12 + $0x48] sm:$0xff] %v4571_v53  ;;  %v4619_v61 = vadd.f32 %v4618_v54, %v3908_v30  ;;  %v4622_v62 = vadd.f32 %v3508_v59, %v6388_v0  ;;  %4118 = vst [vmem:[%s4051_s21 + $0x70] sm:$0xff] (%p5385_p5), %v4117_v25 }
 0x28f   : > { %v3943_v1 = vmax.f32 %v4617_v57, 0.0  ;;  %v4621_v2 = vadd.f32 %v4620_v58, %v3910_v34 }
 0x290   : > { %v3944_v3 = vmax.f32 %v4619_v61, 0.0  ;;  %v4623_v4 = vadd.f32 %v4622_v62, %v3912_v38 }
 0x291   : > { %v3945_v5 = vmax.f32 %v4621_v2, 0.0 }
 0x292   : > { %v4572_v6 = vpack.c.bf16 %v3944_v3, %v3943_v1  ;;  %v3946_v7 = vmax.f32 %v4623_v4, 0.0  ;;  %v3512_v8 = vpop.f32.mrb[24].mxu1 }
 0x293   : > { %v4624_v9 = vadd.f32 %v3512_v8, %v6386_v63  ;;  %v3514_v10 = vpop.f32.mrb[25].mxu1  ;;  %v4103_v63 = vld [vmem:[%s6397_s12] sm:$0xff] (%p5385_p5) }
 0x294   : > { %4039 = vst [vmem:[%s6397_s12 + $0x50] sm:$0xff] %v4572_v6  ;;  %v4573_v11 = vpack.c.bf16 %v3946_v7, %v3945_v5  ;;  %v4626_v12 = vadd.f32 %v3514_v10, %v6388_v0  ;;  %v3516_v13 = vpop.f32.mrb[26].mxu1  ;;  %v4105_v0 = vld [vmem:[%s6397_s12 + $0x8] sm:$0xff] (%p5385_p5)  ;;  %4104 = vst [vmem:[%s4051_s21] sm:$0xff] (%p5385_p5), %v4103_v63  ;;  %v4119_v26 = vld [vmem:[%s6397_s12 + $0x40] sm:$0xff] (%p5385_p5) }
 0x295   : > { %v4625_v14 = vadd.f32 %v4624_v9, %v3916_v49  ;;  %v3517_v15 = vpop.f32.mrb[27].mxu1  ;;  %4106 = vst [vmem:[%s4051_s21 + $0x10] sm:$0xff] (%p5385_p5), %v4105_v0  ;;  %4120 = vst [vmem:[%s4051_s21 + $0x80] sm:$0xff] (%p5385_p5), %v4119_v26  ;;  %v4121_v27 = vld [vmem:[%s6397_s12 + $0x48] sm:$0xff] (%p5385_p5) }
 0x296   : > { %4040 = vst [vmem:[%s6397_s12 + $0x58] sm:$0xff] %v4573_v11  ;;  %v4627_v16 = vadd.f32 %v4626_v12, %v3918_v52  ;;  %4048 = sbr.rel (!%p5385_p5) target bundleno = 677 (0x2a5), region = 74  ;;  %4122 = vst [vmem:[%s4051_s21 + $0x90] sm:$0xff] (%p5385_p5), %v4121_v27 }
 0x297   : > { %v3947_v17 = vmax.f32 %v4625_v14, 0.0 }
 0x298   : > { %v3948_v18 = vmax.f32 %v4627_v16, 0.0 }
 0x29a   : > { %v4574_v19 = vpack.c.bf16 %v3948_v18, %v3947_v17 }
 0x29b   : > { %v4123_v28 = vld [vmem:[%s6397_s12 + $0x50] sm:$0xff] (%p5385_p5) }
 0x29c   : > { %4041 = vst [vmem:[%s6397_s12 + $0x60] sm:$0x11] %v4574_v19  ;;  %4124 = vst [vmem:[%s4051_s21 + $0xa0] sm:$0xff] (%p5385_p5), %v4123_v28 }
 0x29d   : > { %v4125_v29 = vld [vmem:[%s6397_s12 + $0x58] sm:$0xff] }
 0x29e   : > { %4126 = vst [vmem:[%s4051_s21 + $0xb0] sm:$0xff] %v4125_v29 }
 0x2a3   : > { %v4127_v30 = vld [vmem:[%s6397_s12 + $0x60] sm:$0xff] }
 0x2a4   : > { %4128 = vst [vmem:[%s4051_s21 + $0xc0] sm:$0xff] %v4127_v30 }
 0x2a5 PF: > { %p10_p11 = scmp.ge.s32.totalorder %s5373_s16, 4   ;;  %s6467_s12 = smov %s5327_s13 }
 0x2a6   : > { %s6468_s13 = smov %s5383_s19  ;;  %s6469_s14 = smov %s5373_s16 }
 0x2a7   :  { %12 = sbr.rel (!%p10_p11) target bundleno = 2 (0x2), region = 146 }

// kernel: my_lenet_mat_stoch.6
= control target key start
LH: loop header
LB: loop body
LE: loop exit
PB: predicated region body
PF: predicated region fallthrough
CT: control target
= control target key end

     0   :  { %s6057_s12 = smov 0   ;;  %s6059_s13 = smov 0   ;;  %s7391_s0 = inlined_call_operand.vmem [shape: bf16[18,3600], index: 0, kind: input, shape index: {}]   ;;  %s7392_s1 = inlined_call_operand.vmem [shape: bf16[3600,896], index: 1, kind: input, shape index: {}]   ;;  %s7393_s2 = inlined_call_operand.vmem [shape: f32[1,896], index: 2, kind: input, shape index: {}]   ;;  %s7394_s3 = inlined_call_operand.vmem [shape: bf16[18,896], index: 3, kind: output, shape index: {}]  }
   0x1   :  { %s6061_s14 = smov 0  }
   0x2 LB: > { %s6073_s15 = sadd.s32 4294967295, %s6035_s14   ;;  %s6076_s16 = sadd.s32 1, %s6035_s14   ;;  %s6035_s14 = sphi %s6061_s14, %s7398_s14   ;;  %s6031_s13 = sphi %s6059_s13, %s7397_s13   ;;  %s6027_s12 = sphi %s6057_s12, %s7396_s12  }
   0x3   : > { %s38_s17 = ssub.s32 %s6035_s14, %s6076_s16  ;;  %s41_s18 = sadd.s32 1, %s6031_s13 }
   0x4   : > { %p39_p0 = scmp.eq.s32.totalorder %s38_s17, 0  ;;  %p48_p1 = scmp.ne.s32.totalorder %s6031_s13, %s6027_s12 }
   0x5   : > { %p49_p2 = scmp.eq.s32.totalorder %s6035_s14, 0  ;;  %p104_p3 = scmp.eq.s32.totalorder %s6073_s15, 6 }
   0x6   : > { %s6086_s19 = scalar_select %p39_p0, %s6031_s13, %s41_s18  }
   0x7   : > { %p50_p4 = por %p49_p2, %p48_p1  ;;  %p6088_p5 = por %p104_p3, %p48_p1 }
   0x8   : > { %p4985_p6 = scmp.ge.s32.totalorder %s6035_s14, 7 }
   0xa   : > { %129 = sbr.rel (%p4985_p6) target bundleno = 321 (0x141), region = 20 }
  0x11   : > { %132 = sbr.rel (!%p50_p4) target bundleno = 321 (0x141), region = 24  ;;  %s134_s21 = sand.u32 (%p50_p4), 1, %s6031_s13  }
  0x12   : > { %s4986_s22 = sshll.u32 (%p50_p4), %s6035_s14, 2  ;;  %s5689_s23 = smul.u32 (%p50_p4), 1800, %s134_s21 }
  0x13   : > { %s6098_s26 = scalar_lea.vmem (%p50_p4), %s7392_s1, %s4986_s22 }
  0x14   : > { %v154_v0 = vld [vmem:[%s6098_s26] sm:$0xf] (%p50_p4)  ;;  %v156_v1 = vld [vmem:[%s6098_s26 + $0x1c] sm:$0xf] (%p50_p4)  ;;  %v158_v2 = vld [vmem:[%s6098_s26 + $0x38] sm:$0xf] (%p50_p4) }
  0x15   : > { %v160_v3 = vld [vmem:[%s6098_s26 + $0x54] sm:$0xf] (%p50_p4)  ;;  %v162_v4 = vld [vmem:[%s6098_s26 + $0x70] sm:$0xf] (%p50_p4)  ;;  %s6105_s27 = scalar_lea.vmem (%p50_p4), [#allocation2], %s5689_s23 }
  0x16   : > { %155 = vst [vmem:[%s6105_s27] sm:$0xf] (%p50_p4), %v154_v0  ;;  %157 = vst [vmem:[%s6105_s27 + $0x4] sm:$0xf] (%p50_p4), %v156_v1  ;;  %v164_v5 = vld [vmem:[%s6098_s26 + $0x8c] sm:$0xf] (%p50_p4) }
  0x17   : > { %159 = vst [vmem:[%s6105_s27 + $0x8] sm:$0xf] (%p50_p4), %v158_v2  ;;  %161 = vst [vmem:[%s6105_s27 + $0xc] sm:$0xf] (%p50_p4), %v160_v3  ;;  %v166_v6 = vld [vmem:[%s6098_s26 + $0xa8] sm:$0xf] (%p50_p4) }
  0x18   : > { %163 = vst [vmem:[%s6105_s27 + $0x10] sm:$0xf] %v162_v4  ;;  %v168_v7 = vld [vmem:[%s6098_s26 + $0xc4] sm:$0xf]  ;;  %165 = vst [vmem:[%s6105_s27 + $0x14] sm:$0xf] %v164_v5 }
  0x19   : > { %167 = vst [vmem:[%s6105_s27 + $0x18] sm:$0xf] %v166_v6  ;;  %169 = vst [vmem:[%s6105_s27 + $0x1c] sm:$0xf] %v168_v7  ;;  %v170_v8 = vld [vmem:[%s6098_s26 + $0xe0] sm:$0xf] }
  0x1a   : > { %v172_v9 = vld [vmem:[%s6098_s26 + $0xfc] sm:$0xf]  ;;  %v174_v10 = vld [vmem:[%s6098_s26 + $0x118] sm:$0xf]  ;;  %171 = vst [vmem:[%s6105_s27 + $0x20] sm:$0xf] %v170_v8 }
  0x1b   : > { %173 = vst [vmem:[%s6105_s27 + $0x24] sm:$0xf] %v172_v9  ;;  %175 = vst [vmem:[%s6105_s27 + $0x28] sm:$0xf] %v174_v10  ;;  %v176_v11 = vld [vmem:[%s6098_s26 + $0x134] sm:$0xf] }
  0x1c   : > { %v178_v12 = vld [vmem:[%s6098_s26 + $0x150] sm:$0xf]  ;;  %v180_v13 = vld [vmem:[%s6098_s26 + $0x16c] sm:$0xf]  ;;  %177 = vst [vmem:[%s6105_s27 + $0x2c] sm:$0xf] %v176_v11 }
  0x1d   : > { %179 = vst [vmem:[%s6105_s27 + $0x30] sm:$0xf] %v178_v12  ;;  %181 = vst [vmem:[%s6105_s27 + $0x34] sm:$0xf] %v180_v13  ;;  %v182_v14 = vld [vmem:[%s6098_s26 + $0x188] sm:$0xf] }
  0x1e   : > { %v184_v15 = vld [vmem:[%s6098_s26 + $0x1a4] sm:$0xf]  ;;  %v186_v16 = vld [vmem:[%s6098_s26 + $0x1c0] sm:$0xf]  ;;  %183 = vst [vmem:[%s6105_s27 + $0x38] sm:$0xf] %v182_v14 }
  0x1f   : > { %185 = vst [vmem:[%s6105_s27 + $0x3c] sm:$0xf] %v184_v15  ;;  %187 = vst [vmem:[%s6105_s27 + $0x40] sm:$0xf] %v186_v16  ;;  %v188_v17 = vld [vmem:[%s6098_s26 + $0x1dc] sm:$0xf] }
  0x20   : > { %v190_v18 = vld [vmem:[%s6098_s26 + $0x1f8] sm:$0xf]  ;;  %v192_v19 = vld [vmem:[%s6098_s26 + $0x214] sm:$0xf]  ;;  %189 = vst [vmem:[%s6105_s27 + $0x44] sm:$0xf] %v188_v17 }
  0x21   : > { %191 = vst [vmem:[%s6105_s27 + $0x48] sm:$0xf] %v190_v18  ;;  %193 = vst [vmem:[%s6105_s27 + $0x4c] sm:$0xf] %v192_v19  ;;  %v194_v20 = vld [vmem:[%s6098_s26 + $0x230] sm:$0xf] }
  0x22   : > { %v196_v21 = vld [vmem:[%s6098_s26 + $0x24c] sm:$0xf]  ;;  %v198_v22 = vld [vmem:[%s6098_s26 + $0x268] sm:$0xf]  ;;  %195 = vst [vmem:[%s6105_s27 + $0x50] sm:$0xf] %v194_v20 }
  0x23   : > { %197 = vst [vmem:[%s6105_s27 + $0x54] sm:$0xf] %v196_v21  ;;  %199 = vst [vmem:[%s6105_s27 + $0x58] sm:$0xf] %v198_v22  ;;  %v200_v23 = vld [vmem:[%s6098_s26 + $0x284] sm:$0xf] }
  0x24   : > { %v202_v24 = vld [vmem:[%s6098_s26 + $0x2a0] sm:$0xf]  ;;  %v204_v25 = vld [vmem:[%s6098_s26 + $0x2bc] sm:$0xf]  ;;  %201 = vst [vmem:[%s6105_s27 + $0x5c] sm:$0xf] %v200_v23 }
  0x25   : > { %203 = vst [vmem:[%s6105_s27 + $0x60] sm:$0xf] %v202_v24  ;;  %205 = vst [vmem:[%s6105_s27 + $0x64] sm:$0xf] %v204_v25  ;;  %v206_v26 = vld [vmem:[%s6098_s26 + $0x2d8] sm:$0xf] }
  0x26   : > { %v208_v27 = vld [vmem:[%s6098_s26 + $0x2f4] sm:$0xf]  ;;  %v210_v28 = vld [vmem:[%s6098_s26 + $0x310] sm:$0xf]  ;;  %207 = vst [vmem:[%s6105_s27 + $0x68] sm:$0xf] %v206_v26 }
  0x27   : > { %209 = vst [vmem:[%s6105_s27 + $0x6c] sm:$0xf] %v208_v27  ;;  %211 = vst [vmem:[%s6105_s27 + $0x70] sm:$0xf] %v210_v28  ;;  %v212_v29 = vld [vmem:[%s6098_s26 + $0x32c] sm:$0xf] }
  0x28   : > { %v214_v30 = vld [vmem:[%s6098_s26 + $0x348] sm:$0xf]  ;;  %v216_v31 = vld [vmem:[%s6098_s26 + $0x364] sm:$0xf]  ;;  %213 = vst [vmem:[%s6105_s27 + $0x74] sm:$0xf] %v212_v29 }
  0x29   : > { %215 = vst [vmem:[%s6105_s27 + $0x78] sm:$0xf] %v214_v30  ;;  %217 = vst [vmem:[%s6105_s27 + $0x7c] sm:$0xf] %v216_v31  ;;  %v218_v32 = vld [vmem:[%s6098_s26 + $0x380] sm:$0xf] }
  0x2a   : > { %v220_v33 = vld [vmem:[%s6098_s26 + $0x39c] sm:$0xf]  ;;  %v222_v34 = vld [vmem:[%s6098_s26 + $0x3b8] sm:$0xf]  ;;  %219 = vst [vmem:[%s6105_s27 + $0x80] sm:$0xf] %v218_v32 }
  0x2b   : > { %221 = vst [vmem:[%s6105_s27 + $0x84] sm:$0xf] %v220_v33  ;;  %223 = vst [vmem:[%s6105_s27 + $0x88] sm:$0xf] %v222_v34  ;;  %v224_v35 = vld [vmem:[%s6098_s26 + $0x3d4] sm:$0xf] }
  0x2c   : > { %v226_v36 = vld [vmem:[%s6098_s26 + $0x3f0] sm:$0xf]  ;;  %v228_v37 = vld [vmem:[%s6098_s26 + $0x40c] sm:$0xf]  ;;  %225 = vst [vmem:[%s6105_s27 + $0x8c] sm:$0xf] %v224_v35 }
  0x2d   : > { %227 = vst [vmem:[%s6105_s27 + $0x90] sm:$0xf] %v226_v36  ;;  %229 = vst [vmem:[%s6105_s27 + $0x94] sm:$0xf] %v228_v37  ;;  %v230_v38 = vld [vmem:[%s6098_s26 + $0x428] sm:$0xf] }
  0x2e   : > { %v232_v39 = vld [vmem:[%s6098_s26 + $0x444] sm:$0xf]  ;;  %v234_v40 = vld [vmem:[%s6098_s26 + $0x460] sm:$0xf]  ;;  %231 = vst [vmem:[%s6105_s27 + $0x98] sm:$0xf] %v230_v38 }
  0x2f   : > { %233 = vst [vmem:[%s6105_s27 + $0x9c] sm:$0xf] %v232_v39  ;;  %235 = vst [vmem:[%s6105_s27 + $0xa0] sm:$0xf] %v234_v40  ;;  %v236_v41 = vld [vmem:[%s6098_s26 + $0x47c] sm:$0xf] }
  0x30   : > { %v238_v42 = vld [vmem:[%s6098_s26 + $0x498] sm:$0xf]  ;;  %v240_v43 = vld [vmem:[%s6098_s26 + $0x4b4] sm:$0xf]  ;;  %237 = vst [vmem:[%s6105_s27 + $0xa4] sm:$0xf] %v236_v41 }
  0x31   : > { %239 = vst [vmem:[%s6105_s27 + $0xa8] sm:$0xf] %v238_v42  ;;  %241 = vst [vmem:[%s6105_s27 + $0xac] sm:$0xf] %v240_v43  ;;  %v242_v44 = vld [vmem:[%s6098_s26 + $0x4d0] sm:$0xf] }
  0x32   : > { %v244_v45 = vld [vmem:[%s6098_s26 + $0x4ec] sm:$0xf]  ;;  %v246_v46 = vld [vmem:[%s6098_s26 + $0x508] sm:$0xf]  ;;  %243 = vst [vmem:[%s6105_s27 + $0xb0] sm:$0xf] %v242_v44 }
  0x33   : > { %245 = vst [vmem:[%s6105_s27 + $0xb4] sm:$0xf] %v244_v45  ;;  %247 = vst [vmem:[%s6105_s27 + $0xb8] sm:$0xf] %v246_v46  ;;  %v248_v47 = vld [vmem:[%s6098_s26 + $0x524] sm:$0xf] }
  0x34   : > { %v250_v48 = vld [vmem:[%s6098_s26 + $0x540] sm:$0xf]  ;;  %v252_v49 = vld [vmem:[%s6098_s26 + $0x55c] sm:$0xf]  ;;  %249 = vst [vmem:[%s6105_s27 + $0xbc] sm:$0xf] %v248_v47 }
  0x35   : > { %251 = vst [vmem:[%s6105_s27 + $0xc0] sm:$0xf] %v250_v48  ;;  %253 = vst [vmem:[%s6105_s27 + $0xc4] sm:$0xf] %v252_v49  ;;  %v254_v50 = vld [vmem:[%s6098_s26 + $0x578] sm:$0xf] }
  0x36   : > { %v256_v51 = vld [vmem:[%s6098_s26 + $0x594] sm:$0xf]  ;;  %v258_v52 = vld [vmem:[%s6098_s26 + $0x5b0] sm:$0xf]  ;;  %255 = vst [vmem:[%s6105_s27 + $0xc8] sm:$0xf] %v254_v50 }
  0x37   : > { %257 = vst [vmem:[%s6105_s27 + $0xcc] sm:$0xf] %v256_v51  ;;  %259 = vst [vmem:[%s6105_s27 + $0xd0] sm:$0xf] %v258_v52  ;;  %v260_v53 = vld [vmem:[%s6098_s26 + $0x5cc] sm:$0xf] }
  0x38   : > { %v262_v54 = vld [vmem:[%s6098_s26 + $0x5e8] sm:$0xf]  ;;  %v264_v55 = vld [vmem:[%s6098_s26 + $0x604] sm:$0xf]  ;;  %261 = vst [vmem:[%s6105_s27 + $0xd4] sm:$0xf] %v260_v53 }
  0x39   : > { %263 = vst [vmem:[%s6105_s27 + $0xd8] sm:$0xf] %v262_v54  ;;  %265 = vst [vmem:[%s6105_s27 + $0xdc] sm:$0xf] %v264_v55  ;;  %v266_v56 = vld [vmem:[%s6098_s26 + $0x620] sm:$0xf] }
  0x3a   : > { %v268_v57 = vld [vmem:[%s6098_s26 + $0x63c] sm:$0xf]  ;;  %v270_v58 = vld [vmem:[%s6098_s26 + $0x658] sm:$0xf]  ;;  %267 = vst [vmem:[%s6105_s27 + $0xe0] sm:$0xf] %v266_v56 }
  0x3b   : > { %269 = vst [vmem:[%s6105_s27 + $0xe4] sm:$0xf] %v268_v57  ;;  %271 = vst [vmem:[%s6105_s27 + $0xe8] sm:$0xf] %v270_v58  ;;  %v272_v59 = vld [vmem:[%s6098_s26 + $0x674] sm:$0xf] }
  0x3c   : > { %v274_v60 = vld [vmem:[%s6098_s26 + $0x690] sm:$0xf]  ;;  %v276_v61 = vld [vmem:[%s6098_s26 + $0x6ac] sm:$0xf]  ;;  %273 = vst [vmem:[%s6105_s27 + $0xec] sm:$0xf] %v272_v59 }
  0x3d   : > { %275 = vst [vmem:[%s6105_s27 + $0xf0] sm:$0xf] %v274_v60  ;;  %277 = vst [vmem:[%s6105_s27 + $0xf4] sm:$0xf] %v276_v61  ;;  %v278_v62 = vld [vmem:[%s6098_s26 + $0x6c8] sm:$0xf] }
  0x3e   : > { %v280_v63 = vld [vmem:[%s6098_s26 + $0x6e4] sm:$0xf]  ;;  %v282_v0 = vld [vmem:[%s6098_s26 + $0x700] sm:$0xf]  ;;  %279 = vst [vmem:[%s6105_s27 + $0xf8] sm:$0xf] %v278_v62 }
  0x3f   : > { %281 = vst [vmem:[%s6105_s27 + $0xfc] sm:$0xf] %v280_v63  ;;  %283 = vst [vmem:[%s6105_s27 + $0x100] sm:$0xf] %v282_v0  ;;  %v284_v1 = vld [vmem:[%s6098_s26 + $0x71c] sm:$0xf] }
  0x40   : > { %v286_v2 = vld [vmem:[%s6098_s26 + $0x738] sm:$0xf]  ;;  %v288_v3 = vld [vmem:[%s6098_s26 + $0x754] sm:$0xf]  ;;  %285 = vst [vmem:[%s6105_s27 + $0x104] sm:$0xf] %v284_v1 }
  0x41   : > { %287 = vst [vmem:[%s6105_s27 + $0x108] sm:$0xf] %v286_v2  ;;  %289 = vst [vmem:[%s6105_s27 + $0x10c] sm:$0xf] %v288_v3  ;;  %v290_v4 = vld [vmem:[%s6098_s26 + $0x770] sm:$0xf] }
  0x42   : > { %v292_v5 = vld [vmem:[%s6098_s26 + $0x78c] sm:$0xf]  ;;  %v294_v6 = vld [vmem:[%s6098_s26 + $0x7a8] sm:$0xf]  ;;  %291 = vst [vmem:[%s6105_s27 + $0x110] sm:$0xf] %v290_v4 }
  0x43   : > { %293 = vst [vmem:[%s6105_s27 + $0x114] sm:$0xf] %v292_v5  ;;  %295 = vst [vmem:[%s6105_s27 + $0x118] sm:$0xf] %v294_v6  ;;  %v296_v7 = vld [vmem:[%s6098_s26 + $0x7c4] sm:$0xf] }
  0x44   : > { %v298_v8 = vld [vmem:[%s6098_s26 + $0x7e0] sm:$0xf]  ;;  %v300_v9 = vld [vmem:[%s6098_s26 + $0x7fc] sm:$0xf]  ;;  %297 = vst [vmem:[%s6105_s27 + $0x11c] sm:$0xf] %v296_v7 }
  0x45   : > { %299 = vst [vmem:[%s6105_s27 + $0x120] sm:$0xf] %v298_v8  ;;  %301 = vst [vmem:[%s6105_s27 + $0x124] sm:$0xf] %v300_v9  ;;  %v302_v10 = vld [vmem:[%s6098_s26 + $0x818] sm:$0xf] }
  0x46   : > { %v304_v11 = vld [vmem:[%s6098_s26 + $0x834] sm:$0xf]  ;;  %v306_v12 = vld [vmem:[%s6098_s26 + $0x850] sm:$0xf]  ;;  %303 = vst [vmem:[%s6105_s27 + $0x128] sm:$0xf] %v302_v10 }
  0x47   : > { %305 = vst [vmem:[%s6105_s27 + $0x12c] sm:$0xf] %v304_v11  ;;  %307 = vst [vmem:[%s6105_s27 + $0x130] sm:$0xf] %v306_v12  ;;  %v308_v13 = vld [vmem:[%s6098_s26 + $0x86c] sm:$0xf] }
  0x48   : > { %v310_v14 = vld [vmem:[%s6098_s26 + $0x888] sm:$0xf]  ;;  %v312_v15 = vld [vmem:[%s6098_s26 + $0x8a4] sm:$0xf]  ;;  %309 = vst [vmem:[%s6105_s27 + $0x134] sm:$0xf] %v308_v13 }
  0x49   : > { %311 = vst [vmem:[%s6105_s27 + $0x138] sm:$0xf] %v310_v14  ;;  %313 = vst [vmem:[%s6105_s27 + $0x13c] sm:$0xf] %v312_v15  ;;  %v314_v16 = vld [vmem:[%s6098_s26 + $0x8c0] sm:$0xf] }
  0x4a   : > { %v316_v17 = vld [vmem:[%s6098_s26 + $0x8dc] sm:$0xf]  ;;  %v318_v18 = vld [vmem:[%s6098_s26 + $0x8f8] sm:$0xf]  ;;  %315 = vst [vmem:[%s6105_s27 + $0x140] sm:$0xf] %v314_v16 }
  0x4b   : > { %317 = vst [vmem:[%s6105_s27 + $0x144] sm:$0xf] %v316_v17  ;;  %319 = vst [vmem:[%s6105_s27 + $0x148] sm:$0xf] %v318_v18  ;;  %v320_v19 = vld [vmem:[%s6098_s26 + $0x914] sm:$0xf] }
  0x4c   : > { %v322_v20 = vld [vmem:[%s6098_s26 + $0x930] sm:$0xf]  ;;  %v324_v21 = vld [vmem:[%s6098_s26 + $0x94c] sm:$0xf]  ;;  %321 = vst [vmem:[%s6105_s27 + $0x14c] sm:$0xf] %v320_v19 }
  0x4d   : > { %323 = vst [vmem:[%s6105_s27 + $0x150] sm:$0xf] %v322_v20  ;;  %325 = vst [vmem:[%s6105_s27 + $0x154] sm:$0xf] %v324_v21  ;;  %v326_v22 = vld [vmem:[%s6098_s26 + $0x968] sm:$0xf] }
  0x4e   : > { %v328_v23 = vld [vmem:[%s6098_s26 + $0x984] sm:$0xf]  ;;  %v330_v24 = vld [vmem:[%s6098_s26 + $0x9a0] sm:$0xf]  ;;  %327 = vst [vmem:[%s6105_s27 + $0x158] sm:$0xf] %v326_v22 }
  0x4f   : > { %329 = vst [vmem:[%s6105_s27 + $0x15c] sm:$0xf] %v328_v23  ;;  %331 = vst [vmem:[%s6105_s27 + $0x160] sm:$0xf] %v330_v24  ;;  %v332_v25 = vld [vmem:[%s6098_s26 + $0x9bc] sm:$0xf] }
  0x50   : > { %v334_v26 = vld [vmem:[%s6098_s26 + $0x9d8] sm:$0xf]  ;;  %v336_v27 = vld [vmem:[%s6098_s26 + $0x9f4] sm:$0xf]  ;;  %333 = vst [vmem:[%s6105_s27 + $0x164] sm:$0xf] %v332_v25 }
  0x51   : > { %335 = vst [vmem:[%s6105_s27 + $0x168] sm:$0xf] %v334_v26  ;;  %337 = vst [vmem:[%s6105_s27 + $0x16c] sm:$0xf] %v336_v27  ;;  %v338_v28 = vld [vmem:[%s6098_s26 + $0xa10] sm:$0xf] }
  0x52   : > { %v340_v29 = vld [vmem:[%s6098_s26 + $0xa2c] sm:$0xf]  ;;  %v342_v30 = vld [vmem:[%s6098_s26 + $0xa48] sm:$0xf]  ;;  %339 = vst [vmem:[%s6105_s27 + $0x170] sm:$0xf] %v338_v28 }
  0x53   : > { %341 = vst [vmem:[%s6105_s27 + $0x174] sm:$0xf] %v340_v29  ;;  %343 = vst [vmem:[%s6105_s27 + $0x178] sm:$0xf] %v342_v30  ;;  %v344_v31 = vld [vmem:[%s6098_s26 + $0xa64] sm:$0xf] }
  0x54   : > { %v346_v32 = vld [vmem:[%s6098_s26 + $0xa80] sm:$0xf]  ;;  %v348_v33 = vld [vmem:[%s6098_s26 + $0xa9c] sm:$0xf]  ;;  %345 = vst [vmem:[%s6105_s27 + $0x17c] sm:$0xf] %v344_v31 }
  0x55   : > { %347 = vst [vmem:[%s6105_s27 + $0x180] sm:$0xf] %v346_v32  ;;  %349 = vst [vmem:[%s6105_s27 + $0x184] sm:$0xf] %v348_v33  ;;  %v350_v34 = vld [vmem:[%s6098_s26 + $0xab8] sm:$0xf] }
  0x56   : > { %v352_v35 = vld [vmem:[%s6098_s26 + $0xad4] sm:$0xf]  ;;  %v354_v36 = vld [vmem:[%s6098_s26 + $0xaf0] sm:$0xf]  ;;  %351 = vst [vmem:[%s6105_s27 + $0x188] sm:$0xf] %v350_v34 }
  0x57   : > { %353 = vst [vmem:[%s6105_s27 + $0x18c] sm:$0xf] %v352_v35  ;;  %355 = vst [vmem:[%s6105_s27 + $0x190] sm:$0xf] %v354_v36  ;;  %v356_v37 = vld [vmem:[%s6098_s26 + $0xb0c] sm:$0xf] }
  0x58   : > { %v358_v38 = vld [vmem:[%s6098_s26 + $0xb28] sm:$0xf]  ;;  %v360_v39 = vld [vmem:[%s6098_s26 + $0xb44] sm:$0xf]  ;;  %357 = vst [vmem:[%s6105_s27 + $0x194] sm:$0xf] %v356_v37 }
  0x59   : > { %359 = vst [vmem:[%s6105_s27 + $0x198] sm:$0xf] %v358_v38  ;;  %361 = vst [vmem:[%s6105_s27 + $0x19c] sm:$0xf] %v360_v39  ;;  %v362_v40 = vld [vmem:[%s6098_s26 + $0xb60] sm:$0xf] }
  0x5a   : > { %v364_v41 = vld [vmem:[%s6098_s26 + $0xb7c] sm:$0xf]  ;;  %v366_v42 = vld [vmem:[%s6098_s26 + $0xb98] sm:$0xf]  ;;  %363 = vst [vmem:[%s6105_s27 + $0x1a0] sm:$0xf] %v362_v40 }
  0x5b   : > { %365 = vst [vmem:[%s6105_s27 + $0x1a4] sm:$0xf] %v364_v41  ;;  %367 = vst [vmem:[%s6105_s27 + $0x1a8] sm:$0xf] %v366_v42  ;;  %v368_v43 = vld [vmem:[%s6098_s26 + $0xbb4] sm:$0xf] }
  0x5c   : > { %v370_v44 = vld [vmem:[%s6098_s26 + $0xbd0] sm:$0xf]  ;;  %v372_v45 = vld [vmem:[%s6098_s26 + $0xbec] sm:$0xf]  ;;  %369 = vst [vmem:[%s6105_s27 + $0x1ac] sm:$0xf] %v368_v43 }
  0x5d   : > { %371 = vst [vmem:[%s6105_s27 + $0x1b0] sm:$0xf] %v370_v44  ;;  %373 = vst [vmem:[%s6105_s27 + $0x1b4] sm:$0xf] %v372_v45  ;;  %v374_v46 = vld [vmem:[%s6098_s26 + $0xc08] sm:$0xf] }
  0x5e   : > { %v376_v47 = vld [vmem:[%s6098_s26 + $0xc24] sm:$0xf]  ;;  %v378_v48 = vld [vmem:[%s6098_s26 + $0xc40] sm:$0xf]  ;;  %375 = vst [vmem:[%s6105_s27 + $0x1b8] sm:$0xf] %v374_v46 }
  0x5f   : > { %377 = vst [vmem:[%s6105_s27 + $0x1bc] sm:$0xf] %v376_v47  ;;  %379 = vst [vmem:[%s6105_s27 + $0x1c0] sm:$0xf] %v378_v48  ;;  %v380_v49 = vld [vmem:[%s6098_s26 + $0xc5c] sm:$0xf] }
  0x60   : > { %v382_v50 = vld [vmem:[%s6098_s26 + $0xc78] sm:$0xf]  ;;  %v384_v51 = vld [vmem:[%s6098_s26 + $0xc94] sm:$0xf]  ;;  %381 = vst [vmem:[%s6105_s27 + $0x1c4] sm:$0xf] %v380_v49 }
  0x61   : > { %383 = vst [vmem:[%s6105_s27 + $0x1c8] sm:$0xf] %v382_v50  ;;  %385 = vst [vmem:[%s6105_s27 + $0x1cc] sm:$0xf] %v384_v51  ;;  %v386_v52 = vld [vmem:[%s6098_s26 + $0xcb0] sm:$0xf] }
  0x62   : > { %v388_v53 = vld [vmem:[%s6098_s26 + $0xccc] sm:$0xf]  ;;  %v390_v54 = vld [vmem:[%s6098_s26 + $0xce8] sm:$0xf]  ;;  %387 = vst [vmem:[%s6105_s27 + $0x1d0] sm:$0xf] %v386_v52 }
  0x63   : > { %389 = vst [vmem:[%s6105_s27 + $0x1d4] sm:$0xf] %v388_v53  ;;  %391 = vst [vmem:[%s6105_s27 + $0x1d8] sm:$0xf] %v390_v54  ;;  %v392_v55 = vld [vmem:[%s6098_s26 + $0xd04] sm:$0xf] }
  0x64   : > { %v394_v56 = vld [vmem:[%s6098_s26 + $0xd20] sm:$0xf]  ;;  %v396_v57 = vld [vmem:[%s6098_s26 + $0xd3c] sm:$0xf]  ;;  %393 = vst [vmem:[%s6105_s27 + $0x1dc] sm:$0xf] %v392_v55 }
  0x65   : > { %395 = vst [vmem:[%s6105_s27 + $0x1e0] sm:$0xf] %v394_v56  ;;  %397 = vst [vmem:[%s6105_s27 + $0x1e4] sm:$0xf] %v396_v57  ;;  %v398_v58 = vld [vmem:[%s6098_s26 + $0xd58] sm:$0xf] }
  0x66   : > { %v400_v59 = vld [vmem:[%s6098_s26 + $0xd74] sm:$0xf]  ;;  %v402_v60 = vld [vmem:[%s6098_s26 + $0xd90] sm:$0xf]  ;;  %399 = vst [vmem:[%s6105_s27 + $0x1e8] sm:$0xf] %v398_v58 }
  0x67   : > { %401 = vst [vmem:[%s6105_s27 + $0x1ec] sm:$0xf] %v400_v59  ;;  %403 = vst [vmem:[%s6105_s27 + $0x1f0] sm:$0xf] %v402_v60  ;;  %v404_v61 = vld [vmem:[%s6098_s26 + $0xdac] sm:$0xf] }
  0x68   : > { %v406_v62 = vld [vmem:[%s6098_s26 + $0xdc8] sm:$0xf]  ;;  %v408_v63 = vld [vmem:[%s6098_s26 + $0xde4] sm:$0xf]  ;;  %405 = vst [vmem:[%s6105_s27 + $0x1f4] sm:$0xf] %v404_v61 }
  0x69   : > { %407 = vst [vmem:[%s6105_s27 + $0x1f8] sm:$0xf] %v406_v62  ;;  %409 = vst [vmem:[%s6105_s27 + $0x1fc] sm:$0xf] %v408_v63  ;;  %v410_v0 = vld [vmem:[%s6098_s26 + $0xe00] sm:$0xf] }
  0x6a   : > { %v412_v1 = vld [vmem:[%s6098_s26 + $0xe1c] sm:$0xf]  ;;  %v414_v2 = vld [vmem:[%s6098_s26 + $0xe38] sm:$0xf]  ;;  %411 = vst [vmem:[%s6105_s27 + $0x200] sm:$0xf] %v410_v0 }
  0x6b   : > { %413 = vst [vmem:[%s6105_s27 + $0x204] sm:$0xf] %v412_v1  ;;  %415 = vst [vmem:[%s6105_s27 + $0x208] sm:$0xf] %v414_v2  ;;  %v416_v3 = vld [vmem:[%s6098_s26 + $0xe54] sm:$0xf] }
  0x6c   : > { %v418_v4 = vld [vmem:[%s6098_s26 + $0xe70] sm:$0xf]  ;;  %v420_v5 = vld [vmem:[%s6098_s26 + $0xe8c] sm:$0xf]  ;;  %417 = vst [vmem:[%s6105_s27 + $0x20c] sm:$0xf] %v416_v3 }
  0x6d   : > { %419 = vst [vmem:[%s6105_s27 + $0x210] sm:$0xf] %v418_v4  ;;  %421 = vst [vmem:[%s6105_s27 + $0x214] sm:$0xf] %v420_v5  ;;  %v422_v6 = vld [vmem:[%s6098_s26 + $0xea8] sm:$0xf] }
  0x6e   : > { %v424_v7 = vld [vmem:[%s6098_s26 + $0xec4] sm:$0xf]  ;;  %v426_v8 = vld [vmem:[%s6098_s26 + $0xee0] sm:$0xf]  ;;  %423 = vst [vmem:[%s6105_s27 + $0x218] sm:$0xf] %v422_v6 }
  0x6f   : > { %425 = vst [vmem:[%s6105_s27 + $0x21c] sm:$0xf] %v424_v7  ;;  %427 = vst [vmem:[%s6105_s27 + $0x220] sm:$0xf] %v426_v8  ;;  %v428_v9 = vld [vmem:[%s6098_s26 + $0xefc] sm:$0xf] }
  0x70   : > { %v430_v10 = vld [vmem:[%s6098_s26 + $0xf18] sm:$0xf]  ;;  %v432_v11 = vld [vmem:[%s6098_s26 + $0xf34] sm:$0xf]  ;;  %429 = vst [vmem:[%s6105_s27 + $0x224] sm:$0xf] %v428_v9 }
  0x71   : > { %431 = vst [vmem:[%s6105_s27 + $0x228] sm:$0xf] %v430_v10  ;;  %433 = vst [vmem:[%s6105_s27 + $0x22c] sm:$0xf] %v432_v11  ;;  %v434_v12 = vld [vmem:[%s6098_s26 + $0xf50] sm:$0xf] }
  0x72   : > { %v436_v13 = vld [vmem:[%s6098_s26 + $0xf6c] sm:$0xf]  ;;  %v438_v14 = vld [vmem:[%s6098_s26 + $0xf88] sm:$0xf]  ;;  %435 = vst [vmem:[%s6105_s27 + $0x230] sm:$0xf] %v434_v12 }
  0x73   : > { %437 = vst [vmem:[%s6105_s27 + $0x234] sm:$0xf] %v436_v13  ;;  %439 = vst [vmem:[%s6105_s27 + $0x238] sm:$0xf] %v438_v14  ;;  %v440_v15 = vld [vmem:[%s6098_s26 + $0xfa4] sm:$0xf] }
  0x74   : > { %v442_v16 = vld [vmem:[%s6098_s26 + $0xfc0] sm:$0xf]  ;;  %v444_v17 = vld [vmem:[%s6098_s26 + $0xfdc] sm:$0xf]  ;;  %441 = vst [vmem:[%s6105_s27 + $0x23c] sm:$0xf] %v440_v15 }
  0x75   : > { %443 = vst [vmem:[%s6105_s27 + $0x240] sm:$0xf] %v442_v16  ;;  %445 = vst [vmem:[%s6105_s27 + $0x244] sm:$0xf] %v444_v17  ;;  %v446_v18 = vld [vmem:[%s6098_s26 + $0xff8] sm:$0xf] }
  0x76   : > { %v448_v19 = vld [vmem:[%s6098_s26 + $0x1014] sm:$0xf]  ;;  %v450_v20 = vld [vmem:[%s6098_s26 + $0x1030] sm:$0xf]  ;;  %447 = vst [vmem:[%s6105_s27 + $0x248] sm:$0xf] %v446_v18 }
  0x77   : > { %449 = vst [vmem:[%s6105_s27 + $0x24c] sm:$0xf] %v448_v19  ;;  %451 = vst [vmem:[%s6105_s27 + $0x250] sm:$0xf] %v450_v20  ;;  %v452_v21 = vld [vmem:[%s6098_s26 + $0x104c] sm:$0xf] }
  0x78   : > { %v454_v22 = vld [vmem:[%s6098_s26 + $0x1068] sm:$0xf]  ;;  %v456_v23 = vld [vmem:[%s6098_s26 + $0x1084] sm:$0xf]  ;;  %453 = vst [vmem:[%s6105_s27 + $0x254] sm:$0xf] %v452_v21 }
  0x79   : > { %455 = vst [vmem:[%s6105_s27 + $0x258] sm:$0xf] %v454_v22  ;;  %457 = vst [vmem:[%s6105_s27 + $0x25c] sm:$0xf] %v456_v23  ;;  %v458_v24 = vld [vmem:[%s6098_s26 + $0x10a0] sm:$0xf] }
  0x7a   : > { %v460_v25 = vld [vmem:[%s6098_s26 + $0x10bc] sm:$0xf]  ;;  %v462_v26 = vld [vmem:[%s6098_s26 + $0x10d8] sm:$0xf]  ;;  %459 = vst [vmem:[%s6105_s27 + $0x260] sm:$0xf] %v458_v24 }
  0x7b   : > { %461 = vst [vmem:[%s6105_s27 + $0x264] sm:$0xf] %v460_v25  ;;  %463 = vst [vmem:[%s6105_s27 + $0x268] sm:$0xf] %v462_v26  ;;  %v464_v27 = vld [vmem:[%s6098_s26 + $0x10f4] sm:$0xf] }
  0x7c   : > { %v466_v28 = vld [vmem:[%s6098_s26 + $0x1110] sm:$0xf]  ;;  %v468_v29 = vld [vmem:[%s6098_s26 + $0x112c] sm:$0xf]  ;;  %465 = vst [vmem:[%s6105_s27 + $0x26c] sm:$0xf] %v464_v27 }
  0x7d   : > { %467 = vst [vmem:[%s6105_s27 + $0x270] sm:$0xf] %v466_v28  ;;  %469 = vst [vmem:[%s6105_s27 + $0x274] sm:$0xf] %v468_v29  ;;  %v470_v30 = vld [vmem:[%s6098_s26 + $0x1148] sm:$0xf] }
  0x7e   : > { %v472_v31 = vld [vmem:[%s6098_s26 + $0x1164] sm:$0xf]  ;;  %v474_v32 = vld [vmem:[%s6098_s26 + $0x1180] sm:$0xf]  ;;  %471 = vst [vmem:[%s6105_s27 + $0x278] sm:$0xf] %v470_v30 }
  0x7f   : > { %473 = vst [vmem:[%s6105_s27 + $0x27c] sm:$0xf] %v472_v31  ;;  %475 = vst [vmem:[%s6105_s27 + $0x280] sm:$0xf] %v474_v32  ;;  %v476_v33 = vld [vmem:[%s6098_s26 + $0x119c] sm:$0xf] }
  0x80   : > { %v478_v34 = vld [vmem:[%s6098_s26 + $0x11b8] sm:$0xf]  ;;  %v480_v35 = vld [vmem:[%s6098_s26 + $0x11d4] sm:$0xf]  ;;  %477 = vst [vmem:[%s6105_s27 + $0x284] sm:$0xf] %v476_v33 }
  0x81   : > { %479 = vst [vmem:[%s6105_s27 + $0x288] sm:$0xf] %v478_v34  ;;  %481 = vst [vmem:[%s6105_s27 + $0x28c] sm:$0xf] %v480_v35  ;;  %v482_v36 = vld [vmem:[%s6098_s26 + $0x11f0] sm:$0xf] }
  0x82   : > { %v484_v37 = vld [vmem:[%s6098_s26 + $0x120c] sm:$0xf]  ;;  %v486_v38 = vld [vmem:[%s6098_s26 + $0x1228] sm:$0xf]  ;;  %483 = vst [vmem:[%s6105_s27 + $0x290] sm:$0xf] %v482_v36 }
  0x83   : > { %485 = vst [vmem:[%s6105_s27 + $0x294] sm:$0xf] %v484_v37  ;;  %487 = vst [vmem:[%s6105_s27 + $0x298] sm:$0xf] %v486_v38  ;;  %v488_v39 = vld [vmem:[%s6098_s26 + $0x1244] sm:$0xf] }
  0x84   : > { %v490_v40 = vld [vmem:[%s6098_s26 + $0x1260] sm:$0xf]  ;;  %v492_v41 = vld [vmem:[%s6098_s26 + $0x127c] sm:$0xf]  ;;  %489 = vst [vmem:[%s6105_s27 + $0x29c] sm:$0xf] %v488_v39 }
  0x85   : > { %491 = vst [vmem:[%s6105_s27 + $0x2a0] sm:$0xf] %v490_v40  ;;  %493 = vst [vmem:[%s6105_s27 + $0x2a4] sm:$0xf] %v492_v41  ;;  %v494_v42 = vld [vmem:[%s6098_s26 + $0x1298] sm:$0xf] }
  0x86   : > { %v496_v43 = vld [vmem:[%s6098_s26 + $0x12b4] sm:$0xf]  ;;  %v498_v44 = vld [vmem:[%s6098_s26 + $0x12d0] sm:$0xf]  ;;  %495 = vst [vmem:[%s6105_s27 + $0x2a8] sm:$0xf] %v494_v42 }
  0x87   : > { %497 = vst [vmem:[%s6105_s27 + $0x2ac] sm:$0xf] %v496_v43  ;;  %499 = vst [vmem:[%s6105_s27 + $0x2b0] sm:$0xf] %v498_v44  ;;  %v500_v45 = vld [vmem:[%s6098_s26 + $0x12ec] sm:$0xf] }
  0x88   : > { %v502_v46 = vld [vmem:[%s6098_s26 + $0x1308] sm:$0xf]  ;;  %v504_v47 = vld [vmem:[%s6098_s26 + $0x1324] sm:$0xf]  ;;  %501 = vst [vmem:[%s6105_s27 + $0x2b4] sm:$0xf] %v500_v45 }
  0x89   : > { %503 = vst [vmem:[%s6105_s27 + $0x2b8] sm:$0xf] %v502_v46  ;;  %505 = vst [vmem:[%s6105_s27 + $0x2bc] sm:$0xf] %v504_v47  ;;  %v506_v48 = vld [vmem:[%s6098_s26 + $0x1340] sm:$0xf] }
  0x8a   : > { %v508_v49 = vld [vmem:[%s6098_s26 + $0x135c] sm:$0xf]  ;;  %v510_v50 = vld [vmem:[%s6098_s26 + $0x1378] sm:$0xf]  ;;  %507 = vst [vmem:[%s6105_s27 + $0x2c0] sm:$0xf] %v506_v48 }
  0x8b   : > { %509 = vst [vmem:[%s6105_s27 + $0x2c4] sm:$0xf] %v508_v49  ;;  %511 = vst [vmem:[%s6105_s27 + $0x2c8] sm:$0xf] %v510_v50  ;;  %v512_v51 = vld [vmem:[%s6098_s26 + $0x1394] sm:$0xf] }
  0x8c   : > { %v514_v52 = vld [vmem:[%s6098_s26 + $0x13b0] sm:$0xf]  ;;  %v516_v53 = vld [vmem:[%s6098_s26 + $0x13cc] sm:$0xf]  ;;  %513 = vst [vmem:[%s6105_s27 + $0x2cc] sm:$0xf] %v512_v51 }
  0x8d   : > { %515 = vst [vmem:[%s6105_s27 + $0x2d0] sm:$0xf] %v514_v52  ;;  %517 = vst [vmem:[%s6105_s27 + $0x2d4] sm:$0xf] %v516_v53  ;;  %v518_v54 = vld [vmem:[%s6098_s26 + $0x13e8] sm:$0xf] }
  0x8e   : > { %v520_v55 = vld [vmem:[%s6098_s26 + $0x1404] sm:$0xf]  ;;  %v522_v56 = vld [vmem:[%s6098_s26 + $0x1420] sm:$0xf]  ;;  %519 = vst [vmem:[%s6105_s27 + $0x2d8] sm:$0xf] %v518_v54 }
  0x8f   : > { %521 = vst [vmem:[%s6105_s27 + $0x2dc] sm:$0xf] %v520_v55  ;;  %523 = vst [vmem:[%s6105_s27 + $0x2e0] sm:$0xf] %v522_v56  ;;  %v524_v57 = vld [vmem:[%s6098_s26 + $0x143c] sm:$0xf] }
  0x90   : > { %v526_v58 = vld [vmem:[%s6098_s26 + $0x1458] sm:$0xf]  ;;  %v528_v59 = vld [vmem:[%s6098_s26 + $0x1474] sm:$0xf]  ;;  %525 = vst [vmem:[%s6105_s27 + $0x2e4] sm:$0xf] %v524_v57 }
  0x91   : > { %527 = vst [vmem:[%s6105_s27 + $0x2e8] sm:$0xf] %v526_v58  ;;  %529 = vst [vmem:[%s6105_s27 + $0x2ec] sm:$0xf] %v528_v59  ;;  %v530_v60 = vld [vmem:[%s6098_s26 + $0x1490] sm:$0xf] }
  0x92   : > { %v532_v61 = vld [vmem:[%s6098_s26 + $0x14ac] sm:$0xf]  ;;  %v534_v62 = vld [vmem:[%s6098_s26 + $0x14c8] sm:$0xf]  ;;  %531 = vst [vmem:[%s6105_s27 + $0x2f0] sm:$0xf] %v530_v60 }
  0x93   : > { %533 = vst [vmem:[%s6105_s27 + $0x2f4] sm:$0xf] %v532_v61  ;;  %535 = vst [vmem:[%s6105_s27 + $0x2f8] sm:$0xf] %v534_v62  ;;  %v536_v63 = vld [vmem:[%s6098_s26 + $0x14e4] sm:$0xf] }
  0x94   : > { %v538_v0 = vld [vmem:[%s6098_s26 + $0x1500] sm:$0xf]  ;;  %v540_v1 = vld [vmem:[%s6098_s26 + $0x151c] sm:$0xf]  ;;  %537 = vst [vmem:[%s6105_s27 + $0x2fc] sm:$0xf] %v536_v63 }
  0x95   : > { %539 = vst [vmem:[%s6105_s27 + $0x300] sm:$0xf] %v538_v0  ;;  %541 = vst [vmem:[%s6105_s27 + $0x304] sm:$0xf] %v540_v1  ;;  %v542_v2 = vld [vmem:[%s6098_s26 + $0x1538] sm:$0xf] }
  0x96   : > { %v544_v3 = vld [vmem:[%s6098_s26 + $0x1554] sm:$0xf]  ;;  %v546_v4 = vld [vmem:[%s6098_s26 + $0x1570] sm:$0xf]  ;;  %543 = vst [vmem:[%s6105_s27 + $0x308] sm:$0xf] %v542_v2 }
  0x97   : > { %545 = vst [vmem:[%s6105_s27 + $0x30c] sm:$0xf] %v544_v3  ;;  %547 = vst [vmem:[%s6105_s27 + $0x310] sm:$0xf] %v546_v4  ;;  %v548_v5 = vld [vmem:[%s6098_s26 + $0x158c] sm:$0xf] }
  0x98   : > { %v550_v6 = vld [vmem:[%s6098_s26 + $0x15a8] sm:$0xf]  ;;  %v552_v7 = vld [vmem:[%s6098_s26 + $0x15c4] sm:$0xf]  ;;  %549 = vst [vmem:[%s6105_s27 + $0x314] sm:$0xf] %v548_v5 }
  0x99   : > { %551 = vst [vmem:[%s6105_s27 + $0x318] sm:$0xf] %v550_v6  ;;  %553 = vst [vmem:[%s6105_s27 + $0x31c] sm:$0xf] %v552_v7  ;;  %v554_v8 = vld [vmem:[%s6098_s26 + $0x15e0] sm:$0xf] }
  0x9a   : > { %v556_v9 = vld [vmem:[%s6098_s26 + $0x15fc] sm:$0xf]  ;;  %v558_v10 = vld [vmem:[%s6098_s26 + $0x1618] sm:$0xf]  ;;  %555 = vst [vmem:[%s6105_s27 + $0x320] sm:$0xf] %v554_v8 }
  0x9b   : > { %557 = vst [vmem:[%s6105_s27 + $0x324] sm:$0xf] %v556_v9  ;;  %559 = vst [vmem:[%s6105_s27 + $0x328] sm:$0xf] %v558_v10  ;;  %v560_v11 = vld [vmem:[%s6098_s26 + $0x1634] sm:$0xf] }
  0x9c   : > { %v562_v12 = vld [vmem:[%s6098_s26 + $0x1650] sm:$0xf]  ;;  %v564_v13 = vld [vmem:[%s6098_s26 + $0x166c] sm:$0xf]  ;;  %561 = vst [vmem:[%s6105_s27 + $0x32c] sm:$0xf] %v560_v11 }
  0x9d   : > { %563 = vst [vmem:[%s6105_s27 + $0x330] sm:$0xf] %v562_v12  ;;  %565 = vst [vmem:[%s6105_s27 + $0x334] sm:$0xf] %v564_v13  ;;  %v566_v14 = vld [vmem:[%s6098_s26 + $0x1688] sm:$0xf] }
  0x9e   : > { %v568_v15 = vld [vmem:[%s6098_s26 + $0x16a4] sm:$0xf]  ;;  %v570_v16 = vld [vmem:[%s6098_s26 + $0x16c0] sm:$0xf]  ;;  %567 = vst [vmem:[%s6105_s27 + $0x338] sm:$0xf] %v566_v14 }
  0x9f   : > { %569 = vst [vmem:[%s6105_s27 + $0x33c] sm:$0xf] %v568_v15  ;;  %571 = vst [vmem:[%s6105_s27 + $0x340] sm:$0xf] %v570_v16  ;;  %v572_v17 = vld [vmem:[%s6098_s26 + $0x16dc] sm:$0xf] }
  0xa0   : > { %v574_v18 = vld [vmem:[%s6098_s26 + $0x16f8] sm:$0xf]  ;;  %v576_v19 = vld [vmem:[%s6098_s26 + $0x1714] sm:$0xf]  ;;  %573 = vst [vmem:[%s6105_s27 + $0x344] sm:$0xf] %v572_v17 }
  0xa1   : > { %575 = vst [vmem:[%s6105_s27 + $0x348] sm:$0xf] %v574_v18  ;;  %577 = vst [vmem:[%s6105_s27 + $0x34c] sm:$0xf] %v576_v19  ;;  %v578_v20 = vld [vmem:[%s6098_s26 + $0x1730] sm:$0xf] }
  0xa2   : > { %v580_v21 = vld [vmem:[%s6098_s26 + $0x174c] sm:$0xf]  ;;  %v582_v22 = vld [vmem:[%s6098_s26 + $0x1768] sm:$0xf]  ;;  %579 = vst [vmem:[%s6105_s27 + $0x350] sm:$0xf] %v578_v20 }
  0xa3   : > { %581 = vst [vmem:[%s6105_s27 + $0x354] sm:$0xf] %v580_v21  ;;  %583 = vst [vmem:[%s6105_s27 + $0x358] sm:$0xf] %v582_v22  ;;  %v584_v23 = vld [vmem:[%s6098_s26 + $0x1784] sm:$0xf] }
  0xa4   : > { %v586_v24 = vld [vmem:[%s6098_s26 + $0x17a0] sm:$0xf]  ;;  %v588_v25 = vld [vmem:[%s6098_s26 + $0x17bc] sm:$0xf]  ;;  %585 = vst [vmem:[%s6105_s27 + $0x35c] sm:$0xf] %v584_v23 }
  0xa5   : > { %587 = vst [vmem:[%s6105_s27 + $0x360] sm:$0xf] %v586_v24  ;;  %589 = vst [vmem:[%s6105_s27 + $0x364] sm:$0xf] %v588_v25  ;;  %v590_v26 = vld [vmem:[%s6098_s26 + $0x17d8] sm:$0xf] }
  0xa6   : > { %v592_v27 = vld [vmem:[%s6098_s26 + $0x17f4] sm:$0xf]  ;;  %v594_v28 = vld [vmem:[%s6098_s26 + $0x1810] sm:$0xf]  ;;  %591 = vst [vmem:[%s6105_s27 + $0x368] sm:$0xf] %v590_v26 }
  0xa7   : > { %593 = vst [vmem:[%s6105_s27 + $0x36c] sm:$0xf] %v592_v27  ;;  %595 = vst [vmem:[%s6105_s27 + $0x370] sm:$0xf] %v594_v28  ;;  %v596_v29 = vld [vmem:[%s6098_s26 + $0x182c] sm:$0xf] }
  0xa8   : > { %v598_v30 = vld [vmem:[%s6098_s26 + $0x1848] sm:$0xf]  ;;  %v600_v31 = vld [vmem:[%s6098_s26 + $0x1864] sm:$0xf]  ;;  %597 = vst [vmem:[%s6105_s27 + $0x374] sm:$0xf] %v596_v29 }
  0xa9   : > { %599 = vst [vmem:[%s6105_s27 + $0x378] sm:$0xf] %v598_v30  ;;  %601 = vst [vmem:[%s6105_s27 + $0x37c] sm:$0xf] %v600_v31  ;;  %v602_v32 = vld [vmem:[%s6098_s26 + $0x1880] sm:$0xf] }
  0xaa   : > { %v604_v33 = vld [vmem:[%s6098_s26 + $0x189c] sm:$0xf]  ;;  %v606_v34 = vld [vmem:[%s6098_s26 + $0x18b8] sm:$0xf]  ;;  %603 = vst [vmem:[%s6105_s27 + $0x380] sm:$0xf] %v602_v32 }
  0xab   : > { %605 = vst [vmem:[%s6105_s27 + $0x384] sm:$0xf] %v604_v33  ;;  %607 = vst [vmem:[%s6105_s27 + $0x388] sm:$0xf] %v606_v34  ;;  %v608_v35 = vld [vmem:[%s6098_s26 + $0x18d4] sm:$0xf] }
  0xac   : > { %v610_v36 = vld [vmem:[%s6098_s26 + $0x18f0] sm:$0xf]  ;;  %v612_v37 = vld [vmem:[%s6098_s26 + $0x190c] sm:$0xf]  ;;  %609 = vst [vmem:[%s6105_s27 + $0x38c] sm:$0xf] %v608_v35 }
  0xad   : > { %611 = vst [vmem:[%s6105_s27 + $0x390] sm:$0xf] %v610_v36  ;;  %613 = vst [vmem:[%s6105_s27 + $0x394] sm:$0xf] %v612_v37  ;;  %v614_v38 = vld [vmem:[%s6098_s26 + $0x1928] sm:$0xf] }
  0xae   : > { %v616_v39 = vld [vmem:[%s6098_s26 + $0x1944] sm:$0xf]  ;;  %v618_v40 = vld [vmem:[%s6098_s26 + $0x1960] sm:$0xf]  ;;  %615 = vst [vmem:[%s6105_s27 + $0x398] sm:$0xf] %v614_v38 }
  0xaf   : > { %617 = vst [vmem:[%s6105_s27 + $0x39c] sm:$0xf] %v616_v39  ;;  %619 = vst [vmem:[%s6105_s27 + $0x3a0] sm:$0xf] %v618_v40  ;;  %v620_v41 = vld [vmem:[%s6098_s26 + $0x197c] sm:$0xf] }
  0xb0   : > { %v622_v42 = vld [vmem:[%s6098_s26 + $0x1998] sm:$0xf]  ;;  %v624_v43 = vld [vmem:[%s6098_s26 + $0x19b4] sm:$0xf]  ;;  %621 = vst [vmem:[%s6105_s27 + $0x3a4] sm:$0xf] %v620_v41 }
  0xb1   : > { %623 = vst [vmem:[%s6105_s27 + $0x3a8] sm:$0xf] %v622_v42  ;;  %625 = vst [vmem:[%s6105_s27 + $0x3ac] sm:$0xf] %v624_v43  ;;  %v626_v44 = vld [vmem:[%s6098_s26 + $0x19d0] sm:$0xf] }
  0xb2   : > { %v628_v45 = vld [vmem:[%s6098_s26 + $0x19ec] sm:$0xf]  ;;  %v630_v46 = vld [vmem:[%s6098_s26 + $0x1a08] sm:$0xf]  ;;  %627 = vst [vmem:[%s6105_s27 + $0x3b0] sm:$0xf] %v626_v44 }
  0xb3   : > { %629 = vst [vmem:[%s6105_s27 + $0x3b4] sm:$0xf] %v628_v45  ;;  %631 = vst [vmem:[%s6105_s27 + $0x3b8] sm:$0xf] %v630_v46  ;;  %v632_v47 = vld [vmem:[%s6098_s26 + $0x1a24] sm:$0xf] }
  0xb4   : > { %v634_v48 = vld [vmem:[%s6098_s26 + $0x1a40] sm:$0xf]  ;;  %v636_v49 = vld [vmem:[%s6098_s26 + $0x1a5c] sm:$0xf]  ;;  %633 = vst [vmem:[%s6105_s27 + $0x3bc] sm:$0xf] %v632_v47 }
  0xb5   : > { %635 = vst [vmem:[%s6105_s27 + $0x3c0] sm:$0xf] %v634_v48  ;;  %637 = vst [vmem:[%s6105_s27 + $0x3c4] sm:$0xf] %v636_v49  ;;  %v638_v50 = vld [vmem:[%s6098_s26 + $0x1a78] sm:$0xf] }
  0xb6   : > { %v640_v51 = vld [vmem:[%s6098_s26 + $0x1a94] sm:$0xf]  ;;  %v642_v52 = vld [vmem:[%s6098_s26 + $0x1ab0] sm:$0xf]  ;;  %639 = vst [vmem:[%s6105_s27 + $0x3c8] sm:$0xf] %v638_v50 }
  0xb7   : > { %641 = vst [vmem:[%s6105_s27 + $0x3cc] sm:$0xf] %v640_v51  ;;  %643 = vst [vmem:[%s6105_s27 + $0x3d0] sm:$0xf] %v642_v52  ;;  %v644_v53 = vld [vmem:[%s6098_s26 + $0x1acc] sm:$0xf] }
  0xb8   : > { %v646_v54 = vld [vmem:[%s6098_s26 + $0x1ae8] sm:$0xf]  ;;  %v648_v55 = vld [vmem:[%s6098_s26 + $0x1b04] sm:$0xf]  ;;  %645 = vst [vmem:[%s6105_s27 + $0x3d4] sm:$0xf] %v644_v53 }
  0xb9   : > { %647 = vst [vmem:[%s6105_s27 + $0x3d8] sm:$0xf] %v646_v54  ;;  %649 = vst [vmem:[%s6105_s27 + $0x3dc] sm:$0xf] %v648_v55  ;;  %v650_v56 = vld [vmem:[%s6098_s26 + $0x1b20] sm:$0xf] }
  0xba   : > { %v652_v57 = vld [vmem:[%s6098_s26 + $0x1b3c] sm:$0xf]  ;;  %v654_v58 = vld [vmem:[%s6098_s26 + $0x1b58] sm:$0xf]  ;;  %651 = vst [vmem:[%s6105_s27 + $0x3e0] sm:$0xf] %v650_v56 }
  0xbb   : > { %653 = vst [vmem:[%s6105_s27 + $0x3e4] sm:$0xf] %v652_v57  ;;  %655 = vst [vmem:[%s6105_s27 + $0x3e8] sm:$0xf] %v654_v58  ;;  %v656_v59 = vld [vmem:[%s6098_s26 + $0x1b74] sm:$0xf] }
  0xbc   : > { %v658_v60 = vld [vmem:[%s6098_s26 + $0x1b90] sm:$0xf]  ;;  %v660_v61 = vld [vmem:[%s6098_s26 + $0x1bac] sm:$0xf]  ;;  %657 = vst [vmem:[%s6105_s27 + $0x3ec] sm:$0xf] %v656_v59 }
  0xbd   : > { %659 = vst [vmem:[%s6105_s27 + $0x3f0] sm:$0xf] %v658_v60  ;;  %661 = vst [vmem:[%s6105_s27 + $0x3f4] sm:$0xf] %v660_v61  ;;  %v662_v62 = vld [vmem:[%s6098_s26 + $0x1bc8] sm:$0xf] }
  0xbe   : > { %v664_v63 = vld [vmem:[%s6098_s26 + $0x1be4] sm:$0xf]  ;;  %v666_v0 = vld [vmem:[%s6098_s26 + $0x1c00] sm:$0xf]  ;;  %663 = vst [vmem:[%s6105_s27 + $0x3f8] sm:$0xf] %v662_v62 }
  0xbf   : > { %665 = vst [vmem:[%s6105_s27 + $0x3fc] sm:$0xf] %v664_v63  ;;  %667 = vst [vmem:[%s6105_s27 + $0x400] sm:$0xf] %v666_v0  ;;  %v668_v1 = vld [vmem:[%s6098_s26 + $0x1c1c] sm:$0xf] }
  0xc0   : > { %v670_v2 = vld [vmem:[%s6098_s26 + $0x1c38] sm:$0xf]  ;;  %v672_v3 = vld [vmem:[%s6098_s26 + $0x1c54] sm:$0xf]  ;;  %669 = vst [vmem:[%s6105_s27 + $0x404] sm:$0xf] %v668_v1 }
  0xc1   : > { %671 = vst [vmem:[%s6105_s27 + $0x408] sm:$0xf] %v670_v2  ;;  %673 = vst [vmem:[%s6105_s27 + $0x40c] sm:$0xf] %v672_v3  ;;  %v674_v4 = vld [vmem:[%s6098_s26 + $0x1c70] sm:$0xf] }
  0xc2   : > { %v676_v5 = vld [vmem:[%s6098_s26 + $0x1c8c] sm:$0xf]  ;;  %v678_v6 = vld [vmem:[%s6098_s26 + $0x1ca8] sm:$0xf]  ;;  %675 = vst [vmem:[%s6105_s27 + $0x410] sm:$0xf] %v674_v4 }
  0xc3   : > { %677 = vst [vmem:[%s6105_s27 + $0x414] sm:$0xf] %v676_v5  ;;  %679 = vst [vmem:[%s6105_s27 + $0x418] sm:$0xf] %v678_v6  ;;  %v680_v7 = vld [vmem:[%s6098_s26 + $0x1cc4] sm:$0xf] }
  0xc4   : > { %v682_v8 = vld [vmem:[%s6098_s26 + $0x1ce0] sm:$0xf]  ;;  %v684_v9 = vld [vmem:[%s6098_s26 + $0x1cfc] sm:$0xf]  ;;  %681 = vst [vmem:[%s6105_s27 + $0x41c] sm:$0xf] %v680_v7 }
  0xc5   : > { %683 = vst [vmem:[%s6105_s27 + $0x420] sm:$0xf] %v682_v8  ;;  %685 = vst [vmem:[%s6105_s27 + $0x424] sm:$0xf] %v684_v9  ;;  %v686_v10 = vld [vmem:[%s6098_s26 + $0x1d18] sm:$0xf] }
  0xc6   : > { %v688_v11 = vld [vmem:[%s6098_s26 + $0x1d34] sm:$0xf]  ;;  %v690_v12 = vld [vmem:[%s6098_s26 + $0x1d50] sm:$0xf]  ;;  %687 = vst [vmem:[%s6105_s27 + $0x428] sm:$0xf] %v686_v10 }
  0xc7   : > { %689 = vst [vmem:[%s6105_s27 + $0x42c] sm:$0xf] %v688_v11  ;;  %691 = vst [vmem:[%s6105_s27 + $0x430] sm:$0xf] %v690_v12  ;;  %v692_v13 = vld [vmem:[%s6098_s26 + $0x1d6c] sm:$0xf] }
  0xc8   : > { %v694_v14 = vld [vmem:[%s6098_s26 + $0x1d88] sm:$0xf]  ;;  %v696_v15 = vld [vmem:[%s6098_s26 + $0x1da4] sm:$0xf]  ;;  %693 = vst [vmem:[%s6105_s27 + $0x434] sm:$0xf] %v692_v13 }
  0xc9   : > { %695 = vst [vmem:[%s6105_s27 + $0x438] sm:$0xf] %v694_v14  ;;  %697 = vst [vmem:[%s6105_s27 + $0x43c] sm:$0xf] %v696_v15  ;;  %v698_v16 = vld [vmem:[%s6098_s26 + $0x1dc0] sm:$0xf] }
  0xca   : > { %v700_v17 = vld [vmem:[%s6098_s26 + $0x1ddc] sm:$0xf]  ;;  %v702_v18 = vld [vmem:[%s6098_s26 + $0x1df8] sm:$0xf]  ;;  %699 = vst [vmem:[%s6105_s27 + $0x440] sm:$0xf] %v698_v16 }
  0xcb   : > { %701 = vst [vmem:[%s6105_s27 + $0x444] sm:$0xf] %v700_v17  ;;  %703 = vst [vmem:[%s6105_s27 + $0x448] sm:$0xf] %v702_v18  ;;  %v704_v19 = vld [vmem:[%s6098_s26 + $0x1e14] sm:$0xf] }
  0xcc   : > { %v706_v20 = vld [vmem:[%s6098_s26 + $0x1e30] sm:$0xf]  ;;  %v708_v21 = vld [vmem:[%s6098_s26 + $0x1e4c] sm:$0xf]  ;;  %705 = vst [vmem:[%s6105_s27 + $0x44c] sm:$0xf] %v704_v19 }
  0xcd   : > { %707 = vst [vmem:[%s6105_s27 + $0x450] sm:$0xf] %v706_v20  ;;  %709 = vst [vmem:[%s6105_s27 + $0x454] sm:$0xf] %v708_v21  ;;  %v710_v22 = vld [vmem:[%s6098_s26 + $0x1e68] sm:$0xf] }
  0xce   : > { %v712_v23 = vld [vmem:[%s6098_s26 + $0x1e84] sm:$0xf]  ;;  %v714_v24 = vld [vmem:[%s6098_s26 + $0x1ea0] sm:$0xf]  ;;  %711 = vst [vmem:[%s6105_s27 + $0x458] sm:$0xf] %v710_v22 }
  0xcf   : > { %713 = vst [vmem:[%s6105_s27 + $0x45c] sm:$0xf] %v712_v23  ;;  %715 = vst [vmem:[%s6105_s27 + $0x460] sm:$0xf] %v714_v24  ;;  %v716_v25 = vld [vmem:[%s6098_s26 + $0x1ebc] sm:$0xf] }
  0xd0   : > { %v718_v26 = vld [vmem:[%s6098_s26 + $0x1ed8] sm:$0xf]  ;;  %v720_v27 = vld [vmem:[%s6098_s26 + $0x1ef4] sm:$0xf]  ;;  %717 = vst [vmem:[%s6105_s27 + $0x464] sm:$0xf] %v716_v25 }
  0xd1   : > { %719 = vst [vmem:[%s6105_s27 + $0x468] sm:$0xf] %v718_v26  ;;  %721 = vst [vmem:[%s6105_s27 + $0x46c] sm:$0xf] %v720_v27  ;;  %v722_v28 = vld [vmem:[%s6098_s26 + $0x1f10] sm:$0xf] }
  0xd2   : > { %v724_v29 = vld [vmem:[%s6098_s26 + $0x1f2c] sm:$0xf]  ;;  %v726_v30 = vld [vmem:[%s6098_s26 + $0x1f48] sm:$0xf]  ;;  %723 = vst [vmem:[%s6105_s27 + $0x470] sm:$0xf] %v722_v28 }
  0xd3   : > { %725 = vst [vmem:[%s6105_s27 + $0x474] sm:$0xf] %v724_v29  ;;  %727 = vst [vmem:[%s6105_s27 + $0x478] sm:$0xf] %v726_v30  ;;  %v728_v31 = vld [vmem:[%s6098_s26 + $0x1f64] sm:$0xf] }
  0xd4   : > { %v730_v32 = vld [vmem:[%s6098_s26 + $0x1f80] sm:$0xf]  ;;  %v732_v33 = vld [vmem:[%s6098_s26 + $0x1f9c] sm:$0xf]  ;;  %729 = vst [vmem:[%s6105_s27 + $0x47c] sm:$0xf] %v728_v31 }
  0xd5   : > { %731 = vst [vmem:[%s6105_s27 + $0x480] sm:$0xf] %v730_v32  ;;  %733 = vst [vmem:[%s6105_s27 + $0x484] sm:$0xf] %v732_v33  ;;  %v734_v34 = vld [vmem:[%s6098_s26 + $0x1fb8] sm:$0xf] }
  0xd6   : > { %v736_v35 = vld [vmem:[%s6098_s26 + $0x1fd4] sm:$0xf]  ;;  %v738_v36 = vld [vmem:[%s6098_s26 + $0x1ff0] sm:$0xf]  ;;  %735 = vst [vmem:[%s6105_s27 + $0x488] sm:$0xf] %v734_v34 }
  0xd7   : > { %737 = vst [vmem:[%s6105_s27 + $0x48c] sm:$0xf] %v736_v35  ;;  %739 = vst [vmem:[%s6105_s27 + $0x490] sm:$0xf] %v738_v36  ;;  %v740_v37 = vld [vmem:[%s6098_s26 + $0x200c] sm:$0xf] }
  0xd8   : > { %v742_v38 = vld [vmem:[%s6098_s26 + $0x2028] sm:$0xf]  ;;  %v744_v39 = vld [vmem:[%s6098_s26 + $0x2044] sm:$0xf]  ;;  %741 = vst [vmem:[%s6105_s27 + $0x494] sm:$0xf] %v740_v37 }
  0xd9   : > { %743 = vst [vmem:[%s6105_s27 + $0x498] sm:$0xf] %v742_v38  ;;  %745 = vst [vmem:[%s6105_s27 + $0x49c] sm:$0xf] %v744_v39  ;;  %v746_v40 = vld [vmem:[%s6098_s26 + $0x2060] sm:$0xf] }
  0xda   : > { %v748_v41 = vld [vmem:[%s6098_s26 + $0x207c] sm:$0xf]  ;;  %v750_v42 = vld [vmem:[%s6098_s26 + $0x2098] sm:$0xf]  ;;  %747 = vst [vmem:[%s6105_s27 + $0x4a0] sm:$0xf] %v746_v40 }
  0xdb   : > { %749 = vst [vmem:[%s6105_s27 + $0x4a4] sm:$0xf] %v748_v41  ;;  %751 = vst [vmem:[%s6105_s27 + $0x4a8] sm:$0xf] %v750_v42  ;;  %v752_v43 = vld [vmem:[%s6098_s26 + $0x20b4] sm:$0xf] }
  0xdc   : > { %v754_v44 = vld [vmem:[%s6098_s26 + $0x20d0] sm:$0xf]  ;;  %v756_v45 = vld [vmem:[%s6098_s26 + $0x20ec] sm:$0xf]  ;;  %753 = vst [vmem:[%s6105_s27 + $0x4ac] sm:$0xf] %v752_v43 }
  0xdd   : > { %755 = vst [vmem:[%s6105_s27 + $0x4b0] sm:$0xf] %v754_v44  ;;  %757 = vst [vmem:[%s6105_s27 + $0x4b4] sm:$0xf] %v756_v45  ;;  %v758_v46 = vld [vmem:[%s6098_s26 + $0x2108] sm:$0xf] }
  0xde   : > { %v760_v47 = vld [vmem:[%s6098_s26 + $0x2124] sm:$0xf]  ;;  %v762_v48 = vld [vmem:[%s6098_s26 + $0x2140] sm:$0xf]  ;;  %759 = vst [vmem:[%s6105_s27 + $0x4b8] sm:$0xf] %v758_v46 }
  0xdf   : > { %761 = vst [vmem:[%s6105_s27 + $0x4bc] sm:$0xf] %v760_v47  ;;  %763 = vst [vmem:[%s6105_s27 + $0x4c0] sm:$0xf] %v762_v48  ;;  %v764_v49 = vld [vmem:[%s6098_s26 + $0x215c] sm:$0xf] }
  0xe0   : > { %v766_v50 = vld [vmem:[%s6098_s26 + $0x2178] sm:$0xf]  ;;  %v768_v51 = vld [vmem:[%s6098_s26 + $0x2194] sm:$0xf]  ;;  %765 = vst [vmem:[%s6105_s27 + $0x4c4] sm:$0xf] %v764_v49 }
  0xe1   : > { %767 = vst [vmem:[%s6105_s27 + $0x4c8] sm:$0xf] %v766_v50  ;;  %769 = vst [vmem:[%s6105_s27 + $0x4cc] sm:$0xf] %v768_v51  ;;  %v770_v52 = vld [vmem:[%s6098_s26 + $0x21b0] sm:$0xf] }
  0xe2   : > { %v772_v53 = vld [vmem:[%s6098_s26 + $0x21cc] sm:$0xf]  ;;  %v774_v54 = vld [vmem:[%s6098_s26 + $0x21e8] sm:$0xf]  ;;  %771 = vst [vmem:[%s6105_s27 + $0x4d0] sm:$0xf] %v770_v52 }
  0xe3   : > { %773 = vst [vmem:[%s6105_s27 + $0x4d4] sm:$0xf] %v772_v53  ;;  %775 = vst [vmem:[%s6105_s27 + $0x4d8] sm:$0xf] %v774_v54  ;;  %v776_v55 = vld [vmem:[%s6098_s26 + $0x2204] sm:$0xf] }
  0xe4   : > { %v778_v56 = vld [vmem:[%s6098_s26 + $0x2220] sm:$0xf]  ;;  %v780_v57 = vld [vmem:[%s6098_s26 + $0x223c] sm:$0xf]  ;;  %777 = vst [vmem:[%s6105_s27 + $0x4dc] sm:$0xf] %v776_v55 }
  0xe5   : > { %779 = vst [vmem:[%s6105_s27 + $0x4e0] sm:$0xf] %v778_v56  ;;  %781 = vst [vmem:[%s6105_s27 + $0x4e4] sm:$0xf] %v780_v57  ;;  %v782_v58 = vld [vmem:[%s6098_s26 + $0x2258] sm:$0xf] }
  0xe6   : > { %v784_v59 = vld [vmem:[%s6098_s26 + $0x2274] sm:$0xf]  ;;  %v786_v60 = vld [vmem:[%s6098_s26 + $0x2290] sm:$0xf]  ;;  %783 = vst [vmem:[%s6105_s27 + $0x4e8] sm:$0xf] %v782_v58 }
  0xe7   : > { %785 = vst [vmem:[%s6105_s27 + $0x4ec] sm:$0xf] %v784_v59  ;;  %787 = vst [vmem:[%s6105_s27 + $0x4f0] sm:$0xf] %v786_v60  ;;  %v788_v61 = vld [vmem:[%s6098_s26 + $0x22ac] sm:$0xf] }
  0xe8   : > { %v790_v62 = vld [vmem:[%s6098_s26 + $0x22c8] sm:$0xf]  ;;  %v792_v63 = vld [vmem:[%s6098_s26 + $0x22e4] sm:$0xf]  ;;  %789 = vst [vmem:[%s6105_s27 + $0x4f4] sm:$0xf] %v788_v61 }
  0xe9   : > { %791 = vst [vmem:[%s6105_s27 + $0x4f8] sm:$0xf] %v790_v62  ;;  %793 = vst [vmem:[%s6105_s27 + $0x4fc] sm:$0xf] %v792_v63  ;;  %v794_v0 = vld [vmem:[%s6098_s26 + $0x2300] sm:$0xf] }
  0xea   : > { %v796_v1 = vld [vmem:[%s6098_s26 + $0x231c] sm:$0xf]  ;;  %v798_v2 = vld [vmem:[%s6098_s26 + $0x2338] sm:$0xf]  ;;  %795 = vst [vmem:[%s6105_s27 + $0x500] sm:$0xf] %v794_v0 }
  0xeb   : > { %797 = vst [vmem:[%s6105_s27 + $0x504] sm:$0xf] %v796_v1  ;;  %799 = vst [vmem:[%s6105_s27 + $0x508] sm:$0xf] %v798_v2  ;;  %v800_v3 = vld [vmem:[%s6098_s26 + $0x2354] sm:$0xf] }
  0xec   : > { %v802_v4 = vld [vmem:[%s6098_s26 + $0x2370] sm:$0xf]  ;;  %v804_v5 = vld [vmem:[%s6098_s26 + $0x238c] sm:$0xf]  ;;  %801 = vst [vmem:[%s6105_s27 + $0x50c] sm:$0xf] %v800_v3 }
  0xed   : > { %803 = vst [vmem:[%s6105_s27 + $0x510] sm:$0xf] %v802_v4  ;;  %805 = vst [vmem:[%s6105_s27 + $0x514] sm:$0xf] %v804_v5  ;;  %v806_v6 = vld [vmem:[%s6098_s26 + $0x23a8] sm:$0xf] }
  0xee   : > { %v808_v7 = vld [vmem:[%s6098_s26 + $0x23c4] sm:$0xf]  ;;  %v810_v8 = vld [vmem:[%s6098_s26 + $0x23e0] sm:$0xf]  ;;  %807 = vst [vmem:[%s6105_s27 + $0x518] sm:$0xf] %v806_v6 }
  0xef   : > { %809 = vst [vmem:[%s6105_s27 + $0x51c] sm:$0xf] %v808_v7  ;;  %811 = vst [vmem:[%s6105_s27 + $0x520] sm:$0xf] %v810_v8  ;;  %v812_v9 = vld [vmem:[%s6098_s26 + $0x23fc] sm:$0xf] }
  0xf0   : > { %v814_v10 = vld [vmem:[%s6098_s26 + $0x2418] sm:$0xf]  ;;  %v816_v11 = vld [vmem:[%s6098_s26 + $0x2434] sm:$0xf]  ;;  %813 = vst [vmem:[%s6105_s27 + $0x524] sm:$0xf] %v812_v9 }
  0xf1   : > { %815 = vst [vmem:[%s6105_s27 + $0x528] sm:$0xf] %v814_v10  ;;  %817 = vst [vmem:[%s6105_s27 + $0x52c] sm:$0xf] %v816_v11  ;;  %v818_v12 = vld [vmem:[%s6098_s26 + $0x2450] sm:$0xf] }
  0xf2   : > { %v820_v13 = vld [vmem:[%s6098_s26 + $0x246c] sm:$0xf]  ;;  %v822_v14 = vld [vmem:[%s6098_s26 + $0x2488] sm:$0xf]  ;;  %819 = vst [vmem:[%s6105_s27 + $0x530] sm:$0xf] %v818_v12 }
  0xf3   : > { %821 = vst [vmem:[%s6105_s27 + $0x534] sm:$0xf] %v820_v13  ;;  %823 = vst [vmem:[%s6105_s27 + $0x538] sm:$0xf] %v822_v14  ;;  %v824_v15 = vld [vmem:[%s6098_s26 + $0x24a4] sm:$0xf] }
  0xf4   : > { %v826_v16 = vld [vmem:[%s6098_s26 + $0x24c0] sm:$0xf]  ;;  %v828_v17 = vld [vmem:[%s6098_s26 + $0x24dc] sm:$0xf]  ;;  %825 = vst [vmem:[%s6105_s27 + $0x53c] sm:$0xf] %v824_v15 }
  0xf5   : > { %827 = vst [vmem:[%s6105_s27 + $0x540] sm:$0xf] %v826_v16  ;;  %829 = vst [vmem:[%s6105_s27 + $0x544] sm:$0xf] %v828_v17  ;;  %v830_v18 = vld [vmem:[%s6098_s26 + $0x24f8] sm:$0xf] }
  0xf6   : > { %v832_v19 = vld [vmem:[%s6098_s26 + $0x2514] sm:$0xf]  ;;  %v834_v20 = vld [vmem:[%s6098_s26 + $0x2530] sm:$0xf]  ;;  %831 = vst [vmem:[%s6105_s27 + $0x548] sm:$0xf] %v830_v18 }
  0xf7   : > { %833 = vst [vmem:[%s6105_s27 + $0x54c] sm:$0xf] %v832_v19  ;;  %835 = vst [vmem:[%s6105_s27 + $0x550] sm:$0xf] %v834_v20  ;;  %v836_v21 = vld [vmem:[%s6098_s26 + $0x254c] sm:$0xf] }
  0xf8   : > { %v838_v22 = vld [vmem:[%s6098_s26 + $0x2568] sm:$0xf]  ;;  %v840_v23 = vld [vmem:[%s6098_s26 + $0x2584] sm:$0xf]  ;;  %837 = vst [vmem:[%s6105_s27 + $0x554] sm:$0xf] %v836_v21 }
  0xf9   : > { %839 = vst [vmem:[%s6105_s27 + $0x558] sm:$0xf] %v838_v22  ;;  %841 = vst [vmem:[%s6105_s27 + $0x55c] sm:$0xf] %v840_v23  ;;  %v842_v24 = vld [vmem:[%s6098_s26 + $0x25a0] sm:$0xf] }
  0xfa   : > { %v844_v25 = vld [vmem:[%s6098_s26 + $0x25bc] sm:$0xf]  ;;  %v846_v26 = vld [vmem:[%s6098_s26 + $0x25d8] sm:$0xf]  ;;  %843 = vst [vmem:[%s6105_s27 + $0x560] sm:$0xf] %v842_v24 }
  0xfb   : > { %845 = vst [vmem:[%s6105_s27 + $0x564] sm:$0xf] %v844_v25  ;;  %847 = vst [vmem:[%s6105_s27 + $0x568] sm:$0xf] %v846_v26  ;;  %v848_v27 = vld [vmem:[%s6098_s26 + $0x25f4] sm:$0xf] }
  0xfc   : > { %v850_v28 = vld [vmem:[%s6098_s26 + $0x2610] sm:$0xf]  ;;  %v852_v29 = vld [vmem:[%s6098_s26 + $0x262c] sm:$0xf]  ;;  %849 = vst [vmem:[%s6105_s27 + $0x56c] sm:$0xf] %v848_v27 }
  0xfd   : > { %851 = vst [vmem:[%s6105_s27 + $0x570] sm:$0xf] %v850_v28  ;;  %853 = vst [vmem:[%s6105_s27 + $0x574] sm:$0xf] %v852_v29  ;;  %v854_v30 = vld [vmem:[%s6098_s26 + $0x2648] sm:$0xf] }
  0xfe   : > { %v856_v31 = vld [vmem:[%s6098_s26 + $0x2664] sm:$0xf]  ;;  %v858_v32 = vld [vmem:[%s6098_s26 + $0x2680] sm:$0xf]  ;;  %855 = vst [vmem:[%s6105_s27 + $0x578] sm:$0xf] %v854_v30 }
  0xff   : > { %857 = vst [vmem:[%s6105_s27 + $0x57c] sm:$0xf] %v856_v31  ;;  %859 = vst [vmem:[%s6105_s27 + $0x580] sm:$0xf] %v858_v32  ;;  %v860_v33 = vld [vmem:[%s6098_s26 + $0x269c] sm:$0xf] }
 0x100   : > { %v862_v34 = vld [vmem:[%s6098_s26 + $0x26b8] sm:$0xf]  ;;  %v864_v35 = vld [vmem:[%s6098_s26 + $0x26d4] sm:$0xf]  ;;  %861 = vst [vmem:[%s6105_s27 + $0x584] sm:$0xf] %v860_v33 }
 0x101   : > { %863 = vst [vmem:[%s6105_s27 + $0x588] sm:$0xf] %v862_v34  ;;  %865 = vst [vmem:[%s6105_s27 + $0x58c] sm:$0xf] %v864_v35  ;;  %v866_v36 = vld [vmem:[%s6098_s26 + $0x26f0] sm:$0xf] }
 0x102   : > { %v868_v37 = vld [vmem:[%s6098_s26 + $0x270c] sm:$0xf]  ;;  %v870_v38 = vld [vmem:[%s6098_s26 + $0x2728] sm:$0xf]  ;;  %867 = vst [vmem:[%s6105_s27 + $0x590] sm:$0xf] %v866_v36 }
 0x103   : > { %869 = vst [vmem:[%s6105_s27 + $0x594] sm:$0xf] %v868_v37  ;;  %871 = vst [vmem:[%s6105_s27 + $0x598] sm:$0xf] %v870_v38  ;;  %v872_v39 = vld [vmem:[%s6098_s26 + $0x2744] sm:$0xf] }
 0x104   : > { %v874_v40 = vld [vmem:[%s6098_s26 + $0x2760] sm:$0xf]  ;;  %v876_v41 = vld [vmem:[%s6098_s26 + $0x277c] sm:$0xf]  ;;  %873 = vst [vmem:[%s6105_s27 + $0x59c] sm:$0xf] %v872_v39 }
 0x105   : > { %875 = vst [vmem:[%s6105_s27 + $0x5a0] sm:$0xf] %v874_v40  ;;  %877 = vst [vmem:[%s6105_s27 + $0x5a4] sm:$0xf] %v876_v41  ;;  %v878_v42 = vld [vmem:[%s6098_s26 + $0x2798] sm:$0xf] }
 0x106   : > { %v880_v43 = vld [vmem:[%s6098_s26 + $0x27b4] sm:$0xf]  ;;  %v882_v44 = vld [vmem:[%s6098_s26 + $0x27d0] sm:$0xf]  ;;  %879 = vst [vmem:[%s6105_s27 + $0x5a8] sm:$0xf] %v878_v42 }
 0x107   : > { %881 = vst [vmem:[%s6105_s27 + $0x5ac] sm:$0xf] %v880_v43  ;;  %883 = vst [vmem:[%s6105_s27 + $0x5b0] sm:$0xf] %v882_v44  ;;  %v884_v45 = vld [vmem:[%s6098_s26 + $0x27ec] sm:$0xf] }
 0x108   : > { %v886_v46 = vld [vmem:[%s6098_s26 + $0x2808] sm:$0xf]  ;;  %v888_v47 = vld [vmem:[%s6098_s26 + $0x2824] sm:$0xf]  ;;  %885 = vst [vmem:[%s6105_s27 + $0x5b4] sm:$0xf] %v884_v45 }
 0x109   : > { %887 = vst [vmem:[%s6105_s27 + $0x5b8] sm:$0xf] %v886_v46  ;;  %889 = vst [vmem:[%s6105_s27 + $0x5bc] sm:$0xf] %v888_v47  ;;  %v890_v48 = vld [vmem:[%s6098_s26 + $0x2840] sm:$0xf] }
 0x10a   : > { %v892_v49 = vld [vmem:[%s6098_s26 + $0x285c] sm:$0xf]  ;;  %v894_v50 = vld [vmem:[%s6098_s26 + $0x2878] sm:$0xf]  ;;  %891 = vst [vmem:[%s6105_s27 + $0x5c0] sm:$0xf] %v890_v48 }
 0x10b   : > { %893 = vst [vmem:[%s6105_s27 + $0x5c4] sm:$0xf] %v892_v49  ;;  %895 = vst [vmem:[%s6105_s27 + $0x5c8] sm:$0xf] %v894_v50  ;;  %v896_v51 = vld [vmem:[%s6098_s26 + $0x2894] sm:$0xf] }
 0x10c   : > { %v898_v52 = vld [vmem:[%s6098_s26 + $0x28b0] sm:$0xf]  ;;  %v900_v53 = vld [vmem:[%s6098_s26 + $0x28cc] sm:$0xf]  ;;  %897 = vst [vmem:[%s6105_s27 + $0x5cc] sm:$0xf] %v896_v51 }
 0x10d   : > { %899 = vst [vmem:[%s6105_s27 + $0x5d0] sm:$0xf] %v898_v52  ;;  %901 = vst [vmem:[%s6105_s27 + $0x5d4] sm:$0xf] %v900_v53  ;;  %v902_v54 = vld [vmem:[%s6098_s26 + $0x28e8] sm:$0xf] }
 0x10e   : > { %v904_v55 = vld [vmem:[%s6098_s26 + $0x2904] sm:$0xf]  ;;  %v906_v56 = vld [vmem:[%s6098_s26 + $0x2920] sm:$0xf]  ;;  %903 = vst [vmem:[%s6105_s27 + $0x5d8] sm:$0xf] %v902_v54 }
 0x10f   : > { %905 = vst [vmem:[%s6105_s27 + $0x5dc] sm:$0xf] %v904_v55  ;;  %907 = vst [vmem:[%s6105_s27 + $0x5e0] sm:$0xf] %v906_v56  ;;  %v908_v57 = vld [vmem:[%s6098_s26 + $0x293c] sm:$0xf] }
 0x110   : > { %v910_v58 = vld [vmem:[%s6098_s26 + $0x2958] sm:$0xf]  ;;  %v912_v59 = vld [vmem:[%s6098_s26 + $0x2974] sm:$0xf]  ;;  %909 = vst [vmem:[%s6105_s27 + $0x5e4] sm:$0xf] %v908_v57 }
 0x111   : > { %911 = vst [vmem:[%s6105_s27 + $0x5e8] sm:$0xf] %v910_v58  ;;  %913 = vst [vmem:[%s6105_s27 + $0x5ec] sm:$0xf] %v912_v59  ;;  %v914_v60 = vld [vmem:[%s6098_s26 + $0x2990] sm:$0xf] }
 0x112   : > { %v916_v61 = vld [vmem:[%s6098_s26 + $0x29ac] sm:$0xf]  ;;  %v918_v62 = vld [vmem:[%s6098_s26 + $0x29c8] sm:$0xf]  ;;  %915 = vst [vmem:[%s6105_s27 + $0x5f0] sm:$0xf] %v914_v60 }
 0x113   : > { %917 = vst [vmem:[%s6105_s27 + $0x5f4] sm:$0xf] %v916_v61  ;;  %919 = vst [vmem:[%s6105_s27 + $0x5f8] sm:$0xf] %v918_v62  ;;  %v920_v63 = vld [vmem:[%s6098_s26 + $0x29e4] sm:$0xf] }
 0x114   : > { %v922_v0 = vld [vmem:[%s6098_s26 + $0x2a00] sm:$0xf]  ;;  %v924_v1 = vld [vmem:[%s6098_s26 + $0x2a1c] sm:$0xf]  ;;  %921 = vst [vmem:[%s6105_s27 + $0x5fc] sm:$0xf] %v920_v63 }
 0x115   : > { %923 = vst [vmem:[%s6105_s27 + $0x600] sm:$0xf] %v922_v0  ;;  %925 = vst [vmem:[%s6105_s27 + $0x604] sm:$0xf] %v924_v1  ;;  %v926_v2 = vld [vmem:[%s6098_s26 + $0x2a38] sm:$0xf] }
 0x116   : > { %v928_v3 = vld [vmem:[%s6098_s26 + $0x2a54] sm:$0xf]  ;;  %v930_v4 = vld [vmem:[%s6098_s26 + $0x2a70] sm:$0xf]  ;;  %927 = vst [vmem:[%s6105_s27 + $0x608] sm:$0xf] %v926_v2 }
 0x117   : > { %929 = vst [vmem:[%s6105_s27 + $0x60c] sm:$0xf] %v928_v3  ;;  %931 = vst [vmem:[%s6105_s27 + $0x610] sm:$0xf] %v930_v4  ;;  %v932_v5 = vld [vmem:[%s6098_s26 + $0x2a8c] sm:$0xf] }
 0x118   : > { %v934_v6 = vld [vmem:[%s6098_s26 + $0x2aa8] sm:$0xf]  ;;  %v936_v7 = vld [vmem:[%s6098_s26 + $0x2ac4] sm:$0xf]  ;;  %933 = vst [vmem:[%s6105_s27 + $0x614] sm:$0xf] %v932_v5 }
 0x119   : > { %935 = vst [vmem:[%s6105_s27 + $0x618] sm:$0xf] %v934_v6  ;;  %937 = vst [vmem:[%s6105_s27 + $0x61c] sm:$0xf] %v936_v7  ;;  %v938_v8 = vld [vmem:[%s6098_s26 + $0x2ae0] sm:$0xf] }
 0x11a   : > { %v940_v9 = vld [vmem:[%s6098_s26 + $0x2afc] sm:$0xf]  ;;  %v942_v10 = vld [vmem:[%s6098_s26 + $0x2b18] sm:$0xf]  ;;  %939 = vst [vmem:[%s6105_s27 + $0x620] sm:$0xf] %v938_v8 }
 0x11b   : > { %941 = vst [vmem:[%s6105_s27 + $0x624] sm:$0xf] %v940_v9  ;;  %943 = vst [vmem:[%s6105_s27 + $0x628] sm:$0xf] %v942_v10  ;;  %v944_v11 = vld [vmem:[%s6098_s26 + $0x2b34] sm:$0xf] }
 0x11c   : > { %v946_v12 = vld [vmem:[%s6098_s26 + $0x2b50] sm:$0xf]  ;;  %v948_v13 = vld [vmem:[%s6098_s26 + $0x2b6c] sm:$0xf]  ;;  %945 = vst [vmem:[%s6105_s27 + $0x62c] sm:$0xf] %v944_v11 }
 0x11d   : > { %947 = vst [vmem:[%s6105_s27 + $0x630] sm:$0xf] %v946_v12  ;;  %949 = vst [vmem:[%s6105_s27 + $0x634] sm:$0xf] %v948_v13  ;;  %v950_v14 = vld [vmem:[%s6098_s26 + $0x2b88] sm:$0xf] }
 0x11e   : > { %v952_v15 = vld [vmem:[%s6098_s26 + $0x2ba4] sm:$0xf]  ;;  %v954_v16 = vld [vmem:[%s6098_s26 + $0x2bc0] sm:$0xf]  ;;  %951 = vst [vmem:[%s6105_s27 + $0x638] sm:$0xf] %v950_v14 }
 0x11f   : > { %953 = vst [vmem:[%s6105_s27 + $0x63c] sm:$0xf] %v952_v15  ;;  %955 = vst [vmem:[%s6105_s27 + $0x640] sm:$0xf] %v954_v16  ;;  %v956_v17 = vld [vmem:[%s6098_s26 + $0x2bdc] sm:$0xf] }
 0x120   : > { %v958_v18 = vld [vmem:[%s6098_s26 + $0x2bf8] sm:$0xf]  ;;  %v960_v19 = vld [vmem:[%s6098_s26 + $0x2c14] sm:$0xf]  ;;  %957 = vst [vmem:[%s6105_s27 + $0x644] sm:$0xf] %v956_v17 }
 0x121   : > { %959 = vst [vmem:[%s6105_s27 + $0x648] sm:$0xf] %v958_v18  ;;  %961 = vst [vmem:[%s6105_s27 + $0x64c] sm:$0xf] %v960_v19  ;;  %v962_v20 = vld [vmem:[%s6098_s26 + $0x2c30] sm:$0xf] }
 0x122   : > { %v964_v21 = vld [vmem:[%s6098_s26 + $0x2c4c] sm:$0xf]  ;;  %v966_v22 = vld [vmem:[%s6098_s26 + $0x2c68] sm:$0xf]  ;;  %963 = vst [vmem:[%s6105_s27 + $0x650] sm:$0xf] %v962_v20 }
 0x123   : > { %965 = vst [vmem:[%s6105_s27 + $0x654] sm:$0xf] %v964_v21  ;;  %967 = vst [vmem:[%s6105_s27 + $0x658] sm:$0xf] %v966_v22  ;;  %v968_v23 = vld [vmem:[%s6098_s26 + $0x2c84] sm:$0xf] }
 0x124   : > { %v970_v24 = vld [vmem:[%s6098_s26 + $0x2ca0] sm:$0xf]  ;;  %v972_v25 = vld [vmem:[%s6098_s26 + $0x2cbc] sm:$0xf]  ;;  %969 = vst [vmem:[%s6105_s27 + $0x65c] sm:$0xf] %v968_v23 }
 0x125   : > { %971 = vst [vmem:[%s6105_s27 + $0x660] sm:$0xf] %v970_v24  ;;  %973 = vst [vmem:[%s6105_s27 + $0x664] sm:$0xf] %v972_v25  ;;  %v974_v26 = vld [vmem:[%s6098_s26 + $0x2cd8] sm:$0xf] }
 0x126   : > { %v976_v27 = vld [vmem:[%s6098_s26 + $0x2cf4] sm:$0xf]  ;;  %v978_v28 = vld [vmem:[%s6098_s26 + $0x2d10] sm:$0xf]  ;;  %975 = vst [vmem:[%s6105_s27 + $0x668] sm:$0xf] %v974_v26 }
 0x127   : > { %977 = vst [vmem:[%s6105_s27 + $0x66c] sm:$0xf] %v976_v27  ;;  %979 = vst [vmem:[%s6105_s27 + $0x670] sm:$0xf] %v978_v28  ;;  %v980_v29 = vld [vmem:[%s6098_s26 + $0x2d2c] sm:$0xf] }
 0x128   : > { %v982_v30 = vld [vmem:[%s6098_s26 + $0x2d48] sm:$0xf]  ;;  %v984_v31 = vld [vmem:[%s6098_s26 + $0x2d64] sm:$0xf]  ;;  %981 = vst [vmem:[%s6105_s27 + $0x674] sm:$0xf] %v980_v29 }
 0x129   : > { %983 = vst [vmem:[%s6105_s27 + $0x678] sm:$0xf] %v982_v30  ;;  %985 = vst [vmem:[%s6105_s27 + $0x67c] sm:$0xf] %v984_v31  ;;  %v986_v32 = vld [vmem:[%s6098_s26 + $0x2d80] sm:$0xf] }
 0x12a   : > { %v988_v33 = vld [vmem:[%s6098_s26 + $0x2d9c] sm:$0xf]  ;;  %v990_v34 = vld [vmem:[%s6098_s26 + $0x2db8] sm:$0xf]  ;;  %987 = vst [vmem:[%s6105_s27 + $0x680] sm:$0xf] %v986_v32 }
 0x12b   : > { %989 = vst [vmem:[%s6105_s27 + $0x684] sm:$0xf] %v988_v33  ;;  %991 = vst [vmem:[%s6105_s27 + $0x688] sm:$0xf] %v990_v34  ;;  %v992_v35 = vld [vmem:[%s6098_s26 + $0x2dd4] sm:$0xf] }
 0x12c   : > { %v994_v36 = vld [vmem:[%s6098_s26 + $0x2df0] sm:$0xf]  ;;  %v996_v37 = vld [vmem:[%s6098_s26 + $0x2e0c] sm:$0xf]  ;;  %993 = vst [vmem:[%s6105_s27 + $0x68c] sm:$0xf] %v992_v35 }
 0x12d   : > { %995 = vst [vmem:[%s6105_s27 + $0x690] sm:$0xf] %v994_v36  ;;  %997 = vst [vmem:[%s6105_s27 + $0x694] sm:$0xf] %v996_v37  ;;  %v998_v38 = vld [vmem:[%s6098_s26 + $0x2e28] sm:$0xf] }
 0x12e   : > { %v1000_v39 = vld [vmem:[%s6098_s26 + $0x2e44] sm:$0xf]  ;;  %v1002_v40 = vld [vmem:[%s6098_s26 + $0x2e60] sm:$0xf]  ;;  %999 = vst [vmem:[%s6105_s27 + $0x698] sm:$0xf] %v998_v38 }
 0x12f   : > { %1001 = vst [vmem:[%s6105_s27 + $0x69c] sm:$0xf] %v1000_v39  ;;  %1003 = vst [vmem:[%s6105_s27 + $0x6a0] sm:$0xf] %v1002_v40  ;;  %v1004_v41 = vld [vmem:[%s6098_s26 + $0x2e7c] sm:$0xf] }
 0x130   : > { %v1006_v42 = vld [vmem:[%s6098_s26 + $0x2e98] sm:$0xf]  ;;  %v1008_v43 = vld [vmem:[%s6098_s26 + $0x2eb4] sm:$0xf]  ;;  %1005 = vst [vmem:[%s6105_s27 + $0x6a4] sm:$0xf] %v1004_v41 }
 0x131   : > { %1007 = vst [vmem:[%s6105_s27 + $0x6a8] sm:$0xf] %v1006_v42  ;;  %1009 = vst [vmem:[%s6105_s27 + $0x6ac] sm:$0xf] %v1008_v43  ;;  %v1010_v44 = vld [vmem:[%s6098_s26 + $0x2ed0] sm:$0xf] }
 0x132   : > { %v1012_v45 = vld [vmem:[%s6098_s26 + $0x2eec] sm:$0xf]  ;;  %v1014_v46 = vld [vmem:[%s6098_s26 + $0x2f08] sm:$0xf]  ;;  %1011 = vst [vmem:[%s6105_s27 + $0x6b0] sm:$0xf] %v1010_v44 }
 0x133   : > { %1013 = vst [vmem:[%s6105_s27 + $0x6b4] sm:$0xf] %v1012_v45  ;;  %1015 = vst [vmem:[%s6105_s27 + $0x6b8] sm:$0xf] %v1014_v46  ;;  %v1016_v47 = vld [vmem:[%s6098_s26 + $0x2f24] sm:$0xf] }
 0x134   : > { %v1018_v48 = vld [vmem:[%s6098_s26 + $0x2f40] sm:$0xf]  ;;  %v1020_v49 = vld [vmem:[%s6098_s26 + $0x2f5c] sm:$0xf]  ;;  %1017 = vst [vmem:[%s6105_s27 + $0x6bc] sm:$0xf] %v1016_v47 }
 0x135   : > { %1019 = vst [vmem:[%s6105_s27 + $0x6c0] sm:$0xf] %v1018_v48  ;;  %1021 = vst [vmem:[%s6105_s27 + $0x6c4] sm:$0xf] %v1020_v49  ;;  %v1022_v50 = vld [vmem:[%s6098_s26 + $0x2f78] sm:$0xf] }
 0x136   : > { %v1024_v51 = vld [vmem:[%s6098_s26 + $0x2f94] sm:$0xf]  ;;  %v1026_v52 = vld [vmem:[%s6098_s26 + $0x2fb0] sm:$0xf]  ;;  %1023 = vst [vmem:[%s6105_s27 + $0x6c8] sm:$0xf] %v1022_v50 }
 0x137   : > { %1025 = vst [vmem:[%s6105_s27 + $0x6cc] sm:$0xf] %v1024_v51  ;;  %1027 = vst [vmem:[%s6105_s27 + $0x6d0] sm:$0xf] %v1026_v52  ;;  %v1028_v53 = vld [vmem:[%s6098_s26 + $0x2fcc] sm:$0xf] }
 0x138   : > { %v1030_v54 = vld [vmem:[%s6098_s26 + $0x2fe8] sm:$0xf]  ;;  %v1032_v55 = vld [vmem:[%s6098_s26 + $0x3004] sm:$0xf]  ;;  %1029 = vst [vmem:[%s6105_s27 + $0x6d4] sm:$0xf] %v1028_v53 }
 0x139   : > { %1031 = vst [vmem:[%s6105_s27 + $0x6d8] sm:$0xf] %v1030_v54  ;;  %1033 = vst [vmem:[%s6105_s27 + $0x6dc] sm:$0xf] %v1032_v55  ;;  %v1034_v56 = vld [vmem:[%s6098_s26 + $0x3020] sm:$0xf] }
 0x13a   : > { %v1036_v57 = vld [vmem:[%s6098_s26 + $0x303c] sm:$0xf]  ;;  %v1038_v58 = vld [vmem:[%s6098_s26 + $0x3058] sm:$0xf]  ;;  %1035 = vst [vmem:[%s6105_s27 + $0x6e0] sm:$0xf] %v1034_v56 }
 0x13b   : > { %1037 = vst [vmem:[%s6105_s27 + $0x6e4] sm:$0xf] %v1036_v57  ;;  %1039 = vst [vmem:[%s6105_s27 + $0x6e8] sm:$0xf] %v1038_v58  ;;  %v1040_v59 = vld [vmem:[%s6098_s26 + $0x3074] sm:$0xf] }
 0x13c   : > { %v1042_v60 = vld [vmem:[%s6098_s26 + $0x3090] sm:$0xf]  ;;  %v1044_v61 = vld [vmem:[%s6098_s26 + $0x30ac] sm:$0xf]  ;;  %1041 = vst [vmem:[%s6105_s27 + $0x6ec] sm:$0xf] %v1040_v59 }
 0x13d   : > { %1043 = vst [vmem:[%s6105_s27 + $0x6f0] sm:$0xf] %v1042_v60  ;;  %1045 = vst [vmem:[%s6105_s27 + $0x6f4] sm:$0xf] %v1044_v61  ;;  %v1046_v62 = vld [vmem:[%s6098_s26 + $0x30c8] sm:$0xf] }
 0x13e   : > { %v1048_v63 = vld [vmem:[%s6098_s26 + $0x30e4] sm:$0xf]  ;;  %v1050_v0 = vld [vmem:[%s6098_s26 + $0x3100] sm:$0xf]  ;;  %1047 = vst [vmem:[%s6105_s27 + $0x6f8] sm:$0xf] %v1046_v62 }
 0x13f   : > { %1049 = vst [vmem:[%s6105_s27 + $0x6fc] sm:$0xf] %v1048_v63  ;;  %1051 = vst [vmem:[%s6105_s27 + $0x700] sm:$0xf] %v1050_v0  ;;  %v1052_v1 = vld [vmem:[%s6098_s26 + $0x311c] sm:$0xf] }
 0x140   : > { %1053 = vst [vmem:[%s6105_s27 + $0x704] sm:$0xf] %v1052_v1 }
 0x141 PF: > { %p4987_p7 = scmp.ge.s32.totalorder %s6035_s14, 1  ;;  %p1981_p8 = scmp.lt.s32.totalorder %s6035_s14, 8 }
 0x143   : > { %p1982_p9 = pnand %p4987_p7, %p1981_p8 }
 0x144   : > { %s1988_s28 = sand.u32 (!%p1982_p9), 1, %s6027_s12   ;;  %v5749_v2 = vld [vmem:[%s7391_s0 + $0x4] ss:$116 sps:$4 sm:$0xff] (!%p1982_p9)   ;;  %v5754_v3 = vld [vmem:[%s7391_s0 + $0xc] ss:$116 sps:$4 sm:$0xff] (!%p1982_p9)   ;;  %p2013_p10 = scmp.lt.s32.totalorder (!%p1982_p9), %s6073_s15, 6 }
 0x145   : > { %1985 = sbr.rel (%p1982_p9) target bundleno = 800 (0x320), region = 69  ;;  %4154 = vmatprep.mubr.bf16.mxu0 (!%p1982_p9), %v5749_v2  ;;  %4202 = vmatprep.mubr.bf16.mxu1 (!%p1982_p9), %v5754_v3  ;;  %v2047_v31 = vld [vmem:[%s7391_s0 + $0xe8] sm:$0x11] (!%p1982_p9)  ;;  %v5747_v34 = vld [vmem:[%s7391_s0] ss:$116 sps:$4 sm:$0xff] (!%p1982_p9)   ;;  %vm4115_vm0 = vcmask (!%p1982_p9), 130048  }
 0x146   : > { %s5690_s29 = smul.u32 (!%p1982_p9), 1800, %s1988_s28  ;;  %v2048_v35 = vld [vmem:[%s7391_s0 + $0xf0] sm:$0x11] (!%p1982_p9)  ;;  %v5752_v38 = vld [vmem:[%s7391_s0 + $0x8] ss:$116 sps:$4 sm:$0xff] (!%p1982_p9)   ;;  %v5019_v40 = vcombine.high (!%p1982_p9), %v2047_v31, %v2047_v31  ;;  %v5018_v49 = vcombine.low (!%p1982_p9), %v2047_v31, %v2047_v31 }
 0x147   : > { %v5021_v43 = vcombine.high (!%p1982_p9), %v2048_v35, %v2048_v35  ;;  %v5020_v52 = vcombine.low (!%p1982_p9), %v2048_v35, %v2048_v35  ;;  %s5691_s25 = smul.u32 (!%p1982_p9), 12, %s1988_s28 }
 0x148   : > { %s7013_s7 = scalar_lea.vmem (!%p1982_p9), [#allocation2], %s5690_s29 }
 0x149   : > { %v5716_v4 = vld [vmem:[%s7013_s7 + $0x40] sm:$0xff] (!%p1982_p9)   ;;  %v5720_v8 = vld [vmem:[%s7013_s7 + $0x48] sm:$0xff] (!%p1982_p9)   ;;  %v5724_v12 = vld [vmem:[%s7013_s7 + $0x50] sm:$0xff] (!%p1982_p9)   ;;  %s2012_s26 = scalar_lea.vmem (!%p1982_p9), [#allocation3], %s5691_s25 }
 0x14a   : > { %v5717_v5 = vld [vmem:[%s7013_s7] sm:$0xff] (!%p1982_p9)   ;;  %5288 = vmatprep.subr.bf16.mxu0 (!%p1982_p9), %v5716_v4  ;;  %v5721_v9 = vld [vmem:[%s7013_s7 + $0x8] sm:$0xff] (!%p1982_p9)   ;;  %v5725_v13 = vld [vmem:[%s7013_s7 + $0x10] sm:$0xff] (!%p1982_p9)  }
 0x14b   : > { %v5718_v6 = vld [vmem:[%s7013_s7 + $0xc0] sm:$0xff] (!%p1982_p9)   ;;  %5289 = vmatpush3.bf16.msra.mxu0 (!%p1982_p9), %v5717_v5  ;;  %v5722_v10 = vld [vmem:[%s7013_s7 + $0xc8] sm:$0xff] (!%p1982_p9)   ;;  %v5726_v14 = vld [vmem:[%s7013_s7 + $0xd0] sm:$0xff] (!%p1982_p9)  }
 0x14c   : > { %v5719_v7 = vld [vmem:[%s7013_s7 + $0x80] sm:$0xff]   ;;  %5316 = vmatprep.subr.bf16.mxu1 %v5718_v6  ;;  %5290 = vmatprep.subr.bf16.mxu0 %v5720_v8  ;;  %v5723_v11 = vld [vmem:[%s7013_s7 + $0x88] sm:$0xff]   ;;  %v5727_v15 = vld [vmem:[%s7013_s7 + $0x90] sm:$0xff]   ;;  %s2014_s27 = scalar_select %p2013_p10, %s6073_s15, 6 }
 0x14d   : > { %5317 = vmatpush3.bf16.msra.mxu1 %v5719_v7  ;;  %v5728_v16 = vld [vmem:[%s7013_s7 + $0x58] sm:$0xff]   ;;  %v5732_v20 = vld [vmem:[%s7013_s7 + $0x60] sm:$0xff]   ;;  %v5736_v24 = vld [vmem:[%s7013_s7 + $0x68] sm:$0xff]   ;;  %s5277_s12 = sshll.u32 (%p6088_p5), %s6073_s15, 2 }
 0x14e   : > { %5318 = vmatprep.subr.bf16.mxu1 %v5722_v10  ;;  %v5729_v17 = vld [vmem:[%s7013_s7 + $0x18] sm:$0xff]   ;;  %v5733_v21 = vld [vmem:[%s7013_s7 + $0x20] sm:$0xff]   ;;  %v5737_v25 = vld [vmem:[%s7013_s7 + $0x28] sm:$0xff]   ;;  %s2015_s17 = scalar_lea.vmem %s7393_s2, %s2014_s27  ;;  %s4869_s29 = scalar_lea.vmem (%p6088_p5), %s7394_s3, %s5277_s12 }
 0x14f   : > { %5291 = vmatpush3.bf16.msra.mxu0 %v5721_v9  ;;  %v5730_v18 = vld [vmem:[%s7013_s7 + $0xd8] sm:$0xff]   ;;  %v5734_v22 = vld [vmem:[%s7013_s7 + $0xe0] sm:$0xff]   ;;  %v5738_v26 = vld [vmem:[%s7013_s7 + $0xe8] sm:$0xff]  }
 0x150   : > { %5292 = vmatprep.subr.bf16.mxu0 %v5724_v12  ;;  %v5731_v19 = vld [vmem:[%s7013_s7 + $0x98] sm:$0xff]   ;;  %v5735_v23 = vld [vmem:[%s7013_s7 + $0xa0] sm:$0xff]   ;;  %v5739_v27 = vld [vmem:[%s7013_s7 + $0xa8] sm:$0xff]  }
 0x151   : > { %5319 = vmatpush3.bf16.msra.mxu1 %v5723_v11  ;;  %v5740_v28 = vld [vmem:[%s7013_s7 + $0x70] sm:$0xff]   ;;  %v5744_v33 = vld [vmem:[%s7013_s7 + $0x78] sm:$0xff]   ;;  %v5751_v41 = vld [vmem:[%s7013_s7 + $0x140] sm:$0xff]  }
 0x152   : > { %5320 = vmatprep.subr.bf16.mxu1 %v5726_v14  ;;  %v5741_v29 = vld [vmem:[%s7013_s7 + $0x30] sm:$0xff]   ;;  %v5745_v36 = vld [vmem:[%s7013_s7 + $0x38] sm:$0xff]   ;;  %v5755_v42 = vld [vmem:[%s7013_s7 + $0x100] sm:$0xff]  }
 0x153   : > { %5293 = vmatpush3.bf16.msra.mxu0 %v5725_v13  ;;  %v5742_v30 = vld [vmem:[%s7013_s7 + $0xf0] sm:$0xff]   ;;  %v5746_v37 = vld [vmem:[%s7013_s7 + $0xf8] sm:$0xff]   ;;  %v5756_v44 = vld [vmem:[%s7013_s7 + $0x1c0] sm:$0xff]  }
 0x154   : > { %5294 = vmatprep.subr.bf16.mxu0 %v5728_v16  ;;  %v5743_v32 = vld [vmem:[%s7013_s7 + $0xb0] sm:$0xff]   ;;  %v5750_v39 = vld [vmem:[%s7013_s7 + $0xb8] sm:$0xff]   ;;  %v5757_v45 = vld [vmem:[%s7013_s7 + $0x180] sm:$0xff]  }
 0x155   : > { %5321 = vmatpush3.bf16.msra.mxu1 %v5727_v15  ;;  %v5758_v46 = vld [vmem:[%s7013_s7 + $0x148] sm:$0xff]   ;;  %v5762_v51 = vld [vmem:[%s7013_s7 + $0x150] sm:$0xff]   ;;  %v5766_v56 = vld [vmem:[%s7013_s7 + $0x158] sm:$0xff]  }
 0x156   : > { %5322 = vmatprep.subr.bf16.mxu1 %v5730_v18  ;;  %v5759_v47 = vld [vmem:[%s7013_s7 + $0x108] sm:$0xff]   ;;  %v5763_v53 = vld [vmem:[%s7013_s7 + $0x110] sm:$0xff]   ;;  %v5767_v57 = vld [vmem:[%s7013_s7 + $0x118] sm:$0xff]  }
 0x157   : > { %5295 = vmatpush3.bf16.msra.mxu0 %v5729_v17  ;;  %v5760_v48 = vld [vmem:[%s7013_s7 + $0x1c8] sm:$0xff]   ;;  %v5764_v54 = vld [vmem:[%s7013_s7 + $0x1d0] sm:$0xff]   ;;  %v5768_v58 = vld [vmem:[%s7013_s7 + $0x1d8] sm:$0xff]  }
 0x158   : > { %5296 = vmatprep.subr.bf16.mxu0 %v5732_v20  ;;  %v5761_v50 = vld [vmem:[%s7013_s7 + $0x188] sm:$0xff]   ;;  %v5765_v55 = vld [vmem:[%s7013_s7 + $0x190] sm:$0xff]   ;;  %v5769_v59 = vld [vmem:[%s7013_s7 + $0x198] sm:$0xff]  }
 0x159   : > { %5323 = vmatpush3.bf16.msra.mxu1 %v5731_v19  ;;  %v5770_v60 = vld [vmem:[%s7013_s7 + $0x160] sm:$0xff]   ;;  %v5774_v0 = vld [vmem:[%s7013_s7 + $0x168] sm:$0xff]   ;;  %v5780_v4 = vld [vmem:[%s7013_s7 + $0x170] sm:$0xff]  }
 0x15a   : > { %5324 = vmatprep.subr.bf16.mxu1 %v5734_v22  ;;  %v5771_v61 = vld [vmem:[%s7013_s7 + $0x120] sm:$0xff]   ;;  %v5776_v1 = vld [vmem:[%s7013_s7 + $0x128] sm:$0xff]   ;;  %v5782_v5 = vld [vmem:[%s7013_s7 + $0x130] sm:$0xff]  }
 0x15b   : > { %5297 = vmatpush3.bf16.msra.mxu0 %v5733_v21  ;;  %v5772_v62 = vld [vmem:[%s7013_s7 + $0x1e0] sm:$0xff]   ;;  %v5778_v2 = vld [vmem:[%s7013_s7 + $0x1e8] sm:$0xff]   ;;  %v5784_v6 = vld [vmem:[%s7013_s7 + $0x1f0] sm:$0xff]  }
 0x15c   : > { %5298 = vmatprep.subr.bf16.mxu0 %v5736_v24  ;;  %v5773_v63 = vld [vmem:[%s7013_s7 + $0x1a0] sm:$0xff]   ;;  %v5779_v3 = vld [vmem:[%s7013_s7 + $0x1a8] sm:$0xff]   ;;  %v5785_v7 = vld [vmem:[%s7013_s7 + $0x1b0] sm:$0xff]  }
 0x15d   : > { %5325 = vmatpush3.bf16.msra.mxu1 %v5735_v23  ;;  %v5786_v8 = vld [vmem:[%s7013_s7 + $0x178] sm:$0xff]   ;;  %v5791_v12 = vld [vmem:[%s7391_s0 + $0x14] ss:$116 sps:$4 sm:$0xff]  }
 0x15e   : > { %5326 = vmatprep.subr.bf16.mxu1 %v5738_v26  ;;  %v5787_v9 = vld [vmem:[%s7013_s7 + $0x138] sm:$0xff]   ;;  %v5793_v14 = vld [vmem:[%s7013_s7 + $0x240] sm:$0xff]   ;;  %v5800_v20 = vld [vmem:[%s7013_s7 + $0x248] sm:$0xff]  }
 0x15f   : > { %5299 = vmatpush3.bf16.msra.mxu0 %v5737_v25  ;;  %v5788_v10 = vld [vmem:[%s7013_s7 + $0x1f8] sm:$0xff]   ;;  %v5797_v17 = vld [vmem:[%s7013_s7 + $0x200] sm:$0xff]   ;;  %v5801_v21 = vld [vmem:[%s7013_s7 + $0x208] sm:$0xff]  }
 0x160   : > { %5300 = vmatprep.subr.bf16.mxu0 %v5740_v28  ;;  %v5789_v11 = vld [vmem:[%s7391_s0 + $0x10] ss:$116 sps:$4 sm:$0xff]   ;;  %v5794_v15 = vld [vmem:[%s7391_s0 + $0x18] ss:$116 sps:$4 sm:$0xff]  }
 0x161   : > { %5327 = vmatpush3.bf16.msra.mxu1 %v5739_v27  ;;  %v5792_v13 = vld [vmem:[%s7013_s7 + $0x1b8] sm:$0xff]   ;;  %v5798_v18 = vld [vmem:[%s7013_s7 + $0x2c0] sm:$0xff]   ;;  %v5802_v22 = vld [vmem:[%s7013_s7 + $0x2c8] sm:$0xff]  }
 0x162   : > { %5328 = vmatprep.subr.bf16.mxu1 %v5742_v30  ;;  %v5796_v16 = vld [vmem:[%s7391_s0 + $0x1c] ss:$116 sps:$4 sm:$0xff]   ;;  %v5799_v19 = vld [vmem:[%s7013_s7 + $0x280] sm:$0xff]  }
 0x163   : > { %5301 = vmatpush3.bf16.msra.mxu0 %v5741_v29  ;;  %v2049_v23 = vld [vmem:[%s7391_s0 + $0xf8] sm:$0x11]  ;;  %v5804_v25 = vld [vmem:[%s7013_s7 + $0x288] sm:$0xff]   ;;  %v2050_v28 = vld [vmem:[%s7391_s0 + $0x100] sm:$0x11] }
 0x164   : > { %5302 = vmatprep.subr.bf16.mxu0 %v5744_v33  ;;  %v5023_v24 = vcombine.high %v2049_v23, %v2049_v23  ;;  %v5022_v26 = vcombine.low %v2049_v23, %v2049_v23  ;;  %v5806_v27 = vld [vmem:[%s7013_s7 + $0x250] sm:$0xff]   ;;  %v5025_v29 = vcombine.high %v2050_v28, %v2050_v28  ;;  %v5024_v31 = vcombine.low %v2050_v28, %v2050_v28  ;;  %v5813_v35 = vld [vmem:[%s7013_s7 + $0x218] sm:$0xff]   ;;  %v5865_v23 = vld [vmem:[%s7013_s7 + $0x3a8] sm:$0xff]  }
 0x165   : > { %5329 = vmatpush3.bf16.msra.mxu1 %v5743_v32  ;;  %v5808_v30 = vld [vmem:[%s7013_s7 + $0x210] sm:$0xff]   ;;  %v5870_v28 = vld [vmem:[%s7013_s7 + $0x378] sm:$0xff]  }
 0x166   : > { %5330 = vmatprep.subr.bf16.mxu1 %v5746_v37  ;;  %v5810_v32 = vld [vmem:[%s7013_s7 + $0x2d0] sm:$0xff]   ;;  %v5815_v37 = vld [vmem:[%s7013_s7 + $0x298] sm:$0xff]  }
 0x167   : > { %5303 = vmatpush3.bf16.msra.mxu0 %v5745_v36  ;;  %v5811_v33 = vld [vmem:[%s7013_s7 + $0x290] sm:$0xff]   ;;  %v5814_v36 = vld [vmem:[%s7013_s7 + $0x2d8] sm:$0xff]  }
 0x168   : > { %5344 = vmatprep.subr.bf16.mxu0 %v5751_v41  ;;  %v5819_v41 = vld [vmem:[%s7013_s7 + $0x2a0] sm:$0xff]  }
 0x169   : > { %5331 = vmatpush3.bf16.msra.mxu1 %v5750_v39  ;;  %v5817_v39 = vld [vmem:[%s7013_s7 + $0x220] sm:$0xff]  }
 0x16a   : > { %4155 = vmatmul.mubr.bf16.vlgmr.msra.gmra.mrb[0].mxu0 %v5747_v34  ;;  %5372 = vmatprep.subr.bf16.mxu1 %v5756_v44  ;;  %v5812_v34 = vld [vmem:[%s7013_s7 + $0x258] sm:$0xff]   ;;  %v5822_v44 = vld [vmem:[%s7013_s7 + $0x2e8] sm:$0xff]  }
 0x16b   : > { %5345 = vmatpush3.bf16.msra.mxu0 %v5755_v42  ;;  %4162 = vmatprep.mubr.bf16.mxu0 %v5019_v40  ;;  %v5818_v40 = vld [vmem:[%s7013_s7 + $0x2e0] sm:$0xff]   ;;  %v5820_v42 = vld [vmem:[%s7013_s7 + $0x268] sm:$0xff]  }
 0x16c   : > { %4203 = vmatmul.mubr.bf16.vlgmr.msra.gmra.mrb[0].mxu1 %v5752_v38  ;;  %5346 = vmatprep.subr.bf16.mxu0 %v5758_v46  ;;  %v5816_v38 = vld [vmem:[%s7013_s7 + $0x260] sm:$0xff]   ;;  %v5824_v46 = vld [vmem:[%s7013_s7 + $0x270] sm:$0xff]  }
 0x16d   : > { %5373 = vmatpush3.bf16.msra.mxu1 %v5757_v45  ;;  %4210 = vmatprep.mubr.bf16.mxu1 %v5021_v43  ;;  %v5821_v43 = vld [vmem:[%s7013_s7 + $0x228] sm:$0xff]  }
 0x16e   : > { %5374 = vmatprep.subr.bf16.mxu1 %v5760_v48  ;;  %v5823_v45 = vld [vmem:[%s7013_s7 + $0x2a8] sm:$0xff]   ;;  %v5826_v48 = vld [vmem:[%s7013_s7 + $0x2f0] sm:$0xff]  }
 0x16f   : > { %5347 = vmatpush3.bf16.msra.mxu0 %v5759_v47  ;;  %v5825_v47 = vld [vmem:[%s7013_s7 + $0x230] sm:$0xff]  }
 0x170   : > { %5348 = vmatprep.subr.bf16.mxu0 %v5762_v51  ;;  %v5829_v51 = vld [vmem:[%s7013_s7 + $0x238] sm:$0xff]  }
 0x171   : > { %5375 = vmatpush3.bf16.msra.mxu1 %v5761_v50  ;;  %v5828_v50 = vld [vmem:[%s7013_s7 + $0x278] sm:$0xff]  }
 0x172   : > { %4163 = vmatmul.mubr.bf16.gmra.mrb[4].mxu0 %v5018_v49  ;;  %5376 = vmatprep.subr.bf16.mxu1 %v5764_v54  ;;  %v5827_v49 = vld [vmem:[%s7013_s7 + $0x2b0] sm:$0xff]  }
 0x173   : > { %5349 = vmatpush3.bf16.msra.mxu0 %v5763_v53  ;;  %4250 = vmatprep.mubr.bf16.mxu0 %v5791_v12  ;;  %v5831_v53 = vld [vmem:[%s7391_s0 + $0x20] ss:$116 sps:$4 sm:$0xff]   ;;  %v5833_v54 = vld [vmem:[%s7391_s0 + $0x24] ss:$116 sps:$4 sm:$0xff]  }
 0x174   : > { %4211 = vmatmul.mubr.bf16.gmra.mrb[4].mxu1 %v5020_v52  ;;  %5350 = vmatprep.subr.bf16.mxu0 %v5766_v56  ;;  %v5830_v52 = vld [vmem:[%s7013_s7 + $0x2f8] sm:$0xff]   ;;  %v5835_v56 = vld [vmem:[%s7013_s7 + $0x340] sm:$0xff]  }
 0x175   : > { %5377 = vmatpush3.bf16.msra.mxu1 %v5765_v55  ;;  %4298 = vmatprep.mubr.bf16.mxu1 %v5796_v16  ;;  %v5834_v55 = vld [vmem:[%s7013_s7 + $0x2b8] sm:$0xff]   ;;  %v5858_v16 = vld [vmem:[%s7013_s7 + $0x360] sm:$0xff]  }
 0x176   : > { %5378 = vmatprep.subr.bf16.mxu1 %v5768_v58  ;;  %v5838_v58 = vld [vmem:[%s7391_s0 + $0x2c] ss:$116 sps:$4 sm:$0xff]  }
 0x177   : > { %5351 = vmatpush3.bf16.msra.mxu0 %v5767_v57  ;;  %v5836_v57 = vld [vmem:[%s7391_s0 + $0x28] ss:$116 sps:$4 sm:$0xff]  }
 0x178   : > { %5352 = vmatprep.subr.bf16.mxu0 %v5770_v60  ;;  %v5840_v60 = vld [vmem:[%s7013_s7 + $0x3c0] sm:$0xff]   ;;  %v5854_v12 = vld [vmem:[%s7013_s7 + $0x358] sm:$0xff]  }
 0x179   : > { %5379 = vmatpush3.bf16.msra.mxu1 %v5769_v59  ;;  %v5839_v59 = vld [vmem:[%s7013_s7 + $0x300] sm:$0xff]  }
 0x17a   : > { %5380 = vmatprep.subr.bf16.mxu1 %v5772_v62  ;;  %v5842_v62 = vld [vmem:[%s7013_s7 + $0x348] sm:$0xff]  }
 0x17b   : > { %5353 = vmatpush3.bf16.msra.mxu0 %v5771_v61  ;;  %v5841_v61 = vld [vmem:[%s7013_s7 + $0x380] sm:$0xff]  }
 0x17c   : > { %5354 = vmatprep.subr.bf16.mxu0 %v5774_v0  ;;  %v5844_v0 = vld [vmem:[%s7013_s7 + $0x3c8] sm:$0xff]  }
 0x17d   : > { %5381 = vmatpush3.bf16.msra.mxu1 %v5773_v63  ;;  %v5843_v63 = vld [vmem:[%s7013_s7 + $0x308] sm:$0xff]  }
 0x17e   : > { %5382 = vmatprep.subr.bf16.mxu1 %v5778_v2 }
 0x17f   : > { %5355 = vmatpush3.bf16.msra.mxu0 %v5776_v1  ;;  %v2051_v1 = vld [vmem:[%s7391_s0 + $0x108] sm:$0x11] }
 0x180   : > { %5356 = vmatprep.subr.bf16.mxu0 %v5780_v4  ;;  %v5027_v2 = vcombine.high %v2051_v1, %v2051_v1  ;;  %v5026_v4 = vcombine.low %v2051_v1, %v2051_v1  ;;  %v5907_v1 = vld [vmem:[%s7013_s7 + $0x4a8] sm:$0xff]  }
 0x181   : > { %5383 = vmatpush3.bf16.msra.mxu1 %v5779_v3  ;;  %v5846_v3 = vld [vmem:[%s7013_s7 + $0x388] sm:$0xff]  }
 0x182   : > { %5384 = vmatprep.subr.bf16.mxu1 %v5784_v6  ;;  %v2052_v6 = vld [vmem:[%s7391_s0 + $0x110] sm:$0x11] }
 0x183   : > { %5357 = vmatpush3.bf16.msra.mxu0 %v5782_v5  ;;  %v5848_v5 = vld [vmem:[%s7013_s7 + $0x350] sm:$0xff]  }
 0x184   : > { %5358 = vmatprep.subr.bf16.mxu0 %v5786_v8  ;;  %v5850_v8 = vld [vmem:[%s7013_s7 + $0x310] sm:$0xff]  }
 0x185   : > { %5385 = vmatpush3.bf16.msra.mxu1 %v5785_v7  ;;  %v5029_v7 = vcombine.high %v2052_v6, %v2052_v6 }
 0x186   : > { %5386 = vmatprep.subr.bf16.mxu1 %v5788_v10  ;;  %v5852_v10 = vld [vmem:[%s7013_s7 + $0x3d0] sm:$0xff]  }
 0x187   : > { %5359 = vmatpush3.bf16.msra.mxu0 %v5787_v9  ;;  %v5028_v9 = vcombine.low %v2052_v6, %v2052_v6  ;;  %v5912_v6 = vld [vmem:[%s7013_s7 + $0x478] sm:$0xff]  }
 0x188   : > { %5400 = vmatprep.subr.bf16.mxu0 %v5793_v14  ;;  %v5856_v14 = vld [vmem:[%s7013_s7 + $0x3d8] sm:$0xff]  }
 0x189   : > { %5387 = vmatpush3.bf16.msra.mxu1 %v5792_v13  ;;  %v5855_v13 = vld [vmem:[%s7013_s7 + $0x318] sm:$0xff]  }
 0x18a   : > { %4251 = vmatmul.mubr.bf16.vlgmr.msra.gmra.mrb[8].mxu0 %v5789_v11  ;;  %5428 = vmatprep.subr.bf16.mxu1 %v5798_v18  ;;  %v5853_v11 = vld [vmem:[%s7013_s7 + $0x390] sm:$0xff]   ;;  %v5860_v18 = vld [vmem:[%s7013_s7 + $0x3e0] sm:$0xff]  }
 0x18b   : > { %5401 = vmatpush3.bf16.msra.mxu0 %v5797_v17  ;;  %4258 = vmatprep.mubr.bf16.mxu0 %v5023_v24  ;;  %v5859_v17 = vld [vmem:[%s7013_s7 + $0x320] sm:$0xff]   ;;  %v5866_v24 = vld [vmem:[%s7013_s7 + $0x370] sm:$0xff]  }
 0x18c   : > { %4299 = vmatmul.mubr.bf16.vlgmr.msra.gmra.mrb[8].mxu1 %v5794_v15  ;;  %5402 = vmatprep.subr.bf16.mxu0 %v5800_v20  ;;  %v5857_v15 = vld [vmem:[%s7013_s7 + $0x398] sm:$0xff]   ;;  %v5862_v20 = vld [vmem:[%s7013_s7 + $0x368] sm:$0xff]  }
 0x18d   : > { %5429 = vmatpush3.bf16.msra.mxu1 %v5799_v19  ;;  %4306 = vmatprep.mubr.bf16.mxu1 %v5025_v29  ;;  %v5861_v19 = vld [vmem:[%s7013_s7 + $0x3a0] sm:$0xff]   ;;  %v5871_v29 = vld [vmem:[%s7013_s7 + $0x338] sm:$0xff]  }
 0x18e   : > { %5430 = vmatprep.subr.bf16.mxu1 %v5802_v22  ;;  %v5864_v22 = vld [vmem:[%s7013_s7 + $0x3e8] sm:$0xff]  }
 0x18f   : > { %5403 = vmatpush3.bf16.msra.mxu0 %v5801_v21  ;;  %v5863_v21 = vld [vmem:[%s7013_s7 + $0x328] sm:$0xff]  }
 0x190   : > { %5404 = vmatprep.subr.bf16.mxu0 %v5806_v27  ;;  %v5869_v27 = vld [vmem:[%s7013_s7 + $0x3b0] sm:$0xff]  }
 0x191   : > { %5431 = vmatpush3.bf16.msra.mxu1 %v5804_v25  ;;  %v5867_v25 = vld [vmem:[%s7013_s7 + $0x330] sm:$0xff]  }
 0x192   : > { %4259 = vmatmul.mubr.bf16.gmra.mrb[12].mxu0 %v5022_v26  ;;  %5432 = vmatprep.subr.bf16.mxu1 %v5810_v32  ;;  %v5868_v26 = vld [vmem:[%s7013_s7 + $0x3f0] sm:$0xff]  }
 0x193   : > { %5405 = vmatpush3.bf16.msra.mxu0 %v5808_v30  ;;  %4346 = vmatprep.mubr.bf16.mxu0 %v5833_v54  ;;  %v5872_v30 = vld [vmem:[%s7013_s7 + $0x3f8] sm:$0xff]   ;;  %v5875_v32 = vld [vmem:[%s7391_s0 + $0x34] ss:$116 sps:$4 sm:$0xff]  }
 0x194   : > { %4307 = vmatmul.mubr.bf16.gmra.mrb[12].mxu1 %v5024_v31  ;;  %5406 = vmatprep.subr.bf16.mxu0 %v5812_v34  ;;  %v5873_v31 = vld [vmem:[%s7391_s0 + $0x30] ss:$116 sps:$4 sm:$0xff]  }
 0x195   : > { %5433 = vmatpush3.bf16.msra.mxu1 %v5811_v33  ;;  %4394 = vmatprep.mubr.bf16.mxu1 %v5838_v58  ;;  %v5876_v33 = vld [vmem:[%s7013_s7 + $0x3b8] sm:$0xff]   ;;  %v5877_v34 = vld [vmem:[%s7013_s7 + $0x440] sm:$0xff]  }
 0x196   : > { %5434 = vmatprep.subr.bf16.mxu1 %v5814_v36  ;;  %v5880_v36 = vld [vmem:[%s7391_s0 + $0x3c] ss:$116 sps:$4 sm:$0xff]   ;;  %v5900_v58 = vld [vmem:[%s7013_s7 + $0x460] sm:$0xff]  }
 0x197   : > { %5407 = vmatpush3.bf16.msra.mxu0 %v5813_v35  ;;  %v5878_v35 = vld [vmem:[%s7391_s0 + $0x38] ss:$116 sps:$4 sm:$0xff]  }
 0x198   : > { %5408 = vmatprep.subr.bf16.mxu0 %v5816_v38  ;;  %v5882_v38 = vld [vmem:[%s7013_s7 + $0x4c0] sm:$0xff]   ;;  %v5896_v54 = vld [vmem:[%s7013_s7 + $0x458] sm:$0xff]  }
 0x199   : > { %5435 = vmatpush3.bf16.msra.mxu1 %v5815_v37  ;;  %v5881_v37 = vld [vmem:[%s7013_s7 + $0x400] sm:$0xff]  }
 0x19a   : > { %5436 = vmatprep.subr.bf16.mxu1 %v5818_v40  ;;  %v5884_v40 = vld [vmem:[%s7013_s7 + $0x448] sm:$0xff]  }
 0x19b   : > { %5409 = vmatpush3.bf16.msra.mxu0 %v5817_v39  ;;  %v5883_v39 = vld [vmem:[%s7013_s7 + $0x480] sm:$0xff]  }
 0x19c   : > { %5410 = vmatprep.subr.bf16.mxu0 %v5820_v42  ;;  %v5886_v42 = vld [vmem:[%s7013_s7 + $0x4c8] sm:$0xff]  }
 0x19d   : > { %5437 = vmatpush3.bf16.msra.mxu1 %v5819_v41  ;;  %v5885_v41 = vld [vmem:[%s7013_s7 + $0x408] sm:$0xff]  }
 0x19e   : > { %5438 = vmatprep.subr.bf16.mxu1 %v5822_v44 }
 0x19f   : > { %5411 = vmatpush3.bf16.msra.mxu0 %v5821_v43  ;;  %v2053_v43 = vld [vmem:[%s7391_s0 + $0x118] sm:$0x11] }
 0x1a0   : > { %5412 = vmatprep.subr.bf16.mxu0 %v5824_v46  ;;  %v5031_v44 = vcombine.high %v2053_v43, %v2053_v43  ;;  %v5030_v46 = vcombine.low %v2053_v43, %v2053_v43  ;;  %v5949_v43 = vld [vmem:[%s7013_s7 + $0x5a8] sm:$0xff]  }
 0x1a1   : > { %5439 = vmatpush3.bf16.msra.mxu1 %v5823_v45  ;;  %v5888_v45 = vld [vmem:[%s7013_s7 + $0x488] sm:$0xff]  }
 0x1a2   : > { %5440 = vmatprep.subr.bf16.mxu1 %v5826_v48  ;;  %v2054_v48 = vld [vmem:[%s7391_s0 + $0x120] sm:$0x11] }
 0x1a3   : > { %5413 = vmatpush3.bf16.msra.mxu0 %v5825_v47  ;;  %v5890_v47 = vld [vmem:[%s7013_s7 + $0x450] sm:$0xff]  }
 0x1a4   : > { %5414 = vmatprep.subr.bf16.mxu0 %v5828_v50  ;;  %v5892_v50 = vld [vmem:[%s7013_s7 + $0x410] sm:$0xff]  }
 0x1a5   : > { %5441 = vmatpush3.bf16.msra.mxu1 %v5827_v49  ;;  %v5033_v49 = vcombine.high %v2054_v48, %v2054_v48 }
 0x1a6   : > { %5442 = vmatprep.subr.bf16.mxu1 %v5830_v52  ;;  %v5894_v52 = vld [vmem:[%s7013_s7 + $0x4d0] sm:$0xff]  }
 0x1a7   : > { %5415 = vmatpush3.bf16.msra.mxu0 %v5829_v51  ;;  %v5032_v51 = vcombine.low %v2054_v48, %v2054_v48  ;;  %v5954_v48 = vld [vmem:[%s7013_s7 + $0x578] sm:$0xff]  }
 0x1a8   : > { %5456 = vmatprep.subr.bf16.mxu0 %v5835_v56  ;;  %v5898_v56 = vld [vmem:[%s7013_s7 + $0x4d8] sm:$0xff]  }
 0x1a9   : > { %5443 = vmatpush3.bf16.msra.mxu1 %v5834_v55  ;;  %v5897_v55 = vld [vmem:[%s7013_s7 + $0x418] sm:$0xff]  }
 0x1aa   : > { %4347 = vmatmul.mubr.bf16.vlgmr.msra.gmra.mrb[16].mxu0 %v5831_v53  ;;  %5484 = vmatprep.subr.bf16.mxu1 %v5840_v60  ;;  %v5895_v53 = vld [vmem:[%s7013_s7 + $0x490] sm:$0xff]   ;;  %v5902_v60 = vld [vmem:[%s7013_s7 + $0x4e0] sm:$0xff]  }
 0x1ab   : > { %5457 = vmatpush3.bf16.msra.mxu0 %v5839_v59  ;;  %4354 = vmatprep.mubr.bf16.mxu0 %v5027_v2  ;;  %v5901_v59 = vld [vmem:[%s7013_s7 + $0x420] sm:$0xff]   ;;  %v5908_v2 = vld [vmem:[%s7013_s7 + $0x470] sm:$0xff]  }
 0x1ac   : > { %4395 = vmatmul.mubr.bf16.vlgmr.msra.gmra.mrb[16].mxu1 %v5836_v57  ;;  %5458 = vmatprep.subr.bf16.mxu0 %v5842_v62  ;;  %v5899_v57 = vld [vmem:[%s7013_s7 + $0x498] sm:$0xff]   ;;  %v5904_v62 = vld [vmem:[%s7013_s7 + $0x468] sm:$0xff]  }
 0x1ad   : > { %5485 = vmatpush3.bf16.msra.mxu1 %v5841_v61  ;;  %4402 = vmatprep.mubr.bf16.mxu1 %v5029_v7  ;;  %v5903_v61 = vld [vmem:[%s7013_s7 + $0x4a0] sm:$0xff]   ;;  %v5913_v7 = vld [vmem:[%s7013_s7 + $0x438] sm:$0xff]  }
 0x1ae   : > { %5486 = vmatprep.subr.bf16.mxu1 %v5844_v0  ;;  %v5906_v0 = vld [vmem:[%s7013_s7 + $0x4e8] sm:$0xff]  }
 0x1af   : > { %5459 = vmatpush3.bf16.msra.mxu0 %v5843_v63  ;;  %v5905_v63 = vld [vmem:[%s7013_s7 + $0x428] sm:$0xff]  }
 0x1b0   : > { %5460 = vmatprep.subr.bf16.mxu0 %v5848_v5  ;;  %v5911_v5 = vld [vmem:[%s7013_s7 + $0x4b0] sm:$0xff]  }
 0x1b1   : > { %5487 = vmatpush3.bf16.msra.mxu1 %v5846_v3  ;;  %v5909_v3 = vld [vmem:[%s7013_s7 + $0x430] sm:$0xff]  }
 0x1b2   : > { %4355 = vmatmul.mubr.bf16.gmra.mrb[20].mxu0 %v5026_v4  ;;  %5488 = vmatprep.subr.bf16.mxu1 %v5852_v10  ;;  %v5910_v4 = vld [vmem:[%s7013_s7 + $0x4f0] sm:$0xff]  }
 0x1b3   : > { %5461 = vmatpush3.bf16.msra.mxu0 %v5850_v8  ;;  %4442 = vmatprep.mubr.bf16.mxu0 %v5875_v32  ;;  %v5914_v8 = vld [vmem:[%s7013_s7 + $0x4f8] sm:$0xff]  }
 0x1b4   : > { %4403 = vmatmul.mubr.bf16.gmra.mrb[20].mxu1 %v5028_v9  ;;  %5462 = vmatprep.subr.bf16.mxu0 %v5854_v12  ;;  %v5915_v9 = vld [vmem:[%s7391_s0 + $0x40] ss:$116 sps:$4 sm:$0xff]   ;;  %v5917_v10 = vld [vmem:[%s7391_s0 + $0x44] ss:$116 sps:$4 sm:$0xff]  }
 0x1b5   : > { %5489 = vmatpush3.bf16.msra.mxu1 %v5853_v11  ;;  %4490 = vmatprep.mubr.bf16.mxu1 %v5880_v36  ;;  %v5918_v11 = vld [vmem:[%s7013_s7 + $0x4b8] sm:$0xff]   ;;  %v5919_v12 = vld [vmem:[%s7013_s7 + $0x540] sm:$0xff]  }
 0x1b6   : > { %5490 = vmatprep.subr.bf16.mxu1 %v5856_v14  ;;  %v5922_v14 = vld [vmem:[%s7391_s0 + $0x4c] ss:$116 sps:$4 sm:$0xff]  }
 0x1b7   : > { %5463 = vmatpush3.bf16.msra.mxu0 %v5855_v13  ;;  %v5920_v13 = vld [vmem:[%s7391_s0 + $0x48] ss:$116 sps:$4 sm:$0xff]  }
 0x1b8   : > { %5464 = vmatprep.subr.bf16.mxu0 %v5858_v16  ;;  %v5924_v16 = vld [vmem:[%s7013_s7 + $0x5c0] sm:$0xff]   ;;  %v5938_v32 = vld [vmem:[%s7013_s7 + $0x558] sm:$0xff]  }
 0x1b9   : > { %5491 = vmatpush3.bf16.msra.mxu1 %v5857_v15  ;;  %v5923_v15 = vld [vmem:[%s7013_s7 + $0x500] sm:$0xff]  }
 0x1ba   : > { %5492 = vmatprep.subr.bf16.mxu1 %v5860_v18  ;;  %v5926_v18 = vld [vmem:[%s7013_s7 + $0x548] sm:$0xff]   ;;  %v5942_v36 = vld [vmem:[%s7013_s7 + $0x560] sm:$0xff]  }
 0x1bb   : > { %5465 = vmatpush3.bf16.msra.mxu0 %v5859_v17  ;;  %v5925_v17 = vld [vmem:[%s7013_s7 + $0x580] sm:$0xff]  }
 0x1bc   : > { %5466 = vmatprep.subr.bf16.mxu0 %v5862_v20  ;;  %v5928_v20 = vld [vmem:[%s7013_s7 + $0x5c8] sm:$0xff]  }
 0x1bd   : > { %5493 = vmatpush3.bf16.msra.mxu1 %v5861_v19  ;;  %v5927_v19 = vld [vmem:[%s7013_s7 + $0x508] sm:$0xff]  }
 0x1be   : > { %5494 = vmatprep.subr.bf16.mxu1 %v5864_v22 }
 0x1bf   : > { %5467 = vmatpush3.bf16.msra.mxu0 %v5863_v21  ;;  %v2055_v21 = vld [vmem:[%s7391_s0 + $0x128] sm:$0x11] }
 0x1c0   : > { %5468 = vmatprep.subr.bf16.mxu0 %v5866_v24  ;;  %v5035_v22 = vcombine.high %v2055_v21, %v2055_v21  ;;  %v5034_v24 = vcombine.low %v2055_v21, %v2055_v21  ;;  %v5991_v21 = vld [vmem:[%s7013_s7 + $0x6a8] sm:$0xff]  }
 0x1c1   : > { %5495 = vmatpush3.bf16.msra.mxu1 %v5865_v23  ;;  %v5930_v23 = vld [vmem:[%s7013_s7 + $0x588] sm:$0xff]  }
 0x1c2   : > { %5496 = vmatprep.subr.bf16.mxu1 %v5868_v26  ;;  %v2056_v26 = vld [vmem:[%s7391_s0 + $0x130] sm:$0x11] }
 0x1c3   : > { %5469 = vmatpush3.bf16.msra.mxu0 %v5867_v25  ;;  %v5932_v25 = vld [vmem:[%s7013_s7 + $0x550] sm:$0xff]  }
 0x1c4   : > { %5470 = vmatprep.subr.bf16.mxu0 %v5870_v28  ;;  %v5934_v28 = vld [vmem:[%s7013_s7 + $0x510] sm:$0xff]  }
 0x1c5   : > { %5497 = vmatpush3.bf16.msra.mxu1 %v5869_v27  ;;  %v5037_v27 = vcombine.high %v2056_v26, %v2056_v26 }
 0x1c6   : > { %5498 = vmatprep.subr.bf16.mxu1 %v5872_v30  ;;  %v5936_v30 = vld [vmem:[%s7013_s7 + $0x5d0] sm:$0xff]  }
 0x1c7   : > { %5471 = vmatpush3.bf16.msra.mxu0 %v5871_v29  ;;  %v5036_v29 = vcombine.low %v2056_v26, %v2056_v26  ;;  %v5996_v26 = vld [vmem:[%s7013_s7 + $0x678] sm:$0xff]  }
 0x1c8   : > { %5512 = vmatprep.subr.bf16.mxu0 %v5877_v34  ;;  %v5940_v34 = vld [vmem:[%s7013_s7 + $0x5d8] sm:$0xff]  }
 0x1c9   : > { %5499 = vmatpush3.bf16.msra.mxu1 %v5876_v33  ;;  %v5939_v33 = vld [vmem:[%s7013_s7 + $0x518] sm:$0xff]  }
 0x1ca   : > { %4443 = vmatmul.mubr.bf16.vlgmr.msra.gmra.mrb[24].mxu0 %v5873_v31  ;;  %5540 = vmatprep.subr.bf16.mxu1 %v5882_v38  ;;  %v5937_v31 = vld [vmem:[%s7013_s7 + $0x590] sm:$0xff]   ;;  %v5944_v38 = vld [vmem:[%s7013_s7 + $0x5e0] sm:$0xff]  }
 0x1cb   : > { %5513 = vmatpush3.bf16.msra.mxu0 %v5881_v37  ;;  %4450 = vmatprep.mubr.bf16.mxu0 %v5031_v44  ;;  %v5943_v37 = vld [vmem:[%s7013_s7 + $0x520] sm:$0xff]   ;;  %v5950_v44 = vld [vmem:[%s7013_s7 + $0x570] sm:$0xff]  }
 0x1cc   : > { %4491 = vmatmul.mubr.bf16.vlgmr.msra.gmra.mrb[24].mxu1 %v5878_v35  ;;  %5514 = vmatprep.subr.bf16.mxu0 %v5884_v40  ;;  %v5941_v35 = vld [vmem:[%s7013_s7 + $0x598] sm:$0xff]   ;;  %v5946_v40 = vld [vmem:[%s7013_s7 + $0x568] sm:$0xff]  }
 0x1cd   : > { %5541 = vmatpush3.bf16.msra.mxu1 %v5883_v39  ;;  %4498 = vmatprep.mubr.bf16.mxu1 %v5033_v49  ;;  %v5945_v39 = vld [vmem:[%s7013_s7 + $0x5a0] sm:$0xff]   ;;  %v5955_v49 = vld [vmem:[%s7013_s7 + $0x538] sm:$0xff]  }
 0x1ce   : > { %5542 = vmatprep.subr.bf16.mxu1 %v5886_v42  ;;  %v5948_v42 = vld [vmem:[%s7013_s7 + $0x5e8] sm:$0xff]  }
 0x1cf   : > { %5515 = vmatpush3.bf16.msra.mxu0 %v5885_v41  ;;  %v5947_v41 = vld [vmem:[%s7013_s7 + $0x528] sm:$0xff]  }
 0x1d0   : > { %5516 = vmatprep.subr.bf16.mxu0 %v5890_v47  ;;  %v5953_v47 = vld [vmem:[%s7013_s7 + $0x5b0] sm:$0xff]  }
 0x1d1   : > { %5543 = vmatpush3.bf16.msra.mxu1 %v5888_v45  ;;  %v5951_v45 = vld [vmem:[%s7013_s7 + $0x530] sm:$0xff]  }
 0x1d2   : > { %4451 = vmatmul.mubr.bf16.gmra.mrb[28].mxu0 %v5030_v46  ;;  %5544 = vmatprep.subr.bf16.mxu1 %v5894_v52  ;;  %v5952_v46 = vld [vmem:[%s7013_s7 + $0x5f0] sm:$0xff]  }
 0x1d3   : > { %5517 = vmatpush3.bf16.msra.mxu0 %v5892_v50  ;;  %4538 = vmatprep.mubr.bf16.mxu0 %v5917_v10  ;;  %v5956_v50 = vld [vmem:[%s7013_s7 + $0x5f8] sm:$0xff]   ;;  %v5959_v52 = vld [vmem:[%s7391_s0 + $0x54] ss:$116 sps:$4 sm:$0xff]  }
 0x1d4   : > { %4499 = vmatmul.mubr.bf16.gmra.mrb[28].mxu1 %v5032_v51  ;;  %5518 = vmatprep.subr.bf16.mxu0 %v5896_v54  ;;  %v5957_v51 = vld [vmem:[%s7391_s0 + $0x50] ss:$116 sps:$4 sm:$0xff]  }
 0x1d5   : > { %5545 = vmatpush3.bf16.msra.mxu1 %v5895_v53  ;;  %4586 = vmatprep.mubr.bf16.mxu1 %v5922_v14  ;;  %v5960_v53 = vld [vmem:[%s7013_s7 + $0x5b8] sm:$0xff]   ;;  %v5961_v54 = vld [vmem:[%s7013_s7 + $0x640] sm:$0xff]  }
 0x1d6   : > { %5546 = vmatprep.subr.bf16.mxu1 %v5898_v56  ;;  %v5964_v56 = vld [vmem:[%s7391_s0 + $0x5c] ss:$116 sps:$4 sm:$0xff]   ;;  %v5984_v14 = vld [vmem:[%s7013_s7 + $0x660] sm:$0xff]  }
 0x1d7   : > { %5519 = vmatpush3.bf16.msra.mxu0 %v5897_v55  ;;  %v5962_v55 = vld [vmem:[%s7391_s0 + $0x58] ss:$116 sps:$4 sm:$0xff]  }
 0x1d8   : > { %5520 = vmatprep.subr.bf16.mxu0 %v5900_v58  ;;  %v5966_v58 = vld [vmem:[%s7013_s7 + $0x6c0] sm:$0xff]   ;;  %v5980_v10 = vld [vmem:[%s7013_s7 + $0x658] sm:$0xff]  }
 0x1d9   : > { %5547 = vmatpush3.bf16.msra.mxu1 %v5899_v57  ;;  %v5965_v57 = vld [vmem:[%s7013_s7 + $0x600] sm:$0xff]  }
 0x1da   : > { %5548 = vmatprep.subr.bf16.mxu1 %v5902_v60  ;;  %v5968_v60 = vld [vmem:[%s7013_s7 + $0x648] sm:$0xff]  }
 0x1db   : > { %5521 = vmatpush3.bf16.msra.mxu0 %v5901_v59  ;;  %v5967_v59 = vld [vmem:[%s7013_s7 + $0x680] sm:$0xff]  }
 0x1dc   : > { %5522 = vmatprep.subr.bf16.mxu0 %v5904_v62  ;;  %v5970_v62 = vld [vmem:[%s7013_s7 + $0x6c8] sm:$0xff]  }
 0x1dd   : > { %5549 = vmatpush3.bf16.msra.mxu1 %v5903_v61  ;;  %v5969_v61 = vld [vmem:[%s7013_s7 + $0x608] sm:$0xff]  }
 0x1de   : > { %5550 = vmatprep.subr.bf16.mxu1 %v5906_v0 }
 0x1df   : > { %5523 = vmatpush3.bf16.msra.mxu0 %v5905_v63  ;;  %v2057_v63 = vld [vmem:[%s7391_s0 + $0x138] sm:$0x11] }
 0x1e0   : > { %5524 = vmatprep.subr.bf16.mxu0 %v5908_v2  ;;  %v5039_v0 = vcombine.high %v2057_v63, %v2057_v63  ;;  %v5038_v2 = vcombine.low %v2057_v63, %v2057_v63 }
 0x1e1   : > { %5551 = vmatpush3.bf16.msra.mxu1 %v5907_v1  ;;  %v5972_v1 = vld [vmem:[%s7013_s7 + $0x688] sm:$0xff]  }
 0x1e2   : > { %5552 = vmatprep.subr.bf16.mxu1 %v5910_v4  ;;  %v2058_v4 = vld [vmem:[%s7391_s0 + $0x140] sm:$0x11] }
 0x1e3   : > { %5525 = vmatpush3.bf16.msra.mxu0 %v5909_v3  ;;  %v5974_v3 = vld [vmem:[%s7013_s7 + $0x650] sm:$0xff]  }
 0x1e4   : > { %5526 = vmatprep.subr.bf16.mxu0 %v5912_v6  ;;  %v5976_v6 = vld [vmem:[%s7013_s7 + $0x610] sm:$0xff]  }
 0x1e5   : > { %5553 = vmatpush3.bf16.msra.mxu1 %v5911_v5  ;;  %v5041_v5 = vcombine.high %v2058_v4, %v2058_v4 }
 0x1e6   : > { %5554 = vmatprep.subr.bf16.mxu1 %v5914_v8  ;;  %v5978_v8 = vld [vmem:[%s7013_s7 + $0x6d0] sm:$0xff]  }
 0x1e7   : > { %5527 = vmatpush3.bf16.msra.mxu0 %v5913_v7  ;;  %v5040_v7 = vcombine.low %v2058_v4, %v2058_v4 }
 0x1e8   : > { %5568 = vmatprep.subr.bf16.mxu0 %v5919_v12  ;;  %v5982_v12 = vld [vmem:[%s7013_s7 + $0x6d8] sm:$0xff]  }
 0x1e9   : > { %5555 = vmatpush3.bf16.msra.mxu1 %v5918_v11  ;;  %v5981_v11 = vld [vmem:[%s7013_s7 + $0x618] sm:$0xff]  }
 0x1ea   : > { %4539 = vmatmul.mubr.bf16.vlgmr.msra.gmra.mrb[32].mxu0 %v5915_v9  ;;  %5596 = vmatprep.subr.bf16.mxu1 %v5924_v16  ;;  %v5979_v9 = vld [vmem:[%s7013_s7 + $0x690] sm:$0xff]   ;;  %v5986_v16 = vld [vmem:[%s7013_s7 + $0x6e0] sm:$0xff]  }
 0x1eb   : > { %5569 = vmatpush3.bf16.msra.mxu0 %v5923_v15  ;;  %4546 = vmatprep.mubr.bf16.mxu0 %v5035_v22  ;;  %v5985_v15 = vld [vmem:[%s7013_s7 + $0x620] sm:$0xff]   ;;  %v5992_v22 = vld [vmem:[%s7013_s7 + $0x670] sm:$0xff]  }
 0x1ec   : > { %4587 = vmatmul.mubr.bf16.vlgmr.msra.gmra.mrb[32].mxu1 %v5920_v13  ;;  %5570 = vmatprep.subr.bf16.mxu0 %v5926_v18  ;;  %v5983_v13 = vld [vmem:[%s7013_s7 + $0x698] sm:$0xff]   ;;  %v5988_v18 = vld [vmem:[%s7013_s7 + $0x668] sm:$0xff]  }
 0x1ed   : > { %5597 = vmatpush3.bf16.msra.mxu1 %v5925_v17  ;;  %4594 = vmatprep.mubr.bf16.mxu1 %v5037_v27  ;;  %v5987_v17 = vld [vmem:[%s7013_s7 + $0x6a0] sm:$0xff]   ;;  %v5997_v27 = vld [vmem:[%s7013_s7 + $0x638] sm:$0xff]  }
 0x1ee   : > { %5598 = vmatprep.subr.bf16.mxu1 %v5928_v20  ;;  %v5990_v20 = vld [vmem:[%s7013_s7 + $0x6e8] sm:$0xff]  }
 0x1ef   : > { %5571 = vmatpush3.bf16.msra.mxu0 %v5927_v19  ;;  %v5989_v19 = vld [vmem:[%s7013_s7 + $0x628] sm:$0xff]  }
 0x1f0   : > { %5572 = vmatprep.subr.bf16.mxu0 %v5932_v25  ;;  %v5995_v25 = vld [vmem:[%s7013_s7 + $0x6b0] sm:$0xff]  }
 0x1f1   : > { %5599 = vmatpush3.bf16.msra.mxu1 %v5930_v23  ;;  %v5993_v23 = vld [vmem:[%s7013_s7 + $0x630] sm:$0xff]  }
 0x1f2   : > { %4547 = vmatmul.mubr.bf16.gmra.mrb[36].mxu0 %v5034_v24  ;;  %5600 = vmatprep.subr.bf16.mxu1 %v5936_v30  ;;  %v5994_v24 = vld [vmem:[%s7013_s7 + $0x6f0] sm:$0xff]  }
 0x1f3   : > { %5573 = vmatpush3.bf16.msra.mxu0 %v5934_v28  ;;  %4634 = vmatprep.mubr.bf16.mxu0 %v5959_v52  ;;  %v5998_v28 = vld [vmem:[%s7013_s7 + $0x6f8] sm:$0xff]  }
 0x1f4   : > { %4595 = vmatmul.mubr.bf16.gmra.mrb[36].mxu1 %v5036_v29  ;;  %5574 = vmatprep.subr.bf16.mxu0 %v5938_v32  ;;  %v5999_v29 = vld [vmem:[%s7391_s0 + $0x60] ss:$116 sps:$4 sm:$0xff]   ;;  %v6001_v30 = vld [vmem:[%s7391_s0 + $0x64] ss:$116 sps:$4 sm:$0xff]  }
 0x1f5   : > { %5601 = vmatpush3.bf16.msra.mxu1 %v5937_v31  ;;  %4682 = vmatprep.mubr.bf16.mxu1 %v5964_v56  ;;  %v6002_v31 = vld [vmem:[%s7013_s7 + $0x6b8] sm:$0xff]   ;;  %v6003_v32 = vld [vmem:[%s7013_s7 + $0x700] sm:$0xff]  }
 0x1f6   : > { %5602 = vmatprep.subr.bf16.mxu1 %v5940_v34  ;;  %v6006_v34 = vld [vmem:[%s7391_s0 + $0x6c] ss:$116 sps:$4 sm:$0xff]  }
 0x1f7   : > { %5575 = vmatpush3.bf16.msra.mxu0 %v5939_v33  ;;  %v6004_v33 = vld [vmem:[%s7391_s0 + $0x68] ss:$116 sps:$4 sm:$0xff]  }
 0x1f8   : > { %5576 = vmatprep.subr.bf16.mxu0 %v5942_v36 }
 0x1f9   : > { %5603 = vmatpush3.bf16.msra.mxu1 %v5941_v35  ;;  %v2059_v35 = vld [vmem:[%s7391_s0 + $0x148] sm:$0x11] }
 0x1fa   : > { %5604 = vmatprep.subr.bf16.mxu1 %v5944_v38  ;;  %v5043_v36 = vcombine.high %v2059_v35, %v2059_v35 }
 0x1fb   : > { %5577 = vmatpush3.bf16.msra.mxu0 %v5943_v37  ;;  %v2060_v37 = vld [vmem:[%s7391_s0 + $0x150] sm:$0x11] }
 0x1fc   : > { %5578 = vmatprep.subr.bf16.mxu0 %v5946_v40  ;;  %v5045_v38 = vcombine.high %v2060_v37, %v2060_v37  ;;  %v4988_v40 = vld [vmem:[%s2015_s17] ss:$0 sm:$0xff] }
 0x1fd   : > { %5605 = vmatpush3.bf16.msra.mxu1 %v5945_v39 }
 0x1fe   : > { %5606 = vmatprep.subr.bf16.mxu1 %v5948_v42  ;;  %v5042_v42 = vcombine.low %v2059_v35, %v2059_v35 }
 0x1ff   : > { %5579 = vmatpush3.bf16.msra.mxu0 %v5947_v41 }
 0x200   : > { %5580 = vmatprep.subr.bf16.mxu0 %v5950_v44 }
 0x201   : > { %5607 = vmatpush3.bf16.msra.mxu1 %v5949_v43 }
 0x202   : > { %5608 = vmatprep.subr.bf16.mxu1 %v5952_v46  ;;  %v6011_v46 = vld [vmem:[%s7391_s0 + $0x70] ss:$116 sps:$4 sm:$0xff]  }
 0x203   : > { %5581 = vmatpush3.bf16.msra.mxu0 %v5951_v45 }
 0x204   : > { %5582 = vmatprep.subr.bf16.mxu0 %v5954_v48 }
 0x205   : > { %5609 = vmatpush3.bf16.msra.mxu1 %v5953_v47 }
 0x206   : > { %5610 = vmatprep.subr.bf16.mxu1 %v5956_v50 }
 0x207   : > { %5583 = vmatpush3.bf16.msra.mxu0 %v5955_v49 }
 0x208   : > { %5624 = vmatprep.subr.bf16.mxu0 %v5961_v54 }
 0x209   : > { %5611 = vmatpush3.bf16.msra.mxu1 %v5960_v53  ;;  %v5044_v53 = vcombine.low %v2060_v37, %v2060_v37 }
 0x20a   : > { %4635 = vmatmul.mubr.bf16.vlgmr.msra.gmra.mrb[40].mxu0 %v5957_v51  ;;  %5652 = vmatprep.subr.bf16.mxu1 %v5966_v58 }
 0x20b   : > { %5625 = vmatpush3.bf16.msra.mxu0 %v5965_v57  ;;  %4642 = vmatprep.mubr.bf16.mxu0 %v5039_v0 }
 0x20c   : > { %4683 = vmatmul.mubr.bf16.vlgmr.msra.gmra.mrb[40].mxu1 %v5962_v55  ;;  %5626 = vmatprep.subr.bf16.mxu0 %v5968_v60 }
 0x20d   : > { %5653 = vmatpush3.bf16.msra.mxu1 %v5967_v59  ;;  %4690 = vmatprep.mubr.bf16.mxu1 %v5041_v5 }
 0x20e   : > { %5654 = vmatprep.subr.bf16.mxu1 %v5970_v62 }
 0x20f   : > { %5627 = vmatpush3.bf16.msra.mxu0 %v5969_v61  ;;  %v6012_v61 = vld [vmem:[%s7391_s0 + $0x158] ss:$0 sps:$4 sm:$0x11]  }
 0x210   : > { %5628 = vmatprep.subr.bf16.mxu0 %v5974_v3 }
 0x211   : > { %5655 = vmatpush3.bf16.msra.mxu1 %v5972_v1 }
 0x212   : > { %4643 = vmatmul.mubr.bf16.gmra.mrb[44].mxu0 %v5038_v2  ;;  %5656 = vmatprep.subr.bf16.mxu1 %v5978_v8 }
 0x213   : > { %5629 = vmatpush3.bf16.msra.mxu0 %v5976_v6  ;;  %4730 = vmatprep.mubr.bf16.mxu0 %v6001_v30 }
 0x214   : > { %4691 = vmatmul.mubr.bf16.gmra.mrb[44].mxu1 %v5040_v7  ;;  %5630 = vmatprep.subr.bf16.mxu0 %v5980_v10 }
 0x215   : > { %5657 = vmatpush3.bf16.msra.mxu1 %v5979_v9  ;;  %4778 = vmatprep.mubr.bf16.mxu1 %v6006_v34 }
 0x216   : > { %5658 = vmatprep.subr.bf16.mxu1 %v5982_v12 }
 0x217   : > { %5631 = vmatpush3.bf16.msra.mxu0 %v5981_v11 }
 0x218   : > { %5632 = vmatprep.subr.bf16.mxu0 %v5984_v14 }
 0x219   : > { %5659 = vmatpush3.bf16.msra.mxu1 %v5983_v13 }
 0x21a   : > { %5660 = vmatprep.subr.bf16.mxu1 %v5986_v16 }
 0x21b   : > { %5633 = vmatpush3.bf16.msra.mxu0 %v5985_v15 }
 0x21c   : > { %5634 = vmatprep.subr.bf16.mxu0 %v5988_v18 }
 0x21d   : > { %5661 = vmatpush3.bf16.msra.mxu1 %v5987_v17 }
 0x21e   : > { %5662 = vmatprep.subr.bf16.mxu1 %v5990_v20 }
 0x21f   : > { %5635 = vmatpush3.bf16.msra.mxu0 %v5989_v19 }
 0x220   : > { %5636 = vmatprep.subr.bf16.mxu0 %v5992_v22 }
 0x221   : > { %5663 = vmatpush3.bf16.msra.mxu1 %v5991_v21 }
 0x222   : > { %5664 = vmatprep.subr.bf16.mxu1 %v5994_v24 }
 0x223   : > { %5637 = vmatpush3.bf16.msra.mxu0 %v5993_v23 }
 0x224   : > { %5638 = vmatprep.subr.bf16.mxu0 %v5996_v26 }
 0x225   : > { %5665 = vmatpush3.bf16.msra.mxu1 %v5995_v25 }
 0x226   : > { %5666 = vmatprep.subr.bf16.mxu1 %v5998_v28 }
 0x227   : > { %5639 = vmatpush3.bf16.msra.mxu0 %v5997_v27 }
 0x228   : > { %5683 = vmatprep.subr.bf16.mxu0 %v6003_v32 }
 0x229   : > { %5667 = vmatpush3.bf16.msra.mxu1 %v6002_v31 }
 0x22a   : > { %4731 = vmatmul.mubr.bf16.vlgmr.msra.gmra.mrb[48].mxu0 %v5999_v29 }
 0x22b   : > { %5684 = vmatpush3.bf16.msra.mxu0 %v6003_v32  ;;  %4738 = vmatprep.mubr.bf16.mxu0 %v5043_v36 }
 0x22c   : > { %4779 = vmatmul.mubr.bf16.vlgmr.msra.gmra.mrb[48].mxu1 %v6004_v33 }
 0x22d   : > { %4786 = vmatprep.mubr.bf16.mxu1 %v5045_v38 }
 0x232   : > { %4739 = vmatmul.mubr.bf16.gmra.mrb[52].mxu0 %v5042_v42 }
 0x233   : > { %5685 = vmatprep.mubr.msk.bf16.mxu0 %vm4115_vm0, %v6011_v46 }
 0x234   : > { %4787 = vmatmul.mubr.bf16.gmra.mrb[52].mxu1 %v5044_v53 }
 0x23a   : > { %5686 = vmatmul.mubr.msk.bf16.vlgmr.msra.gmra.mrb[56].mxu0 %vm4115_vm0, %v6012_v61 }
 0x23d   : > { %v5304_v39 = vpop.f32.mrb[0].mxu0 }
 0x23e   : > { %v5305_v41 = vpop.f32.mrb[1].mxu0 }
 0x23f   : > { %v5306_v43 = vadd.f32 %v5305_v41, %v5304_v39  ;;  %v5307_v44 = vpop.f32.mrb[2].mxu0  ;;  %v5332_v45 = vpop.f32.mrb[0].mxu1 }
 0x240   : > { %v5308_v47 = vpop.f32.mrb[3].mxu0  ;;  %v5333_v48 = vpop.f32.mrb[1].mxu1 }
 0x241   : > { %v4157_v49 = vadd.f32 %v5306_v43, %v4988_v40  ;;  %v5309_v50 = vadd.f32 %v5308_v47, %v5307_v44  ;;  %v5334_v51 = vadd.f32 %v5333_v48, %v5332_v45  ;;  %v5335_v52 = vpop.f32.mrb[2].mxu1 }
 0x242   : > { %v5336_v54 = vpop.f32.mrb[3].mxu1 }
 0x243   : > { %v4160_v55 = vadd.f32 %v5309_v50, %v4988_v40  ;;  %v4205_v56 = vadd.f32 %v5334_v51, %v4157_v49  ;;  %v5337_v57 = vadd.f32 %v5336_v54, %v5335_v52 }
 0x245   : > { %v4208_v58 = vadd.f32 %v5337_v57, %v4160_v55  ;;  %v5310_v59 = vpop.f32.mrb[4].mxu0 }
 0x246   : > { %v5311_v60 = vpop.f32.mrb[5].mxu0 }
 0x247   : > { %v5312_v62 = vadd.f32 %v5311_v60, %v5310_v59  ;;  %v5313_v63 = vpop.f32.mrb[6].mxu0  ;;  %v5338_v0 = vpop.f32.mrb[4].mxu1 }
 0x248   : > { %v5314_v1 = vpop.f32.mrb[7].mxu0  ;;  %v5339_v2 = vpop.f32.mrb[5].mxu1 }
 0x249   : > { %v4165_v3 = vadd.f32 %v5312_v62, %v4988_v40  ;;  %v5340_v4 = vadd.f32 %v5339_v2, %v5338_v0  ;;  %v5341_v5 = vpop.f32.mrb[6].mxu1 }
 0x24a   : > { %v5342_v6 = vpop.f32.mrb[7].mxu1 }
 0x24b   : > { %v4213_v7 = vadd.f32 %v5340_v4, %v4165_v3 }
 0x25d   : > { %v5360_v8 = vpop.f32.mrb[8].mxu0 }
 0x25e   : > { %v5361_v9 = vpop.f32.mrb[9].mxu0 }
 0x25f   : > { %v5362_v10 = vadd.f32 %v5361_v9, %v5360_v8  ;;  %v5363_v11 = vpop.f32.mrb[10].mxu0  ;;  %v5388_v12 = vpop.f32.mrb[8].mxu1 }
 0x260   : > { %v5364_v13 = vpop.f32.mrb[11].mxu0  ;;  %v5389_v16 = vpop.f32.mrb[9].mxu1 }
 0x261   : > { %v4253_v14 = vadd.f32 %v5362_v10, %v4205_v56  ;;  %v5365_v15 = vadd.f32 %v5364_v13, %v5363_v11  ;;  %v5390_v17 = vadd.f32 %v5389_v16, %v5388_v12  ;;  %v5391_v18 = vpop.f32.mrb[10].mxu1 }
 0x262   : > { %v5392_v20 = vpop.f32.mrb[11].mxu1 }
 0x263   : > { %v4256_v19 = vadd.f32 %v5365_v15, %v4208_v58  ;;  %v4301_v21 = vadd.f32 %v5390_v17, %v4253_v14  ;;  %v5393_v22 = vadd.f32 %v5392_v20, %v5391_v18 }
 0x265   : > { %v4304_v23 = vadd.f32 %v5393_v22, %v4256_v19  ;;  %v5366_v24 = vpop.f32.mrb[12].mxu0 }
 0x266   : > { %v5367_v25 = vpop.f32.mrb[13].mxu0 }
 0x267   : > { %v5368_v26 = vadd.f32 %v5367_v25, %v5366_v24  ;;  %v5394_v27 = vpop.f32.mrb[12].mxu1  ;;  %v5369_v28 = vpop.f32.mrb[14].mxu0 }
 0x268   : > { %v5395_v29 = vpop.f32.mrb[13].mxu1  ;;  %v5370_v30 = vpop.f32.mrb[15].mxu0 }
 0x269   : > { %v4261_v31 = vadd.f32 %v5368_v26, %v4213_v7  ;;  %v5396_v32 = vadd.f32 %v5395_v29, %v5394_v27  ;;  %v5397_v33 = vpop.f32.mrb[14].mxu1 }
 0x26a   : > { %v5398_v34 = vpop.f32.mrb[15].mxu1 }
 0x26b   : > { %v4309_v35 = vadd.f32 %v5396_v32, %v4261_v31 }
 0x27d   : > { %v5416_v36 = vpop.f32.mrb[16].mxu0 }
 0x27e   : > { %v5417_v37 = vpop.f32.mrb[17].mxu0 }
 0x27f   : > { %v5418_v38 = vadd.f32 %v5417_v37, %v5416_v36  ;;  %v5419_v39 = vpop.f32.mrb[18].mxu0  ;;  %v5444_v42 = vpop.f32.mrb[16].mxu1 }
 0x280   : > { %v5420_v40 = vpop.f32.mrb[19].mxu0  ;;  %v5445_v44 = vpop.f32.mrb[17].mxu1 }
 0x281   : > { %v4349_v41 = vadd.f32 %v5418_v38, %v4301_v21  ;;  %v5421_v43 = vadd.f32 %v5420_v40, %v5419_v39  ;;  %v5446_v46 = vadd.f32 %v5445_v44, %v5444_v42  ;;  %v5447_v47 = vpop.f32.mrb[18].mxu1 }
 0x282   : > { %v5448_v48 = vpop.f32.mrb[19].mxu1 }
 0x283   : > { %v4352_v45 = vadd.f32 %v5421_v43, %v4304_v23  ;;  %v4397_v49 = vadd.f32 %v5446_v46, %v4349_v41  ;;  %v5449_v50 = vadd.f32 %v5448_v48, %v5447_v47 }
 0x285   : > { %v4400_v51 = vadd.f32 %v5449_v50, %v4352_v45  ;;  %v5422_v52 = vpop.f32.mrb[20].mxu0 }
 0x286   : > { %v5423_v53 = vpop.f32.mrb[21].mxu0 }
 0x287   : > { %v5424_v54 = vadd.f32 %v5423_v53, %v5422_v52  ;;  %v5450_v55 = vpop.f32.mrb[20].mxu1  ;;  %v5425_v56 = vpop.f32.mrb[22].mxu0 }
 0x288   : > { %v5451_v57 = vpop.f32.mrb[21].mxu1  ;;  %v5426_v58 = vpop.f32.mrb[23].mxu0 }
 0x289   : > { %v4357_v59 = vadd.f32 %v5424_v54, %v4309_v35  ;;  %v5452_v60 = vadd.f32 %v5451_v57, %v5450_v55  ;;  %v5453_v61 = vpop.f32.mrb[22].mxu1 }
 0x28a   : > { %v5454_v62 = vpop.f32.mrb[23].mxu1 }
 0x28b   : > { %v4405_v63 = vadd.f32 %v5452_v60, %v4357_v59 }
 0x29d   : > { %v5472_v0 = vpop.f32.mrb[24].mxu0 }
 0x29e   : > { %v5473_v1 = vpop.f32.mrb[25].mxu0 }
 0x29f   : > { %v5474_v2 = vadd.f32 %v5473_v1, %v5472_v0  ;;  %v5475_v3 = vpop.f32.mrb[26].mxu0  ;;  %v5500_v4 = vpop.f32.mrb[24].mxu1 }
 0x2a0   : > { %v5476_v5 = vpop.f32.mrb[27].mxu0  ;;  %v5501_v8 = vpop.f32.mrb[25].mxu1 }
 0x2a1   : > { %v4445_v6 = vadd.f32 %v5474_v2, %v4397_v49  ;;  %v5477_v7 = vadd.f32 %v5476_v5, %v5475_v3  ;;  %v5502_v9 = vadd.f32 %v5501_v8, %v5500_v4  ;;  %v5503_v10 = vpop.f32.mrb[26].mxu1 }
 0x2a2   : > { %v5504_v12 = vpop.f32.mrb[27].mxu1 }
 0x2a3   : > { %v4448_v11 = vadd.f32 %v5477_v7, %v4400_v51  ;;  %v4493_v13 = vadd.f32 %v5502_v9, %v4445_v6  ;;  %v5505_v14 = vadd.f32 %v5504_v12, %v5503_v10 }
 0x2a5   : > { %v4496_v15 = vadd.f32 %v5505_v14, %v4448_v11  ;;  %v5478_v16 = vpop.f32.mrb[28].mxu0 }
 0x2a6   : > { %v5479_v17 = vpop.f32.mrb[29].mxu0 }
 0x2a7   : > { %v5480_v18 = vadd.f32 %v5479_v17, %v5478_v16  ;;  %v5481_v19 = vpop.f32.mrb[30].mxu0  ;;  %v5506_v20 = vpop.f32.mrb[28].mxu1 }
 0x2a8   : > { %v5482_v21 = vpop.f32.mrb[31].mxu0  ;;  %v5507_v23 = vpop.f32.mrb[29].mxu1 }
 0x2a9   : > { %v4453_v22 = vadd.f32 %v5480_v18, %v4405_v63  ;;  %v5508_v24 = vadd.f32 %v5507_v23, %v5506_v20  ;;  %v5509_v25 = vpop.f32.mrb[30].mxu1 }
 0x2aa   : > { %v5510_v26 = vpop.f32.mrb[31].mxu1 }
 0x2ab   : > { %v4501_v27 = vadd.f32 %v5508_v24, %v4453_v22 }
 0x2bd   : > { %v5528_v28 = vpop.f32.mrb[32].mxu0 }
 0x2be   : > { %v5529_v29 = vpop.f32.mrb[33].mxu0 }
 0x2bf   : > { %v5530_v30 = vadd.f32 %v5529_v29, %v5528_v28  ;;  %v5531_v31 = vpop.f32.mrb[34].mxu0  ;;  %v5556_v32 = vpop.f32.mrb[32].mxu1 }
 0x2c0   : > { %v5532_v33 = vpop.f32.mrb[35].mxu0  ;;  %v5557_v36 = vpop.f32.mrb[33].mxu1 }
 0x2c1   : > { %v4541_v34 = vadd.f32 %v5530_v30, %v4493_v13  ;;  %v5533_v35 = vadd.f32 %v5532_v33, %v5531_v31  ;;  %v5558_v37 = vadd.f32 %v5557_v36, %v5556_v32  ;;  %v5559_v38 = vpop.f32.mrb[34].mxu1 }
 0x2c2   : > { %v5560_v40 = vpop.f32.mrb[35].mxu1 }
 0x2c3   : > { %v4544_v39 = vadd.f32 %v5533_v35, %v4496_v15  ;;  %v4589_v41 = vadd.f32 %v5558_v37, %v4541_v34  ;;  %v5561_v42 = vadd.f32 %v5560_v40, %v5559_v38 }
 0x2c5   : > { %v4592_v43 = vadd.f32 %v5561_v42, %v4544_v39  ;;  %v5534_v44 = vpop.f32.mrb[36].mxu0 }
 0x2c6   : > { %v5535_v45 = vpop.f32.mrb[37].mxu0 }
 0x2c7   : > { %v5536_v46 = vadd.f32 %v5535_v45, %v5534_v44  ;;  %v5562_v47 = vpop.f32.mrb[36].mxu1  ;;  %v5537_v48 = vpop.f32.mrb[38].mxu0 }
 0x2c8   : > { %v5563_v49 = vpop.f32.mrb[37].mxu1  ;;  %v5538_v50 = vpop.f32.mrb[39].mxu0 }
 0x2c9   : > { %v4549_v51 = vadd.f32 %v5536_v46, %v4501_v27  ;;  %v5564_v52 = vadd.f32 %v5563_v49, %v5562_v47  ;;  %v5565_v53 = vpop.f32.mrb[38].mxu1 }
 0x2ca   : > { %v5566_v54 = vpop.f32.mrb[39].mxu1 }
 0x2cb   : > { %v4597_v55 = vadd.f32 %v5564_v52, %v4549_v51 }
 0x2dd   : > { %v5584_v56 = vpop.f32.mrb[40].mxu0 }
 0x2de   : > { %v5585_v57 = vpop.f32.mrb[41].mxu0 }
 0x2df   : > { %v5586_v58 = vadd.f32 %v5585_v57, %v5584_v56  ;;  %v5587_v59 = vpop.f32.mrb[42].mxu0  ;;  %v5612_v62 = vpop.f32.mrb[40].mxu1 }
 0x2e0   : > { %v5588_v60 = vpop.f32.mrb[43].mxu0  ;;  %v5613_v0 = vpop.f32.mrb[41].mxu1 }
 0x2e1   : > { %v4637_v61 = vadd.f32 %v5586_v58, %v4589_v41  ;;  %v5589_v63 = vadd.f32 %v5588_v60, %v5587_v59  ;;  %v5614_v2 = vadd.f32 %v5613_v0, %v5612_v62  ;;  %v5615_v3 = vpop.f32.mrb[42].mxu1 }
 0x2e2   : > { %v5616_v4 = vpop.f32.mrb[43].mxu1 }
 0x2e3   : > { %v4640_v1 = vadd.f32 %v5589_v63, %v4592_v43  ;;  %v4685_v5 = vadd.f32 %v5614_v2, %v4637_v61  ;;  %v5617_v6 = vadd.f32 %v5616_v4, %v5615_v3 }
 0x2e5   : > { %v4688_v7 = vadd.f32 %v5617_v6, %v4640_v1  ;;  %v5590_v8 = vpop.f32.mrb[44].mxu0 }
 0x2e6   : > { %v5591_v9 = vpop.f32.mrb[45].mxu0 }
 0x2e7   : > { %v5592_v10 = vadd.f32 %v5591_v9, %v5590_v8  ;;  %v5618_v11 = vpop.f32.mrb[44].mxu1  ;;  %v5593_v12 = vpop.f32.mrb[46].mxu0 }
 0x2e8   : > { %v5619_v13 = vpop.f32.mrb[45].mxu1  ;;  %v5594_v14 = vpop.f32.mrb[47].mxu0 }
 0x2e9   : > { %v4645_v15 = vadd.f32 %v5592_v10, %v4597_v55  ;;  %v5620_v16 = vadd.f32 %v5619_v13, %v5618_v11  ;;  %v5621_v17 = vpop.f32.mrb[46].mxu1 }
 0x2ea   : > { %v5622_v18 = vpop.f32.mrb[47].mxu1 }
 0x2eb   : > { %v4693_v19 = vadd.f32 %v5620_v16, %v4645_v15 }
 0x2fd   : > { %v5640_v20 = vpop.f32.mrb[48].mxu0 }
 0x2fe   : > { %v5641_v21 = vpop.f32.mrb[49].mxu0 }
 0x2ff   : > { %v5642_v22 = vadd.f32 %v5641_v21, %v5640_v20  ;;  %v5643_v23 = vpop.f32.mrb[50].mxu0  ;;  %v5668_v24 = vpop.f32.mrb[48].mxu1 }
 0x300   : > { %v5644_v25 = vpop.f32.mrb[51].mxu0  ;;  %v5669_v28 = vpop.f32.mrb[49].mxu1 }
 0x301   : > { %v4733_v26 = vadd.f32 %v5642_v22, %v4685_v5  ;;  %v5645_v27 = vadd.f32 %v5644_v25, %v5643_v23  ;;  %v5670_v29 = vadd.f32 %v5669_v28, %v5668_v24  ;;  %v5671_v30 = vpop.f32.mrb[50].mxu1 }
 0x302   : > { %v5672_v32 = vpop.f32.mrb[51].mxu1 }
 0x303   : > { %v4736_v31 = vadd.f32 %v5645_v27, %v4688_v7  ;;  %v5673_v33 = vadd.f32 %v5672_v32, %v5671_v30  ;;  %v4781_v34 = vadd.f32 %v5670_v29, %v4733_v26 }
 0x305   : > { %v5646_v35 = vpop.f32.mrb[52].mxu0  ;;  %v4784_v37 = vadd.f32 %v5673_v33, %v4736_v31 }
 0x306   : > { %v5647_v36 = vpop.f32.mrb[53].mxu0 }
 0x307   : > { %v5648_v38 = vadd.f32 %v5647_v36, %v5646_v35  ;;  %v5649_v39 = vpop.f32.mrb[54].mxu0  ;;  %v5674_v40 = vpop.f32.mrb[52].mxu1 }
 0x308   : > { %v5650_v41 = vpop.f32.mrb[55].mxu0  ;;  %v5675_v43 = vpop.f32.mrb[53].mxu1 }
 0x309   : > { %v4741_v42 = vadd.f32 %v5648_v38, %v4693_v19  ;;  %v5676_v44 = vadd.f32 %v5675_v43, %v5674_v40  ;;  %v5677_v45 = vpop.f32.mrb[54].mxu1 }
 0x30a   : > { %v5678_v46 = vpop.f32.mrb[55].mxu1 }
 0x30b   : > { %v4789_v47 = vadd.f32 %v5676_v44, %v4741_v42 }
 0x30d   : > { %v5687_v48 = vpop.f32.mrb[56].mxu0 }
 0x30e   : > { %v4837_v49 = vadd.f32 %v5687_v48, %v4789_v47  ;;  %v4828_v50 = vpop.f32.mrb[57].mxu0 }
 0x30f   : > { %v4829_v51 = vadd.f32 %v4828_v50, %v4781_v34  ;;  %v5688_v52 = vpop.f32.mrb[58].mxu0 }
 0x310   : > { %v4844_v53 = vmax.f32 %v4837_v49, 0.0  ;;  %v4831_v54 = vpop.f32.mrb[59].mxu0 }
 0x311   : > { %v4832_v55 = vadd.f32 %v4831_v54, %v4784_v37  ;;  %v4842_v57 = vmax.f32 %v4829_v51, 0.0  ;;  %4867 = sbr.rel (!%p6088_p5) target bundleno = 800 (0x320), region = 77 }
 0x312   : > { %v5282_v56 = vpack.c.bf16 %v4844_v53, %v4844_v53 }
 0x313   : > { %v4843_v58 = vmax.f32 %v4832_v55, 0.0 }
 0x314   : > { %4860 = vst [vmem:[%s2012_s26 + $0x8] sm:$0x1] %v5282_v56 }
 0x315   : > { %v5286_v59 = vpack.c.bf16 %v4843_v58, %v4842_v57 }
 0x317   : > { %5287 = vst [vmem:[%s2012_s26] sm:$0xff] %v5286_v59  }
 0x31b   : > { %v4889_v62 = vld [vmem:[%s2012_s26 + $0x8] sm:$0xf] }
 0x31c   : > { %4890 = vst [vmem:[%s4869_s29 + $0x38] sm:$0xf] %v4889_v62 }
 0x31e   : > { %v4885_v60 = vld [vmem:[%s2012_s26] sm:$0xf]  ;;  %v4887_v61 = vld [vmem:[%s2012_s26 + $0x4] sm:$0xf] }
 0x31f   : > { %4886 = vst [vmem:[%s4869_s29] sm:$0xf] %v4885_v60  ;;  %4888 = vst [vmem:[%s4869_s29 + $0x1c] sm:$0xf] %v4887_v61 }
 0x320 PF: > { %p10_p11 = scmp.ge.s32.totalorder %s6076_s16, 9   ;;  %s7396_s12 = smov %s6031_s13 }
 0x321   : > { %s7397_s13 = smov %s6086_s19  ;;  %s7398_s14 = smov %s6076_s16 }
 0x322   :  { %12 = sbr.rel (!%p10_p11) target bundleno = 2 (0x2), region = 152 }

// kernel: my_lenet_mat_stoch.7
= control target key start
LH: loop header
LB: loop body
LE: loop exit
PB: predicated region body
PF: predicated region fallthrough
CT: control target
= control target key end

     0   :  { %v943_v29 = vlaneseq  ;;  %v6796_v35 = vmov 1966171168   ;;  %s8307_s0 = inlined_call_operand.vmem [shape: bf16[2,7200], index: 0, kind: input, shape index: {}]   ;;  %s8308_s1 = inlined_call_operand.vmem [shape: bf16[7200,128], index: 1, kind: input, shape index: {}]   ;;  %s8309_s2 = inlined_call_operand.vmem [shape: f32[1,128], index: 2, kind: input, shape index: {}]   ;;  %s8310_s3 = inlined_call_operand.hbm [shape: f32[2,128], index: 3, kind: output, shape index: {}]  }
   0x1   :  { %v6315_v0 = vld [vmem:[%s8308_s1 + $0x40] sm:$0xff]   ;;  %v6319_v4 = vld [vmem:[%s8308_s1 + $0x48] sm:$0xff]   ;;  %v6323_v8 = vld [vmem:[%s8308_s1 + $0x50] sm:$0xff]   ;;  %v941_v36 = vunpack.c.l.s4 %v6796_v35 }
   0x2   :  { %v6316_v1 = vld [vmem:[%s8308_s1] sm:$0xff]   ;;  %5684 = vmatprep.subr.bf16.mxu0 %v6315_v0  ;;  %v6320_v5 = vld [vmem:[%s8308_s1 + $0x8] sm:$0xff]   ;;  %v6324_v9 = vld [vmem:[%s8308_s1 + $0x10] sm:$0xff]   ;;  %v944_v33 = vshrl.u32 %v943_v29, 7 }
   0x3   :  { %v6317_v2 = vld [vmem:[%s8308_s1 + $0xc0] sm:$0xff]   ;;  %5685 = vmatpush3.bf16.msra.mxu0 %v6316_v1  ;;  %v6321_v6 = vld [vmem:[%s8308_s1 + $0xc8] sm:$0xff]   ;;  %v6325_v10 = vld [vmem:[%s8308_s1 + $0xd0] sm:$0xff]   ;;  %v942_v39 = vunpack.c.0.s8 %v941_v36 }
   0x4   :  { %v6318_v3 = vld [vmem:[%s8308_s1 + $0x80] sm:$0xff]   ;;  %5706 = vmatprep.subr.bf16.mxu1 %v6317_v2  ;;  %5686 = vmatprep.subr.bf16.mxu0 %v6319_v4  ;;  %v6322_v7 = vld [vmem:[%s8308_s1 + $0x88] sm:$0xff]   ;;  %v6326_v11 = vld [vmem:[%s8308_s1 + $0x90] sm:$0xff]  }
   0x5   :  { %5707 = vmatpush3.bf16.msra.mxu1 %v6318_v3  ;;  %v6327_v12 = vld [vmem:[%s8308_s1 + $0x58] sm:$0xff]   ;;  %v6331_v16 = vld [vmem:[%s8308_s1 + $0x60] sm:$0xff]   ;;  %v6335_v20 = vld [vmem:[%s8308_s1 + $0x68] sm:$0xff]   ;;  %v6925_v41 = vsub.s32 %v942_v39, %v944_v33 }
   0x6   :  { %5708 = vmatprep.subr.bf16.mxu1 %v6321_v6  ;;  %v6328_v13 = vld [vmem:[%s8308_s1 + $0x18] sm:$0xff]   ;;  %v6332_v17 = vld [vmem:[%s8308_s1 + $0x20] sm:$0xff]   ;;  %v6336_v21 = vld [vmem:[%s8308_s1 + $0x28] sm:$0xff]  }
   0x7   :  { %5687 = vmatpush3.bf16.msra.mxu0 %v6320_v5  ;;  %v6329_v14 = vld [vmem:[%s8308_s1 + $0xd8] sm:$0xff]   ;;  %v6333_v18 = vld [vmem:[%s8308_s1 + $0xe0] sm:$0xff]   ;;  %v6337_v22 = vld [vmem:[%s8308_s1 + $0xe8] sm:$0xff]  }
   0x8   :  { %5688 = vmatprep.subr.bf16.mxu0 %v6323_v8  ;;  %v6330_v15 = vld [vmem:[%s8308_s1 + $0x98] sm:$0xff]   ;;  %v6334_v19 = vld [vmem:[%s8308_s1 + $0xa0] sm:$0xff]   ;;  %v6338_v23 = vld [vmem:[%s8308_s1 + $0xa8] sm:$0xff]  }
   0x9   :  { %5709 = vmatpush3.bf16.msra.mxu1 %v6322_v7  ;;  %v6339_v24 = vld [vmem:[%s8308_s1 + $0x70] sm:$0xff]   ;;  %v6343_v28 = vld [vmem:[%s8308_s1 + $0x78] sm:$0xff]   ;;  %v6348_v34 = vld [vmem:[%s8308_s1 + $0x140] sm:$0xff]  }
   0xa   :  { %5710 = vmatprep.subr.bf16.mxu1 %v6325_v10  ;;  %v6340_v25 = vld [vmem:[%s8308_s1 + $0x30] sm:$0xff]   ;;  %v6344_v30 = vld [vmem:[%s8308_s1 + $0x38] sm:$0xff]   ;;  %v16_v37 = vld [vmem:[%s8307_s0] sm:$0xff] }
   0xb   :  { %5689 = vmatpush3.bf16.msra.mxu0 %v6324_v9  ;;  %v6341_v26 = vld [vmem:[%s8308_s1 + $0xf0] sm:$0xff]   ;;  %v6345_v31 = vld [vmem:[%s8308_s1 + $0xf8] sm:$0xff]   ;;  %v939_v38 = vcombine.high %v16_v37, %v16_v37  ;;  %v6350_v40 = vld [vmem:[%s8308_s1 + $0x1c0] sm:$0xff]   ;;  %v946_v42 = vrot.slane %v16_v37, %v6925_v41 }
   0xc   :  { %5690 = vmatprep.subr.bf16.mxu0 %v6327_v12  ;;  %v6342_v27 = vld [vmem:[%s8308_s1 + $0xb0] sm:$0xff]   ;;  %v6346_v32 = vld [vmem:[%s8308_s1 + $0xb8] sm:$0xff]   ;;  %v6349_v47 = vld [vmem:[%s8308_s1 + $0x100] sm:$0xff]  }
   0xd   :  { %5711 = vmatpush3.bf16.msra.mxu1 %v6326_v11  ;;  %v6929_v43 = vrot.slane %v939_v38, %v6925_v41  ;;  %v954_v44 = vcombine.high %v946_v42, %v946_v42  ;;  %v962_v45 = vrot.slane %v946_v42, %v6925_v41  ;;  %v6351_v49 = vld [vmem:[%s8308_s1 + $0x180] sm:$0xff]   ;;  %v6352_v52 = vld [vmem:[%s8308_s1 + $0x148] sm:$0xff]   ;;  %v6356_v58 = vld [vmem:[%s8308_s1 + $0x150] sm:$0xff]  }
   0xe   :  { %5712 = vmatprep.subr.bf16.mxu1 %v6329_v14  ;;  %v6353_v54 = vld [vmem:[%s8308_s1 + $0x108] sm:$0xff]   ;;  %v6357_v59 = vld [vmem:[%s8308_s1 + $0x110] sm:$0xff]   ;;  %v6360_v62 = vld [vmem:[%s8308_s1 + $0x158] sm:$0xff]  }
   0xf   :  { %5691 = vmatpush3.bf16.msra.mxu0 %v6328_v13  ;;  %v955_v46 = vcombine.high %v6929_v43, %v6929_v43  ;;  %v976_v48 = vrot.slane %v954_v44, %v6925_v41  ;;  %v984_v51 = vcombine.high %v962_v45, %v962_v45  ;;  %v6354_v55 = vld [vmem:[%s8308_s1 + $0x1c8] sm:$0xff]   ;;  %v6358_v60 = vld [vmem:[%s8308_s1 + $0x1d0] sm:$0xff]   ;;  %v6361_v63 = vld [vmem:[%s8308_s1 + $0x118] sm:$0xff]  }
  0x10   :  { %5692 = vmatprep.subr.bf16.mxu0 %v6331_v16  ;;  %v6355_v57 = vld [vmem:[%s8308_s1 + $0x188] sm:$0xff]   ;;  %v6359_v61 = vld [vmem:[%s8308_s1 + $0x190] sm:$0xff]   ;;  %v6362_v0 = vld [vmem:[%s8308_s1 + $0x1d8] sm:$0xff]  }
  0x11   :  { %5713 = vmatpush3.bf16.msra.mxu1 %v6330_v15  ;;  %v983_v50 = vrot.slane %v955_v46, %v6925_v41  ;;  %4088 = vmatprep.mubr.bf16.mxu0 %v976_v48  ;;  %v986_v53 = vcombine.high %v976_v48, %v976_v48  ;;  %v6363_v1 = vld [vmem:[%s8308_s1 + $0x198] sm:$0xff]   ;;  %v6364_v2 = vld [vmem:[%s8308_s1 + $0x160] sm:$0xff]   ;;  %v6368_v6 = vld [vmem:[%s8308_s1 + $0x168] sm:$0xff]  }
  0x12   :  { %5714 = vmatprep.subr.bf16.mxu1 %v6333_v18  ;;  %v6365_v3 = vld [vmem:[%s8308_s1 + $0x120] sm:$0xff]   ;;  %v6369_v7 = vld [vmem:[%s8308_s1 + $0x128] sm:$0xff]   ;;  %v6372_v10 = vld [vmem:[%s8308_s1 + $0x170] sm:$0xff]   ;;  %v969_v18 = vrot.slane %v6929_v43, %v6925_v41 }
  0x13   :  { %5693 = vmatpush3.bf16.msra.mxu0 %v6332_v17  ;;  %v987_v56 = vcombine.high %v983_v50, %v983_v50  ;;  %4128 = vmatprep.mubr.bf16.mxu1 %v986_v53  ;;  %v6366_v4 = vld [vmem:[%s8308_s1 + $0x1e0] sm:$0xff]   ;;  %v6370_v8 = vld [vmem:[%s8308_s1 + $0x1e8] sm:$0xff]   ;;  %v6373_v11 = vld [vmem:[%s8308_s1 + $0x130] sm:$0xff]  }
  0x14   :  { %5694 = vmatprep.subr.bf16.mxu0 %v6335_v20  ;;  %v6367_v5 = vld [vmem:[%s8308_s1 + $0x1a0] sm:$0xff]   ;;  %v6371_v9 = vld [vmem:[%s8308_s1 + $0x1a8] sm:$0xff]   ;;  %v6374_v12 = vld [vmem:[%s8308_s1 + $0x1f0] sm:$0xff]  }
  0x15   :  { %5715 = vmatpush3.bf16.msra.mxu1 %v6334_v19  ;;  %v6375_v13 = vld [vmem:[%s8308_s1 + $0x1b0] sm:$0xff]   ;;  %v6376_v14 = vld [vmem:[%s8308_s1 + $0x178] sm:$0xff]   ;;  %v6380_v19 = vld [vmem:[%s8308_s1 + $0x240] sm:$0xff]  }
  0x16   :  { %5716 = vmatprep.subr.bf16.mxu1 %v6337_v22  ;;  %v6377_v15 = vld [vmem:[%s8308_s1 + $0x138] sm:$0xff]   ;;  %v6381_v20 = vld [vmem:[%s8308_s1 + $0x200] sm:$0xff]   ;;  %v6389_v29 = vld [vmem:[%s8308_s1 + $0x210] sm:$0xff]  }
  0x17   :  { %5695 = vmatpush3.bf16.msra.mxu0 %v6336_v21  ;;  %v6378_v16 = vld [vmem:[%s8308_s1 + $0x1f8] sm:$0xff]   ;;  %v6382_v21 = vld [vmem:[%s8308_s1 + $0x2c0] sm:$0xff]   ;;  %v6401_v42 = vld [vmem:[%s8308_s1 + $0x228] sm:$0xff]  }
  0x18   :  { %5696 = vmatprep.subr.bf16.mxu0 %v6339_v24  ;;  %v6379_v17 = vld [vmem:[%s8308_s1 + $0x1b8] sm:$0xff]   ;;  %v6383_v22 = vld [vmem:[%s8308_s1 + $0x280] sm:$0xff]   ;;  %v6384_v24 = vld [vmem:[%s8308_s1 + $0x248] sm:$0xff]  }
  0x19   :  { %5717 = vmatpush3.bf16.msra.mxu1 %v6338_v23  ;;  %v985_v23 = vcombine.high %v969_v18, %v969_v18  ;;  %v6393_v33 = vld [vmem:[%s8308_s1 + $0x218] sm:$0xff]   ;;  %v6396_v36 = vld [vmem:[%s8308_s1 + $0x260] sm:$0xff]   ;;  %v6402_v43 = vld [vmem:[%s8308_s1 + $0x2e8] sm:$0xff]  }
  0x1a   :  { %5718 = vmatprep.subr.bf16.mxu1 %v6341_v26  ;;  %v6386_v26 = vld [vmem:[%s8308_s1 + $0x2c8] sm:$0xff]   ;;  %v6395_v35 = vld [vmem:[%s8308_s1 + $0x298] sm:$0xff]   ;;  %v6397_v37 = vld [vmem:[%s8308_s1 + $0x220] sm:$0xff]  }
  0x1b   :  { %5697 = vmatpush3.bf16.msra.mxu0 %v6340_v25  ;;  %v6385_v25 = vld [vmem:[%s8308_s1 + $0x208] sm:$0xff]   ;;  %v6398_v38 = vld [vmem:[%s8308_s1 + $0x2e0] sm:$0xff]  }
  0x1c   :  { %5698 = vmatprep.subr.bf16.mxu0 %v6343_v28  ;;  %v6388_v28 = vld [vmem:[%s8308_s1 + $0x250] sm:$0xff]   ;;  %v6399_v39 = vld [vmem:[%s8308_s1 + $0x2a0] sm:$0xff]   ;;  %v6403_v44 = vld [vmem:[%s8308_s1 + $0x2a8] sm:$0xff]  }
  0x1d   :  { %5719 = vmatpush3.bf16.msra.mxu1 %v6342_v27  ;;  %v6387_v27 = vld [vmem:[%s8308_s1 + $0x288] sm:$0xff]  }
  0x1e   :  { %5720 = vmatprep.subr.bf16.mxu1 %v6345_v31  ;;  %v6391_v31 = vld [vmem:[%s8308_s1 + $0x290] sm:$0xff]   ;;  %v17_v46 = vld [vmem:[%s8307_s0 + $0x8] sm:$0xff] }
  0x1f   :  { %5699 = vmatpush3.bf16.msra.mxu0 %v6344_v30  ;;  %v6390_v30 = vld [vmem:[%s8308_s1 + $0x2d0] sm:$0xff]   ;;  %v995_v48 = vrot.slane %v17_v46, %v6925_v41 }
  0x20   :  { %5728 = vmatprep.subr.bf16.mxu0 %v6348_v34  ;;  %v6394_v34 = vld [vmem:[%s8308_s1 + $0x2d8] sm:$0xff]  }
  0x21   :  { %5721 = vmatpush3.bf16.msra.mxu1 %v6346_v32  ;;  %v6392_v32 = vld [vmem:[%s8308_s1 + $0x258] sm:$0xff]  }
  0x22   :  { %5750 = vmatprep.subr.bf16.mxu1 %v6350_v40  ;;  %4089 = vmatmul.mubr.bf16.vlgmr.msra.gmra.mrb[0].mxu0 %v962_v45  ;;  %v6400_v40 = vld [vmem:[%s8308_s1 + $0x268] sm:$0xff]   ;;  %v6404_v45 = vld [vmem:[%s8308_s1 + $0x270] sm:$0xff]  }
  0x23   :  { %5729 = vmatpush3.bf16.msra.mxu0 %v6349_v47  ;;  %4168 = vmatprep.mubr.bf16.mxu0 %v983_v50  ;;  %v6405_v47 = vld [vmem:[%s8308_s1 + $0x230] sm:$0xff]  }
  0x24   :  { %4129 = vmatmul.mubr.bf16.vlgmr.msra.gmra.mrb[0].mxu1 %v984_v51  ;;  %5730 = vmatprep.subr.bf16.mxu0 %v6352_v52  ;;  %v6406_v50 = vld [vmem:[%s8308_s1 + $0x2f0] sm:$0xff]   ;;  %v1003_v52 = vcombine.high %v995_v48, %v995_v48 }
  0x25   :  { %5751 = vmatpush3.bf16.msra.mxu1 %v6351_v49  ;;  %4208 = vmatprep.mubr.bf16.mxu1 %v987_v56  ;;  %v988_v49 = vcombine.high %v17_v46, %v17_v46  ;;  %v6407_v51 = vld [vmem:[%s8308_s1 + $0x2b0] sm:$0xff]  }
  0x26   :  { %5752 = vmatprep.subr.bf16.mxu1 %v6354_v55  ;;  %v6409_v55 = vld [vmem:[%s8308_s1 + $0x238] sm:$0xff]   ;;  %v1025_v56 = vrot.slane %v1003_v52, %v6925_v41  ;;  %v6455_v46 = vld [vmem:[%s8308_s1 + $0x4d0] sm:$0xff]   ;;  %v6461_v52 = vld [vmem:[%s8308_s1 + $0x460] sm:$0xff]  }
  0x27   :  { %5731 = vmatpush3.bf16.msra.mxu0 %v6353_v54  ;;  %v7117_v53 = vrot.slane %v988_v49, %v6925_v41  ;;  %v6408_v54 = vld [vmem:[%s8308_s1 + $0x278] sm:$0xff]  }
  0x28   :  { %5732 = vmatprep.subr.bf16.mxu0 %v6356_v58  ;;  %v6410_v58 = vld [vmem:[%s8308_s1 + $0x2f8] sm:$0xff]  }
  0x29   :  { %5753 = vmatpush3.bf16.msra.mxu1 %v6355_v57  ;;  %v1004_v57 = vcombine.high %v7117_v53, %v7117_v53  ;;  %v6458_v49 = vld [vmem:[%s8308_s1 + $0x418] sm:$0xff]  }
  0x2a   :  { %5754 = vmatprep.subr.bf16.mxu1 %v6358_v60  ;;  %v1035_v60 = vcombine.high %v1025_v56, %v1025_v56 }
  0x2b   :  { %5733 = vmatpush3.bf16.msra.mxu0 %v6357_v59  ;;  %v6411_v59 = vld [vmem:[%s8308_s1 + $0x2b8] sm:$0xff]  }
  0x2c   :  { %5734 = vmatprep.subr.bf16.mxu0 %v6360_v62  ;;  %v6412_v62 = vld [vmem:[%s8308_s1 + $0x340] sm:$0xff]  }
  0x2d   :  { %5755 = vmatpush3.bf16.msra.mxu1 %v6359_v61  ;;  %v1011_v61 = vrot.slane %v995_v48, %v6925_v41  ;;  %v6457_v48 = vld [vmem:[%s8308_s1 + $0x458] sm:$0xff]  }
  0x2e   :  { %5756 = vmatprep.subr.bf16.mxu1 %v6362_v0  ;;  %v1032_v0 = vrot.slane %v1004_v57, %v6925_v41  ;;  %v6466_v57 = vld [vmem:[%s8308_s1 + $0x428] sm:$0xff]  }
  0x2f   :  { %5735 = vmatpush3.bf16.msra.mxu0 %v6361_v63  ;;  %v6413_v63 = vld [vmem:[%s8308_s1 + $0x300] sm:$0xff]  }
  0x30   :  { %5736 = vmatprep.subr.bf16.mxu0 %v6364_v2  ;;  %v6415_v2 = vld [vmem:[%s8308_s1 + $0x380] sm:$0xff]  }
  0x31   :  { %5757 = vmatpush3.bf16.msra.mxu1 %v6363_v1  ;;  %v6414_v1 = vld [vmem:[%s8308_s1 + $0x3c0] sm:$0xff]  }
  0x32   :  { %5758 = vmatprep.subr.bf16.mxu1 %v6366_v4  ;;  %v6416_v4 = vld [vmem:[%s8308_s1 + $0x348] sm:$0xff]  }
  0x33   :  { %5737 = vmatpush3.bf16.msra.mxu0 %v6365_v3  ;;  %v1033_v3 = vcombine.high %v1011_v61, %v1011_v61 }
  0x34   :  { %5738 = vmatprep.subr.bf16.mxu0 %v6368_v6  ;;  %v1036_v6 = vcombine.high %v1032_v0, %v1032_v0 }
  0x35   :  { %5759 = vmatpush3.bf16.msra.mxu1 %v6367_v5  ;;  %v6417_v5 = vld [vmem:[%s8308_s1 + $0x308] sm:$0xff]  }
  0x36   :  { %5760 = vmatprep.subr.bf16.mxu1 %v6370_v8  ;;  %v6419_v8 = vld [vmem:[%s8308_s1 + $0x388] sm:$0xff]  }
  0x37   :  { %5739 = vmatpush3.bf16.msra.mxu0 %v6369_v7  ;;  %v6418_v7 = vld [vmem:[%s8308_s1 + $0x3c8] sm:$0xff]  }
  0x38   :  { %5740 = vmatprep.subr.bf16.mxu0 %v6372_v10  ;;  %v6421_v10 = vld [vmem:[%s8308_s1 + $0x310] sm:$0xff]  }
  0x39   :  { %5761 = vmatpush3.bf16.msra.mxu1 %v6371_v9  ;;  %v6420_v9 = vld [vmem:[%s8308_s1 + $0x350] sm:$0xff]  }
  0x3a   :  { %5762 = vmatprep.subr.bf16.mxu1 %v6374_v12  ;;  %v6423_v12 = vld [vmem:[%s8308_s1 + $0x390] sm:$0xff]  }
  0x3b   :  { %5741 = vmatpush3.bf16.msra.mxu0 %v6373_v11  ;;  %v6422_v11 = vld [vmem:[%s8308_s1 + $0x3d0] sm:$0xff]  }
  0x3c   :  { %5742 = vmatprep.subr.bf16.mxu0 %v6376_v14  ;;  %v6425_v14 = vld [vmem:[%s8308_s1 + $0x318] sm:$0xff]  }
  0x3d   :  { %5763 = vmatpush3.bf16.msra.mxu1 %v6375_v13  ;;  %v6424_v13 = vld [vmem:[%s8308_s1 + $0x358] sm:$0xff]  }
  0x3e   :  { %5764 = vmatprep.subr.bf16.mxu1 %v6378_v16  ;;  %v6427_v16 = vld [vmem:[%s8308_s1 + $0x398] sm:$0xff]  }
  0x3f   :  { %5743 = vmatpush3.bf16.msra.mxu0 %v6377_v15  ;;  %v6426_v15 = vld [vmem:[%s8308_s1 + $0x3d8] sm:$0xff]  }
  0x40   :  { %5772 = vmatprep.subr.bf16.mxu0 %v6380_v19  ;;  %v6430_v19 = vld [vmem:[%s8308_s1 + $0x3e0] sm:$0xff]  }
  0x41   :  { %5765 = vmatpush3.bf16.msra.mxu1 %v6379_v17  ;;  %v6428_v17 = vld [vmem:[%s8308_s1 + $0x360] sm:$0xff]  }
  0x42   :  { %4169 = vmatmul.mubr.bf16.vlgmr.msra.gmra.mrb[4].mxu0 %v969_v18  ;;  %5794 = vmatprep.subr.bf16.mxu1 %v6382_v21  ;;  %v6429_v18 = vld [vmem:[%s8308_s1 + $0x320] sm:$0xff]   ;;  %v6432_v21 = vld [vmem:[%s8308_s1 + $0x368] sm:$0xff]  }
  0x43   :  { %5773 = vmatpush3.bf16.msra.mxu0 %v6381_v20  ;;  %4248 = vmatprep.mubr.bf16.mxu0 %v1025_v56  ;;  %v6431_v20 = vld [vmem:[%s8308_s1 + $0x3a0] sm:$0xff]   ;;  %v6465_v56 = vld [vmem:[%s8308_s1 + $0x468] sm:$0xff]  }
  0x44   :  { %4209 = vmatmul.mubr.bf16.vlgmr.msra.gmra.mrb[4].mxu1 %v985_v23  ;;  %5774 = vmatprep.subr.bf16.mxu0 %v6384_v24  ;;  %v6434_v23 = vld [vmem:[%s8308_s1 + $0x3e8] sm:$0xff]  }
  0x45   :  { %5795 = vmatpush3.bf16.msra.mxu1 %v6383_v22  ;;  %4288 = vmatprep.mubr.bf16.mxu1 %v1035_v60  ;;  %v6433_v22 = vld [vmem:[%s8308_s1 + $0x328] sm:$0xff]   ;;  %v6469_v60 = vld [vmem:[%s8308_s1 + $0x470] sm:$0xff]  }
  0x46   :  { %5796 = vmatprep.subr.bf16.mxu1 %v6386_v26  ;;  %v6435_v24 = vld [vmem:[%s8308_s1 + $0x3a8] sm:$0xff]   ;;  %v6437_v26 = vld [vmem:[%s8308_s1 + $0x330] sm:$0xff]  }
  0x47   :  { %5775 = vmatpush3.bf16.msra.mxu0 %v6385_v25  ;;  %v6436_v25 = vld [vmem:[%s8308_s1 + $0x370] sm:$0xff]  }
  0x48   :  { %5776 = vmatprep.subr.bf16.mxu0 %v6388_v28  ;;  %v6439_v28 = vld [vmem:[%s8308_s1 + $0x3b0] sm:$0xff]  }
  0x49   :  { %5797 = vmatpush3.bf16.msra.mxu1 %v6387_v27  ;;  %v6438_v27 = vld [vmem:[%s8308_s1 + $0x3f0] sm:$0xff]  }
  0x4a   :  { %5798 = vmatprep.subr.bf16.mxu1 %v6390_v30  ;;  %v6441_v30 = vld [vmem:[%s8308_s1 + $0x338] sm:$0xff]  }
  0x4b   :  { %5777 = vmatpush3.bf16.msra.mxu0 %v6389_v29  ;;  %v6440_v29 = vld [vmem:[%s8308_s1 + $0x378] sm:$0xff]  }
  0x4c   :  { %5778 = vmatprep.subr.bf16.mxu0 %v6392_v32  ;;  %v6443_v32 = vld [vmem:[%s8308_s1 + $0x3b8] sm:$0xff]  }
  0x4d   :  { %5799 = vmatpush3.bf16.msra.mxu1 %v6391_v31  ;;  %v6442_v31 = vld [vmem:[%s8308_s1 + $0x3f8] sm:$0xff]  }
  0x4e   :  { %5800 = vmatprep.subr.bf16.mxu1 %v6394_v34  ;;  %v6445_v34 = vld [vmem:[%s8308_s1 + $0x440] sm:$0xff]  }
  0x4f   :  { %5779 = vmatpush3.bf16.msra.mxu0 %v6393_v33  ;;  %v1018_v33 = vrot.slane %v7117_v53, %v6925_v41  ;;  %v6462_v53 = vld [vmem:[%s8308_s1 + $0x420] sm:$0xff]  }
  0x50   :  { %5780 = vmatprep.subr.bf16.mxu0 %v6396_v36  ;;  %v6447_v36 = vld [vmem:[%s8308_s1 + $0x4c0] sm:$0xff]  }
  0x51   :  { %5801 = vmatpush3.bf16.msra.mxu1 %v6395_v35  ;;  %v6446_v35 = vld [vmem:[%s8308_s1 + $0x400] sm:$0xff]  }
  0x52   :  { %5802 = vmatprep.subr.bf16.mxu1 %v6398_v38  ;;  %v1034_v38 = vcombine.high %v1018_v33, %v1018_v33 }
  0x53   :  { %5781 = vmatpush3.bf16.msra.mxu0 %v6397_v37  ;;  %v6448_v37 = vld [vmem:[%s8308_s1 + $0x480] sm:$0xff]  }
  0x54   :  { %5782 = vmatprep.subr.bf16.mxu0 %v6400_v40  ;;  %v6450_v40 = vld [vmem:[%s8308_s1 + $0x408] sm:$0xff]  }
  0x55   :  { %5803 = vmatpush3.bf16.msra.mxu1 %v6399_v39  ;;  %v6449_v39 = vld [vmem:[%s8308_s1 + $0x448] sm:$0xff]  }
  0x56   :  { %5804 = vmatprep.subr.bf16.mxu1 %v6402_v43  ;;  %v6452_v43 = vld [vmem:[%s8308_s1 + $0x488] sm:$0xff]  }
  0x57   :  { %5783 = vmatpush3.bf16.msra.mxu0 %v6401_v42  ;;  %v6451_v42 = vld [vmem:[%s8308_s1 + $0x4c8] sm:$0xff]  }
  0x58   :  { %5784 = vmatprep.subr.bf16.mxu0 %v6404_v45  ;;  %v6454_v45 = vld [vmem:[%s8308_s1 + $0x410] sm:$0xff]  }
  0x59   :  { %5805 = vmatpush3.bf16.msra.mxu1 %v6403_v44  ;;  %v6453_v44 = vld [vmem:[%s8308_s1 + $0x450] sm:$0xff]  }
  0x5a   :  { %5806 = vmatprep.subr.bf16.mxu1 %v6406_v50  ;;  %v6459_v50 = vld [vmem:[%s8308_s1 + $0x4d8] sm:$0xff]  }
  0x5b   :  { %5785 = vmatpush3.bf16.msra.mxu0 %v6405_v47  ;;  %v6456_v47 = vld [vmem:[%s8308_s1 + $0x490] sm:$0xff]  }
  0x5c   :  { %5786 = vmatprep.subr.bf16.mxu0 %v6408_v54  ;;  %v6463_v54 = vld [vmem:[%s8308_s1 + $0x4e0] sm:$0xff]  }
  0x5d   :  { %5807 = vmatpush3.bf16.msra.mxu1 %v6407_v51  ;;  %v6460_v51 = vld [vmem:[%s8308_s1 + $0x498] sm:$0xff]  }
  0x5e   :  { %5808 = vmatprep.subr.bf16.mxu1 %v6410_v58  ;;  %v6467_v58 = vld [vmem:[%s8308_s1 + $0x4e8] sm:$0xff]  }
  0x5f   :  { %5787 = vmatpush3.bf16.msra.mxu0 %v6409_v55  ;;  %v6464_v55 = vld [vmem:[%s8308_s1 + $0x4a0] sm:$0xff]  }
  0x60   :  { %5816 = vmatprep.subr.bf16.mxu0 %v6412_v62  ;;  %v6470_v62 = vld [vmem:[%s8308_s1 + $0x430] sm:$0xff]  }
  0x61   :  { %5809 = vmatpush3.bf16.msra.mxu1 %v6411_v59  ;;  %v6468_v59 = vld [vmem:[%s8308_s1 + $0x4a8] sm:$0xff]  }
  0x62   :  { %4249 = vmatmul.mubr.bf16.vlgmr.msra.gmra.mrb[8].mxu0 %v1011_v61  ;;  %5838 = vmatprep.subr.bf16.mxu1 %v6414_v1  ;;  %v18_v61 = vld [vmem:[%s8307_s0 + $0x10] sm:$0xff] }
  0x63   :  { %5817 = vmatpush3.bf16.msra.mxu0 %v6413_v63  ;;  %4328 = vmatprep.mubr.bf16.mxu0 %v1032_v0  ;;  %v1044_v63 = vrot.slane %v18_v61, %v6925_v41  ;;  %v1037_v0 = vcombine.high %v18_v61, %v18_v61  ;;  %v6471_v1 = vld [vmem:[%s8308_s1 + $0x4f0] sm:$0xff]  }
  0x64   :  { %4289 = vmatmul.mubr.bf16.vlgmr.msra.gmra.mrb[8].mxu1 %v1033_v3  ;;  %5818 = vmatprep.subr.bf16.mxu0 %v6416_v4  ;;  %v6520_v61 = vld [vmem:[%s8308_s1 + $0x6d0] sm:$0xff]  }
  0x65   :  { %5839 = vmatpush3.bf16.msra.mxu1 %v6415_v2  ;;  %4368 = vmatprep.mubr.bf16.mxu1 %v1036_v6  ;;  %v6472_v2 = vld [vmem:[%s8308_s1 + $0x4b0] sm:$0xff]   ;;  %v1052_v3 = vcombine.high %v1044_v63, %v1044_v63  ;;  %v7323_v4 = vrot.slane %v1037_v0, %v6925_v41  ;;  %v6474_v6 = vld [vmem:[%s8308_s1 + $0x438] sm:$0xff]  }
  0x66   :  { %5840 = vmatprep.subr.bf16.mxu1 %v6418_v7  ;;  %v6523_v0 = vld [vmem:[%s8308_s1 + $0x618] sm:$0xff]  }
  0x67   :  { %5819 = vmatpush3.bf16.msra.mxu0 %v6417_v5  ;;  %v6473_v5 = vld [vmem:[%s8308_s1 + $0x478] sm:$0xff]   ;;  %v1074_v7 = vrot.slane %v1052_v3, %v6925_v41  ;;  %v6526_v3 = vld [vmem:[%s8308_s1 + $0x660] sm:$0xff]  }
  0x68   :  { %5820 = vmatprep.subr.bf16.mxu0 %v6420_v9  ;;  %v6475_v9 = vld [vmem:[%s8308_s1 + $0x4f8] sm:$0xff]  }
  0x69   :  { %5841 = vmatpush3.bf16.msra.mxu1 %v6419_v8  ;;  %v1053_v8 = vcombine.high %v7323_v4, %v7323_v4 }
  0x6a   :  { %5842 = vmatprep.subr.bf16.mxu1 %v6422_v11  ;;  %v1084_v11 = vcombine.high %v1074_v7, %v1074_v7 }
  0x6b   :  { %5821 = vmatpush3.bf16.msra.mxu0 %v6421_v10  ;;  %v6476_v10 = vld [vmem:[%s8308_s1 + $0x4b8] sm:$0xff]  }
  0x6c   :  { %5822 = vmatprep.subr.bf16.mxu0 %v6424_v13  ;;  %v6477_v13 = vld [vmem:[%s8308_s1 + $0x540] sm:$0xff]  }
  0x6d   :  { %5843 = vmatpush3.bf16.msra.mxu1 %v6423_v12  ;;  %v1060_v12 = vrot.slane %v1044_v63, %v6925_v41  ;;  %v6522_v63 = vld [vmem:[%s8308_s1 + $0x658] sm:$0xff]  }
  0x6e   :  { %5844 = vmatprep.subr.bf16.mxu1 %v6426_v15  ;;  %v1081_v15 = vrot.slane %v1053_v8, %v6925_v41  ;;  %v6531_v8 = vld [vmem:[%s8308_s1 + $0x628] sm:$0xff]  }
  0x6f   :  { %5823 = vmatpush3.bf16.msra.mxu0 %v6425_v14  ;;  %v6478_v14 = vld [vmem:[%s8308_s1 + $0x500] sm:$0xff]  }
  0x70   :  { %5824 = vmatprep.subr.bf16.mxu0 %v6428_v17  ;;  %v6480_v17 = vld [vmem:[%s8308_s1 + $0x580] sm:$0xff]  }
  0x71   :  { %5845 = vmatpush3.bf16.msra.mxu1 %v6427_v16  ;;  %v6479_v16 = vld [vmem:[%s8308_s1 + $0x5c0] sm:$0xff]  }
  0x72   :  { %5846 = vmatprep.subr.bf16.mxu1 %v6430_v19  ;;  %v6481_v19 = vld [vmem:[%s8308_s1 + $0x548] sm:$0xff]  }
  0x73   :  { %5825 = vmatpush3.bf16.msra.mxu0 %v6429_v18  ;;  %v1082_v18 = vcombine.high %v1060_v12, %v1060_v12 }
  0x74   :  { %5826 = vmatprep.subr.bf16.mxu0 %v6432_v21  ;;  %v1085_v21 = vcombine.high %v1081_v15, %v1081_v15 }
  0x75   :  { %5847 = vmatpush3.bf16.msra.mxu1 %v6431_v20  ;;  %v6482_v20 = vld [vmem:[%s8308_s1 + $0x508] sm:$0xff]  }
  0x76   :  { %5848 = vmatprep.subr.bf16.mxu1 %v6434_v23  ;;  %v6484_v23 = vld [vmem:[%s8308_s1 + $0x588] sm:$0xff]  }
  0x77   :  { %5827 = vmatpush3.bf16.msra.mxu0 %v6433_v22  ;;  %v6483_v22 = vld [vmem:[%s8308_s1 + $0x5c8] sm:$0xff]  }
  0x78   :  { %5828 = vmatprep.subr.bf16.mxu0 %v6436_v25  ;;  %v6486_v25 = vld [vmem:[%s8308_s1 + $0x510] sm:$0xff]  }
  0x79   :  { %5849 = vmatpush3.bf16.msra.mxu1 %v6435_v24  ;;  %v6485_v24 = vld [vmem:[%s8308_s1 + $0x550] sm:$0xff]  }
  0x7a   :  { %5850 = vmatprep.subr.bf16.mxu1 %v6438_v27  ;;  %v6488_v27 = vld [vmem:[%s8308_s1 + $0x590] sm:$0xff]  }
  0x7b   :  { %5829 = vmatpush3.bf16.msra.mxu0 %v6437_v26  ;;  %v6487_v26 = vld [vmem:[%s8308_s1 + $0x5d0] sm:$0xff]  }
  0x7c   :  { %5830 = vmatprep.subr.bf16.mxu0 %v6440_v29  ;;  %v6490_v29 = vld [vmem:[%s8308_s1 + $0x518] sm:$0xff]  }
  0x7d   :  { %5851 = vmatpush3.bf16.msra.mxu1 %v6439_v28  ;;  %v6489_v28 = vld [vmem:[%s8308_s1 + $0x558] sm:$0xff]  }
  0x7e   :  { %5852 = vmatprep.subr.bf16.mxu1 %v6442_v31  ;;  %v6492_v31 = vld [vmem:[%s8308_s1 + $0x598] sm:$0xff]  }
  0x7f   :  { %5831 = vmatpush3.bf16.msra.mxu0 %v6441_v30  ;;  %v6491_v30 = vld [vmem:[%s8308_s1 + $0x5d8] sm:$0xff]  }
  0x80   :  { %5860 = vmatprep.subr.bf16.mxu0 %v6445_v34  ;;  %v6495_v34 = vld [vmem:[%s8308_s1 + $0x5e0] sm:$0xff]  }
  0x81   :  { %5853 = vmatpush3.bf16.msra.mxu1 %v6443_v32  ;;  %v6493_v32 = vld [vmem:[%s8308_s1 + $0x560] sm:$0xff]  }
  0x82   :  { %4329 = vmatmul.mubr.bf16.vlgmr.msra.gmra.mrb[12].mxu0 %v1018_v33  ;;  %5882 = vmatprep.subr.bf16.mxu1 %v6447_v36  ;;  %v6494_v33 = vld [vmem:[%s8308_s1 + $0x520] sm:$0xff]   ;;  %v6497_v36 = vld [vmem:[%s8308_s1 + $0x568] sm:$0xff]  }
  0x83   :  { %5861 = vmatpush3.bf16.msra.mxu0 %v6446_v35  ;;  %4408 = vmatprep.mubr.bf16.mxu0 %v1074_v7  ;;  %v6496_v35 = vld [vmem:[%s8308_s1 + $0x5a0] sm:$0xff]   ;;  %v6530_v7 = vld [vmem:[%s8308_s1 + $0x668] sm:$0xff]  }
  0x84   :  { %4369 = vmatmul.mubr.bf16.vlgmr.msra.gmra.mrb[12].mxu1 %v1034_v38  ;;  %5862 = vmatprep.subr.bf16.mxu0 %v6449_v39  ;;  %v6499_v38 = vld [vmem:[%s8308_s1 + $0x5e8] sm:$0xff]  }
  0x85   :  { %5883 = vmatpush3.bf16.msra.mxu1 %v6448_v37  ;;  %4448 = vmatprep.mubr.bf16.mxu1 %v1084_v11  ;;  %v6498_v37 = vld [vmem:[%s8308_s1 + $0x528] sm:$0xff]   ;;  %v6534_v11 = vld [vmem:[%s8308_s1 + $0x670] sm:$0xff]  }
  0x86   :  { %5884 = vmatprep.subr.bf16.mxu1 %v6451_v42  ;;  %v6500_v39 = vld [vmem:[%s8308_s1 + $0x5a8] sm:$0xff]   ;;  %v6502_v42 = vld [vmem:[%s8308_s1 + $0x530] sm:$0xff]  }
  0x87   :  { %5863 = vmatpush3.bf16.msra.mxu0 %v6450_v40  ;;  %v6501_v40 = vld [vmem:[%s8308_s1 + $0x570] sm:$0xff]  }
  0x88   :  { %5864 = vmatprep.subr.bf16.mxu0 %v6453_v44  ;;  %v6504_v44 = vld [vmem:[%s8308_s1 + $0x5b0] sm:$0xff]  }
  0x89   :  { %5885 = vmatpush3.bf16.msra.mxu1 %v6452_v43  ;;  %v6503_v43 = vld [vmem:[%s8308_s1 + $0x5f0] sm:$0xff]  }
  0x8a   :  { %5886 = vmatprep.subr.bf16.mxu1 %v6455_v46  ;;  %v6506_v46 = vld [vmem:[%s8308_s1 + $0x538] sm:$0xff]  }
  0x8b   :  { %5865 = vmatpush3.bf16.msra.mxu0 %v6454_v45  ;;  %v6505_v45 = vld [vmem:[%s8308_s1 + $0x578] sm:$0xff]  }
  0x8c   :  { %5866 = vmatprep.subr.bf16.mxu0 %v6457_v48  ;;  %v6508_v48 = vld [vmem:[%s8308_s1 + $0x5b8] sm:$0xff]  }
  0x8d   :  { %5887 = vmatpush3.bf16.msra.mxu1 %v6456_v47  ;;  %v6507_v47 = vld [vmem:[%s8308_s1 + $0x5f8] sm:$0xff]  }
  0x8e   :  { %5888 = vmatprep.subr.bf16.mxu1 %v6459_v50  ;;  %v6510_v50 = vld [vmem:[%s8308_s1 + $0x640] sm:$0xff]  }
  0x8f   :  { %5867 = vmatpush3.bf16.msra.mxu0 %v6458_v49  ;;  %v1067_v49 = vrot.slane %v7323_v4, %v6925_v41  ;;  %v6527_v4 = vld [vmem:[%s8308_s1 + $0x620] sm:$0xff]  }
  0x90   :  { %5868 = vmatprep.subr.bf16.mxu0 %v6461_v52  ;;  %v6512_v52 = vld [vmem:[%s8308_s1 + $0x6c0] sm:$0xff]  }
  0x91   :  { %5889 = vmatpush3.bf16.msra.mxu1 %v6460_v51  ;;  %v6511_v51 = vld [vmem:[%s8308_s1 + $0x600] sm:$0xff]  }
  0x92   :  { %5890 = vmatprep.subr.bf16.mxu1 %v6463_v54  ;;  %v1083_v54 = vcombine.high %v1067_v49, %v1067_v49 }
  0x93   :  { %5869 = vmatpush3.bf16.msra.mxu0 %v6462_v53  ;;  %v6513_v53 = vld [vmem:[%s8308_s1 + $0x680] sm:$0xff]  }
  0x94   :  { %5870 = vmatprep.subr.bf16.mxu0 %v6465_v56  ;;  %v6515_v56 = vld [vmem:[%s8308_s1 + $0x608] sm:$0xff]  }
  0x95   :  { %5891 = vmatpush3.bf16.msra.mxu1 %v6464_v55  ;;  %v6514_v55 = vld [vmem:[%s8308_s1 + $0x648] sm:$0xff]  }
  0x96   :  { %5892 = vmatprep.subr.bf16.mxu1 %v6467_v58  ;;  %v6517_v58 = vld [vmem:[%s8308_s1 + $0x688] sm:$0xff]  }
  0x97   :  { %5871 = vmatpush3.bf16.msra.mxu0 %v6466_v57  ;;  %v6516_v57 = vld [vmem:[%s8308_s1 + $0x6c8] sm:$0xff]  }
  0x98   :  { %5872 = vmatprep.subr.bf16.mxu0 %v6469_v60  ;;  %v6519_v60 = vld [vmem:[%s8308_s1 + $0x610] sm:$0xff]  }
  0x99   :  { %5893 = vmatpush3.bf16.msra.mxu1 %v6468_v59  ;;  %v6518_v59 = vld [vmem:[%s8308_s1 + $0x650] sm:$0xff]  }
  0x9a   :  { %5894 = vmatprep.subr.bf16.mxu1 %v6471_v1  ;;  %v6524_v1 = vld [vmem:[%s8308_s1 + $0x6d8] sm:$0xff]  }
  0x9b   :  { %5873 = vmatpush3.bf16.msra.mxu0 %v6470_v62  ;;  %v6521_v62 = vld [vmem:[%s8308_s1 + $0x690] sm:$0xff]  }
  0x9c   :  { %5874 = vmatprep.subr.bf16.mxu0 %v6473_v5  ;;  %v6528_v5 = vld [vmem:[%s8308_s1 + $0x6e0] sm:$0xff]  }
  0x9d   :  { %5895 = vmatpush3.bf16.msra.mxu1 %v6472_v2  ;;  %v6525_v2 = vld [vmem:[%s8308_s1 + $0x698] sm:$0xff]  }
  0x9e   :  { %5896 = vmatprep.subr.bf16.mxu1 %v6475_v9  ;;  %v6532_v9 = vld [vmem:[%s8308_s1 + $0x6e8] sm:$0xff]  }
  0x9f   :  { %5875 = vmatpush3.bf16.msra.mxu0 %v6474_v6  ;;  %v6529_v6 = vld [vmem:[%s8308_s1 + $0x6a0] sm:$0xff]  }
  0xa0   :  { %5904 = vmatprep.subr.bf16.mxu0 %v6477_v13  ;;  %v6536_v13 = vld [vmem:[%s8308_s1 + $0x6f0] sm:$0xff]  }
  0xa1   :  { %5897 = vmatpush3.bf16.msra.mxu1 %v6476_v10  ;;  %v6533_v10 = vld [vmem:[%s8308_s1 + $0x6a8] sm:$0xff]  }
  0xa2   :  { %4409 = vmatmul.mubr.bf16.vlgmr.msra.gmra.mrb[16].mxu0 %v1060_v12  ;;  %5926 = vmatprep.subr.bf16.mxu1 %v6479_v16  ;;  %v19_v12 = vld [vmem:[%s8307_s0 + $0x18] sm:$0xff]  ;;  %v6535_v16 = vld [vmem:[%s8308_s1 + $0x630] sm:$0xff]  }
  0xa3   :  { %5905 = vmatpush3.bf16.msra.mxu0 %v6478_v14  ;;  %4488 = vmatprep.mubr.bf16.mxu0 %v1081_v15  ;;  %v1093_v14 = vrot.slane %v19_v12, %v6925_v41  ;;  %v1086_v15 = vcombine.high %v19_v12, %v19_v12  ;;  %v6573_v12 = vld [vmem:[%s8308_s1 + $0x7b8] sm:$0xff]  }
  0xa4   :  { %4449 = vmatmul.mubr.bf16.vlgmr.msra.gmra.mrb[16].mxu1 %v1082_v18  ;;  %5906 = vmatprep.subr.bf16.mxu0 %v6481_v19 }
  0xa5   :  { %5927 = vmatpush3.bf16.msra.mxu1 %v6480_v17  ;;  %4528 = vmatprep.mubr.bf16.mxu1 %v1085_v21  ;;  %v6538_v17 = vld [vmem:[%s8308_s1 + $0x678] sm:$0xff]   ;;  %v1101_v18 = vcombine.high %v1093_v14, %v1093_v14  ;;  %v7529_v19 = vrot.slane %v1086_v15, %v6925_v41  ;;  %v6576_v15 = vld [vmem:[%s8308_s1 + $0x800] sm:$0xff]  }
  0xa6   :  { %5928 = vmatprep.subr.bf16.mxu1 %v6483_v22  ;;  %v6540_v21 = vld [vmem:[%s8308_s1 + $0x6f8] sm:$0xff]  }
  0xa7   :  { %5907 = vmatpush3.bf16.msra.mxu0 %v6482_v20  ;;  %v6537_v20 = vld [vmem:[%s8308_s1 + $0x6b0] sm:$0xff]   ;;  %v1123_v22 = vrot.slane %v1101_v18, %v6925_v41 }
  0xa8   :  { %5908 = vmatprep.subr.bf16.mxu0 %v6485_v24  ;;  %v6539_v24 = vld [vmem:[%s8308_s1 + $0x638] sm:$0xff]  }
  0xa9   :  { %5929 = vmatpush3.bf16.msra.mxu1 %v6484_v23  ;;  %v1102_v23 = vcombine.high %v7529_v19, %v7529_v19 }
  0xaa   :  { %5930 = vmatprep.subr.bf16.mxu1 %v6487_v26  ;;  %v6542_v26 = vld [vmem:[%s8308_s1 + $0x740] sm:$0xff]  }
  0xab   :  { %5909 = vmatpush3.bf16.msra.mxu0 %v6486_v25  ;;  %v1109_v25 = vrot.slane %v1093_v14, %v6925_v41  ;;  %v6575_v14 = vld [vmem:[%s8308_s1 + $0x840] sm:$0xff]  }
  0xac   :  { %5910 = vmatprep.subr.bf16.mxu0 %v6489_v28  ;;  %v6541_v28 = vld [vmem:[%s8308_s1 + $0x6b8] sm:$0xff]  }
  0xad   :  { %5931 = vmatpush3.bf16.msra.mxu1 %v6488_v27  ;;  %v1133_v27 = vcombine.high %v1123_v22, %v1123_v22 }
  0xae   :  { %5932 = vmatprep.subr.bf16.mxu1 %v6491_v30  ;;  %v6544_v30 = vld [vmem:[%s8308_s1 + $0x7c0] sm:$0xff]  }
  0xaf   :  { %5911 = vmatpush3.bf16.msra.mxu0 %v6490_v29  ;;  %v1130_v29 = vrot.slane %v1102_v23, %v6925_v41  ;;  %v6583_v23 = vld [vmem:[%s8308_s1 + $0x850] sm:$0xff]  }
  0xb0   :  { %5912 = vmatprep.subr.bf16.mxu0 %v6493_v32  ;;  %v1131_v32 = vcombine.high %v1109_v25, %v1109_v25 }
  0xb1   :  { %5933 = vmatpush3.bf16.msra.mxu1 %v6492_v31  ;;  %v6543_v31 = vld [vmem:[%s8308_s1 + $0x700] sm:$0xff]  }
  0xb2   :  { %5934 = vmatprep.subr.bf16.mxu1 %v6495_v34  ;;  %v6545_v34 = vld [vmem:[%s8308_s1 + $0x780] sm:$0xff]  }
  0xb3   :  { %5913 = vmatpush3.bf16.msra.mxu0 %v6494_v33  ;;  %v6546_v33 = vld [vmem:[%s8308_s1 + $0x748] sm:$0xff]  }
  0xb4   :  { %5914 = vmatprep.subr.bf16.mxu0 %v6497_v36  ;;  %v6548_v36 = vld [vmem:[%s8308_s1 + $0x7c8] sm:$0xff]  }
  0xb5   :  { %5935 = vmatpush3.bf16.msra.mxu1 %v6496_v35  ;;  %v1134_v35 = vcombine.high %v1130_v29, %v1130_v29 }
  0xb6   :  { %5936 = vmatprep.subr.bf16.mxu1 %v6499_v38  ;;  %v6550_v38 = vld [vmem:[%s8308_s1 + $0x750] sm:$0xff]  }
  0xb7   :  { %5915 = vmatpush3.bf16.msra.mxu0 %v6498_v37  ;;  %v6547_v37 = vld [vmem:[%s8308_s1 + $0x708] sm:$0xff]  }
  0xb8   :  { %5916 = vmatprep.subr.bf16.mxu0 %v6501_v40  ;;  %v6552_v40 = vld [vmem:[%s8308_s1 + $0x7d0] sm:$0xff]  }
  0xb9   :  { %5937 = vmatpush3.bf16.msra.mxu1 %v6500_v39  ;;  %v6549_v39 = vld [vmem:[%s8308_s1 + $0x788] sm:$0xff]  }
  0xba   :  { %5938 = vmatprep.subr.bf16.mxu1 %v6503_v43  ;;  %v6554_v43 = vld [vmem:[%s8308_s1 + $0x758] sm:$0xff]  }
  0xbb   :  { %5917 = vmatpush3.bf16.msra.mxu0 %v6502_v42  ;;  %v6551_v42 = vld [vmem:[%s8308_s1 + $0x710] sm:$0xff]  }
  0xbc   :  { %5918 = vmatprep.subr.bf16.mxu0 %v6505_v45  ;;  %v6555_v45 = vld [vmem:[%s8308_s1 + $0x718] sm:$0xff]  }
  0xbd   :  { %5939 = vmatpush3.bf16.msra.mxu1 %v6504_v44  ;;  %v6553_v44 = vld [vmem:[%s8308_s1 + $0x790] sm:$0xff]  }
  0xbe   :  { %5940 = vmatprep.subr.bf16.mxu1 %v6507_v47  ;;  %v6557_v47 = vld [vmem:[%s8308_s1 + $0x798] sm:$0xff]  }
  0xbf   :  { %5919 = vmatpush3.bf16.msra.mxu0 %v6506_v46  ;;  %v6556_v46 = vld [vmem:[%s8308_s1 + $0x7d8] sm:$0xff]  }
  0xc0   :  { %5948 = vmatprep.subr.bf16.mxu0 %v6510_v50  ;;  %v6560_v50 = vld [vmem:[%s8308_s1 + $0x7e0] sm:$0xff]  }
  0xc1   :  { %5941 = vmatpush3.bf16.msra.mxu1 %v6508_v48  ;;  %v6558_v48 = vld [vmem:[%s8308_s1 + $0x760] sm:$0xff]  }
  0xc2   :  { %4489 = vmatmul.mubr.bf16.vlgmr.msra.gmra.mrb[20].mxu0 %v1067_v49  ;;  %5970 = vmatprep.subr.bf16.mxu1 %v6512_v52  ;;  %v6559_v49 = vld [vmem:[%s8308_s1 + $0x720] sm:$0xff]   ;;  %v6562_v52 = vld [vmem:[%s8308_s1 + $0x768] sm:$0xff]  }
  0xc3   :  { %5949 = vmatpush3.bf16.msra.mxu0 %v6511_v51  ;;  %4568 = vmatprep.mubr.bf16.mxu0 %v1123_v22  ;;  %v6561_v51 = vld [vmem:[%s8308_s1 + $0x7a0] sm:$0xff]   ;;  %v6582_v22 = vld [vmem:[%s8308_s1 + $0x888] sm:$0xff]  }
  0xc4   :  { %4529 = vmatmul.mubr.bf16.vlgmr.msra.gmra.mrb[20].mxu1 %v1083_v54  ;;  %5950 = vmatprep.subr.bf16.mxu0 %v6514_v55  ;;  %v6564_v54 = vld [vmem:[%s8308_s1 + $0x7e8] sm:$0xff]  }
  0xc5   :  { %5971 = vmatpush3.bf16.msra.mxu1 %v6513_v53  ;;  %4608 = vmatprep.mubr.bf16.mxu1 %v1133_v27  ;;  %v6563_v53 = vld [vmem:[%s8308_s1 + $0x728] sm:$0xff]   ;;  %v6587_v27 = vld [vmem:[%s8308_s1 + $0x858] sm:$0xff]  }
  0xc6   :  { %5972 = vmatprep.subr.bf16.mxu1 %v6516_v57  ;;  %v6565_v55 = vld [vmem:[%s8308_s1 + $0x7a8] sm:$0xff]   ;;  %v6566_v57 = vld [vmem:[%s8308_s1 + $0x770] sm:$0xff]  }
  0xc7   :  { %5951 = vmatpush3.bf16.msra.mxu0 %v6515_v56  ;;  %v5231_v56 = vld [vmem:[%s8309_s2] ss:$0 sm:$0xff] }
  0xc8   :  { %5952 = vmatprep.subr.bf16.mxu0 %v6518_v59  ;;  %v6567_v59 = vld [vmem:[%s8308_s1 + $0x730] sm:$0xff]  }
  0xc9   :  { %5973 = vmatpush3.bf16.msra.mxu1 %v6517_v58 }
  0xca   :  { %5974 = vmatprep.subr.bf16.mxu1 %v6520_v61  ;;  %v6568_v61 = vld [vmem:[%s8308_s1 + $0x7f0] sm:$0xff]  }
  0xcb   :  { %5953 = vmatpush3.bf16.msra.mxu0 %v6519_v60 }
  0xcc   :  { %5954 = vmatprep.subr.bf16.mxu0 %v6522_v63 }
  0xcd   :  { %5975 = vmatpush3.bf16.msra.mxu1 %v6521_v62 }
  0xce   :  { %5976 = vmatprep.subr.bf16.mxu1 %v6524_v1  ;;  %v6569_v1 = vld [vmem:[%s8308_s1 + $0x7b0] sm:$0xff]  }
  0xcf   :  { %5955 = vmatpush3.bf16.msra.mxu0 %v6523_v0 }
  0xd0   :  { %5956 = vmatprep.subr.bf16.mxu0 %v6526_v3 }
  0xd1   :  { %5977 = vmatpush3.bf16.msra.mxu1 %v6525_v2  ;;  %v6570_v2 = vld [vmem:[%s8308_s1 + $0x778] sm:$0xff]  }
  0xd2   :  { %5978 = vmatprep.subr.bf16.mxu1 %v6528_v5 }
  0xd3   :  { %5957 = vmatpush3.bf16.msra.mxu0 %v6527_v4 }
  0xd4   :  { %5958 = vmatprep.subr.bf16.mxu0 %v6530_v7 }
  0xd5   :  { %5979 = vmatpush3.bf16.msra.mxu1 %v6529_v6 }
  0xd6   :  { %5980 = vmatprep.subr.bf16.mxu1 %v6532_v9 }
  0xd7   :  { %5959 = vmatpush3.bf16.msra.mxu0 %v6531_v8  ;;  %v6571_v8 = vld [vmem:[%s8308_s1 + $0x738] sm:$0xff]  }
  0xd8   :  { %5960 = vmatprep.subr.bf16.mxu0 %v6534_v11 }
  0xd9   :  { %5981 = vmatpush3.bf16.msra.mxu1 %v6533_v10  ;;  %v6572_v10 = vld [vmem:[%s8308_s1 + $0x7f8] sm:$0xff]  }
  0xda   :  { %5982 = vmatprep.subr.bf16.mxu1 %v6536_v13  ;;  %v1116_v13 = vrot.slane %v7529_v19, %v6925_v41  ;;  %v6579_v19 = vld [vmem:[%s8308_s1 + $0x848] sm:$0xff]  }
  0xdb   :  { %5961 = vmatpush3.bf16.msra.mxu0 %v6535_v16  ;;  %v6577_v16 = vld [vmem:[%s8308_s1 + $0x8c0] sm:$0xff]  }
  0xdc   :  { %5962 = vmatprep.subr.bf16.mxu0 %v6538_v17  ;;  %v6578_v17 = vld [vmem:[%s8308_s1 + $0x880] sm:$0xff]   ;;  %v1132_v18 = vcombine.high %v1116_v13, %v1116_v13 }
  0xdd   :  { %5983 = vmatpush3.bf16.msra.mxu1 %v6537_v20  ;;  %v6580_v20 = vld [vmem:[%s8308_s1 + $0x808] sm:$0xff]  }
  0xde   :  { %5984 = vmatprep.subr.bf16.mxu1 %v6540_v21  ;;  %v6581_v21 = vld [vmem:[%s8308_s1 + $0x8c8] sm:$0xff]  }
  0xdf   :  { %5963 = vmatpush3.bf16.msra.mxu0 %v6539_v24  ;;  %v6584_v24 = vld [vmem:[%s8308_s1 + $0x810] sm:$0xff]  }
  0xe0   :  { %5992 = vmatprep.subr.bf16.mxu0 %v6542_v26  ;;  %v6586_v26 = vld [vmem:[%s8308_s1 + $0x890] sm:$0xff]  }
  0xe1   :  { %5985 = vmatpush3.bf16.msra.mxu1 %v6541_v28  ;;  %v6588_v28 = vld [vmem:[%s8308_s1 + $0x818] sm:$0xff]  }
  0xe2   :  { %4569 = vmatmul.mubr.bf16.vlgmr.msra.gmra.mrb[24].mxu0 %v1109_v25  ;;  %6014 = vmatprep.subr.bf16.mxu1 %v6544_v30  ;;  %v6585_v25 = vld [vmem:[%s8308_s1 + $0x8d0] sm:$0xff]   ;;  %v6590_v30 = vld [vmem:[%s8308_s1 + $0x898] sm:$0xff]  }
  0xe3   :  { %5993 = vmatpush3.bf16.msra.mxu0 %v6543_v31  ;;  %4648 = vmatprep.mubr.bf16.mxu0 %v1130_v29  ;;  %v6589_v29 = vld [vmem:[%s8308_s1 + $0x8d8] sm:$0xff]   ;;  %v6591_v31 = vld [vmem:[%s8308_s1 + $0x860] sm:$0xff]  }
  0xe4   :  { %4609 = vmatmul.mubr.bf16.vlgmr.msra.gmra.mrb[24].mxu1 %v1131_v32  ;;  %5994 = vmatprep.subr.bf16.mxu0 %v6546_v33  ;;  %v6592_v32 = vld [vmem:[%s8308_s1 + $0x820] sm:$0xff]  }
  0xe5   :  { %6015 = vmatpush3.bf16.msra.mxu1 %v6545_v34  ;;  %4688 = vmatprep.mubr.bf16.mxu1 %v1134_v35  ;;  %v6593_v33 = vld [vmem:[%s8308_s1 + $0x8e0] sm:$0xff]   ;;  %v6595_v35 = vld [vmem:[%s8308_s1 + $0x868] sm:$0xff]  }
  0xe6   :  { %6016 = vmatprep.subr.bf16.mxu1 %v6548_v36  ;;  %v6594_v34 = vld [vmem:[%s8308_s1 + $0x8a0] sm:$0xff]   ;;  %v6596_v36 = vld [vmem:[%s8308_s1 + $0x828] sm:$0xff]  }
  0xe7   :  { %5995 = vmatpush3.bf16.msra.mxu0 %v6547_v37  ;;  %v6597_v37 = vld [vmem:[%s8308_s1 + $0x8e8] sm:$0xff]  }
  0xe8   :  { %5996 = vmatprep.subr.bf16.mxu0 %v6550_v38  ;;  %v6598_v38 = vld [vmem:[%s8308_s1 + $0x8a8] sm:$0xff]  }
  0xe9   :  { %6017 = vmatpush3.bf16.msra.mxu1 %v6549_v39  ;;  %v6599_v39 = vld [vmem:[%s8308_s1 + $0x870] sm:$0xff]  }
  0xea   :  { %6018 = vmatprep.subr.bf16.mxu1 %v6552_v40 }
  0xeb   :  { %5997 = vmatpush3.bf16.msra.mxu0 %v6551_v42  ;;  %v6600_v42 = vld [vmem:[%s8308_s1 + $0x830] sm:$0xff]  }
  0xec   :  { %5998 = vmatprep.subr.bf16.mxu0 %v6554_v43  ;;  %v6601_v43 = vld [vmem:[%s8308_s1 + $0x8f0] sm:$0xff]  }
  0xed   :  { %6019 = vmatpush3.bf16.msra.mxu1 %v6553_v44 }
  0xee   :  { %6020 = vmatprep.subr.bf16.mxu1 %v6556_v46 }
  0xef   :  { %5999 = vmatpush3.bf16.msra.mxu0 %v6555_v45  ;;  %v20_v45 = vld [vmem:[%s8307_s0 + $0x20] sm:$0xff] }
  0xf0   :  { %6000 = vmatprep.subr.bf16.mxu0 %v6558_v48 }
  0xf1   :  { %6021 = vmatpush3.bf16.msra.mxu1 %v6557_v47 }
  0xf2   :  { %6022 = vmatprep.subr.bf16.mxu1 %v6560_v50  ;;  %v6603_v50 = vld [vmem:[%s8308_s1 + $0x878] sm:$0xff]  }
  0xf3   :  { %6001 = vmatpush3.bf16.msra.mxu0 %v6559_v49  ;;  %v6602_v49 = vld [vmem:[%s8308_s1 + $0x8b0] sm:$0xff]  }
  0xf4   :  { %6002 = vmatprep.subr.bf16.mxu0 %v6562_v52  ;;  %v1135_v52 = vcombine.high %v20_v45, %v20_v45 }
  0xf5   :  { %6023 = vmatpush3.bf16.msra.mxu1 %v6561_v51  ;;  %v5700_v58 = vpop.f32.mrb[0].mxu0  ;;  %v1142_v51 = vrot.slane %v20_v45, %v6925_v41 }
  0xf6   :  { %v5701_v60 = vpop.f32.mrb[1].mxu0  ;;  %6024 = vmatprep.subr.bf16.mxu1 %v6564_v54 }
  0xf7   :  { %v5702_v62 = vadd.f32 %v5701_v60, %v5700_v58  ;;  %v5703_v63 = vpop.f32.mrb[2].mxu0  ;;  %v5722_v0 = vpop.f32.mrb[0].mxu1  ;;  %6003 = vmatpush3.bf16.msra.mxu0 %v6563_v53  ;;  %v6604_v58 = vld [vmem:[%s8308_s1 + $0x838] sm:$0xff]  }
  0xf8   :  { %v5704_v3 = vpop.f32.mrb[3].mxu0  ;;  %v5723_v4 = vpop.f32.mrb[1].mxu1  ;;  %6004 = vmatprep.subr.bf16.mxu0 %v6566_v57 }
  0xf9   :  { %v4091_v5 = vadd.f32 %v5702_v62, %v5231_v56  ;;  %v5724_v6 = vadd.f32 %v5723_v4, %v5722_v0  ;;  %6025 = vmatpush3.bf16.msra.mxu1 %v6565_v55  ;;  %v5725_v7 = vpop.f32.mrb[2].mxu1  ;;  %v7750_v62 = vrot.slane %v1135_v52, %v6925_v41  ;;  %v6606_v0 = vld [vmem:[%s8308_s1 + $0x8b8] sm:$0xff]   ;;  %v6607_v3 = vld [vmem:[%s8308_s1 + $0x940] sm:$0xff]  }
  0xfa   :  { %v5726_v9 = vpop.f32.mrb[3].mxu1  ;;  %6026 = vmatprep.subr.bf16.mxu1 %v6568_v61  ;;  %v6605_v61 = vld [vmem:[%s8308_s1 + $0x8f8] sm:$0xff]   ;;  %v6609_v7 = vld [vmem:[%s8308_s1 + $0x9c0] sm:$0xff]  }
  0xfb   :  { %v7644_v11 = vadd.f32 %v5724_v6, %v4091_v5  ;;  %6005 = vmatpush3.bf16.msra.mxu0 %v6567_v59  ;;  %v1150_v59 = vcombine.high %v1142_v51, %v1142_v51  ;;  %v1151_v4 = vcombine.high %v7750_v62, %v7750_v62  ;;  %v6608_v6 = vld [vmem:[%s8308_s1 + $0x900] sm:$0xff]   ;;  %v6638_v52 = vld [vmem:[%s8308_s1 + $0x9b8] sm:$0xff]  }
  0xfc   :  { %6006 = vmatprep.subr.bf16.mxu0 %v6570_v2  ;;  %v1158_v2 = vrot.slane %v1142_v51, %v6925_v41  ;;  %v6610_v9 = vld [vmem:[%s8308_s1 + $0x980] sm:$0xff]  }
  0xfd   :  { %6027 = vmatpush3.bf16.msra.mxu1 %v6569_v1  ;;  %v1172_v1 = vrot.slane %v1150_v59, %v6925_v41  ;;  %v6644_v59 = vld [vmem:[%s8308_s1 + $0xa48] sm:$0xff]  }
  0xfe   :  { %6028 = vmatprep.subr.bf16.mxu1 %v6572_v10  ;;  %v1180_v10 = vcombine.high %v1158_v2, %v1158_v2 }
  0xff   :  { %6007 = vmatpush3.bf16.msra.mxu0 %v6571_v8  ;;  %v1182_v5 = vcombine.high %v1172_v1, %v1172_v1  ;;  %v1179_v8 = vrot.slane %v1151_v4, %v6925_v41  ;;  %v6653_v4 = vld [vmem:[%s8308_s1 + $0xa18] sm:$0xff]  }
 0x100   :  { %6036 = vmatprep.subr.bf16.mxu0 %v6575_v14  ;;  %v6613_v14 = vld [vmem:[%s8308_s1 + $0x9c8] sm:$0xff]  }
 0x101   :  { %6029 = vmatpush3.bf16.msra.mxu1 %v6573_v12  ;;  %v6612_v12 = vld [vmem:[%s8308_s1 + $0x908] sm:$0xff]  }
 0x102   :  { %4649 = vmatmul.mubr.bf16.vlgmr.msra.gmra.mrb[28].mxu0 %v1116_v13  ;;  %6058 = vmatprep.subr.bf16.mxu1 %v6577_v16  ;;  %v1183_v13 = vcombine.high %v1179_v8, %v1179_v8  ;;  %v6615_v16 = vld [vmem:[%s8308_s1 + $0x950] sm:$0xff]  }
 0x103   :  { %6037 = vmatpush3.bf16.msra.mxu0 %v6576_v15  ;;  %4728 = vmatprep.mubr.bf16.mxu0 %v1172_v1  ;;  %v6614_v15 = vld [vmem:[%s8308_s1 + $0x988] sm:$0xff]   ;;  %v6650_v1 = vld [vmem:[%s8308_s1 + $0xad0] sm:$0xff]  }
 0x104   :  { %4689 = vmatmul.mubr.bf16.vlgmr.msra.gmra.mrb[28].mxu1 %v1132_v18  ;;  %6038 = vmatprep.subr.bf16.mxu0 %v6579_v19  ;;  %v6617_v18 = vld [vmem:[%s8308_s1 + $0x9d0] sm:$0xff]  }
 0x105   :  { %6059 = vmatpush3.bf16.msra.mxu1 %v6578_v17  ;;  %4768 = vmatprep.mubr.bf16.mxu1 %v1182_v5  ;;  %v6616_v17 = vld [vmem:[%s8308_s1 + $0x910] sm:$0xff]   ;;  %v6654_v5 = vld [vmem:[%s8308_s1 + $0xad8] sm:$0xff]  }
 0x106   :  { %6060 = vmatprep.subr.bf16.mxu1 %v6581_v21  ;;  %v6618_v19 = vld [vmem:[%s8308_s1 + $0x990] sm:$0xff]   ;;  %v6620_v21 = vld [vmem:[%s8308_s1 + $0x918] sm:$0xff]  }
 0x107   :  { %6039 = vmatpush3.bf16.msra.mxu0 %v6580_v20  ;;  %v6619_v20 = vld [vmem:[%s8308_s1 + $0x958] sm:$0xff]  }
 0x108   :  { %6040 = vmatprep.subr.bf16.mxu0 %v6583_v23  ;;  %v6622_v23 = vld [vmem:[%s8308_s1 + $0x998] sm:$0xff]  }
 0x109   :  { %6061 = vmatpush3.bf16.msra.mxu1 %v6582_v22  ;;  %v6621_v22 = vld [vmem:[%s8308_s1 + $0x9d8] sm:$0xff]  }
 0x10a   :  { %6062 = vmatprep.subr.bf16.mxu1 %v6585_v25  ;;  %v6624_v25 = vld [vmem:[%s8308_s1 + $0x920] sm:$0xff]  }
 0x10b   :  { %6041 = vmatpush3.bf16.msra.mxu0 %v6584_v24  ;;  %v6623_v24 = vld [vmem:[%s8308_s1 + $0x960] sm:$0xff]  }
 0x10c   :  { %6042 = vmatprep.subr.bf16.mxu0 %v6587_v27  ;;  %v6626_v27 = vld [vmem:[%s8308_s1 + $0x9a0] sm:$0xff]  }
 0x10d   :  { %6063 = vmatpush3.bf16.msra.mxu1 %v6586_v26  ;;  %v6625_v26 = vld [vmem:[%s8308_s1 + $0x9e0] sm:$0xff]  }
 0x10e   :  { %6064 = vmatprep.subr.bf16.mxu1 %v6589_v29  ;;  %v6628_v29 = vld [vmem:[%s8308_s1 + $0x928] sm:$0xff]  }
 0x10f   :  { %6043 = vmatpush3.bf16.msra.mxu0 %v6588_v28  ;;  %v6627_v28 = vld [vmem:[%s8308_s1 + $0x968] sm:$0xff]  }
 0x110   :  { %6044 = vmatprep.subr.bf16.mxu0 %v6591_v31  ;;  %v6630_v31 = vld [vmem:[%s8308_s1 + $0x9a8] sm:$0xff]  }
 0x111   :  { %6065 = vmatpush3.bf16.msra.mxu1 %v6590_v30  ;;  %v6629_v30 = vld [vmem:[%s8308_s1 + $0x9e8] sm:$0xff]  }
 0x112   :  { %6066 = vmatprep.subr.bf16.mxu1 %v6593_v33 }
 0x113   :  { %6045 = vmatpush3.bf16.msra.mxu0 %v6592_v32  ;;  %v6631_v32 = vld [vmem:[%s8308_s1 + $0x970] sm:$0xff]  }
 0x114   :  { %6046 = vmatprep.subr.bf16.mxu0 %v6595_v35 }
 0x115   :  { %6067 = vmatpush3.bf16.msra.mxu1 %v6594_v34  ;;  %v5744_v40 = vpop.f32.mrb[4].mxu0  ;;  %v6632_v34 = vld [vmem:[%s8308_s1 + $0x930] sm:$0xff]  }
 0x116   :  { %v5745_v44 = vpop.f32.mrb[5].mxu0  ;;  %6068 = vmatprep.subr.bf16.mxu1 %v6597_v37 }
 0x117   :  { %v5746_v46 = vadd.f32 %v5745_v44, %v5744_v40  ;;  %v5747_v47 = vpop.f32.mrb[6].mxu0  ;;  %v5766_v48 = vpop.f32.mrb[4].mxu1  ;;  %6047 = vmatpush3.bf16.msra.mxu0 %v6596_v36  ;;  %v6633_v36 = vld [vmem:[%s8308_s1 + $0x9f0] sm:$0xff]  }
 0x118   :  { %v5748_v53 = vpop.f32.mrb[7].mxu0  ;;  %v5767_v54 = vpop.f32.mrb[5].mxu1  ;;  %6048 = vmatprep.subr.bf16.mxu0 %v6599_v39  ;;  %v6634_v40 = vld [vmem:[%s8308_s1 + $0x9b0] sm:$0xff]  }
 0x119   :  { %v4171_v55 = vadd.f32 %v5746_v46, %v7644_v11  ;;  %v5768_v56 = vadd.f32 %v5767_v54, %v5766_v48  ;;  %6069 = vmatpush3.bf16.msra.mxu1 %v6598_v38  ;;  %v5769_v57 = vpop.f32.mrb[6].mxu1  ;;  %v6611_v11 = vld [vmem:[%s8308_s1 + $0x948] sm:$0xff]   ;;  %v6636_v48 = vld [vmem:[%s8308_s1 + $0x938] sm:$0xff]   ;;  %v1165_v53 = vrot.slane %v7750_v62, %v6925_v41  ;;  %v6640_v54 = vld [vmem:[%s8308_s1 + $0xa40] sm:$0xff]  }
 0x11a   :  { %v5770_v60 = vpop.f32.mrb[7].mxu1  ;;  %6070 = vmatprep.subr.bf16.mxu1 %v6601_v43  ;;  %v6643_v57 = vld [vmem:[%s8308_s1 + $0xa80] sm:$0xff]   ;;  %v6647_v62 = vld [vmem:[%s8308_s1 + $0xa88] sm:$0xff]  }
 0x11b   :  { %v7752_v63 = vadd.f32 %v5768_v56, %v4171_v55  ;;  %6049 = vmatpush3.bf16.msra.mxu0 %v6600_v42  ;;  %v6635_v42 = vld [vmem:[%s8308_s1 + $0x978] sm:$0xff]   ;;  %v6641_v55 = vld [vmem:[%s8308_s1 + $0xa00] sm:$0xff]   ;;  %v6645_v60 = vld [vmem:[%s8308_s1 + $0xa08] sm:$0xff]  }
 0x11c   :  { %6050 = vmatprep.subr.bf16.mxu0 %v6603_v50  ;;  %v6637_v50 = vld [vmem:[%s8308_s1 + $0x9f8] sm:$0xff]   ;;  %v6642_v56 = vld [vmem:[%s8308_s1 + $0xac0] sm:$0xff]  }
 0x11d   :  { %6071 = vmatpush3.bf16.msra.mxu1 %v6602_v49 }
 0x11e   :  { %6072 = vmatprep.subr.bf16.mxu1 %v6605_v61  ;;  %v6646_v61 = vld [vmem:[%s8308_s1 + $0xac8] sm:$0xff]  }
 0x11f   :  { %6051 = vmatpush3.bf16.msra.mxu0 %v6604_v58  ;;  %v1181_v58 = vcombine.high %v1165_v53, %v1165_v53 }
 0x120   :  { %6080 = vmatprep.subr.bf16.mxu0 %v6607_v3  ;;  %v6652_v3 = vld [vmem:[%s8308_s1 + $0xa58] sm:$0xff]  }
 0x121   :  { %6073 = vmatpush3.bf16.msra.mxu1 %v6606_v0  ;;  %v6649_v0 = vld [vmem:[%s8308_s1 + $0xa10] sm:$0xff]  }
 0x122   :  { %4729 = vmatmul.mubr.bf16.vlgmr.msra.gmra.mrb[32].mxu0 %v1158_v2  ;;  %6102 = vmatprep.subr.bf16.mxu1 %v6609_v7  ;;  %v6651_v2 = vld [vmem:[%s8308_s1 + $0xa90] sm:$0xff]   ;;  %v6656_v7 = vld [vmem:[%s8308_s1 + $0xa60] sm:$0xff]  }
 0x123   :  { %6081 = vmatpush3.bf16.msra.mxu0 %v6608_v6  ;;  %4808 = vmatprep.mubr.bf16.mxu0 %v1179_v8  ;;  %v6655_v6 = vld [vmem:[%s8308_s1 + $0xa98] sm:$0xff]   ;;  %v6657_v8 = vld [vmem:[%s8308_s1 + $0xa20] sm:$0xff]  }
 0x124   :  { %4769 = vmatmul.mubr.bf16.vlgmr.msra.gmra.mrb[32].mxu1 %v1180_v10  ;;  %6082 = vmatprep.subr.bf16.mxu0 %v6611_v11  ;;  %v6659_v10 = vld [vmem:[%s8308_s1 + $0xaa0] sm:$0xff]   ;;  %v6660_v11 = vld [vmem:[%s8308_s1 + $0xa68] sm:$0xff]  }
 0x125   :  { %6103 = vmatpush3.bf16.msra.mxu1 %v6610_v9  ;;  %4848 = vmatprep.mubr.bf16.mxu1 %v1183_v13  ;;  %v6658_v9 = vld [vmem:[%s8308_s1 + $0xae0] sm:$0xff]   ;;  %v6662_v13 = vld [vmem:[%s8308_s1 + $0xae8] sm:$0xff]  }
 0x126   :  { %6104 = vmatprep.subr.bf16.mxu1 %v6613_v14  ;;  %v6663_v14 = vld [vmem:[%s8308_s1 + $0xaa8] sm:$0xff]  }
 0x127   :  { %6083 = vmatpush3.bf16.msra.mxu0 %v6612_v12  ;;  %v6661_v12 = vld [vmem:[%s8308_s1 + $0xa28] sm:$0xff]  }
 0x128   :  { %6084 = vmatprep.subr.bf16.mxu0 %v6615_v16 }
 0x129   :  { %6105 = vmatpush3.bf16.msra.mxu1 %v6614_v15  ;;  %v6664_v15 = vld [vmem:[%s8308_s1 + $0xa70] sm:$0xff]  }
 0x12a   :  { %6106 = vmatprep.subr.bf16.mxu1 %v6617_v18 }
 0x12b   :  { %6085 = vmatpush3.bf16.msra.mxu0 %v6616_v17  ;;  %v6665_v17 = vld [vmem:[%s8308_s1 + $0xa30] sm:$0xff]  }
 0x12c   :  { %6086 = vmatprep.subr.bf16.mxu0 %v6619_v20 }
 0x12d   :  { %6107 = vmatpush3.bf16.msra.mxu1 %v6618_v19  ;;  %v6666_v19 = vld [vmem:[%s8308_s1 + $0xaf0] sm:$0xff]  }
 0x12e   :  { %6108 = vmatprep.subr.bf16.mxu1 %v6621_v22 }
 0x12f   :  { %6087 = vmatpush3.bf16.msra.mxu0 %v6620_v21 }
 0x130   :  { %6088 = vmatprep.subr.bf16.mxu0 %v6623_v24  ;;  %v6668_v24 = vld [vmem:[%s8308_s1 + $0xa78] sm:$0xff]  }
 0x131   :  { %6109 = vmatpush3.bf16.msra.mxu1 %v6622_v23  ;;  %v6667_v23 = vld [vmem:[%s8308_s1 + $0xab0] sm:$0xff]  }
 0x132   :  { %6110 = vmatprep.subr.bf16.mxu1 %v6625_v26 }
 0x133   :  { %6089 = vmatpush3.bf16.msra.mxu0 %v6624_v25  ;;  %v21_v25 = vld [vmem:[%s8307_s0 + $0x28] sm:$0xff] }
 0x134   :  { %6090 = vmatprep.subr.bf16.mxu0 %v6627_v28  ;;  %v1191_v28 = vrot.slane %v21_v25, %v6925_v41 }
 0x135   :  { %6111 = vmatpush3.bf16.msra.mxu1 %v6626_v27  ;;  %v5788_v33 = vpop.f32.mrb[8].mxu0 }
 0x136   :  { %v5789_v35 = vpop.f32.mrb[9].mxu0  ;;  %6112 = vmatprep.subr.bf16.mxu1 %v6629_v30 }
 0x137   :  { %v5790_v37 = vadd.f32 %v5789_v35, %v5788_v33  ;;  %v5791_v38 = vpop.f32.mrb[10].mxu0  ;;  %v5810_v39 = vpop.f32.mrb[8].mxu1  ;;  %6091 = vmatpush3.bf16.msra.mxu0 %v6628_v29  ;;  %v1184_v29 = vcombine.high %v21_v25, %v21_v25  ;;  %v6669_v33 = vld [vmem:[%s8308_s1 + $0xa38] sm:$0xff]  }
 0x138   :  { %v5792_v43 = vpop.f32.mrb[11].mxu0  ;;  %v5811_v44 = vpop.f32.mrb[9].mxu1  ;;  %6092 = vmatprep.subr.bf16.mxu0 %v6631_v32  ;;  %v6670_v35 = vld [vmem:[%s8308_s1 + $0xaf8] sm:$0xff]  }
 0x139   :  { %v4251_v45 = vadd.f32 %v5790_v37, %v7752_v63  ;;  %v5812_v46 = vadd.f32 %v5811_v44, %v5810_v39  ;;  %6113 = vmatpush3.bf16.msra.mxu1 %v6630_v31  ;;  %v5813_v47 = vpop.f32.mrb[10].mxu1  ;;  %v6648_v63 = vld [vmem:[%s8308_s1 + $0xa50] sm:$0xff]   ;;  %v7962_v37 = vrot.slane %v1184_v29, %v6925_v41  ;;  %v6671_v39 = vld [vmem:[%s8308_s1 + $0xab8] sm:$0xff]   ;;  %v6672_v43 = vld [vmem:[%s8308_s1 + $0xb40] sm:$0xff]  }
 0x13a   :  { %v5814_v49 = vpop.f32.mrb[11].mxu1  ;;  %6114 = vmatprep.subr.bf16.mxu1 %v6633_v36  ;;  %v1199_v36 = vcombine.high %v1191_v28, %v1191_v28  ;;  %v6674_v47 = vld [vmem:[%s8308_s1 + $0xbc0] sm:$0xff]   ;;  %v6702_v25 = vld [vmem:[%s8308_s1 + $0xbf8] sm:$0xff]  }
 0x13b   :  { %v7856_v51 = vadd.f32 %v5812_v46, %v4251_v45  ;;  %6093 = vmatpush3.bf16.msra.mxu0 %v6632_v34  ;;  %v1200_v44 = vcombine.high %v7962_v37, %v7962_v37  ;;  %v6673_v45 = vld [vmem:[%s8308_s1 + $0xb00] sm:$0xff]  }
 0x13c   :  { %6094 = vmatprep.subr.bf16.mxu0 %v6635_v42  ;;  %v1207_v42 = vrot.slane %v1191_v28, %v6925_v41  ;;  %v6675_v49 = vld [vmem:[%s8308_s1 + $0xb80] sm:$0xff]   ;;  %v1214_v28 = vrot.slane %v7962_v37, %v6925_v41  ;;  %v6712_v37 = vld [vmem:[%s8308_s1 + $0xc88] sm:$0xff]  }
 0x13d   :  { %6115 = vmatpush3.bf16.msra.mxu1 %v6634_v40  ;;  %v1221_v40 = vrot.slane %v1199_v36, %v6925_v41  ;;  %v6705_v29 = vld [vmem:[%s8308_s1 + $0xc40] sm:$0xff]   ;;  %v6711_v36 = vld [vmem:[%s8308_s1 + $0xcc8] sm:$0xff]  }
 0x13e   :  { %6116 = vmatprep.subr.bf16.mxu1 %v6637_v50  ;;  %v1229_v50 = vcombine.high %v1207_v42, %v1207_v42 }
 0x13f   :  { %6095 = vmatpush3.bf16.msra.mxu0 %v6636_v48  ;;  %v1231_v46 = vcombine.high %v1221_v40, %v1221_v40  ;;  %v1228_v48 = vrot.slane %v1200_v44, %v6925_v41  ;;  %v6718_v44 = vld [vmem:[%s8308_s1 + $0xc18] sm:$0xff]  }
 0x140   :  { %6124 = vmatprep.subr.bf16.mxu0 %v6640_v54  ;;  %v6678_v54 = vld [vmem:[%s8308_s1 + $0xbc8] sm:$0xff]  }
 0x141   :  { %6117 = vmatpush3.bf16.msra.mxu1 %v6638_v52  ;;  %v6677_v52 = vld [vmem:[%s8308_s1 + $0xb08] sm:$0xff]  }
 0x142   :  { %4809 = vmatmul.mubr.bf16.vlgmr.msra.gmra.mrb[36].mxu0 %v1165_v53  ;;  %6146 = vmatprep.subr.bf16.mxu1 %v6642_v56  ;;  %v1232_v53 = vcombine.high %v1228_v48, %v1228_v48  ;;  %v6680_v56 = vld [vmem:[%s8308_s1 + $0xb50] sm:$0xff]  }
 0x143   :  { %6125 = vmatpush3.bf16.msra.mxu0 %v6641_v55  ;;  %4888 = vmatprep.mubr.bf16.mxu0 %v1221_v40  ;;  %v6679_v55 = vld [vmem:[%s8308_s1 + $0xb88] sm:$0xff]   ;;  %v6715_v40 = vld [vmem:[%s8308_s1 + $0xcd0] sm:$0xff]  }
 0x144   :  { %4849 = vmatmul.mubr.bf16.vlgmr.msra.gmra.mrb[36].mxu1 %v1181_v58  ;;  %6126 = vmatprep.subr.bf16.mxu0 %v6644_v59  ;;  %v6682_v58 = vld [vmem:[%s8308_s1 + $0xbd0] sm:$0xff]  }
 0x145   :  { %6147 = vmatpush3.bf16.msra.mxu1 %v6643_v57  ;;  %4928 = vmatprep.mubr.bf16.mxu1 %v1231_v46  ;;  %v6681_v57 = vld [vmem:[%s8308_s1 + $0xb10] sm:$0xff]   ;;  %v6720_v46 = vld [vmem:[%s8308_s1 + $0xc98] sm:$0xff]  }
 0x146   :  { %6148 = vmatprep.subr.bf16.mxu1 %v6646_v61  ;;  %v6683_v59 = vld [vmem:[%s8308_s1 + $0xb90] sm:$0xff]   ;;  %v6685_v61 = vld [vmem:[%s8308_s1 + $0xb18] sm:$0xff]  }
 0x147   :  { %6127 = vmatpush3.bf16.msra.mxu0 %v6645_v60  ;;  %v6684_v60 = vld [vmem:[%s8308_s1 + $0xb58] sm:$0xff]  }
 0x148   :  { %6128 = vmatprep.subr.bf16.mxu0 %v6648_v63  ;;  %v6687_v63 = vld [vmem:[%s8308_s1 + $0xb98] sm:$0xff]  }
 0x149   :  { %6149 = vmatpush3.bf16.msra.mxu1 %v6647_v62  ;;  %v6686_v62 = vld [vmem:[%s8308_s1 + $0xbd8] sm:$0xff]  }
 0x14a   :  { %6150 = vmatprep.subr.bf16.mxu1 %v6650_v1  ;;  %v6689_v1 = vld [vmem:[%s8308_s1 + $0xb20] sm:$0xff]  }
 0x14b   :  { %6129 = vmatpush3.bf16.msra.mxu0 %v6649_v0  ;;  %v6688_v0 = vld [vmem:[%s8308_s1 + $0xb60] sm:$0xff]  }
 0x14c   :  { %6130 = vmatprep.subr.bf16.mxu0 %v6652_v3  ;;  %v6691_v3 = vld [vmem:[%s8308_s1 + $0xba0] sm:$0xff]  }
 0x14d   :  { %6151 = vmatpush3.bf16.msra.mxu1 %v6651_v2  ;;  %v6690_v2 = vld [vmem:[%s8308_s1 + $0xbe0] sm:$0xff]  }
 0x14e   :  { %6152 = vmatprep.subr.bf16.mxu1 %v6654_v5  ;;  %v6693_v5 = vld [vmem:[%s8308_s1 + $0xb28] sm:$0xff]  }
 0x14f   :  { %6131 = vmatpush3.bf16.msra.mxu0 %v6653_v4  ;;  %v6692_v4 = vld [vmem:[%s8308_s1 + $0xb68] sm:$0xff]  }
 0x150   :  { %6132 = vmatprep.subr.bf16.mxu0 %v6656_v7  ;;  %v6695_v7 = vld [vmem:[%s8308_s1 + $0xba8] sm:$0xff]  }
 0x151   :  { %6153 = vmatpush3.bf16.msra.mxu1 %v6655_v6  ;;  %v6694_v6 = vld [vmem:[%s8308_s1 + $0xbe8] sm:$0xff]  }
 0x152   :  { %6154 = vmatprep.subr.bf16.mxu1 %v6658_v9 }
 0x153   :  { %6133 = vmatpush3.bf16.msra.mxu0 %v6657_v8  ;;  %v6696_v8 = vld [vmem:[%s8308_s1 + $0xb70] sm:$0xff]  }
 0x154   :  { %6134 = vmatprep.subr.bf16.mxu0 %v6660_v11 }
 0x155   :  { %6155 = vmatpush3.bf16.msra.mxu1 %v6659_v10  ;;  %v5832_v16 = vpop.f32.mrb[12].mxu0  ;;  %v6697_v10 = vld [vmem:[%s8308_s1 + $0xb30] sm:$0xff]  }
 0x156   :  { %v5833_v18 = vpop.f32.mrb[13].mxu0  ;;  %6156 = vmatprep.subr.bf16.mxu1 %v6662_v13 }
 0x157   :  { %v5834_v20 = vadd.f32 %v5833_v18, %v5832_v16  ;;  %v5835_v21 = vpop.f32.mrb[14].mxu0  ;;  %v5854_v22 = vpop.f32.mrb[12].mxu1  ;;  %6135 = vmatpush3.bf16.msra.mxu0 %v6661_v12  ;;  %v6698_v12 = vld [vmem:[%s8308_s1 + $0xbf0] sm:$0xff]  }
 0x158   :  { %v5836_v26 = vpop.f32.mrb[15].mxu0  ;;  %v5855_v27 = vpop.f32.mrb[13].mxu1  ;;  %6136 = vmatprep.subr.bf16.mxu0 %v6664_v15  ;;  %v6699_v16 = vld [vmem:[%s8308_s1 + $0xbb0] sm:$0xff]  }
 0x159   :  { %v4331_v30 = vadd.f32 %v5834_v20, %v7856_v51  ;;  %v5856_v31 = vadd.f32 %v5855_v27, %v5854_v22  ;;  %6157 = vmatpush3.bf16.msra.mxu1 %v6663_v14  ;;  %v5857_v32 = vpop.f32.mrb[14].mxu1  ;;  %v6676_v51 = vld [vmem:[%s8308_s1 + $0xb48] sm:$0xff]   ;;  %v6703_v27 = vld [vmem:[%s8308_s1 + $0xbb8] sm:$0xff]  }
 0x15a   :  { %v5858_v34 = vpop.f32.mrb[15].mxu1  ;;  %6158 = vmatprep.subr.bf16.mxu1 %v6666_v19  ;;  %v6708_v32 = vld [vmem:[%s8308_s1 + $0xc80] sm:$0xff]  }
 0x15b   :  { %v7964_v38 = vadd.f32 %v5856_v31, %v4331_v30  ;;  %6137 = vmatpush3.bf16.msra.mxu0 %v6665_v17  ;;  %v6700_v17 = vld [vmem:[%s8308_s1 + $0xb78] sm:$0xff]   ;;  %v6706_v30 = vld [vmem:[%s8308_s1 + $0xc00] sm:$0xff]   ;;  %v6709_v34 = vld [vmem:[%s8308_s1 + $0xc48] sm:$0xff]  }
 0x15c   :  { %6138 = vmatprep.subr.bf16.mxu0 %v6668_v24  ;;  %v6707_v31 = vld [vmem:[%s8308_s1 + $0xcc0] sm:$0xff]  }
 0x15d   :  { %6159 = vmatpush3.bf16.msra.mxu1 %v6667_v23  ;;  %v6701_v23 = vld [vmem:[%s8308_s1 + $0xb38] sm:$0xff]  }
 0x15e   :  { %6160 = vmatprep.subr.bf16.mxu1 %v6670_v35  ;;  %v6710_v35 = vld [vmem:[%s8308_s1 + $0xc08] sm:$0xff]  }
 0x15f   :  { %6139 = vmatpush3.bf16.msra.mxu0 %v6669_v33  ;;  %v1230_v33 = vcombine.high %v1214_v28, %v1214_v28 }
 0x160   :  { %6168 = vmatprep.subr.bf16.mxu0 %v6672_v43  ;;  %v6717_v43 = vld [vmem:[%s8308_s1 + $0xc58] sm:$0xff]  }
 0x161   :  { %6161 = vmatpush3.bf16.msra.mxu1 %v6671_v39  ;;  %v6714_v39 = vld [vmem:[%s8308_s1 + $0xc10] sm:$0xff]  }
 0x162   :  { %4889 = vmatmul.mubr.bf16.vlgmr.msra.gmra.mrb[40].mxu0 %v1207_v42  ;;  %6190 = vmatprep.subr.bf16.mxu1 %v6674_v47  ;;  %v6716_v42 = vld [vmem:[%s8308_s1 + $0xc90] sm:$0xff]   ;;  %v6721_v47 = vld [vmem:[%s8308_s1 + $0xc60] sm:$0xff]  }
 0x163   :  { %6169 = vmatpush3.bf16.msra.mxu0 %v6673_v45  ;;  %4968 = vmatprep.mubr.bf16.mxu0 %v1228_v48  ;;  %v6719_v45 = vld [vmem:[%s8308_s1 + $0xcd8] sm:$0xff]   ;;  %v6722_v48 = vld [vmem:[%s8308_s1 + $0xc20] sm:$0xff]  }
 0x164   :  { %4929 = vmatmul.mubr.bf16.vlgmr.msra.gmra.mrb[40].mxu1 %v1229_v50  ;;  %6170 = vmatprep.subr.bf16.mxu0 %v6676_v51  ;;  %v6724_v50 = vld [vmem:[%s8308_s1 + $0xca0] sm:$0xff]   ;;  %v6725_v51 = vld [vmem:[%s8308_s1 + $0xc68] sm:$0xff]  }
 0x165   :  { %6191 = vmatpush3.bf16.msra.mxu1 %v6675_v49  ;;  %5008 = vmatprep.mubr.bf16.mxu1 %v1232_v53  ;;  %v6723_v49 = vld [vmem:[%s8308_s1 + $0xce0] sm:$0xff]   ;;  %v6727_v53 = vld [vmem:[%s8308_s1 + $0xce8] sm:$0xff]  }
 0x166   :  { %6192 = vmatprep.subr.bf16.mxu1 %v6678_v54  ;;  %v6728_v54 = vld [vmem:[%s8308_s1 + $0xca8] sm:$0xff]  }
 0x167   :  { %6171 = vmatpush3.bf16.msra.mxu0 %v6677_v52  ;;  %v6726_v52 = vld [vmem:[%s8308_s1 + $0xc28] sm:$0xff]  }
 0x168   :  { %6172 = vmatprep.subr.bf16.mxu0 %v6680_v56 }
 0x169   :  { %6193 = vmatpush3.bf16.msra.mxu1 %v6679_v55  ;;  %v6729_v55 = vld [vmem:[%s8308_s1 + $0xc70] sm:$0xff]  }
 0x16a   :  { %6194 = vmatprep.subr.bf16.mxu1 %v6682_v58 }
 0x16b   :  { %6173 = vmatpush3.bf16.msra.mxu0 %v6681_v57  ;;  %v6730_v57 = vld [vmem:[%s8308_s1 + $0xc30] sm:$0xff]  }
 0x16c   :  { %6174 = vmatprep.subr.bf16.mxu0 %v6684_v60 }
 0x16d   :  { %6195 = vmatpush3.bf16.msra.mxu1 %v6683_v59  ;;  %v6731_v59 = vld [vmem:[%s8308_s1 + $0xcf0] sm:$0xff]  }
 0x16e   :  { %6196 = vmatprep.subr.bf16.mxu1 %v6686_v62 }
 0x16f   :  { %6175 = vmatpush3.bf16.msra.mxu0 %v6685_v61 }
 0x170   :  { %6176 = vmatprep.subr.bf16.mxu0 %v6688_v0 }
 0x171   :  { %6197 = vmatpush3.bf16.msra.mxu1 %v6687_v63 }
 0x172   :  { %6198 = vmatprep.subr.bf16.mxu1 %v6690_v2  ;;  %v22_v2 = vld [vmem:[%s8307_s0 + $0x30] sm:$0xff] }
 0x173   :  { %6177 = vmatpush3.bf16.msra.mxu0 %v6689_v1  ;;  %v6733_v1 = vld [vmem:[%s8308_s1 + $0xc78] sm:$0xff]  }
 0x174   :  { %6178 = vmatprep.subr.bf16.mxu0 %v6692_v4 }
 0x175   :  { %6199 = vmatpush3.bf16.msra.mxu1 %v6691_v3  ;;  %v5876_v9 = vpop.f32.mrb[16].mxu0 }
 0x176   :  { %v5877_v11 = vpop.f32.mrb[17].mxu0  ;;  %6200 = vmatprep.subr.bf16.mxu1 %v6694_v6  ;;  %v6732_v6 = vld [vmem:[%s8308_s1 + $0xcb0] sm:$0xff]  }
 0x177   :  { %v5878_v13 = vadd.f32 %v5877_v11, %v5876_v9  ;;  %v5879_v14 = vpop.f32.mrb[18].mxu0  ;;  %v5898_v15 = vpop.f32.mrb[16].mxu1  ;;  %6179 = vmatpush3.bf16.msra.mxu0 %v6693_v5 }
 0x178   :  { %v5880_v18 = vpop.f32.mrb[19].mxu0  ;;  %v5899_v19 = vpop.f32.mrb[17].mxu1  ;;  %6180 = vmatprep.subr.bf16.mxu0 %v6696_v8  ;;  %v1233_v8 = vcombine.high %v22_v2, %v22_v2 }
 0x179   :  { %v4411_v20 = vadd.f32 %v5878_v13, %v7964_v38  ;;  %v5900_v21 = vadd.f32 %v5899_v19, %v5898_v15  ;;  %6201 = vmatpush3.bf16.msra.mxu1 %v6695_v7  ;;  %v5901_v22 = vpop.f32.mrb[18].mxu1  ;;  %v6713_v38 = vld [vmem:[%s8308_s1 + $0xc50] sm:$0xff]   ;;  %v1240_v7 = vrot.slane %v22_v2, %v6925_v41  ;;  %v6766_v2 = vld [vmem:[%s8308_s1 + $0xd38] sm:$0xff]  }
 0x17a   :  { %v5902_v24 = vpop.f32.mrb[19].mxu1  ;;  %6202 = vmatprep.subr.bf16.mxu1 %v6698_v12  ;;  %v6734_v12 = vld [vmem:[%s8308_s1 + $0xc38] sm:$0xff]   ;;  %v8176_v14 = vrot.slane %v1233_v8, %v6925_v41  ;;  %v6738_v22 = vld [vmem:[%s8308_s1 + $0xd00] sm:$0xff]  }
 0x17b   :  { %v8068_v26 = vadd.f32 %v5900_v21, %v4411_v20  ;;  %6181 = vmatpush3.bf16.msra.mxu0 %v6697_v10  ;;  %v6735_v10 = vld [vmem:[%s8308_s1 + $0xcf8] sm:$0xff]   ;;  %v1248_v13 = vcombine.high %v1240_v7, %v1240_v7  ;;  %v1256_v15 = vrot.slane %v1240_v7, %v6925_v41  ;;  %v6739_v20 = vld [vmem:[%s8308_s1 + $0xdc0] sm:$0xff]  }
 0x17c   :  { %6182 = vmatprep.subr.bf16.mxu0 %v6700_v17  ;;  %v6736_v17 = vld [vmem:[%s8308_s1 + $0xcb8] sm:$0xff]   ;;  %v1249_v19 = vcombine.high %v8176_v14, %v8176_v14 }
 0x17d   :  { %6203 = vmatpush3.bf16.msra.mxu1 %v6699_v16  ;;  %v6737_v16 = vld [vmem:[%s8308_s1 + $0xd40] sm:$0xff]   ;;  %v1270_v18 = vrot.slane %v1248_v13, %v6925_v41  ;;  %v1278_v24 = vcombine.high %v1256_v15, %v1256_v15 }
 0x17e   :  { %6204 = vmatprep.subr.bf16.mxu1 %v6702_v25  ;;  %v6741_v25 = vld [vmem:[%s8308_s1 + $0xd48] sm:$0xff]  }
 0x17f   :  { %6183 = vmatpush3.bf16.msra.mxu0 %v6701_v23  ;;  %v1280_v21 = vcombine.high %v1270_v18, %v1270_v18  ;;  %v1277_v23 = vrot.slane %v1249_v19, %v6925_v41 }
 0x180   :  { %6212 = vmatprep.subr.bf16.mxu0 %v6705_v29  ;;  %v6742_v29 = vld [vmem:[%s8308_s1 + $0xd08] sm:$0xff]  }
 0x181   :  { %6205 = vmatpush3.bf16.msra.mxu1 %v6703_v27  ;;  %v1281_v27 = vcombine.high %v1277_v23, %v1277_v23 }
 0x182   :  { %4969 = vmatmul.mubr.bf16.vlgmr.msra.gmra.mrb[44].mxu0 %v1214_v28  ;;  %6234 = vmatprep.subr.bf16.mxu1 %v6707_v31  ;;  %v6743_v28 = vld [vmem:[%s8308_s1 + $0xdc8] sm:$0xff]  }
 0x183   :  { %6213 = vmatpush3.bf16.msra.mxu0 %v6706_v30  ;;  %5048 = vmatprep.mubr.bf16.mxu0 %v1270_v18  ;;  %v6745_v30 = vld [vmem:[%s8308_s1 + $0xd50] sm:$0xff]   ;;  %v6744_v31 = vld [vmem:[%s8308_s1 + $0xd88] sm:$0xff]  }
 0x184   :  { %5009 = vmatmul.mubr.bf16.vlgmr.msra.gmra.mrb[44].mxu1 %v1230_v33  ;;  %6214 = vmatprep.subr.bf16.mxu0 %v6709_v34  ;;  %v6746_v33 = vld [vmem:[%s8308_s1 + $0xd10] sm:$0xff]   ;;  %v6749_v34 = vld [vmem:[%s8308_s1 + $0xd58] sm:$0xff]  }
 0x185   :  { %6235 = vmatpush3.bf16.msra.mxu1 %v6708_v32  ;;  %5088 = vmatprep.mubr.bf16.mxu1 %v1280_v21  ;;  %v6747_v32 = vld [vmem:[%s8308_s1 + $0xdd0] sm:$0xff]  }
 0x186   :  { %6236 = vmatprep.subr.bf16.mxu1 %v6711_v36  ;;  %v6751_v36 = vld [vmem:[%s8308_s1 + $0xdd8] sm:$0xff]  }
 0x187   :  { %6215 = vmatpush3.bf16.msra.mxu0 %v6710_v35  ;;  %v6748_v35 = vld [vmem:[%s8308_s1 + $0xd90] sm:$0xff]  }
 0x188   :  { %6216 = vmatprep.subr.bf16.mxu0 %v6713_v38  ;;  %v6753_v38 = vld [vmem:[%s8308_s1 + $0xd60] sm:$0xff]  }
 0x189   :  { %6237 = vmatpush3.bf16.msra.mxu1 %v6712_v37  ;;  %v6750_v37 = vld [vmem:[%s8308_s1 + $0xd18] sm:$0xff]  }
 0x18a   :  { %6238 = vmatprep.subr.bf16.mxu1 %v6715_v40  ;;  %v6755_v40 = vld [vmem:[%s8308_s1 + $0xde0] sm:$0xff]  }
 0x18b   :  { %6217 = vmatpush3.bf16.msra.mxu0 %v6714_v39  ;;  %v6752_v39 = vld [vmem:[%s8308_s1 + $0xd98] sm:$0xff]  }
 0x18c   :  { %6218 = vmatprep.subr.bf16.mxu0 %v6717_v43  ;;  %v6757_v43 = vld [vmem:[%s8308_s1 + $0xd68] sm:$0xff]  }
 0x18d   :  { %6239 = vmatpush3.bf16.msra.mxu1 %v6716_v42  ;;  %v6754_v42 = vld [vmem:[%s8308_s1 + $0xd20] sm:$0xff]  }
 0x18e   :  { %6240 = vmatprep.subr.bf16.mxu1 %v6719_v45  ;;  %v6759_v45 = vld [vmem:[%s8308_s1 + $0xde8] sm:$0xff]  }
 0x18f   :  { %6219 = vmatpush3.bf16.msra.mxu0 %v6718_v44  ;;  %v6756_v44 = vld [vmem:[%s8308_s1 + $0xda0] sm:$0xff]  }
 0x190   :  { %6220 = vmatprep.subr.bf16.mxu0 %v6721_v47  ;;  %v6761_v47 = vld [vmem:[%s8308_s1 + $0xd70] sm:$0xff]  }
 0x191   :  { %6241 = vmatpush3.bf16.msra.mxu1 %v6720_v46  ;;  %v6758_v46 = vld [vmem:[%s8308_s1 + $0xd28] sm:$0xff]  }
 0x192   :  { %6242 = vmatprep.subr.bf16.mxu1 %v6723_v49  ;;  %v6760_v49 = vld [vmem:[%s8308_s1 + $0xda8] sm:$0xff]  }
 0x193   :  { %6221 = vmatpush3.bf16.msra.mxu0 %v6722_v48 }
 0x194   :  { %6222 = vmatprep.subr.bf16.mxu0 %v6725_v51  ;;  %v6763_v51 = vld [vmem:[%s8308_s1 + $0xdf0] sm:$0xff]  }
 0x195   :  { %6243 = vmatpush3.bf16.msra.mxu1 %v6724_v50  ;;  %v5920_v56 = vpop.f32.mrb[20].mxu0 }
 0x196   :  { %v5921_v58 = vpop.f32.mrb[21].mxu0  ;;  %6244 = vmatprep.subr.bf16.mxu1 %v6727_v53 }
 0x197   :  { %v5922_v60 = vadd.f32 %v5921_v58, %v5920_v56  ;;  %v5923_v61 = vpop.f32.mrb[22].mxu0  ;;  %v5942_v62 = vpop.f32.mrb[20].mxu1  ;;  %6223 = vmatpush3.bf16.msra.mxu0 %v6726_v52  ;;  %v6765_v56 = vld [vmem:[%s8308_s1 + $0xd78] sm:$0xff]  }
 0x198   :  { %v5924_v63 = vpop.f32.mrb[23].mxu0  ;;  %v5943_v0 = vpop.f32.mrb[21].mxu1  ;;  %6224 = vmatprep.subr.bf16.mxu0 %v6729_v55  ;;  %v6762_v55 = vld [vmem:[%s8308_s1 + $0xd30] sm:$0xff]  }
 0x199   :  { %v4491_v3 = vadd.f32 %v5922_v60, %v8068_v26  ;;  %v5944_v4 = vadd.f32 %v5943_v0, %v5942_v62  ;;  %6245 = vmatpush3.bf16.msra.mxu1 %v6728_v54  ;;  %v5945_v5 = vpop.f32.mrb[22].mxu1  ;;  %v6740_v26 = vld [vmem:[%s8308_s1 + $0xd80] sm:$0xff]   ;;  %v6764_v62 = vld [vmem:[%s8308_s1 + $0xdb0] sm:$0xff]   ;;  %v6767_v0 = vld [vmem:[%s8308_s1 + $0xdf8] sm:$0xff]  }
 0x19a   :  { %v5946_v9 = vpop.f32.mrb[23].mxu1  ;;  %6246 = vmatprep.subr.bf16.mxu1 %v6731_v59 }
 0x19b   :  { %v8170_v11 = vadd.f32 %v5944_v4, %v4491_v3  ;;  %6225 = vmatpush3.bf16.msra.mxu0 %v6730_v57 }
 0x19c   :  { %6226 = vmatprep.subr.bf16.mxu0 %v6733_v1 }
 0x19d   :  { %6247 = vmatpush3.bf16.msra.mxu1 %v6732_v6 }
 0x19e   :  { %6248 = vmatprep.subr.bf16.mxu1 %v6735_v10 }
 0x19f   :  { %6227 = vmatpush3.bf16.msra.mxu0 %v6734_v12 }
 0x1a0   :  { %6256 = vmatprep.subr.bf16.mxu0 %v6737_v16 }
 0x1a1   :  { %6249 = vmatpush3.bf16.msra.mxu1 %v6736_v17 }
 0x1a2   :  { %5049 = vmatmul.mubr.bf16.vlgmr.msra.gmra.mrb[48].mxu0 %v1256_v15  ;;  %6278 = vmatprep.subr.bf16.mxu1 %v6739_v20 }
 0x1a3   :  { %6257 = vmatpush3.bf16.msra.mxu0 %v6738_v22  ;;  %5128 = vmatprep.mubr.bf16.mxu0 %v1277_v23 }
 0x1a4   :  { %5089 = vmatmul.mubr.bf16.vlgmr.msra.gmra.mrb[48].mxu1 %v1278_v24  ;;  %6258 = vmatprep.subr.bf16.mxu0 %v6741_v25 }
 0x1a5   :  { %6279 = vmatpush3.bf16.msra.mxu1 %v6740_v26  ;;  %5168 = vmatprep.mubr.bf16.mxu1 %v1281_v27 }
 0x1a6   :  { %6280 = vmatprep.subr.bf16.mxu1 %v6743_v28 }
 0x1a7   :  { %6259 = vmatpush3.bf16.msra.mxu0 %v6742_v29 }
 0x1a8   :  { %6260 = vmatprep.subr.bf16.mxu0 %v6745_v30 }
 0x1a9   :  { %6281 = vmatpush3.bf16.msra.mxu1 %v6744_v31 }
 0x1aa   :  { %6282 = vmatprep.subr.bf16.mxu1 %v6747_v32 }
 0x1ab   :  { %6261 = vmatpush3.bf16.msra.mxu0 %v6746_v33 }
 0x1ac   :  { %6262 = vmatprep.subr.bf16.mxu0 %v6749_v34 }
 0x1ad   :  { %6283 = vmatpush3.bf16.msra.mxu1 %v6748_v35 }
 0x1ae   :  { %6284 = vmatprep.subr.bf16.mxu1 %v6751_v36 }
 0x1af   :  { %6263 = vmatpush3.bf16.msra.mxu0 %v6750_v37 }
 0x1b0   :  { %6264 = vmatprep.subr.bf16.mxu0 %v6753_v38 }
 0x1b1   :  { %6285 = vmatpush3.bf16.msra.mxu1 %v6752_v39 }
 0x1b2   :  { %6286 = vmatprep.subr.bf16.mxu1 %v6755_v40 }
 0x1b3   :  { %6265 = vmatpush3.bf16.msra.mxu0 %v6754_v42 }
 0x1b4   :  { %6266 = vmatprep.subr.bf16.mxu0 %v6757_v43 }
 0x1b5   :  { %6287 = vmatpush3.bf16.msra.mxu1 %v6756_v44  ;;  %v5964_v48 = vpop.f32.mrb[24].mxu0 }
 0x1b6   :  { %v5965_v50 = vpop.f32.mrb[25].mxu0  ;;  %6288 = vmatprep.subr.bf16.mxu1 %v6759_v45 }
 0x1b7   :  { %v5966_v52 = vadd.f32 %v5965_v50, %v5964_v48  ;;  %v5967_v53 = vpop.f32.mrb[26].mxu0  ;;  %v5986_v54 = vpop.f32.mrb[24].mxu1  ;;  %6267 = vmatpush3.bf16.msra.mxu0 %v6758_v46 }
 0x1b8   :  { %v5968_v57 = vpop.f32.mrb[27].mxu0  ;;  %v5987_v58 = vpop.f32.mrb[25].mxu1  ;;  %6268 = vmatprep.subr.bf16.mxu0 %v6761_v47 }
 0x1b9   :  { %v4571_v59 = vadd.f32 %v5966_v52, %v8170_v11  ;;  %v5988_v60 = vadd.f32 %v5987_v58, %v5986_v54  ;;  %6289 = vmatpush3.bf16.msra.mxu1 %v6760_v49  ;;  %v5989_v61 = vpop.f32.mrb[26].mxu1 }
 0x1ba   :  { %v5990_v63 = vpop.f32.mrb[27].mxu1  ;;  %6290 = vmatprep.subr.bf16.mxu1 %v6763_v51 }
 0x1bb   :  { %v4611_v1 = vadd.f32 %v5988_v60, %v4571_v59  ;;  %6269 = vmatpush3.bf16.msra.mxu0 %v6762_v55 }
 0x1bc   :  { %8 = vsyncpa [#allocation3], 0  ;;  %6270 = vmatprep.subr.bf16.mxu0 %v6765_v56  ;;  %v1263_v3 = vrot.slane %v8176_v14, %v6925_v41  ;;  %v6768_v4 = vld [vmem:[%s8308_s1 + $0xdb8] sm:$0xff]   ;;  %v6770_v5 = vld [vmem:[%s8308_s1 + $0xe00] sm:$0xff]   ;;  %v6797_v6 = vmov 0.0   ;;  %vm6798_vm0 = vmmov 0  }
 0x1bd   :  { %6291 = vmatpush3.bf16.msra.mxu1 %v6764_v62  ;;  %v6771_v8 = vld [vmem:[%s8308_s1 + $0xe08] sm:$0xff]   ;;  %v5232_v9 = vld.sshfl [vmem:[%s8307_s0 + $0x38] sm:$0x1 pattern:$0x75316420]  ;;  %vm4052_vm1 = vcmask 261120  }
 0x1be   :  { %6292 = vmatprep.subr.bf16.mxu1 %v6767_v0  ;;  %v1279_v7 = vcombine.high %v1263_v3, %v1263_v3  ;;  %v1295_v10 = vrot.slane %v5232_v9, %v6925_v41  ;;  %s6799_s0 = smov [#allocation2]  }
 0x1bf   :  { %6271 = vmatpush3.bf16.msra.mxu0 %v6766_v2  ;;  %s5223_s1 = sshll.u32 %s6799_s0, 4  ;;  %s5224_s1 = int_to_ptr.vmem [resolvable:$true] %s5223_s1 }
 0x1c0   :  { %6303 = vmatprep.subr.bf16.mxu0 %v6797_v6  ;;  %s6772_s24 = scalar_lea.vmem %s5224_s1, 32  ;;  %p6777_p1 = scmp.lt.s32.totalorder %s5224_s1, %s5224_s1 }
 0x1c1   :  { %6293 = vmatpush3.bf16.msra.mxu1 %v6768_v4  ;;  %p6773_p0 = scmp.ne.s32.totalorder %s5224_s1, %s6772_s24  ;;  %p6778_p2 = scmp.lt.s32.totalorder %s6772_s24, %s6772_s24 }
 0x1c2   :  { %5129 = vmatmul.mubr.bf16.vlgmr.msra.gmra.mrb[52].mxu0 %v1263_v3 }
 0x1c3   :  { %6304 = vmatpush3.bf16.msra.mxu0 %v6770_v5  ;;  %6307 = vmatprep.mubr.msk.bf16.mxu0 %vm6798_vm0, %v6797_v6  ;;  %p6779_p3 = por %p6778_p2, %p6777_p1 }
 0x1c4   :  { %5169 = vmatmul.mubr.bf16.vlgmr.msra.gmra.mrb[52].mxu1 %v1279_v7  ;;  %6305 = vmatprep.subr.bf16.mxu0 %v6797_v6 }
 0x1c5   :  { %p6780_p4 = pnand %p6779_p3, %p6773_p0 }
 0x1c7   :  { %6306 = vmatpush3.bf16.msra.mxu0 %v6771_v8 }
 0x1ca   :  { %6308 = vmatmul.mubr.msk.bf16.vlgmr.msra.gmra.mrb[56].mxu0 %vm4052_vm1, %v1295_v10 }
 0x1d5   :  { %v6008_v11 = vpop.f32.mrb[28].mxu0 }
 0x1d6   :  { %v6009_v12 = vpop.f32.mrb[29].mxu0 }
 0x1d7   :  { %v6010_v13 = vadd.f32 %v6009_v12, %v6008_v11  ;;  %v6011_v14 = vpop.f32.mrb[30].mxu0  ;;  %v6030_v15 = vpop.f32.mrb[28].mxu1 }
 0x1d8   :  { %v6012_v16 = vpop.f32.mrb[31].mxu0  ;;  %v6031_v17 = vpop.f32.mrb[29].mxu1 }
 0x1d9   :  { %v4651_v18 = vadd.f32 %v6010_v13, %v4611_v1  ;;  %v6032_v19 = vadd.f32 %v6031_v17, %v6030_v15  ;;  %v6033_v20 = vpop.f32.mrb[30].mxu1 }
 0x1da   :  { %v6034_v21 = vpop.f32.mrb[31].mxu1 }
 0x1db   :  { %v4691_v22 = vadd.f32 %v6032_v19, %v4651_v18 }
 0x1f5   :  { %v6052_v23 = vpop.f32.mrb[32].mxu0 }
 0x1f6   :  { %v6053_v24 = vpop.f32.mrb[33].mxu0 }
 0x1f7   :  { %v6054_v25 = vadd.f32 %v6053_v24, %v6052_v23  ;;  %v6055_v26 = vpop.f32.mrb[34].mxu0  ;;  %v6074_v41 = vpop.f32.mrb[32].mxu1 }
 0x1f8   :  { %v6056_v27 = vpop.f32.mrb[35].mxu0  ;;  %v6075_v28 = vpop.f32.mrb[33].mxu1 }
 0x1f9   :  { %v4731_v29 = vadd.f32 %v6054_v25, %v4691_v22  ;;  %v6076_v30 = vadd.f32 %v6075_v28, %v6074_v41  ;;  %v6077_v31 = vpop.f32.mrb[34].mxu1 }
 0x1fa   :  { %v6078_v32 = vpop.f32.mrb[35].mxu1 }
 0x1fb   :  { %v4771_v33 = vadd.f32 %v6076_v30, %v4731_v29 }
 0x215   :  { %v6096_v34 = vpop.f32.mrb[36].mxu0 }
 0x216   :  { %v6097_v35 = vpop.f32.mrb[37].mxu0 }
 0x217   :  { %v6098_v36 = vadd.f32 %v6097_v35, %v6096_v34  ;;  %v6099_v37 = vpop.f32.mrb[38].mxu0  ;;  %v6118_v38 = vpop.f32.mrb[36].mxu1 }
 0x218   :  { %v6100_v39 = vpop.f32.mrb[39].mxu0  ;;  %v6119_v40 = vpop.f32.mrb[37].mxu1 }
 0x219   :  { %v4811_v42 = vadd.f32 %v6098_v36, %v4771_v33  ;;  %v6120_v43 = vadd.f32 %v6119_v40, %v6118_v38  ;;  %v6121_v44 = vpop.f32.mrb[38].mxu1 }
 0x21a   :  { %v6122_v45 = vpop.f32.mrb[39].mxu1 }
 0x21b   :  { %v4851_v46 = vadd.f32 %v6120_v43, %v4811_v42 }
 0x235   :  { %v6140_v47 = vpop.f32.mrb[40].mxu0 }
 0x236   :  { %v6141_v48 = vpop.f32.mrb[41].mxu0 }
 0x237   :  { %v6142_v49 = vadd.f32 %v6141_v48, %v6140_v47  ;;  %v6143_v50 = vpop.f32.mrb[42].mxu0  ;;  %v6162_v51 = vpop.f32.mrb[40].mxu1 }
 0x238   :  { %v6144_v52 = vpop.f32.mrb[43].mxu0  ;;  %v6163_v53 = vpop.f32.mrb[41].mxu1 }
 0x239   :  { %v4891_v54 = vadd.f32 %v6142_v49, %v4851_v46  ;;  %v6164_v55 = vadd.f32 %v6163_v53, %v6162_v51  ;;  %v6165_v56 = vpop.f32.mrb[42].mxu1 }
 0x23a   :  { %v6166_v57 = vpop.f32.mrb[43].mxu1 }
 0x23b   :  { %v4931_v58 = vadd.f32 %v6164_v55, %v4891_v54 }
 0x255   :  { %v6184_v59 = vpop.f32.mrb[44].mxu0 }
 0x256   :  { %v6185_v60 = vpop.f32.mrb[45].mxu0 }
 0x257   :  { %v6186_v61 = vadd.f32 %v6185_v60, %v6184_v59  ;;  %v6187_v62 = vpop.f32.mrb[46].mxu0  ;;  %v6206_v63 = vpop.f32.mrb[44].mxu1 }
 0x258   :  { %v6188_v0 = vpop.f32.mrb[47].mxu0  ;;  %v6207_v1 = vpop.f32.mrb[45].mxu1 }
 0x259   :  { %v4971_v2 = vadd.f32 %v6186_v61, %v4931_v58  ;;  %v6208_v3 = vadd.f32 %v6207_v1, %v6206_v63  ;;  %v6209_v4 = vpop.f32.mrb[46].mxu1 }
 0x25a   :  { %v6210_v5 = vpop.f32.mrb[47].mxu1 }
 0x25b   :  { %v5011_v6 = vadd.f32 %v6208_v3, %v4971_v2 }
 0x275   :  { %v6228_v7 = vpop.f32.mrb[48].mxu0 }
 0x276   :  { %v6229_v8 = vpop.f32.mrb[49].mxu0 }
 0x277   :  { %v6230_v9 = vadd.f32 %v6229_v8, %v6228_v7  ;;  %v6231_v10 = vpop.f32.mrb[50].mxu0  ;;  %v6250_v11 = vpop.f32.mrb[48].mxu1 }
 0x278   :  { %v6232_v12 = vpop.f32.mrb[51].mxu0  ;;  %v6251_v13 = vpop.f32.mrb[49].mxu1 }
 0x279   :  { %v5051_v14 = vadd.f32 %v6230_v9, %v5011_v6  ;;  %v6252_v15 = vadd.f32 %v6251_v13, %v6250_v11  ;;  %v6253_v16 = vpop.f32.mrb[50].mxu1 }
 0x27a   :  { %v6254_v17 = vpop.f32.mrb[51].mxu1 }
 0x27b   :  { %v5091_v18 = vadd.f32 %v6252_v15, %v5051_v14 }
 0x295   :  { %v6272_v19 = vpop.f32.mrb[52].mxu0 }
 0x296   :  { %v6273_v20 = vpop.f32.mrb[53].mxu0 }
 0x297   :  { %v6274_v21 = vadd.f32 %v6273_v20, %v6272_v19  ;;  %v6294_v22 = vpop.f32.mrb[52].mxu1  ;;  %v6275_v23 = vpop.f32.mrb[54].mxu0 }
 0x298   :  { %v6295_v24 = vpop.f32.mrb[53].mxu1  ;;  %v6276_v25 = vpop.f32.mrb[55].mxu0 }
 0x299   :  { %v5131_v26 = vadd.f32 %v6274_v21, %v5091_v18  ;;  %v6296_v41 = vadd.f32 %v6295_v24, %v6294_v22  ;;  %v6297_v27 = vpop.f32.mrb[54].mxu1 }
 0x29a   :  { %v6298_v28 = vpop.f32.mrb[55].mxu1 }
 0x29b   :  { %v5171_v29 = vadd.f32 %v6296_v41, %v5131_v26 }
 0x29d   :  { %v5210_v30 = vpop.f32.mrb[56].mxu0 }
 0x29e   :  { %v5211_v31 = vadd.f32 %v5210_v30, %v5171_v29  ;;  %v6309_v32 = vpop.f32.mrb[57].mxu0 }
 0x29f   :  { %v5213_v33 = vpop.f32.mrb[58].mxu0 }
 0x2a0   :  { %5216 = vst [vmem:[#allocation2] sm:$0x3] %v5211_v31  ;;  %v6310_v34 = vpop.f32.mrb[59].mxu0 }
 0x2a1   :  { %6783 = shalt.err (!%p6780_p4)
}
 0x2a2   :  { %s6784_s27 = scalar_lea.hbm %s8310_s3, 32 }
 0x2a3   :  { %p6785_p5 = scmp.ne.s32.totalorder %s8310_s3, %s6784_s27  ;;  %p6788_p6 = scmp.lt.u32.totalorder %s6784_s27, %s8310_s3 }
 0x2a5   :  { %p6790_p7 = pnand %p6788_p6, %p6785_p5 }
 0x2a7   :  { %6793 = shalt.err (!%p6790_p7)
}
 0x2a8   :  { %5226 = dma.vmem_to_hbm [thread:$0]  %s5224_s1, 32, %s8310_s3, [#allocation3]  }
 0x2a9   :  { %6794 = dma.done.wait [#allocation3], 32  }
 0x2aa   :  { %6795 = vsyncadd [#allocation3], 4294967264 }
 0x2ab   :  { %5230 = vsyncpa [#allocation3], 1 }

</bundles_post_ra>
